<compile_context>
chip_gen: v7x
topology: tpu7x:2x2x1
jax: 0.10.0
libtpu: 0.0.40
codegen_flags: <defaults>
</compile_context>

<pallas_src>
import jax
import jax.numpy as jnp
from jax import lax
from jax.experimental import pallas as pl
from jax.experimental.pallas import tpu as pltpu


def _round_up(n, m):
    return ((n + m - 1) // m) * m


# ----------------------------------------------------------------------------
# Fused bidirectional LSTM layer kernel (single invocation, no grid).
# Gate order inside the kernel is [i | f | o | g] per direction (PyTorch's
# nn.LSTM order [i, f, g, o] is permuted at weight-packing time) so the three
# sigmoids run as one contiguous (B, 3*Hp) EUP op.
# ----------------------------------------------------------------------------
def _make_bilstm_kernel(T, B, Hp, chunk_rows):
    H3 = 3 * Hp
    H4 = 4 * Hp
    H8 = 8 * Hp
    N = T * B
    n_chunks = N // chunk_rows            # chunk_rows divides N by construction

    # partial unroll of the serial recurrence (full for short sequences)
    if T <= 32:
        unroll = T
    elif T % 8 == 0:
        unroll = 8
    elif T % 4 == 0:
        unroll = 4
    elif T % 2 == 0:
        unroll = 2
    else:
        unroll = 1

    def kernel(len_ref, x_ref, wih_ref, whh_f_ref, whh_b_ref, b_ref,
               out_ref, gx_sc, hf_sc, hb_sc, cf_sc, cb_sc):
        # len_ref   : (B, 1)        int32  sentence lengths (padded rows = 0)
        # x_ref     : (T*B, Din)    bf16   time-major flattened input
        # wih_ref   : (Din, 8*Hp)   bf16   [W_ih_fwd^T | W_ih_bwd^T], [i|f|o|g]
        # whh_*_ref : (Hp, 4*Hp)    bf16   per-direction W_hh^T, [i|f|o|g]
        # b_ref     : (1, 8*Hp)     f32    [b_fwd | b_bwd] (b_ih + b_hh)
        # out_ref   : (T*B, 2*Hp)   bf16   [h_fwd | h_bwd]
        # gx_sc     : (T*B, 8*Hp)   bf16   hoisted input-projection gates
        # h*/c*_sc  : (B, Hp)       f32    per-direction recurrent state

        # ---- hoisted input projection: chunked MXU matmul, stored bf16 -----
        def proj_chunk(r0):
            gx = jnp.dot(x_ref[pl.ds(r0, chunk_rows), :], wih_ref[...],
                         preferred_element_type=jnp.float32)
            gx_sc[pl.ds(r0, chunk_rows), :] = (gx + b_ref[...]).astype(jnp.bfloat16)

        if n_chunks == 1:
            proj_chunk(0)
        else:
            def proj_step(ci, carry):
                proj_chunk(pl.multiple_of(ci * chunk_rows, chunk_rows))
                return carry
            lax.fori_loop(0, n_chunks, proj_step, 0)

        # ---- fused fwd/bwd recurrence over the VMEM-resident gate buffer ----
        hf_sc[...] = jnp.zeros_like(hf_sc)
        hb_sc[...] = jnp.zeros_like(hb_sc)
        cf_sc[...] = jnp.zeros_like(cf_sc)
        cb_sc[...] = jnp.zeros_like(cb_sc)
        lens = len_ref[...]                                  # (B, 1) int32

        def cell(g, c_prev):
            # g: (B, 4*Hp) f32 pre-activations, gate order [i | f | o | g]
            sig = jax.nn.sigmoid(g[:, 0:H3])                 # one EUP pass
            g_g = jnp.tanh(g[:, H3:H4])
            i_g = sig[:, 0:Hp]
            f_g = sig[:, Hp:2 * Hp]
            o_g = sig[:, 2 * Hp:H3]
            c_new = f_g * c_prev + i_g * g_g
            h_new = o_g * jnp.tanh(c_new)
            return h_new, c_new

        def step(t, carry):
            del carry
            tb = T - 1 - t                                   # backward time idx
            row_f = pl.multiple_of(t * B, B)                 # B is a mult of 16
            row_b = pl.multiple_of(tb * B, B)

            # per-direction recurrent matmuls (half the weight-tile traffic of
            # a block-diagonal (B,2Hp)@(2Hp,8Hp) matmul at tiny M)
            gh_f = jnp.dot(hf_sc[...].astype(jnp.bfloat16), whh_f_ref[...],
                           preferred_element_type=jnp.float32)
            gh_b = jnp.dot(hb_sc[...].astype(jnp.bfloat16), whh_b_ref[...],
                           preferred_element_type=jnp.float32)

            g_f = gx_sc[pl.ds(row_f, B), 0:H4].astype(jnp.float32) + gh_f
            g_b = gx_sc[pl.ds(row_b, B), H4:H8].astype(jnp.float32) + gh_b

            h_f, c_f = cell(g_f, cf_sc[...])
            h_b, c_b = cell(g_b, cb_sc[...])

            # packed-sequence semantics: steps at/after sentence_length produce
            # zero output and the recurrent state stays exactly zero (so the
            # backward direction effectively starts at t = len-1, zero init).
            valid_f = t < lens                               # (B, 1) bool
            valid_b = tb < lens
            h_f = jnp.where(valid_f, h_f, 0.0)
            c_f = jnp.where(valid_f, c_f, 0.0)
            h_b = jnp.where(valid_b, h_b, 0.0)
            c_b = jnp.where(valid_b, c_b, 0.0)

            hf_sc[...] = h_f
            cf_sc[...] = c_f
            hb_sc[...] = h_b
            cb_sc[...] = c_b

            out_ref[pl.ds(row_f, B), 0:Hp] = h_f.astype(out_ref.dtype)
            out_ref[pl.ds(row_b, B), Hp:2 * Hp] = h_b.astype(out_ref.dtype)
            return 0

        lax.fori_loop(0, T, step, 0, unroll=unroll)

    return kernel


def bilstm_layer(x_flat, lengths, wih, whh_f, whh_b, bias, *, T, B, Hp):
    """One fused bidirectional LSTM layer.

    x_flat:  (T*B, Din) bf16 time-major flattened input
    lengths: (B, 1) int32
    wih:     (Din, 8*Hp) bf16   whh_f / whh_b: (Hp, 4*Hp) bf16
    bias:    (1, 8*Hp) f32
    returns: (T*B, 2*Hp) bf16  ([h_fwd | h_bwd])
    """
    N = T * B
    assert x_flat.shape[0] == N

    # chunk the hoisted projection over timesteps (bounds its f32 intermediate)
    t_chunk = 1
    for d in range(1, T + 1):
        if T % d == 0 and d * B <= 2048:
            t_chunk = d
    chunk_rows = t_chunk * B

    def _bytes(a):
        return a.size * a.dtype.itemsize

    footprint = (_bytes(x_flat) + _bytes(lengths) + _bytes(wih) + _bytes(whh_f)
                 + _bytes(whh_b) + _bytes(bias)
                 + N * 2 * Hp * 2            # bf16 layer output
                 + N * 8 * Hp * 2            # bf16 gx scratch
                 + 4 * B * Hp * 4            # f32 h/c states
                 + chunk_rows * 8 * Hp * 4)  # f32 projection intermediate
    vmem_limit = max(32 << 20, min(int(footprint * 1.3) + (4 << 20), 100 << 20))
    # TODO(synk): if footprint exceeds ~48 MiB (v7x usable VMEM), stream gx from
    #             HBM in time chunks (emit_pipeline) instead of holding it here.

    vmem = pltpu.MemorySpace.VMEM
    kernel = _make_bilstm_kernel(T, B, Hp, chunk_rows)
    return pl.pallas_call(
        kernel,
        out_shape=jax.ShapeDtypeStruct((N, 2 * Hp), jnp.bfloat16),
        in_specs=[pl.BlockSpec(memory_space=vmem)] * 6,
        out_specs=pl.BlockSpec(memory_space=vmem),
        scratch_shapes=[
            pltpu.VMEM((N, 8 * Hp), jnp.bfloat16),   # hoisted x-projection gates
            pltpu.VMEM((B, Hp), jnp.float32),        # h fwd
            pltpu.VMEM((B, Hp), jnp.float32),        # h bwd
            pltpu.VMEM((B, Hp), jnp.float32),        # c fwd
            pltpu.VMEM((B, Hp), jnp.float32),        # c bwd
        ],
        compiler_params=pltpu.CompilerParams(vmem_limit_bytes=vmem_limit),
    )(lengths, x_flat, wih, whh_f, whh_b, bias)


# ----------------------------------------------------------------------------
# tanh + linear projection, row-tiled, label dim padded to 128 lanes.
# ----------------------------------------------------------------------------
def _tanh_linear_kernel(x_ref, w_ref, b_ref, o_ref):
    xt = jnp.tanh(x_ref[...].astype(jnp.float32))            # f32 (v5e-safe EUP)
    o_ref[...] = (jnp.dot(xt.astype(jnp.bfloat16), w_ref[...],
                          preferred_element_type=jnp.float32)
                  + b_ref[...])


def tanh_linear(x_flat, w_bf16, b_f32):
    N, H2 = x_flat.shape
    Lp = w_bf16.shape[1]
    block_rows = N if N <= 1024 else 1024                    # multiple of 16
    return pl.pallas_call(
        _tanh_linear_kernel,
        out_shape=jax.ShapeDtypeStruct((N, Lp), jnp.float32),
        grid=(pl.cdiv(N, block_rows),),
        in_specs=[
            pl.BlockSpec((block_rows, H2), lambda i: (i, 0)),
            pl.BlockSpec((H2, Lp), lambda i: (0, 0)),
            pl.BlockSpec((1, Lp), lambda i: (0, 0)),
        ],
        out_specs=pl.BlockSpec((block_rows, Lp), lambda i: (i, 0)),
        compiler_params=pltpu.CompilerParams(
            dimension_semantics=("parallel",)),
    )(x_flat, w_bf16, b_f32)


# ----------------------------------------------------------------------------
# Full model wrapper (Joint.forward with model_bilstm=True, train=False)
# ----------------------------------------------------------------------------
class JointPallas:
    def __init__(self, *, embed_num, embed_dim, label_num, padding_id,
                 lstm_hiddens, lstm_layers, key):
        self.embed_num = embed_num
        self.embed_dim = embed_dim
        self.label_num = label_num
        self.padding_id = padding_id
        self.H = lstm_hiddens
        self.Hp = _round_up(lstm_hiddens, 128)          # lane-aligned hidden
        self.D_pad = _round_up(embed_dim, 128)          # lane-aligned embed dim
        self.layers = lstm_layers
        self.label_pad = _round_up(max(label_num, 128), 128)

        H, Hp = self.H, self.Hp
        keys = iter(jax.random.split(key, 3 + 8 * lstm_layers))
        scale = 1.0 / (H ** 0.5)

        # Permute PyTorch's [i, f, g, o] gate order to the kernel's [i, f, o, g]
        # and zero-pad H -> Hp (padded gate columns have zero weight/bias, so
        # padded hidden units stay exactly zero through the recurrence).
        ORDER = (0, 1, 3, 2)

        def pack_ih(w_ih, segments, d_in_pad):
            # w_ih: (4H, d_in) PyTorch layout -> (d_in_pad, 4*Hp)
            out = jnp.zeros((d_in_pad, 4 * Hp), jnp.float32)
            for dst_g, src_g in enumerate(ORDER):
                blk = w_ih[src_g * H:(src_g + 1) * H, :]          # (H, d_in)
                for (src0, ln, dst0) in segments:
                    out = out.at[dst0:dst0 + ln,
                                 dst_g * Hp:dst_g * Hp + H].set(
                                     blk[:, src0:src0 + ln].T)
            return out

        def pack_hh(w_hh):
            out = jnp.zeros((Hp, 4 * Hp), jnp.float32)
            for dst_g, src_g in enumerate(ORDER):
                out = out.at[:H, dst_g * Hp:dst_g * Hp + H].set(
                    w_hh[src_g * H:(src_g + 1) * H, :].T)
            return out

        def pack_bias(b):
            out = jnp.zeros((4 * Hp,), jnp.float32)
            for dst_g, src_g in enumerate(ORDER):
                out = out.at[dst_g * Hp:dst_g * Hp + H].set(
                    b[src_g * H:(src_g + 1) * H])
            return out

        # Embedding (padding row zeroed, like nn.Embedding(padding_idx=...)),
        # columns zero-padded to D_pad, stored bf16 (bf16 layer-boundary acts).
        emb = jax.random.normal(next(keys), (embed_num, embed_dim),
                                jnp.float32) * 0.1
        emb = emb.at[padding_id].set(0.0)
        emb_pad = jnp.zeros((embed_num, self.D_pad), jnp.float32)
        emb_pad = emb_pad.at[:, :embed_dim].set(emb)
        self.embed = emb_pad.astype(jnp.bfloat16)

        # Per-layer fused LSTM parameters.
        self.lstm_params = []
        for layer in range(lstm_layers):
            if layer == 0:
                d_in, d_in_pad = embed_dim, self.D_pad
                segments = [(0, embed_dim, 0)]
            else:
                d_in, d_in_pad = 2 * H, 2 * Hp
                # previous layer output: real fwd at cols [0:H], bwd at [Hp:Hp+H]
                segments = [(0, H, 0), (H, H, Hp)]

            wih_dirs, whh_dirs, bias_dirs = [], [], []
            for _d in range(2):
                w_ih = jax.random.uniform(next(keys), (4 * H, d_in),
                                          jnp.float32, -scale, scale)
                w_hh = jax.random.uniform(next(keys), (4 * H, H),
                                          jnp.float32, -scale, scale)
                b_ih = jax.random.uniform(next(keys), (4 * H,),
                                          jnp.float32, -scale, scale)
                b_hh = jax.random.uniform(next(keys), (4 * H,),
                                          jnp.float32, -scale, scale)
                wih_dirs.append(pack_ih(w_ih, segments, d_in_pad))
                whh_dirs.append(pack_hh(w_hh))
                bias_dirs.append(pack_bias(b_ih + b_hh))

            wih_cat = jnp.concatenate(wih_dirs, axis=1)           # (d_in_pad, 8Hp)
            bias_cat = jnp.concatenate(bias_dirs).reshape(1, 8 * Hp)
            self.lstm_params.append(
                (wih_cat.astype(jnp.bfloat16),
                 whh_dirs[0].astype(jnp.bfloat16),
                 whh_dirs[1].astype(jnp.bfloat16),
                 bias_cat))

        # Output linear: rows follow the padded hidden layout
        # (real fwd at [0:H], real bwd at [Hp:Hp+H]); labels padded to 128 lanes.
        w_lin = jax.random.uniform(next(keys), (label_num, 2 * H),
                                   jnp.float32, -scale, scale)
        b_lin = jax.random.uniform(next(keys), (label_num,),
                                   jnp.float32, -scale, scale)
        w_pad = jnp.zeros((2 * Hp, self.label_pad), jnp.float32)
        w_pad = w_pad.at[0:H, :label_num].set(w_lin[:, 0:H].T)
        w_pad = w_pad.at[Hp:Hp + H, :label_num].set(w_lin[:, H:2 * H].T)
        b_pad = jnp.zeros((1, self.label_pad), jnp.float32)
        b_pad = b_pad.at[0, :label_num].set(b_lin)
        self.w_lin = w_pad.astype(jnp.bfloat16)
        self.b_lin = b_pad

    def __call__(self, word, sentence_length, train=False):
        # TODO(synk): dropout_emb / dropout are identity here (eval / train=False).
        B, T = word.shape
        Hp = self.Hp
        # pad batch to a multiple of 16 sublanes (bf16 tile-aligned row slabs)
        B_pad = _round_up(max(B, 16), 16)

        lengths = jnp.zeros((B_pad, 1), jnp.int32)
        lengths = lengths.at[:B, 0].set(sentence_length.astype(jnp.int32))

        # Keep activations flat time-major (T*B_pad, .): only a tiny int
        # token-id transpose is needed, no full activation transposes.
        word_tm = jnp.transpose(word, (1, 0))                 # (T, B)
        word_tm = jnp.pad(word_tm, ((0, 0), (0, B_pad - B)),
                          constant_values=self.padding_id)    # (T, B_pad)
        x = self.embed[word_tm.reshape(T * B_pad)]            # (T*B_pad, D_pad) bf16

        for (wih, whh_f, whh_b, bias) in self.lstm_params:
            x = bilstm_layer(x, lengths, wih, whh_f, whh_b, bias,
                             T=T, B=B_pad, Hp=Hp)              # (T*B_pad, 2Hp) bf16

        logits = tanh_linear(x, self.w_lin, self.b_lin)        # (T*B_pad, Lpad) f32
        logits = logits.reshape(T, B_pad, self.label_pad)
        # slice away batch/label padding BEFORE the transpose to keep the
        # XLA transpose traffic minimal
        logits = logits[:, :B, :self.label_num]                # (T, B, L)
        return jnp.transpose(logits, (1, 0, 2))                # (B, T, L)


if __name__ == "__main__":
    # small, deterministic configuration
    B, T = 2, 8
    EMBED_NUM, EMBED_DIM = 50, 32
    LABEL_NUM = 8
    LSTM_HIDDENS, LSTM_LAYERS = 32, 2
    PADDING_ID = 0

    key = jax.random.PRNGKey(0)
    k_model, k_word = jax.random.split(key)

    model = JointPallas(embed_num=EMBED_NUM, embed_dim=EMBED_DIM,
                        label_num=LABEL_NUM, padding_id=PADDING_ID,
                        lstm_hiddens=LSTM_HIDDENS, lstm_layers=LSTM_LAYERS,
                        key=k_model)

    sentence_length = jnp.array([T, 5], dtype=jnp.int32)
    word = jax.random.randint(k_word, (B, T), 1, EMBED_NUM, dtype=jnp.int32)
    # zero out (pad) positions beyond each sentence length
    pos = jnp.arange(T)[None, :]
    word = jnp.where(pos < sentence_length[:, None], word, PADDING_ID)

    out = model(word, sentence_length, train=False)
    out = jax.block_until_ready(out)

    assert out.shape == (B, T, LABEL_NUM), out.shape
    assert bool(jnp.all(jnp.isfinite(out)))
    # packed-sequence semantics: timesteps at/after sentence_length see a zero
    # LSTM output, so their logits all equal the output bias -> identical rows.
    assert bool(jnp.allclose(out[1, 5], out[1, 7], atol=1e-5)), "pad rows differ"
    print("KERNEL_OK")
</pallas_src>

<mosaic_0001>
module attributes {stable_mosaic.version = 11 : i64} {
  func.func @kernel(%arg0: memref<16x1xi32, #tpu.memory_space<vmem>>, %arg1: memref<128x128xbf16, #tpu.memory_space<vmem>>, %arg2: memref<128x1024xbf16, #tpu.memory_space<vmem>>, %arg3: memref<128x512xbf16, #tpu.memory_space<vmem>>, %arg4: memref<128x512xbf16, #tpu.memory_space<vmem>>, %arg5: memref<1x1024xf32, #tpu.memory_space<vmem>>, %arg6: memref<128x256xbf16, #tpu.memory_space<vmem>>, %arg7: memref<128x1024xbf16, #tpu.memory_space<vmem>>, %arg8: memref<16x128xf32, #tpu.memory_space<vmem>>, %arg9: memref<16x128xf32, #tpu.memory_space<vmem>>, %arg10: memref<16x128xf32, #tpu.memory_space<vmem>>, %arg11: memref<16x128xf32, #tpu.memory_space<vmem>>) attributes {dimension_semantics = [], scalar_prefetch = 0 : i64, scratch_operands = 5 : i64, tpu.core_type = #tpu.core_type<tc>} {
    %c0 = arith.constant 0 : index
    %c0_0 = arith.constant 0 : index
    %0 = vector.load %arg1[%c0, %c0_0] : memref<128x128xbf16, #tpu.memory_space<vmem>>, vector<128x128xbf16>
    %c0_1 = arith.constant 0 : index
    %c0_2 = arith.constant 0 : index
    %1 = vector.load %arg2[%c0_1, %c0_2] : memref<128x1024xbf16, #tpu.memory_space<vmem>>, vector<128x1024xbf16>
    %cst = arith.constant dense<0.000000e+00> : vector<128x1024xf32>
    %2 = tpu.matmul %0, %1, %cst {dimension_numbers = #tpu.dot_dimension_numbers<[1], [0], [0], [1], [0, 0, 1, 1], [], []>} : vector<128x128xbf16>, vector<128x1024xbf16>, vector<128x1024xf32> -> vector<128x1024xf32>
    %c0_3 = arith.constant 0 : index
    %c0_4 = arith.constant 0 : index
    %3 = vector.load %arg5[%c0_3, %c0_4] : memref<1x1024xf32, #tpu.memory_space<vmem>>, vector<1x1024xf32>
    %4 = vector.broadcast %3 : vector<1x1024xf32> to vector<128x1024xf32>
    %5 = arith.addf %2, %4 : vector<128x1024xf32>
    %6 = arith.truncf %5 : vector<128x1024xf32> to vector<128x1024xbf16>
    %c0_5 = arith.constant 0 : index
    %c0_6 = arith.constant 0 : index
    %7 = vector.load %arg7[%c0_5, %c0_6] : memref<128x1024xbf16, #tpu.memory_space<vmem>>, vector<128x1024xbf16>
    tpu.vector_store %arg7[%c0_5, %c0_6], %6 {strides = array<i32>} : memref<128x1024xbf16, #tpu.memory_space<vmem>>, vector<128x1024xbf16>,
    %cst_7 = arith.constant 0.000000e+00 : f32
    %8 = vector.broadcast %cst_7 : f32 to vector<16x128xf32>
    %c0_8 = arith.constant 0 : index
    %c0_9 = arith.constant 0 : index
    %9 = vector.load %arg8[%c0_8, %c0_9] : memref<16x128xf32, #tpu.memory_space<vmem>>, vector<16x128xf32>
    tpu.vector_store %arg8[%c0_8, %c0_9], %8 {strides = array<i32>} : memref<16x128xf32, #tpu.memory_space<vmem>>, vector<16x128xf32>,
    %cst_10 = arith.constant 0.000000e+00 : f32
    %10 = vector.broadcast %cst_10 : f32 to vector<16x128xf32>
    %c0_11 = arith.constant 0 : index
    %c0_12 = arith.constant 0 : index
    %11 = vector.load %arg9[%c0_11, %c0_12] : memref<16x128xf32, #tpu.memory_space<vmem>>, vector<16x128xf32>
    tpu.vector_store %arg9[%c0_11, %c0_12], %10 {strides = array<i32>} : memref<16x128xf32, #tpu.memory_space<vmem>>, vector<16x128xf32>,
    %cst_13 = arith.constant 0.000000e+00 : f32
    %12 = vector.broadcast %cst_13 : f32 to vector<16x128xf32>
    %c0_14 = arith.constant 0 : index
    %c0_15 = arith.constant 0 : index
    %13 = vector.load %arg10[%c0_14, %c0_15] : memref<16x128xf32, #tpu.memory_space<vmem>>, vector<16x128xf32>
    tpu.vector_store %arg10[%c0_14, %c0_15], %12 {strides = array<i32>} : memref<16x128xf32, #tpu.memory_space<vmem>>, vector<16x128xf32>,
    %cst_16 = arith.constant 0.000000e+00 : f32
    %14 = vector.broadcast %cst_16 : f32 to vector<16x128xf32>
    %c0_17 = arith.constant 0 : index
    %c0_18 = arith.constant 0 : index
    %15 = vector.load %arg11[%c0_17, %c0_18] : memref<16x128xf32, #tpu.memory_space<vmem>>, vector<16x128xf32>
    tpu.vector_store %arg11[%c0_17, %c0_18], %14 {strides = array<i32>} : memref<16x128xf32, #tpu.memory_space<vmem>>, vector<16x128xf32>,
    %c0_19 = arith.constant 0 : index
    %c0_20 = arith.constant 0 : index
    %16 = vector.load %arg0[%c0_19, %c0_20] : memref<16x1xi32, #tpu.memory_space<vmem>>, vector<16x1xi32>
    %c0_i32 = arith.constant 0 : i32
    %c7_i32 = arith.constant 7 : i32
    %17 = arith.subi %c7_i32, %c0_i32 : i32
    %c16_i32 = arith.constant 16 : i32
    %18 = arith.muli %c0_i32, %c16_i32 : i32
    %19 = tpu.assume_multiple %18, 16 : i32
    %c16_i32_21 = arith.constant 16 : i32
    %20 = arith.muli %17, %c16_i32_21 : i32
    %21 = tpu.assume_multiple %20, 16 : i32
    %c0_22 = arith.constant 0 : index
    %c0_23 = arith.constant 0 : index
    %22 = vector.load %arg8[%c0_22, %c0_23] : memref<16x128xf32, #tpu.memory_space<vmem>>, vector<16x128xf32>
    %23 = arith.truncf %22 : vector<16x128xf32> to vector<16x128xbf16>
    %c0_24 = arith.constant 0 : index
    %c0_25 = arith.constant 0 : index
    %24 = vector.load %arg3[%c0_24, %c0_25] : memref<128x512xbf16, #tpu.memory_space<vmem>>, vector<128x512xbf16>
    %cst_26 = arith.constant dense<0.000000e+00> : vector<16x512xf32>
    %25 = tpu.matmul %23, %24, %cst_26 {dimension_numbers = #tpu.dot_dimension_numbers<[1], [0], [0], [1], [0, 0, 1, 1], [], []>} : vector<16x128xbf16>, vector<128x512xbf16>, vector<16x512xf32> -> vector<16x512xf32>
    %c0_27 = arith.constant 0 : index
    %c0_28 = arith.constant 0 : index
    %26 = vector.load %arg9[%c0_27, %c0_28] : memref<16x128xf32, #tpu.memory_space<vmem>>, vector<16x128xf32>
    %27 = arith.truncf %26 : vector<16x128xf32> to vector<16x128xbf16>
    %c0_29 = arith.constant 0 : index
    %c0_30 = arith.constant 0 : index
    %28 = vector.load %arg4[%c0_29, %c0_30] : memref<128x512xbf16, #tpu.memory_space<vmem>>, vector<128x512xbf16>
    %cst_31 = arith.constant dense<0.000000e+00> : vector<16x512xf32>
    %29 = tpu.matmul %27, %28, %cst_31 {dimension_numbers = #tpu.dot_dimension_numbers<[1], [0], [0], [1], [0, 0, 1, 1], [], []>} : vector<16x128xbf16>, vector<128x512xbf16>, vector<16x512xf32> -> vector<16x512xf32>
    %30 = arith.index_cast %19 : i32 to index
    %c0_32 = arith.constant 0 : index
    %31 = vector.load %arg7[%30, %c0_32] : memref<128x1024xbf16, #tpu.memory_space<vmem>>, vector<16x512xbf16>
    %32 = arith.extf %31 : vector<16x512xbf16> to vector<16x512xf32>
    %33 = arith.addf %32, %25 : vector<16x512xf32>
    %34 = arith.index_cast %21 : i32 to index
    %c512 = arith.constant 512 : index
    %35 = vector.load %arg7[%34, %c512] : memref<128x1024xbf16, #tpu.memory_space<vmem>>, vector<16x512xbf16>
    %36 = arith.extf %35 : vector<16x512xbf16> to vector<16x512xf32>
    %37 = arith.addf %36, %29 : vector<16x512xf32>
    %c0_33 = arith.constant 0 : index
    %c0_34 = arith.constant 0 : index
    %38 = vector.load %arg10[%c0_33, %c0_34] : memref<16x128xf32, #tpu.memory_space<vmem>>, vector<16x128xf32>
    %39 = vector.extract_strided_slice %33 {offsets = [0, 0], sizes = [16, 384], strides = [1, 1]} : vector<16x512xf32> to vector<16x384xf32>
    %40 = arith.negf %39 : vector<16x384xf32>
    %41 = math.exp %40 : vector<16x384xf32>
    %cst_35 = arith.constant 1.000000e+00 : f32
    %42 = vector.broadcast %cst_35 : f32 to vector<16x384xf32>
    %43 = arith.addf %42, %41 : vector<16x384xf32>
    %44 = arith.divf %42, %43 : vector<16x384xf32>
    %45 = vector.extract_strided_slice %33 {offsets = [0, 384], sizes = [16, 128], strides = [1, 1]} : vector<16x512xf32> to vector<16x128xf32>
    %46 = math.tanh %45 : vector<16x128xf32>
    %47 = vector.extract_strided_slice %44 {offsets = [0, 0], sizes = [16, 128], strides = [1, 1]} : vector<16x384xf32> to vector<16x128xf32>
    %48 = vector.extract_strided_slice %44 {offsets = [0, 128], sizes = [16, 128], strides = [1, 1]} : vector<16x384xf32> to vector<16x128xf32>
    %49 = vector.extract_strided_slice %44 {offsets = [0, 256], sizes = [16, 128], strides = [1, 1]} : vector<16x384xf32> to vector<16x128xf32>
    %50 = arith.mulf %48, %38 : vector<16x128xf32>
    %51 = arith.mulf %47, %46 : vector<16x128xf32>
    %52 = arith.addf %50, %51 : vector<16x128xf32>
    %53 = math.tanh %52 : vector<16x128xf32>
    %54 = arith.mulf %49, %53 : vector<16x128xf32>
    %c0_36 = arith.constant 0 : index
    %c0_37 = arith.constant 0 : index
    %55 = vector.load %arg11[%c0_36, %c0_37] : memref<16x128xf32, #tpu.memory_space<vmem>>, vector<16x128xf32>
    %56 = vector.extract_strided_slice %37 {offsets = [0, 0], sizes = [16, 384], strides = [1, 1]} : vector<16x512xf32> to vector<16x384xf32>
    %57 = arith.negf %56 : vector<16x384xf32>
    %58 = math.exp %57 : vector<16x384xf32>
    %cst_38 = arith.constant 1.000000e+00 : f32
    %59 = vector.broadcast %cst_38 : f32 to vector<16x384xf32>
    %60 = arith.addf %59, %58 : vector<16x384xf32>
    %61 = arith.divf %59, %60 : vector<16x384xf32>
    %62 = vector.extract_strided_slice %37 {offsets = [0, 384], sizes = [16, 128], strides = [1, 1]} : vector<16x512xf32> to vector<16x128xf32>
    %63 = math.tanh %62 : vector<16x128xf32>
    %64 = vector.extract_strided_slice %61 {offsets = [0, 0], sizes = [16, 128], strides = [1, 1]} : vector<16x384xf32> to vector<16x128xf32>
    %65 = vector.extract_strided_slice %61 {offsets = [0, 128], sizes = [16, 128], strides = [1, 1]} : vector<16x384xf32> to vector<16x128xf32>
    %66 = vector.extract_strided_slice %61 {offsets = [0, 256], sizes = [16, 128], strides = [1, 1]} : vector<16x384xf32> to vector<16x128xf32>
    %67 = arith.mulf %65, %55 : vector<16x128xf32>
    %68 = arith.mulf %64, %63 : vector<16x128xf32>
    %69 = arith.addf %67, %68 : vector<16x128xf32>
    %70 = math.tanh %69 : vector<16x128xf32>
    %71 = arith.mulf %66, %70 : vector<16x128xf32>
    %72 = vector.broadcast %c0_i32 : i32 to vector<16x1xi32>
    %73 = arith.cmpi slt, %72, %16 : vector<16x1xi32>
    %74 = vector.broadcast %17 : i32 to vector<16x1xi32>
    %75 = arith.cmpi slt, %74, %16 : vector<16x1xi32>
    %cst_39 = arith.constant 0.000000e+00 : f32
    %76 = vector.shape_cast %73 : vector<16x1xi1> to vector<16x1xi1>
    %77 = vector.broadcast %76 : vector<16x1xi1> to vector<16x128xi1>
    %78 = vector.broadcast %cst_39 : f32 to vector<16x128xf32>
    %79 = arith.select %77, %54, %78 : vector<16x128xi1>, vector<16x128xf32>
    %cst_40 = arith.constant 0.000000e+00 : f32
    %80 = vector.shape_cast %73 : vector<16x1xi1> to vector<16x1xi1>
    %81 = vector.broadcast %80 : vector<16x1xi1> to vector<16x128xi1>
    %82 = vector.broadcast %cst_40 : f32 to vector<16x128xf32>
    %83 = arith.select %81, %52, %82 : vector<16x128xi1>, vector<16x128xf32>
    %cst_41 = arith.constant 0.000000e+00 : f32
    %84 = vector.shape_cast %75 : vector<16x1xi1> to vector<16x1xi1>
    %85 = vector.broadcast %84 : vector<16x1xi1> to vector<16x128xi1>
    %86 = vector.broadcast %cst_41 : f32 to vector<16x128xf32>
    %87 = arith.select %85, %71, %86 : vector<16x128xi1>, vector<16x128xf32>
    %cst_42 = arith.constant 0.000000e+00 : f32
    %88 = vector.shape_cast %75 : vector<16x1xi1> to vector<16x1xi1>
    %89 = vector.broadcast %88 : vector<16x1xi1> to vector<16x128xi1>
    %90 = vector.broadcast %cst_42 : f32 to vector<16x128xf32>
    %91 = arith.select %89, %69, %90 : vector<16x128xi1>, vector<16x128xf32>
    %c0_43 = arith.constant 0 : index
    %c0_44 = arith.constant 0 : index
    %92 = vector.load %arg8[%c0_43, %c0_44] : memref<16x128xf32, #tpu.memory_space<vmem>>, vector<16x128xf32>
    tpu.vector_store %arg8[%c0_43, %c0_44], %79 {strides = array<i32>} : memref<16x128xf32, #tpu.memory_space<vmem>>, vector<16x128xf32>,
    %c0_45 = arith.constant 0 : index
    %c0_46 = arith.constant 0 : index
    %93 = vector.load %arg10[%c0_45, %c0_46] : memref<16x128xf32, #tpu.memory_space<vmem>>, vector<16x128xf32>
    tpu.vector_store %arg10[%c0_45, %c0_46], %83 {strides = array<i32>} : memref<16x128xf32, #tpu.memory_space<vmem>>, vector<16x128xf32>,
    %c0_47 = arith.constant 0 : index
    %c0_48 = arith.constant 0 : index
    %94 = vector.load %arg9[%c0_47, %c0_48] : memref<16x128xf32, #tpu.memory_space<vmem>>, vector<16x128xf32>
    tpu.vector_store %arg9[%c0_47, %c0_48], %87 {strides = array<i32>} : memref<16x128xf32, #tpu.memory_space<vmem>>, vector<16x128xf32>,
    %c0_49 = arith.constant 0 : index
    %c0_50 = arith.constant 0 : index
    %95 = vector.load %arg11[%c0_49, %c0_50] : memref<16x128xf32, #tpu.memory_space<vmem>>, vector<16x128xf32>
    tpu.vector_store %arg11[%c0_49, %c0_50], %91 {strides = array<i32>} : memref<16x128xf32, #tpu.memory_space<vmem>>, vector<16x128xf32>,
    %96 = arith.truncf %79 : vector<16x128xf32> to vector<16x128xbf16>
    %97 = arith.index_cast %19 : i32 to index
    %c0_51 = arith.constant 0 : index
    %98 = vector.load %arg6[%97, %c0_51] : memref<128x256xbf16, #tpu.memory_space<vmem>>, vector<16x128xbf16>
    tpu.vector_store %arg6[%97, %c0_51], %96 {strides = array<i32>} : memref<128x256xbf16, #tpu.memory_space<vmem>>, vector<16x128xbf16>,
    %99 = arith.truncf %87 : vector<16x128xf32> to vector<16x128xbf16>
    %100 = arith.index_cast %21 : i32 to index
    %c128 = arith.constant 128 : index
    %101 = vector.load %arg6[%100, %c128] : memref<128x256xbf16, #tpu.memory_space<vmem>>, vector<16x128xbf16>
    tpu.vector_store %arg6[%100, %c128], %99 {strides = array<i32>} : memref<128x256xbf16, #tpu.memory_space<vmem>>, vector<16x128xbf16>,
    %c1_i32 = arith.constant 1 : i32
    %c7_i32_52 = arith.constant 7 : i32
    %102 = arith.subi %c7_i32_52, %c1_i32 : i32
    %c16_i32_53 = arith.constant 16 : i32
    %103 = arith.muli %c1_i32, %c16_i32_53 : i32
    %104 = tpu.assume_multiple %103, 16 : i32
    %c16_i32_54 = arith.constant 16 : i32
    %105 = arith.muli %102, %c16_i32_54 : i32
    %106 = tpu.assume_multiple %105, 16 : i32
    %c0_55 = arith.constant 0 : index
    %c0_56 = arith.constant 0 : index
    %107 = vector.load %arg8[%c0_55, %c0_56] : memref<16x128xf32, #tpu.memory_space<vmem>>, vector<16x128xf32>
    %108 = arith.truncf %107 : vector<16x128xf32> to vector<16x128xbf16>
    %c0_57 = arith.constant 0 : index
    %c0_58 = arith.constant 0 : index
    %109 = vector.load %arg3[%c0_57, %c0_58] : memref<128x512xbf16, #tpu.memory_space<vmem>>, vector<128x512xbf16>
    %cst_59 = arith.constant dense<0.000000e+00> : vector<16x512xf32>
    %110 = tpu.matmul %108, %109, %cst_59 {dimension_numbers = #tpu.dot_dimension_numbers<[1], [0], [0], [1], [0, 0, 1, 1], [], []>} : vector<16x128xbf16>, vector<128x512xbf16>, vector<16x512xf32> -> vector<16x512xf32>
    %c0_60 = arith.constant 0 : index
    %c0_61 = arith.constant 0 : index
    %111 = vector.load %arg9[%c0_60, %c0_61] : memref<16x128xf32, #tpu.memory_space<vmem>>, vector<16x128xf32>
    %112 = arith.truncf %111 : vector<16x128xf32> to vector<16x128xbf16>
    %c0_62 = arith.constant 0 : index
    %c0_63 = arith.constant 0 : index
    %113 = vector.load %arg4[%c0_62, %c0_63] : memref<128x512xbf16, #tpu.memory_space<vmem>>, vector<128x512xbf16>
    %cst_64 = arith.constant dense<0.000000e+00> : vector<16x512xf32>
    %114 = tpu.matmul %112, %113, %cst_64 {dimension_numbers = #tpu.dot_dimension_numbers<[1], [0], [0], [1], [0, 0, 1, 1], [], []>} : vector<16x128xbf16>, vector<128x512xbf16>, vector<16x512xf32> -> vector<16x512xf32>
    %115 = arith.index_cast %104 : i32 to index
    %c0_65 = arith.constant 0 : index
    %116 = vector.load %arg7[%115, %c0_65] : memref<128x1024xbf16, #tpu.memory_space<vmem>>, vector<16x512xbf16>
    %117 = arith.extf %116 : vector<16x512xbf16> to vector<16x512xf32>
    %118 = arith.addf %117, %110 : vector<16x512xf32>
    %119 = arith.index_cast %106 : i32 to index
    %c512_66 = arith.constant 512 : index
    %120 = vector.load %arg7[%119, %c512_66] : memref<128x1024xbf16, #tpu.memory_space<vmem>>, vector<16x512xbf16>
    %121 = arith.extf %120 : vector<16x512xbf16> to vector<16x512xf32>
    %122 = arith.addf %121, %114 : vector<16x512xf32>
    %c0_67 = arith.constant 0 : index
    %c0_68 = arith.constant 0 : index
    %123 = vector.load %arg10[%c0_67, %c0_68] : memref<16x128xf32, #tpu.memory_space<vmem>>, vector<16x128xf32>
    %124 = vector.extract_strided_slice %118 {offsets = [0, 0], sizes = [16, 384], strides = [1, 1]} : vector<16x512xf32> to vector<16x384xf32>
    %125 = arith.negf %124 : vector<16x384xf32>
    %126 = math.exp %125 : vector<16x384xf32>
    %cst_69 = arith.constant 1.000000e+00 : f32
    %127 = vector.broadcast %cst_69 : f32 to vector<16x384xf32>
    %128 = arith.addf %127, %126 : vector<16x384xf32>
    %129 = arith.divf %127, %128 : vector<16x384xf32>
    %130 = vector.extract_strided_slice %118 {offsets = [0, 384], sizes = [16, 128], strides = [1, 1]} : vector<16x512xf32> to vector<16x128xf32>
    %131 = math.tanh %130 : vector<16x128xf32>
    %132 = vector.extract_strided_slice %129 {offsets = [0, 0], sizes = [16, 128], strides = [1, 1]} : vector<16x384xf32> to vector<16x128xf32>
    %133 = vector.extract_strided_slice %129 {offsets = [0, 128], sizes = [16, 128], strides = [1, 1]} : vector<16x384xf32> to vector<16x128xf32>
    %134 = vector.extract_strided_slice %129 {offsets = [0, 256], sizes = [16, 128], strides = [1, 1]} : vector<16x384xf32> to vector<16x128xf32>
    %135 = arith.mulf %133, %123 : vector<16x128xf32>
    %136 = arith.mulf %132, %131 : vector<16x128xf32>
    %137 = arith.addf %135, %136 : vector<16x128xf32>
    %138 = math.tanh %137 : vector<16x128xf32>
    %139 = arith.mulf %134, %138 : vector<16x128xf32>
    %c0_70 = arith.constant 0 : index
    %c0_71 = arith.constant 0 : index
    %140 = vector.load %arg11[%c0_70, %c0_71] : memref<16x128xf32, #tpu.memory_space<vmem>>, vector<16x128xf32>
    %141 = vector.extract_strided_slice %122 {offsets = [0, 0], sizes = [16, 384], strides = [1, 1]} : vector<16x512xf32> to vector<16x384xf32>
    %142 = arith.negf %141 : vector<16x384xf32>
    %143 = math.exp %142 : vector<16x384xf32>
    %cst_72 = arith.constant 1.000000e+00 : f32
    %144 = vector.broadcast %cst_72 : f32 to vector<16x384xf32>
    %145 = arith.addf %144, %143 : vector<16x384xf32>
    %146 = arith.divf %144, %145 : vector<16x384xf32>
    %147 = vector.extract_strided_slice %122 {offsets = [0, 384], sizes = [16, 128], strides = [1, 1]} : vector<16x512xf32> to vector<16x128xf32>
    %148 = math.tanh %147 : vector<16x128xf32>
    %149 = vector.extract_strided_slice %146 {offsets = [0, 0], sizes = [16, 128], strides = [1, 1]} : vector<16x384xf32> to vector<16x128xf32>
    %150 = vector.extract_strided_slice %146 {offsets = [0, 128], sizes = [16, 128], strides = [1, 1]} : vector<16x384xf32> to vector<16x128xf32>
    %151 = vector.extract_strided_slice %146 {offsets = [0, 256], sizes = [16, 128], strides = [1, 1]} : vector<16x384xf32> to vector<16x128xf32>
    %152 = arith.mulf %150, %140 : vector<16x128xf32>
    %153 = arith.mulf %149, %148 : vector<16x128xf32>
    %154 = arith.addf %152, %153 : vector<16x128xf32>
    %155 = math.tanh %154 : vector<16x128xf32>
    %156 = arith.mulf %151, %155 : vector<16x128xf32>
    %157 = vector.broadcast %c1_i32 : i32 to vector<16x1xi32>
    %158 = arith.cmpi slt, %157, %16 : vector<16x1xi32>
    %159 = vector.broadcast %102 : i32 to vector<16x1xi32>
    %160 = arith.cmpi slt, %159, %16 : vector<16x1xi32>
    %cst_73 = arith.constant 0.000000e+00 : f32
    %161 = vector.shape_cast %158 : vector<16x1xi1> to vector<16x1xi1>
    %162 = vector.broadcast %161 : vector<16x1xi1> to vector<16x128xi1>
    %163 = vector.broadcast %cst_73 : f32 to vector<16x128xf32>
    %164 = arith.select %162, %139, %163 : vector<16x128xi1>, vector<16x128xf32>
    %cst_74 = arith.constant 0.000000e+00 : f32
    %165 = vector.shape_cast %158 : vector<16x1xi1> to vector<16x1xi1>
    %166 = vector.broadcast %165 : vector<16x1xi1> to vector<16x128xi1>
    %167 = vector.broadcast %cst_74 : f32 to vector<16x128xf32>
    %168 = arith.select %166, %137, %167 : vector<16x128xi1>, vector<16x128xf32>
    %cst_75 = arith.constant 0.000000e+00 : f32
    %169 = vector.shape_cast %160 : vector<16x1xi1> to vector<16x1xi1>
    %170 = vector.broadcast %169 : vector<16x1xi1> to vector<16x128xi1>
    %171 = vector.broadcast %cst_75 : f32 to vector<16x128xf32>
    %172 = arith.select %170, %156, %171 : vector<16x128xi1>, vector<16x128xf32>
    %cst_76 = arith.constant 0.000000e+00 : f32
    %173 = vector.shape_cast %160 : vector<16x1xi1> to vector<16x1xi1>
    %174 = vector.broadcast %173 : vector<16x1xi1> to vector<16x128xi1>
    %175 = vector.broadcast %cst_76 : f32 to vector<16x128xf32>
    %176 = arith.select %174, %154, %175 : vector<16x128xi1>, vector<16x128xf32>
    %c0_77 = arith.constant 0 : index
    %c0_78 = arith.constant 0 : index
    %177 = vector.load %arg8[%c0_77, %c0_78] : memref<16x128xf32, #tpu.memory_space<vmem>>, vector<16x128xf32>
    tpu.vector_store %arg8[%c0_77, %c0_78], %164 {strides = array<i32>} : memref<16x128xf32, #tpu.memory_space<vmem>>, vector<16x128xf32>,
    %c0_79 = arith.constant 0 : index
    %c0_80 = arith.constant 0 : index
    %178 = vector.load %arg10[%c0_79, %c0_80] : memref<16x128xf32, #tpu.memory_space<vmem>>, vector<16x128xf32>
    tpu.vector_store %arg10[%c0_79, %c0_80], %168 {strides = array<i32>} : memref<16x128xf32, #tpu.memory_space<vmem>>, vector<16x128xf32>,
    %c0_81 = arith.constant 0 : index
    %c0_82 = arith.constant 0 : index
    %179 = vector.load %arg9[%c0_81, %c0_82] : memref<16x128xf32, #tpu.memory_space<vmem>>, vector<16x128xf32>
    tpu.vector_store %arg9[%c0_81, %c0_82], %172 {strides = array<i32>} : memref<16x128xf32, #tpu.memory_space<vmem>>, vector<16x128xf32>,
    %c0_83 = arith.constant 0 : index
    %c0_84 = arith.constant 0 : index
    %180 = vector.load %arg11[%c0_83, %c0_84] : memref<16x128xf32, #tpu.memory_space<vmem>>, vector<16x128xf32>
    tpu.vector_store %arg11[%c0_83, %c0_84], %176 {strides = array<i32>} : memref<16x128xf32, #tpu.memory_space<vmem>>, vector<16x128xf32>,
    %181 = arith.truncf %164 : vector<16x128xf32> to vector<16x128xbf16>
    %182 = arith.index_cast %104 : i32 to index
    %c0_85 = arith.constant 0 : index
    %183 = vector.load %arg6[%182, %c0_85] : memref<128x256xbf16, #tpu.memory_space<vmem>>, vector<16x128xbf16>
    tpu.vector_store %arg6[%182, %c0_85], %181 {strides = array<i32>} : memref<128x256xbf16, #tpu.memory_space<vmem>>, vector<16x128xbf16>,
    %184 = arith.truncf %172 : vector<16x128xf32> to vector<16x128xbf16>
    %185 = arith.index_cast %106 : i32 to index
    %c128_86 = arith.constant 128 : index
    %186 = vector.load %arg6[%185, %c128_86] : memref<128x256xbf16, #tpu.memory_space<vmem>>, vector<16x128xbf16>
    tpu.vector_store %arg6[%185, %c128_86], %184 {strides = array<i32>} : memref<128x256xbf16, #tpu.memory_space<vmem>>, vector<16x128xbf16>,
    %c2_i32 = arith.constant 2 : i32
    %c7_i32_87 = arith.constant 7 : i32
    %187 = arith.subi %c7_i32_87, %c2_i32 : i32
    %c16_i32_88 = arith.constant 16 : i32
    %188 = arith.muli %c2_i32, %c16_i32_88 : i32
    %189 = tpu.assume_multiple %188, 16 : i32
    %c16_i32_89 = arith.constant 16 : i32
    %190 = arith.muli %187, %c16_i32_89 : i32
    %191 = tpu.assume_multiple %190, 16 : i32
    %c0_90 = arith.constant 0 : index
    %c0_91 = arith.constant 0 : index
    %192 = vector.load %arg8[%c0_90, %c0_91] : memref<16x128xf32, #tpu.memory_space<vmem>>, vector<16x128xf32>
    %193 = arith.truncf %192 : vector<16x128xf32> to vector<16x128xbf16>
    %c0_92 = arith.constant 0 : index
    %c0_93 = arith.constant 0 : index
    %194 = vector.load %arg3[%c0_92, %c0_93] : memref<128x512xbf16, #tpu.memory_space<vmem>>, vector<128x512xbf16>
    %cst_94 = arith.constant dense<0.000000e+00> : vector<16x512xf32>
    %195 = tpu.matmul %193, %194, %cst_94 {dimension_numbers = #tpu.dot_dimension_numbers<[1], [0], [0], [1], [0, 0, 1, 1], [], []>} : vector<16x128xbf16>, vector<128x512xbf16>, vector<16x512xf32> -> vector<16x512xf32>
    %c0_95 = arith.constant 0 : index
    %c0_96 = arith.constant 0 : index
    %196 = vector.load %arg9[%c0_95, %c0_96] : memref<16x128xf32, #tpu.memory_space<vmem>>, vector<16x128xf32>
    %197 = arith.truncf %196 : vector<16x128xf32> to vector<16x128xbf16>
    %c0_97 = arith.constant 0 : index
    %c0_98 = arith.constant 0 : index
    %198 = vector.load %arg4[%c0_97, %c0_98] : memref<128x512xbf16, #tpu.memory_space<vmem>>, vector<128x512xbf16>
    %cst_99 = arith.constant dense<0.000000e+00> : vector<16x512xf32>
    %199 = tpu.matmul %197, %198, %cst_99 {dimension_numbers = #tpu.dot_dimension_numbers<[1], [0], [0], [1], [0, 0, 1, 1], [], []>} : vector<16x128xbf16>, vector<128x512xbf16>, vector<16x512xf32> -> vector<16x512xf32>
    %200 = arith.index_cast %189 : i32 to index
    %c0_100 = arith.constant 0 : index
    %201 = vector.load %arg7[%200, %c0_100] : memref<128x1024xbf16, #tpu.memory_space<vmem>>, vector<16x512xbf16>
    %202 = arith.extf %201 : vector<16x512xbf16> to vector<16x512xf32>
    %203 = arith.addf %202, %195 : vector<16x512xf32>
    %204 = arith.index_cast %191 : i32 to index
    %c512_101 = arith.constant 512 : index
    %205 = vector.load %arg7[%204, %c512_101] : memref<128x1024xbf16, #tpu.memory_space<vmem>>, vector<16x512xbf16>
    %206 = arith.extf %205 : vector<16x512xbf16> to vector<16x512xf32>
    %207 = arith.addf %206, %199 : vector<16x512xf32>
    %c0_102 = arith.constant 0 : index
    %c0_103 = arith.constant 0 : index
    %208 = vector.load %arg10[%c0_102, %c0_103] : memref<16x128xf32, #tpu.memory_space<vmem>>, vector<16x128xf32>
    %209 = vector.extract_strided_slice %203 {offsets = [0, 0], sizes = [16, 384], strides = [1, 1]} : vector<16x512xf32> to vector<16x384xf32>
    %210 = arith.negf %209 : vector<16x384xf32>
    %211 = math.exp %210 : vector<16x384xf32>
    %cst_104 = arith.constant 1.000000e+00 : f32
    %212 = vector.broadcast %cst_104 : f32 to vector<16x384xf32>
    %213 = arith.addf %212, %211 : vector<16x384xf32>
    %214 = arith.divf %212, %213 : vector<16x384xf32>
    %215 = vector.extract_strided_slice %203 {offsets = [0, 384], sizes = [16, 128], strides = [1, 1]} : vector<16x512xf32> to vector<16x128xf32>
    %216 = math.tanh %215 : vector<16x128xf32>
    %217 = vector.extract_strided_slice %214 {offsets = [0, 0], sizes = [16, 128], strides = [1, 1]} : vector<16x384xf32> to vector<16x128xf32>
    %218 = vector.extract_strided_slice %214 {offsets = [0, 128], sizes = [16, 128], strides = [1, 1]} : vector<16x384xf32> to vector<16x128xf32>
    %219 = vector.extract_strided_slice %214 {offsets = [0, 256], sizes = [16, 128], strides = [1, 1]} : vector<16x384xf32> to vector<16x128xf32>
    %220 = arith.mulf %218, %208 : vector<16x128xf32>
    %221 = arith.mulf %217, %216 : vector<16x128xf32>
    %222 = arith.addf %220, %221 : vector<16x128xf32>
    %223 = math.tanh %222 : vector<16x128xf32>
    %224 = arith.mulf %219, %223 : vector<16x128xf32>
    %c0_105 = arith.constant 0 : index
    %c0_106 = arith.constant 0 : index
    %225 = vector.load %arg11[%c0_105, %c0_106] : memref<16x128xf32, #tpu.memory_space<vmem>>, vector<16x128xf32>
    %226 = vector.extract_strided_slice %207 {offsets = [0, 0], sizes = [16, 384], strides = [1, 1]} : vector<16x512xf32> to vector<16x384xf32>
    %227 = arith.negf %226 : vector<16x384xf32>
    %228 = math.exp %227 : vector<16x384xf32>
    %cst_107 = arith.constant 1.000000e+00 : f32
    %229 = vector.broadcast %cst_107 : f32 to vector<16x384xf32>
    %230 = arith.addf %229, %228 : vector<16x384xf32>
    %231 = arith.divf %229, %230 : vector<16x384xf32>
    %232 = vector.extract_strided_slice %207 {offsets = [0, 384], sizes = [16, 128], strides = [1, 1]} : vector<16x512xf32> to vector<16x128xf32>
    %233 = math.tanh %232 : vector<16x128xf32>
    %234 = vector.extract_strided_slice %231 {offsets = [0, 0], sizes = [16, 128], strides = [1, 1]} : vector<16x384xf32> to vector<16x128xf32>
    %235 = vector.extract_strided_slice %231 {offsets = [0, 128], sizes = [16, 128], strides = [1, 1]} : vector<16x384xf32> to vector<16x128xf32>
    %236 = vector.extract_strided_slice %231 {offsets = [0, 256], sizes = [16, 128], strides = [1, 1]} : vector<16x384xf32> to vector<16x128xf32>
    %237 = arith.mulf %235, %225 : vector<16x128xf32>
    %238 = arith.mulf %234, %233 : vector<16x128xf32>
    %239 = arith.addf %237, %238 : vector<16x128xf32>
    %240 = math.tanh %239 : vector<16x128xf32>
    %241 = arith.mulf %236, %240 : vector<16x128xf32>
    %242 = vector.broadcast %c2_i32 : i32 to vector<16x1xi32>
    %243 = arith.cmpi slt, %242, %16 : vector<16x1xi32>
    %244 = vector.broadcast %187 : i32 to vector<16x1xi32>
    %245 = arith.cmpi slt, %244, %16 : vector<16x1xi32>
    %cst_108 = arith.constant 0.000000e+00 : f32
    %246 = vector.shape_cast %243 : vector<16x1xi1> to vector<16x1xi1>
    %247 = vector.broadcast %246 : vector<16x1xi1> to vector<16x128xi1>
    %248 = vector.broadcast %cst_108 : f32 to vector<16x128xf32>
    %249 = arith.select %247, %224, %248 : vector<16x128xi1>, vector<16x128xf32>
    %cst_109 = arith.constant 0.000000e+00 : f32
    %250 = vector.shape_cast %243 : vector<16x1xi1> to vector<16x1xi1>
    %251 = vector.broadcast %250 : vector<16x1xi1> to vector<16x128xi1>
    %252 = vector.broadcast %cst_109 : f32 to vector<16x128xf32>
    %253 = arith.select %251, %222, %252 : vector<16x128xi1>, vector<16x128xf32>
    %cst_110 = arith.constant 0.000000e+00 : f32
    %254 = vector.shape_cast %245 : vector<16x1xi1> to vector<16x1xi1>
    %255 = vector.broadcast %254 : vector<16x1xi1> to vector<16x128xi1>
    %256 = vector.broadcast %cst_110 : f32 to vector<16x128xf32>
    %257 = arith.select %255, %241, %256 : vector<16x128xi1>, vector<16x128xf32>
    %cst_111 = arith.constant 0.000000e+00 : f32
    %258 = vector.shape_cast %245 : vector<16x1xi1> to vector<16x1xi1>
    %259 = vector.broadcast %258 : vector<16x1xi1> to vector<16x128xi1>
    %260 = vector.broadcast %cst_111 : f32 to vector<16x128xf32>
    %261 = arith.select %259, %239, %260 : vector<16x128xi1>, vector<16x128xf32>
    %c0_112 = arith.constant 0 : index
    %c0_113 = arith.constant 0 : index
    %262 = vector.load %arg8[%c0_112, %c0_113] : memref<16x128xf32, #tpu.memory_space<vmem>>, vector<16x128xf32>
    tpu.vector_store %arg8[%c0_112, %c0_113], %249 {strides = array<i32>} : memref<16x128xf32, #tpu.memory_space<vmem>>, vector<16x128xf32>,
    %c0_114 = arith.constant 0 : index
    %c0_115 = arith.constant 0 : index
    %263 = vector.load %arg10[%c0_114, %c0_115] : memref<16x128xf32, #tpu.memory_space<vmem>>, vector<16x128xf32>
    tpu.vector_store %arg10[%c0_114, %c0_115], %253 {strides = array<i32>} : memref<16x128xf32, #tpu.memory_space<vmem>>, vector<16x128xf32>,
    %c0_116 = arith.constant 0 : index
    %c0_117 = arith.constant 0 : index
    %264 = vector.load %arg9[%c0_116, %c0_117] : memref<16x128xf32, #tpu.memory_space<vmem>>, vector<16x128xf32>
    tpu.vector_store %arg9[%c0_116, %c0_117], %257 {strides = array<i32>} : memref<16x128xf32, #tpu.memory_space<vmem>>, vector<16x128xf32>,
    %c0_118 = arith.constant 0 : index
    %c0_119 = arith.constant 0 : index
    %265 = vector.load %arg11[%c0_118, %c0_119] : memref<16x128xf32, #tpu.memory_space<vmem>>, vector<16x128xf32>
    tpu.vector_store %arg11[%c0_118, %c0_119], %261 {strides = array<i32>} : memref<16x128xf32, #tpu.memory_space<vmem>>, vector<16x128xf32>,
    %266 = arith.truncf %249 : vector<16x128xf32> to vector<16x128xbf16>
    %267 = arith.index_cast %189 : i32 to index
    %c0_120 = arith.constant 0 : index
    %268 = vector.load %arg6[%267, %c0_120] : memref<128x256xbf16, #tpu.memory_space<vmem>>, vector<16x128xbf16>
    tpu.vector_store %arg6[%267, %c0_120], %266 {strides = array<i32>} : memref<128x256xbf16, #tpu.memory_space<vmem>>, vector<16x128xbf16>,
    %269 = arith.truncf %257 : vector<16x128xf32> to vector<16x128xbf16>
    %270 = arith.index_cast %191 : i32 to index
    %c128_121 = arith.constant 128 : index
    %271 = vector.load %arg6[%270, %c128_121] : memref<128x256xbf16, #tpu.memory_space<vmem>>, vector<16x128xbf16>
    tpu.vector_store %arg6[%270, %c128_121], %269 {strides = array<i32>} : memref<128x256xbf16, #tpu.memory_space<vmem>>, vector<16x128xbf16>,
    %c3_i32 = arith.constant 3 : i32
    %c7_i32_122 = arith.constant 7 : i32
    %272 = arith.subi %c7_i32_122, %c3_i32 : i32
    %c16_i32_123 = arith.constant 16 : i32
    %273 = arith.muli %c3_i32, %c16_i32_123 : i32
    %274 = tpu.assume_multiple %273, 16 : i32
    %c16_i32_124 = arith.constant 16 : i32
    %275 = arith.muli %272, %c16_i32_124 : i32
    %276 = tpu.assume_multiple %275, 16 : i32
    %c0_125 = arith.constant 0 : index
    %c0_126 = arith.constant 0 : index
    %277 = vector.load %arg8[%c0_125, %c0_126] : memref<16x128xf32, #tpu.memory_space<vmem>>, vector<16x128xf32>
    %278 = arith.truncf %277 : vector<16x128xf32> to vector<16x128xbf16>
    %c0_127 = arith.constant 0 : index
    %c0_128 = arith.constant 0 : index
    %279 = vector.load %arg3[%c0_127, %c0_128] : memref<128x512xbf16, #tpu.memory_space<vmem>>, vector<128x512xbf16>
    %cst_129 = arith.constant dense<0.000000e+00> : vector<16x512xf32>
    %280 = tpu.matmul %278, %279, %cst_129 {dimension_numbers = #tpu.dot_dimension_numbers<[1], [0], [0], [1], [0, 0, 1, 1], [], []>} : vector<16x128xbf16>, vector<128x512xbf16>, vector<16x512xf32> -> vector<16x512xf32>
    %c0_130 = arith.constant 0 : index
    %c0_131 = arith.constant 0 : index
    %281 = vector.load %arg9[%c0_130, %c0_131] : memref<16x128xf32, #tpu.memory_space<vmem>>, vector<16x128xf32>
    %282 = arith.truncf %281 : vector<16x128xf32> to vector<16x128xbf16>
    %c0_132 = arith.constant 0 : index
    %c0_133 = arith.constant 0 : index
    %283 = vector.load %arg4[%c0_132, %c0_133] : memref<128x512xbf16, #tpu.memory_space<vmem>>, vector<128x512xbf16>
    %cst_134 = arith.constant dense<0.000000e+00> : vector<16x512xf32>
    %284 = tpu.matmul %282, %283, %cst_134 {dimension_numbers = #tpu.dot_dimension_numbers<[1], [0], [0], [1], [0, 0, 1, 1], [], []>} : vector<16x128xbf16>, vector<128x512xbf16>, vector<16x512xf32> -> vector<16x512xf32>
    %285 = arith.index_cast %274 : i32 to index
    %c0_135 = arith.constant 0 : index
    %286 = vector.load %arg7[%285, %c0_135] : memref<128x1024xbf16, #tpu.memory_space<vmem>>, vector<16x512xbf16>
    %287 = arith.extf %286 : vector<16x512xbf16> to vector<16x512xf32>
    %288 = arith.addf %287, %280 : vector<16x512xf32>
    %289 = arith.index_cast %276 : i32 to index
    %c512_136 = arith.constant 512 : index
    %290 = vector.load %arg7[%289, %c512_136] : memref<128x1024xbf16, #tpu.memory_space<vmem>>, vector<16x512xbf16>
    %291 = arith.extf %290 : vector<16x512xbf16> to vector<16x512xf32>
    %292 = arith.addf %291, %284 : vector<16x512xf32>
    %c0_137 = arith.constant 0 : index
    %c0_138 = arith.constant 0 : index
    %293 = vector.load %arg10[%c0_137, %c0_138] : memref<16x128xf32, #tpu.memory_space<vmem>>, vector<16x128xf32>
    %294 = vector.extract_strided_slice %288 {offsets = [0, 0], sizes = [16, 384], strides = [1, 1]} : vector<16x512xf32> to vector<16x384xf32>
    %295 = arith.negf %294 : vector<16x384xf32>
    %296 = math.exp %295 : vector<16x384xf32>
    %cst_139 = arith.constant 1.000000e+00 : f32
    %297 = vector.broadcast %cst_139 : f32 to vector<16x384xf32>
    %298 = arith.addf %297, %296 : vector<16x384xf32>
    %299 = arith.divf %297, %298 : vector<16x384xf32>
    %300 = vector.extract_strided_slice %288 {offsets = [0, 384], sizes = [16, 128], strides = [1, 1]} : vector<16x512xf32> to vector<16x128xf32>
    %301 = math.tanh %300 : vector<16x128xf32>
    %302 = vector.extract_strided_slice %299 {offsets = [0, 0], sizes = [16, 128], strides = [1, 1]} : vector<16x384xf32> to vector<16x128xf32>
    %303 = vector.extract_strided_slice %299 {offsets = [0, 128], sizes = [16, 128], strides = [1, 1]} : vector<16x384xf32> to vector<16x128xf32>
    %304 = vector.extract_strided_slice %299 {offsets = [0, 256], sizes = [16, 128], strides = [1, 1]} : vector<16x384xf32> to vector<16x128xf32>
    %305 = arith.mulf %303, %293 : vector<16x128xf32>
    %306 = arith.mulf %302, %301 : vector<16x128xf32>
    %307 = arith.addf %305, %306 : vector<16x128xf32>
    %308 = math.tanh %307 : vector<16x128xf32>
    %309 = arith.mulf %304, %308 : vector<16x128xf32>
    %c0_140 = arith.constant 0 : index
    %c0_141 = arith.constant 0 : index
    %310 = vector.load %arg11[%c0_140, %c0_141] : memref<16x128xf32, #tpu.memory_space<vmem>>, vector<16x128xf32>
    %311 = vector.extract_strided_slice %292 {offsets = [0, 0], sizes = [16, 384], strides = [1, 1]} : vector<16x512xf32> to vector<16x384xf32>
    %312 = arith.negf %311 : vector<16x384xf32>
    %313 = math.exp %312 : vector<16x384xf32>
    %cst_142 = arith.constant 1.000000e+00 : f32
    %314 = vector.broadcast %cst_142 : f32 to vector<16x384xf32>
    %315 = arith.addf %314, %313 : vector<16x384xf32>
    %316 = arith.divf %314, %315 : vector<16x384xf32>
    %317 = vector.extract_strided_slice %292 {offsets = [0, 384], sizes = [16, 128], strides = [1, 1]} : vector<16x512xf32> to vector<16x128xf32>
    %318 = math.tanh %317 : vector<16x128xf32>
    %319 = vector.extract_strided_slice %316 {offsets = [0, 0], sizes = [16, 128], strides = [1, 1]} : vector<16x384xf32> to vector<16x128xf32>
    %320 = vector.extract_strided_slice %316 {offsets = [0, 128], sizes = [16, 128], strides = [1, 1]} : vector<16x384xf32> to vector<16x128xf32>
    %321 = vector.extract_strided_slice %316 {offsets = [0, 256], sizes = [16, 128], strides = [1, 1]} : vector<16x384xf32> to vector<16x128xf32>
    %322 = arith.mulf %320, %310 : vector<16x128xf32>
    %323 = arith.mulf %319, %318 : vector<16x128xf32>
    %324 = arith.addf %322, %323 : vector<16x128xf32>
    %325 = math.tanh %324 : vector<16x128xf32>
    %326 = arith.mulf %321, %325 : vector<16x128xf32>
    %327 = vector.broadcast %c3_i32 : i32 to vector<16x1xi32>
    %328 = arith.cmpi slt, %327, %16 : vector<16x1xi32>
    %329 = vector.broadcast %272 : i32 to vector<16x1xi32>
    %330 = arith.cmpi slt, %329, %16 : vector<16x1xi32>
    %cst_143 = arith.constant 0.000000e+00 : f32
    %331 = vector.shape_cast %328 : vector<16x1xi1> to vector<16x1xi1>
    %332 = vector.broadcast %331 : vector<16x1xi1> to vector<16x128xi1>
    %333 = vector.broadcast %cst_143 : f32 to vector<16x128xf32>
    %334 = arith.select %332, %309, %333 : vector<16x128xi1>, vector<16x128xf32>
    %cst_144 = arith.constant 0.000000e+00 : f32
    %335 = vector.shape_cast %328 : vector<16x1xi1> to vector<16x1xi1>
    %336 = vector.broadcast %335 : vector<16x1xi1> to vector<16x128xi1>
    %337 = vector.broadcast %cst_144 : f32 to vector<16x128xf32>
    %338 = arith.select %336, %307, %337 : vector<16x128xi1>, vector<16x128xf32>
    %cst_145 = arith.constant 0.000000e+00 : f32
    %339 = vector.shape_cast %330 : vector<16x1xi1> to vector<16x1xi1>
    %340 = vector.broadcast %339 : vector<16x1xi1> to vector<16x128xi1>
    %341 = vector.broadcast %cst_145 : f32 to vector<16x128xf32>
    %342 = arith.select %340, %326, %341 : vector<16x128xi1>, vector<16x128xf32>
    %cst_146 = arith.constant 0.000000e+00 : f32
    %343 = vector.shape_cast %330 : vector<16x1xi1> to vector<16x1xi1>
    %344 = vector.broadcast %343 : vector<16x1xi1> to vector<16x128xi1>
    %345 = vector.broadcast %cst_146 : f32 to vector<16x128xf32>
    %346 = arith.select %344, %324, %345 : vector<16x128xi1>, vector<16x128xf32>
    %c0_147 = arith.constant 0 : index
    %c0_148 = arith.constant 0 : index
    %347 = vector.load %arg8[%c0_147, %c0_148] : memref<16x128xf32, #tpu.memory_space<vmem>>, vector<16x128xf32>
    tpu.vector_store %arg8[%c0_147, %c0_148], %334 {strides = array<i32>} : memref<16x128xf32, #tpu.memory_space<vmem>>, vector<16x128xf32>,
    %c0_149 = arith.constant 0 : index
    %c0_150 = arith.constant 0 : index
    %348 = vector.load %arg10[%c0_149, %c0_150] : memref<16x128xf32, #tpu.memory_space<vmem>>, vector<16x128xf32>
    tpu.vector_store %arg10[%c0_149, %c0_150], %338 {strides = array<i32>} : memref<16x128xf32, #tpu.memory_space<vmem>>, vector<16x128xf32>,
    %c0_151 = arith.constant 0 : index
    %c0_152 = arith.constant 0 : index
    %349 = vector.load %arg9[%c0_151, %c0_152] : memref<16x128xf32, #tpu.memory_space<vmem>>, vector<16x128xf32>
    tpu.vector_store %arg9[%c0_151, %c0_152], %342 {strides = array<i32>} : memref<16x128xf32, #tpu.memory_space<vmem>>, vector<16x128xf32>,
    %c0_153 = arith.constant 0 : index
    %c0_154 = arith.constant 0 : index
    %350 = vector.load %arg11[%c0_153, %c0_154] : memref<16x128xf32, #tpu.memory_space<vmem>>, vector<16x128xf32>
    tpu.vector_store %arg11[%c0_153, %c0_154], %346 {strides = array<i32>} : memref<16x128xf32, #tpu.memory_space<vmem>>, vector<16x128xf32>,
    %351 = arith.truncf %334 : vector<16x128xf32> to vector<16x128xbf16>
    %352 = arith.index_cast %274 : i32 to index
    %c0_155 = arith.constant 0 : index
    %353 = vector.load %arg6[%352, %c0_155] : memref<128x256xbf16, #tpu.memory_space<vmem>>, vector<16x128xbf16>
    tpu.vector_store %arg6[%352, %c0_155], %351 {strides = array<i32>} : memref<128x256xbf16, #tpu.memory_space<vmem>>, vector<16x128xbf16>,
    %354 = arith.truncf %342 : vector<16x128xf32> to vector<16x128xbf16>
    %355 = arith.index_cast %276 : i32 to index
    %c128_156 = arith.constant 128 : index
    %356 = vector.load %arg6[%355, %c128_156] : memref<128x256xbf16, #tpu.memory_space<vmem>>, vector<16x128xbf16>
    tpu.vector_store %arg6[%355, %c128_156], %354 {strides = array<i32>} : memref<128x256xbf16, #tpu.memory_space<vmem>>, vector<16x128xbf16>,
    %c4_i32 = arith.constant 4 : i32
    %c7_i32_157 = arith.constant 7 : i32
    %357 = arith.subi %c7_i32_157, %c4_i32 : i32
    %c16_i32_158 = arith.constant 16 : i32
    %358 = arith.muli %c4_i32, %c16_i32_158 : i32
    %359 = tpu.assume_multiple %358, 16 : i32
    %c16_i32_159 = arith.constant 16 : i32
    %360 = arith.muli %357, %c16_i32_159 : i32
    %361 = tpu.assume_multiple %360, 16 : i32
    %c0_160 = arith.constant 0 : index
    %c0_161 = arith.constant 0 : index
    %362 = vector.load %arg8[%c0_160, %c0_161] : memref<16x128xf32, #tpu.memory_space<vmem>>, vector<16x128xf32>
    %363 = arith.truncf %362 : vector<16x128xf32> to vector<16x128xbf16>
    %c0_162 = arith.constant 0 : index
    %c0_163 = arith.constant 0 : index
    %364 = vector.load %arg3[%c0_162, %c0_163] : memref<128x512xbf16, #tpu.memory_space<vmem>>, vector<128x512xbf16>
    %cst_164 = arith.constant dense<0.000000e+00> : vector<16x512xf32>
    %365 = tpu.matmul %363, %364, %cst_164 {dimension_numbers = #tpu.dot_dimension_numbers<[1], [0], [0], [1], [0, 0, 1, 1], [], []>} : vector<16x128xbf16>, vector<128x512xbf16>, vector<16x512xf32> -> vector<16x512xf32>
    %c0_165 = arith.constant 0 : index
    %c0_166 = arith.constant 0 : index
    %366 = vector.load %arg9[%c0_165, %c0_166] : memref<16x128xf32, #tpu.memory_space<vmem>>, vector<16x128xf32>
    %367 = arith.truncf %366 : vector<16x128xf32> to vector<16x128xbf16>
    %c0_167 = arith.constant 0 : index
    %c0_168 = arith.constant 0 : index
    %368 = vector.load %arg4[%c0_167, %c0_168] : memref<128x512xbf16, #tpu.memory_space<vmem>>, vector<128x512xbf16>
    %cst_169 = arith.constant dense<0.000000e+00> : vector<16x512xf32>
    %369 = tpu.matmul %367, %368, %cst_169 {dimension_numbers = #tpu.dot_dimension_numbers<[1], [0], [0], [1], [0, 0, 1, 1], [], []>} : vector<16x128xbf16>, vector<128x512xbf16>, vector<16x512xf32> -> vector<16x512xf32>
    %370 = arith.index_cast %359 : i32 to index
    %c0_170 = arith.constant 0 : index
    %371 = vector.load %arg7[%370, %c0_170] : memref<128x1024xbf16, #tpu.memory_space<vmem>>, vector<16x512xbf16>
    %372 = arith.extf %371 : vector<16x512xbf16> to vector<16x512xf32>
    %373 = arith.addf %372, %365 : vector<16x512xf32>
    %374 = arith.index_cast %361 : i32 to index
    %c512_171 = arith.constant 512 : index
    %375 = vector.load %arg7[%374, %c512_171] : memref<128x1024xbf16, #tpu.memory_space<vmem>>, vector<16x512xbf16>
    %376 = arith.extf %375 : vector<16x512xbf16> to vector<16x512xf32>
    %377 = arith.addf %376, %369 : vector<16x512xf32>
    %c0_172 = arith.constant 0 : index
    %c0_173 = arith.constant 0 : index
    %378 = vector.load %arg10[%c0_172, %c0_173] : memref<16x128xf32, #tpu.memory_space<vmem>>, vector<16x128xf32>
    %379 = vector.extract_strided_slice %373 {offsets = [0, 0], sizes = [16, 384], strides = [1, 1]} : vector<16x512xf32> to vector<16x384xf32>
    %380 = arith.negf %379 : vector<16x384xf32>
    %381 = math.exp %380 : vector<16x384xf32>
    %cst_174 = arith.constant 1.000000e+00 : f32
    %382 = vector.broadcast %cst_174 : f32 to vector<16x384xf32>
    %383 = arith.addf %382, %381 : vector<16x384xf32>
    %384 = arith.divf %382, %383 : vector<16x384xf32>
    %385 = vector.extract_strided_slice %373 {offsets = [0, 384], sizes = [16, 128], strides = [1, 1]} : vector<16x512xf32> to vector<16x128xf32>
    %386 = math.tanh %385 : vector<16x128xf32>
    %387 = vector.extract_strided_slice %384 {offsets = [0, 0], sizes = [16, 128], strides = [1, 1]} : vector<16x384xf32> to vector<16x128xf32>
    %388 = vector.extract_strided_slice %384 {offsets = [0, 128], sizes = [16, 128], strides = [1, 1]} : vector<16x384xf32> to vector<16x128xf32>
    %389 = vector.extract_strided_slice %384 {offsets = [0, 256], sizes = [16, 128], strides = [1, 1]} : vector<16x384xf32> to vector<16x128xf32>
    %390 = arith.mulf %388, %378 : vector<16x128xf32>
    %391 = arith.mulf %387, %386 : vector<16x128xf32>
    %392 = arith.addf %390, %391 : vector<16x128xf32>
    %393 = math.tanh %392 : vector<16x128xf32>
    %394 = arith.mulf %389, %393 : vector<16x128xf32>
    %c0_175 = arith.constant 0 : index
    %c0_176 = arith.constant 0 : index
    %395 = vector.load %arg11[%c0_175, %c0_176] : memref<16x128xf32, #tpu.memory_space<vmem>>, vector<16x128xf32>
    %396 = vector.extract_strided_slice %377 {offsets = [0, 0], sizes = [16, 384], strides = [1, 1]} : vector<16x512xf32> to vector<16x384xf32>
    %397 = arith.negf %396 : vector<16x384xf32>
    %398 = math.exp %397 : vector<16x384xf32>
    %cst_177 = arith.constant 1.000000e+00 : f32
    %399 = vector.broadcast %cst_177 : f32 to vector<16x384xf32>
    %400 = arith.addf %399, %398 : vector<16x384xf32>
    %401 = arith.divf %399, %400 : vector<16x384xf32>
    %402 = vector.extract_strided_slice %377 {offsets = [0, 384], sizes = [16, 128], strides = [1, 1]} : vector<16x512xf32> to vector<16x128xf32>
    %403 = math.tanh %402 : vector<16x128xf32>
    %404 = vector.extract_strided_slice %401 {offsets = [0, 0], sizes = [16, 128], strides = [1, 1]} : vector<16x384xf32> to vector<16x128xf32>
    %405 = vector.extract_strided_slice %401 {offsets = [0, 128], sizes = [16, 128], strides = [1, 1]} : vector<16x384xf32> to vector<16x128xf32>
    %406 = vector.extract_strided_slice %401 {offsets = [0, 256], sizes = [16, 128], strides = [1, 1]} : vector<16x384xf32> to vector<16x128xf32>
    %407 = arith.mulf %405, %395 : vector<16x128xf32>
    %408 = arith.mulf %404, %403 : vector<16x128xf32>
    %409 = arith.addf %407, %408 : vector<16x128xf32>
    %410 = math.tanh %409 : vector<16x128xf32>
    %411 = arith.mulf %406, %410 : vector<16x128xf32>
    %412 = vector.broadcast %c4_i32 : i32 to vector<16x1xi32>
    %413 = arith.cmpi slt, %412, %16 : vector<16x1xi32>
    %414 = vector.broadcast %357 : i32 to vector<16x1xi32>
    %415 = arith.cmpi slt, %414, %16 : vector<16x1xi32>
    %cst_178 = arith.constant 0.000000e+00 : f32
    %416 = vector.shape_cast %413 : vector<16x1xi1> to vector<16x1xi1>
    %417 = vector.broadcast %416 : vector<16x1xi1> to vector<16x128xi1>
    %418 = vector.broadcast %cst_178 : f32 to vector<16x128xf32>
    %419 = arith.select %417, %394, %418 : vector<16x128xi1>, vector<16x128xf32>
    %cst_179 = arith.constant 0.000000e+00 : f32
    %420 = vector.shape_cast %413 : vector<16x1xi1> to vector<16x1xi1>
    %421 = vector.broadcast %420 : vector<16x1xi1> to vector<16x128xi1>
    %422 = vector.broadcast %cst_179 : f32 to vector<16x128xf32>
    %423 = arith.select %421, %392, %422 : vector<16x128xi1>, vector<16x128xf32>
    %cst_180 = arith.constant 0.000000e+00 : f32
    %424 = vector.shape_cast %415 : vector<16x1xi1> to vector<16x1xi1>
    %425 = vector.broadcast %424 : vector<16x1xi1> to vector<16x128xi1>
    %426 = vector.broadcast %cst_180 : f32 to vector<16x128xf32>
    %427 = arith.select %425, %411, %426 : vector<16x128xi1>, vector<16x128xf32>
    %cst_181 = arith.constant 0.000000e+00 : f32
    %428 = vector.shape_cast %415 : vector<16x1xi1> to vector<16x1xi1>
    %429 = vector.broadcast %428 : vector<16x1xi1> to vector<16x128xi1>
    %430 = vector.broadcast %cst_181 : f32 to vector<16x128xf32>
    %431 = arith.select %429, %409, %430 : vector<16x128xi1>, vector<16x128xf32>
    %c0_182 = arith.constant 0 : index
    %c0_183 = arith.constant 0 : index
    %432 = vector.load %arg8[%c0_182, %c0_183] : memref<16x128xf32, #tpu.memory_space<vmem>>, vector<16x128xf32>
    tpu.vector_store %arg8[%c0_182, %c0_183], %419 {strides = array<i32>} : memref<16x128xf32, #tpu.memory_space<vmem>>, vector<16x128xf32>,
    %c0_184 = arith.constant 0 : index
    %c0_185 = arith.constant 0 : index
    %433 = vector.load %arg10[%c0_184, %c0_185] : memref<16x128xf32, #tpu.memory_space<vmem>>, vector<16x128xf32>
    tpu.vector_store %arg10[%c0_184, %c0_185], %423 {strides = array<i32>} : memref<16x128xf32, #tpu.memory_space<vmem>>, vector<16x128xf32>,
    %c0_186 = arith.constant 0 : index
    %c0_187 = arith.constant 0 : index
    %434 = vector.load %arg9[%c0_186, %c0_187] : memref<16x128xf32, #tpu.memory_space<vmem>>, vector<16x128xf32>
    tpu.vector_store %arg9[%c0_186, %c0_187], %427 {strides = array<i32>} : memref<16x128xf32, #tpu.memory_space<vmem>>, vector<16x128xf32>,
    %c0_188 = arith.constant 0 : index
    %c0_189 = arith.constant 0 : index
    %435 = vector.load %arg11[%c0_188, %c0_189] : memref<16x128xf32, #tpu.memory_space<vmem>>, vector<16x128xf32>
    tpu.vector_store %arg11[%c0_188, %c0_189], %431 {strides = array<i32>} : memref<16x128xf32, #tpu.memory_space<vmem>>, vector<16x128xf32>,
    %436 = arith.truncf %419 : vector<16x128xf32> to vector<16x128xbf16>
    %437 = arith.index_cast %359 : i32 to index
    %c0_190 = arith.constant 0 : index
    %438 = vector.load %arg6[%437, %c0_190] : memref<128x256xbf16, #tpu.memory_space<vmem>>, vector<16x128xbf16>
    tpu.vector_store %arg6[%437, %c0_190], %436 {strides = array<i32>} : memref<128x256xbf16, #tpu.memory_space<vmem>>, vector<16x128xbf16>,
    %439 = arith.truncf %427 : vector<16x128xf32> to vector<16x128xbf16>
    %440 = arith.index_cast %361 : i32 to index
    %c128_191 = arith.constant 128 : index
    %441 = vector.load %arg6[%440, %c128_191] : memref<128x256xbf16, #tpu.memory_space<vmem>>, vector<16x128xbf16>
    tpu.vector_store %arg6[%440, %c128_191], %439 {strides = array<i32>} : memref<128x256xbf16, #tpu.memory_space<vmem>>, vector<16x128xbf16>,
    %c5_i32 = arith.constant 5 : i32
    %c7_i32_192 = arith.constant 7 : i32
    %442 = arith.subi %c7_i32_192, %c5_i32 : i32
    %c16_i32_193 = arith.constant 16 : i32
    %443 = arith.muli %c5_i32, %c16_i32_193 : i32
    %444 = tpu.assume_multiple %443, 16 : i32
    %c16_i32_194 = arith.constant 16 : i32
    %445 = arith.muli %442, %c16_i32_194 : i32
    %446 = tpu.assume_multiple %445, 16 : i32
    %c0_195 = arith.constant 0 : index
    %c0_196 = arith.constant 0 : index
    %447 = vector.load %arg8[%c0_195, %c0_196] : memref<16x128xf32, #tpu.memory_space<vmem>>, vector<16x128xf32>
    %448 = arith.truncf %447 : vector<16x128xf32> to vector<16x128xbf16>
    %c0_197 = arith.constant 0 : index
    %c0_198 = arith.constant 0 : index
    %449 = vector.load %arg3[%c0_197, %c0_198] : memref<128x512xbf16, #tpu.memory_space<vmem>>, vector<128x512xbf16>
    %cst_199 = arith.constant dense<0.000000e+00> : vector<16x512xf32>
    %450 = tpu.matmul %448, %449, %cst_199 {dimension_numbers = #tpu.dot_dimension_numbers<[1], [0], [0], [1], [0, 0, 1, 1], [], []>} : vector<16x128xbf16>, vector<128x512xbf16>, vector<16x512xf32> -> vector<16x512xf32>
    %c0_200 = arith.constant 0 : index
    %c0_201 = arith.constant 0 : index
    %451 = vector.load %arg9[%c0_200, %c0_201] : memref<16x128xf32, #tpu.memory_space<vmem>>, vector<16x128xf32>
    %452 = arith.truncf %451 : vector<16x128xf32> to vector<16x128xbf16>
    %c0_202 = arith.constant 0 : index
    %c0_203 = arith.constant 0 : index
    %453 = vector.load %arg4[%c0_202, %c0_203] : memref<128x512xbf16, #tpu.memory_space<vmem>>, vector<128x512xbf16>
    %cst_204 = arith.constant dense<0.000000e+00> : vector<16x512xf32>
    %454 = tpu.matmul %452, %453, %cst_204 {dimension_numbers = #tpu.dot_dimension_numbers<[1], [0], [0], [1], [0, 0, 1, 1], [], []>} : vector<16x128xbf16>, vector<128x512xbf16>, vector<16x512xf32> -> vector<16x512xf32>
    %455 = arith.index_cast %444 : i32 to index
    %c0_205 = arith.constant 0 : index
    %456 = vector.load %arg7[%455, %c0_205] : memref<128x1024xbf16, #tpu.memory_space<vmem>>, vector<16x512xbf16>
    %457 = arith.extf %456 : vector<16x512xbf16> to vector<16x512xf32>
    %458 = arith.addf %457, %450 : vector<16x512xf32>
    %459 = arith.index_cast %446 : i32 to index
    %c512_206 = arith.constant 512 : index
    %460 = vector.load %arg7[%459, %c512_206] : memref<128x1024xbf16, #tpu.memory_space<vmem>>, vector<16x512xbf16>
    %461 = arith.extf %460 : vector<16x512xbf16> to vector<16x512xf32>
    %462 = arith.addf %461, %454 : vector<16x512xf32>
    %c0_207 = arith.constant 0 : index
    %c0_208 = arith.constant 0 : index
    %463 = vector.load %arg10[%c0_207, %c0_208] : memref<16x128xf32, #tpu.memory_space<vmem>>, vector<16x128xf32>
    %464 = vector.extract_strided_slice %458 {offsets = [0, 0], sizes = [16, 384], strides = [1, 1]} : vector<16x512xf32> to vector<16x384xf32>
    %465 = arith.negf %464 : vector<16x384xf32>
    %466 = math.exp %465 : vector<16x384xf32>
    %cst_209 = arith.constant 1.000000e+00 : f32
    %467 = vector.broadcast %cst_209 : f32 to vector<16x384xf32>
    %468 = arith.addf %467, %466 : vector<16x384xf32>
    %469 = arith.divf %467, %468 : vector<16x384xf32>
    %470 = vector.extract_strided_slice %458 {offsets = [0, 384], sizes = [16, 128], strides = [1, 1]} : vector<16x512xf32> to vector<16x128xf32>
    %471 = math.tanh %470 : vector<16x128xf32>
    %472 = vector.extract_strided_slice %469 {offsets = [0, 0], sizes = [16, 128], strides = [1, 1]} : vector<16x384xf32> to vector<16x128xf32>
    %473 = vector.extract_strided_slice %469 {offsets = [0, 128], sizes = [16, 128], strides = [1, 1]} : vector<16x384xf32> to vector<16x128xf32>
    %474 = vector.extract_strided_slice %469 {offsets = [0, 256], sizes = [16, 128], strides = [1, 1]} : vector<16x384xf32> to vector<16x128xf32>
    %475 = arith.mulf %473, %463 : vector<16x128xf32>
    %476 = arith.mulf %472, %471 : vector<16x128xf32>
    %477 = arith.addf %475, %476 : vector<16x128xf32>
    %478 = math.tanh %477 : vector<16x128xf32>
    %479 = arith.mulf %474, %478 : vector<16x128xf32>
    %c0_210 = arith.constant 0 : index
    %c0_211 = arith.constant 0 : index
    %480 = vector.load %arg11[%c0_210, %c0_211] : memref<16x128xf32, #tpu.memory_space<vmem>>, vector<16x128xf32>
    %481 = vector.extract_strided_slice %462 {offsets = [0, 0], sizes = [16, 384], strides = [1, 1]} : vector<16x512xf32> to vector<16x384xf32>
    %482 = arith.negf %481 : vector<16x384xf32>
    %483 = math.exp %482 : vector<16x384xf32>
    %cst_212 = arith.constant 1.000000e+00 : f32
    %484 = vector.broadcast %cst_212 : f32 to vector<16x384xf32>
    %485 = arith.addf %484, %483 : vector<16x384xf32>
    %486 = arith.divf %484, %485 : vector<16x384xf32>
    %487 = vector.extract_strided_slice %462 {offsets = [0, 384], sizes = [16, 128], strides = [1, 1]} : vector<16x512xf32> to vector<16x128xf32>
    %488 = math.tanh %487 : vector<16x128xf32>
    %489 = vector.extract_strided_slice %486 {offsets = [0, 0], sizes = [16, 128], strides = [1, 1]} : vector<16x384xf32> to vector<16x128xf32>
    %490 = vector.extract_strided_slice %486 {offsets = [0, 128], sizes = [16, 128], strides = [1, 1]} : vector<16x384xf32> to vector<16x128xf32>
    %491 = vector.extract_strided_slice %486 {offsets = [0, 256], sizes = [16, 128], strides = [1, 1]} : vector<16x384xf32> to vector<16x128xf32>
    %492 = arith.mulf %490, %480 : vector<16x128xf32>
    %493 = arith.mulf %489, %488 : vector<16x128xf32>
    %494 = arith.addf %492, %493 : vector<16x128xf32>
    %495 = math.tanh %494 : vector<16x128xf32>
    %496 = arith.mulf %491, %495 : vector<16x128xf32>
    %497 = vector.broadcast %c5_i32 : i32 to vector<16x1xi32>
    %498 = arith.cmpi slt, %497, %16 : vector<16x1xi32>
    %499 = vector.broadcast %442 : i32 to vector<16x1xi32>
    %500 = arith.cmpi slt, %499, %16 : vector<16x1xi32>
    %cst_213 = arith.constant 0.000000e+00 : f32
    %501 = vector.shape_cast %498 : vector<16x1xi1> to vector<16x1xi1>
    %502 = vector.broadcast %501 : vector<16x1xi1> to vector<16x128xi1>
    %503 = vector.broadcast %cst_213 : f32 to vector<16x128xf32>
    %504 = arith.select %502, %479, %503 : vector<16x128xi1>, vector<16x128xf32>
    %cst_214 = arith.constant 0.000000e+00 : f32
    %505 = vector.shape_cast %498 : vector<16x1xi1> to vector<16x1xi1>
    %506 = vector.broadcast %505 : vector<16x1xi1> to vector<16x128xi1>
    %507 = vector.broadcast %cst_214 : f32 to vector<16x128xf32>
    %508 = arith.select %506, %477, %507 : vector<16x128xi1>, vector<16x128xf32>
    %cst_215 = arith.constant 0.000000e+00 : f32
    %509 = vector.shape_cast %500 : vector<16x1xi1> to vector<16x1xi1>
    %510 = vector.broadcast %509 : vector<16x1xi1> to vector<16x128xi1>
    %511 = vector.broadcast %cst_215 : f32 to vector<16x128xf32>
    %512 = arith.select %510, %496, %511 : vector<16x128xi1>, vector<16x128xf32>
    %cst_216 = arith.constant 0.000000e+00 : f32
    %513 = vector.shape_cast %500 : vector<16x1xi1> to vector<16x1xi1>
    %514 = vector.broadcast %513 : vector<16x1xi1> to vector<16x128xi1>
    %515 = vector.broadcast %cst_216 : f32 to vector<16x128xf32>
    %516 = arith.select %514, %494, %515 : vector<16x128xi1>, vector<16x128xf32>
    %c0_217 = arith.constant 0 : index
    %c0_218 = arith.constant 0 : index
    %517 = vector.load %arg8[%c0_217, %c0_218] : memref<16x128xf32, #tpu.memory_space<vmem>>, vector<16x128xf32>
    tpu.vector_store %arg8[%c0_217, %c0_218], %504 {strides = array<i32>} : memref<16x128xf32, #tpu.memory_space<vmem>>, vector<16x128xf32>,
    %c0_219 = arith.constant 0 : index
    %c0_220 = arith.constant 0 : index
    %518 = vector.load %arg10[%c0_219, %c0_220] : memref<16x128xf32, #tpu.memory_space<vmem>>, vector<16x128xf32>
    tpu.vector_store %arg10[%c0_219, %c0_220], %508 {strides = array<i32>} : memref<16x128xf32, #tpu.memory_space<vmem>>, vector<16x128xf32>,
    %c0_221 = arith.constant 0 : index
    %c0_222 = arith.constant 0 : index
    %519 = vector.load %arg9[%c0_221, %c0_222] : memref<16x128xf32, #tpu.memory_space<vmem>>, vector<16x128xf32>
    tpu.vector_store %arg9[%c0_221, %c0_222], %512 {strides = array<i32>} : memref<16x128xf32, #tpu.memory_space<vmem>>, vector<16x128xf32>,
    %c0_223 = arith.constant 0 : index
    %c0_224 = arith.constant 0 : index
    %520 = vector.load %arg11[%c0_223, %c0_224] : memref<16x128xf32, #tpu.memory_space<vmem>>, vector<16x128xf32>
    tpu.vector_store %arg11[%c0_223, %c0_224], %516 {strides = array<i32>} : memref<16x128xf32, #tpu.memory_space<vmem>>, vector<16x128xf32>,
    %521 = arith.truncf %504 : vector<16x128xf32> to vector<16x128xbf16>
    %522 = arith.index_cast %444 : i32 to index
    %c0_225 = arith.constant 0 : index
    %523 = vector.load %arg6[%522, %c0_225] : memref<128x256xbf16, #tpu.memory_space<vmem>>, vector<16x128xbf16>
    tpu.vector_store %arg6[%522, %c0_225], %521 {strides = array<i32>} : memref<128x256xbf16, #tpu.memory_space<vmem>>, vector<16x128xbf16>,
    %524 = arith.truncf %512 : vector<16x128xf32> to vector<16x128xbf16>
    %525 = arith.index_cast %446 : i32 to index
    %c128_226 = arith.constant 128 : index
    %526 = vector.load %arg6[%525, %c128_226] : memref<128x256xbf16, #tpu.memory_space<vmem>>, vector<16x128xbf16>
    tpu.vector_store %arg6[%525, %c128_226], %524 {strides = array<i32>} : memref<128x256xbf16, #tpu.memory_space<vmem>>, vector<16x128xbf16>,
    %c6_i32 = arith.constant 6 : i32
    %c7_i32_227 = arith.constant 7 : i32
    %527 = arith.subi %c7_i32_227, %c6_i32 : i32
    %c16_i32_228 = arith.constant 16 : i32
    %528 = arith.muli %c6_i32, %c16_i32_228 : i32
    %529 = tpu.assume_multiple %528, 16 : i32
    %c16_i32_229 = arith.constant 16 : i32
    %530 = arith.muli %527, %c16_i32_229 : i32
    %531 = tpu.assume_multiple %530, 16 : i32
    %c0_230 = arith.constant 0 : index
    %c0_231 = arith.constant 0 : index
    %532 = vector.load %arg8[%c0_230, %c0_231] : memref<16x128xf32, #tpu.memory_space<vmem>>, vector<16x128xf32>
    %533 = arith.truncf %532 : vector<16x128xf32> to vector<16x128xbf16>
    %c0_232 = arith.constant 0 : index
    %c0_233 = arith.constant 0 : index
    %534 = vector.load %arg3[%c0_232, %c0_233] : memref<128x512xbf16, #tpu.memory_space<vmem>>, vector<128x512xbf16>
    %cst_234 = arith.constant dense<0.000000e+00> : vector<16x512xf32>
    %535 = tpu.matmul %533, %534, %cst_234 {dimension_numbers = #tpu.dot_dimension_numbers<[1], [0], [0], [1], [0, 0, 1, 1], [], []>} : vector<16x128xbf16>, vector<128x512xbf16>, vector<16x512xf32> -> vector<16x512xf32>
    %c0_235 = arith.constant 0 : index
    %c0_236 = arith.constant 0 : index
    %536 = vector.load %arg9[%c0_235, %c0_236] : memref<16x128xf32, #tpu.memory_space<vmem>>, vector<16x128xf32>
    %537 = arith.truncf %536 : vector<16x128xf32> to vector<16x128xbf16>
    %c0_237 = arith.constant 0 : index
    %c0_238 = arith.constant 0 : index
    %538 = vector.load %arg4[%c0_237, %c0_238] : memref<128x512xbf16, #tpu.memory_space<vmem>>, vector<128x512xbf16>
    %cst_239 = arith.constant dense<0.000000e+00> : vector<16x512xf32>
    %539 = tpu.matmul %537, %538, %cst_239 {dimension_numbers = #tpu.dot_dimension_numbers<[1], [0], [0], [1], [0, 0, 1, 1], [], []>} : vector<16x128xbf16>, vector<128x512xbf16>, vector<16x512xf32> -> vector<16x512xf32>
    %540 = arith.index_cast %529 : i32 to index
    %c0_240 = arith.constant 0 : index
    %541 = vector.load %arg7[%540, %c0_240] : memref<128x1024xbf16, #tpu.memory_space<vmem>>, vector<16x512xbf16>
    %542 = arith.extf %541 : vector<16x512xbf16> to vector<16x512xf32>
    %543 = arith.addf %542, %535 : vector<16x512xf32>
    %544 = arith.index_cast %531 : i32 to index
    %c512_241 = arith.constant 512 : index
    %545 = vector.load %arg7[%544, %c512_241] : memref<128x1024xbf16, #tpu.memory_space<vmem>>, vector<16x512xbf16>
    %546 = arith.extf %545 : vector<16x512xbf16> to vector<16x512xf32>
    %547 = arith.addf %546, %539 : vector<16x512xf32>
    %c0_242 = arith.constant 0 : index
    %c0_243 = arith.constant 0 : index
    %548 = vector.load %arg10[%c0_242, %c0_243] : memref<16x128xf32, #tpu.memory_space<vmem>>, vector<16x128xf32>
    %549 = vector.extract_strided_slice %543 {offsets = [0, 0], sizes = [16, 384], strides = [1, 1]} : vector<16x512xf32> to vector<16x384xf32>
    %550 = arith.negf %549 : vector<16x384xf32>
    %551 = math.exp %550 : vector<16x384xf32>
    %cst_244 = arith.constant 1.000000e+00 : f32
    %552 = vector.broadcast %cst_244 : f32 to vector<16x384xf32>
    %553 = arith.addf %552, %551 : vector<16x384xf32>
    %554 = arith.divf %552, %553 : vector<16x384xf32>
    %555 = vector.extract_strided_slice %543 {offsets = [0, 384], sizes = [16, 128], strides = [1, 1]} : vector<16x512xf32> to vector<16x128xf32>
    %556 = math.tanh %555 : vector<16x128xf32>
    %557 = vector.extract_strided_slice %554 {offsets = [0, 0], sizes = [16, 128], strides = [1, 1]} : vector<16x384xf32> to vector<16x128xf32>
    %558 = vector.extract_strided_slice %554 {offsets = [0, 128], sizes = [16, 128], strides = [1, 1]} : vector<16x384xf32> to vector<16x128xf32>
    %559 = vector.extract_strided_slice %554 {offsets = [0, 256], sizes = [16, 128], strides = [1, 1]} : vector<16x384xf32> to vector<16x128xf32>
    %560 = arith.mulf %558, %548 : vector<16x128xf32>
    %561 = arith.mulf %557, %556 : vector<16x128xf32>
    %562 = arith.addf %560, %561 : vector<16x128xf32>
    %563 = math.tanh %562 : vector<16x128xf32>
    %564 = arith.mulf %559, %563 : vector<16x128xf32>
    %c0_245 = arith.constant 0 : index
    %c0_246 = arith.constant 0 : index
    %565 = vector.load %arg11[%c0_245, %c0_246] : memref<16x128xf32, #tpu.memory_space<vmem>>, vector<16x128xf32>
    %566 = vector.extract_strided_slice %547 {offsets = [0, 0], sizes = [16, 384], strides = [1, 1]} : vector<16x512xf32> to vector<16x384xf32>
    %567 = arith.negf %566 : vector<16x384xf32>
    %568 = math.exp %567 : vector<16x384xf32>
    %cst_247 = arith.constant 1.000000e+00 : f32
    %569 = vector.broadcast %cst_247 : f32 to vector<16x384xf32>
    %570 = arith.addf %569, %568 : vector<16x384xf32>
    %571 = arith.divf %569, %570 : vector<16x384xf32>
    %572 = vector.extract_strided_slice %547 {offsets = [0, 384], sizes = [16, 128], strides = [1, 1]} : vector<16x512xf32> to vector<16x128xf32>
    %573 = math.tanh %572 : vector<16x128xf32>
    %574 = vector.extract_strided_slice %571 {offsets = [0, 0], sizes = [16, 128], strides = [1, 1]} : vector<16x384xf32> to vector<16x128xf32>
    %575 = vector.extract_strided_slice %571 {offsets = [0, 128], sizes = [16, 128], strides = [1, 1]} : vector<16x384xf32> to vector<16x128xf32>
    %576 = vector.extract_strided_slice %571 {offsets = [0, 256], sizes = [16, 128], strides = [1, 1]} : vector<16x384xf32> to vector<16x128xf32>
    %577 = arith.mulf %575, %565 : vector<16x128xf32>
    %578 = arith.mulf %574, %573 : vector<16x128xf32>
    %579 = arith.addf %577, %578 : vector<16x128xf32>
    %580 = math.tanh %579 : vector<16x128xf32>
    %581 = arith.mulf %576, %580 : vector<16x128xf32>
    %582 = vector.broadcast %c6_i32 : i32 to vector<16x1xi32>
    %583 = arith.cmpi slt, %582, %16 : vector<16x1xi32>
    %584 = vector.broadcast %527 : i32 to vector<16x1xi32>
    %585 = arith.cmpi slt, %584, %16 : vector<16x1xi32>
    %cst_248 = arith.constant 0.000000e+00 : f32
    %586 = vector.shape_cast %583 : vector<16x1xi1> to vector<16x1xi1>
    %587 = vector.broadcast %586 : vector<16x1xi1> to vector<16x128xi1>
    %588 = vector.broadcast %cst_248 : f32 to vector<16x128xf32>
    %589 = arith.select %587, %564, %588 : vector<16x128xi1>, vector<16x128xf32>
    %cst_249 = arith.constant 0.000000e+00 : f32
    %590 = vector.shape_cast %583 : vector<16x1xi1> to vector<16x1xi1>
    %591 = vector.broadcast %590 : vector<16x1xi1> to vector<16x128xi1>
    %592 = vector.broadcast %cst_249 : f32 to vector<16x128xf32>
    %593 = arith.select %591, %562, %592 : vector<16x128xi1>, vector<16x128xf32>
    %cst_250 = arith.constant 0.000000e+00 : f32
    %594 = vector.shape_cast %585 : vector<16x1xi1> to vector<16x1xi1>
    %595 = vector.broadcast %594 : vector<16x1xi1> to vector<16x128xi1>
    %596 = vector.broadcast %cst_250 : f32 to vector<16x128xf32>
    %597 = arith.select %595, %581, %596 : vector<16x128xi1>, vector<16x128xf32>
    %cst_251 = arith.constant 0.000000e+00 : f32
    %598 = vector.shape_cast %585 : vector<16x1xi1> to vector<16x1xi1>
    %599 = vector.broadcast %598 : vector<16x1xi1> to vector<16x128xi1>
    %600 = vector.broadcast %cst_251 : f32 to vector<16x128xf32>
    %601 = arith.select %599, %579, %600 : vector<16x128xi1>, vector<16x128xf32>
    %c0_252 = arith.constant 0 : index
    %c0_253 = arith.constant 0 : index
    %602 = vector.load %arg8[%c0_252, %c0_253] : memref<16x128xf32, #tpu.memory_space<vmem>>, vector<16x128xf32>
    tpu.vector_store %arg8[%c0_252, %c0_253], %589 {strides = array<i32>} : memref<16x128xf32, #tpu.memory_space<vmem>>, vector<16x128xf32>,
    %c0_254 = arith.constant 0 : index
    %c0_255 = arith.constant 0 : index
    %603 = vector.load %arg10[%c0_254, %c0_255] : memref<16x128xf32, #tpu.memory_space<vmem>>, vector<16x128xf32>
    tpu.vector_store %arg10[%c0_254, %c0_255], %593 {strides = array<i32>} : memref<16x128xf32, #tpu.memory_space<vmem>>, vector<16x128xf32>,
    %c0_256 = arith.constant 0 : index
    %c0_257 = arith.constant 0 : index
    %604 = vector.load %arg9[%c0_256, %c0_257] : memref<16x128xf32, #tpu.memory_space<vmem>>, vector<16x128xf32>
    tpu.vector_store %arg9[%c0_256, %c0_257], %597 {strides = array<i32>} : memref<16x128xf32, #tpu.memory_space<vmem>>, vector<16x128xf32>,
    %c0_258 = arith.constant 0 : index
    %c0_259 = arith.constant 0 : index
    %605 = vector.load %arg11[%c0_258, %c0_259] : memref<16x128xf32, #tpu.memory_space<vmem>>, vector<16x128xf32>
    tpu.vector_store %arg11[%c0_258, %c0_259], %601 {strides = array<i32>} : memref<16x128xf32, #tpu.memory_space<vmem>>, vector<16x128xf32>,
    %606 = arith.truncf %589 : vector<16x128xf32> to vector<16x128xbf16>
    %607 = arith.index_cast %529 : i32 to index
    %c0_260 = arith.constant 0 : index
    %608 = vector.load %arg6[%607, %c0_260] : memref<128x256xbf16, #tpu.memory_space<vmem>>, vector<16x128xbf16>
    tpu.vector_store %arg6[%607, %c0_260], %606 {strides = array<i32>} : memref<128x256xbf16, #tpu.memory_space<vmem>>, vector<16x128xbf16>,
    %609 = arith.truncf %597 : vector<16x128xf32> to vector<16x128xbf16>
    %610 = arith.index_cast %531 : i32 to index
    %c128_261 = arith.constant 128 : index
    %611 = vector.load %arg6[%610, %c128_261] : memref<128x256xbf16, #tpu.memory_space<vmem>>, vector<16x128xbf16>
    tpu.vector_store %arg6[%610, %c128_261], %609 {strides = array<i32>} : memref<128x256xbf16, #tpu.memory_space<vmem>>, vector<16x128xbf16>,
    %c7_i32_262 = arith.constant 7 : i32
    %c7_i32_263 = arith.constant 7 : i32
    %612 = arith.subi %c7_i32_263, %c7_i32_262 : i32
    %c16_i32_264 = arith.constant 16 : i32
    %613 = arith.muli %c7_i32_262, %c16_i32_264 : i32
    %614 = tpu.assume_multiple %613, 16 : i32
    %c16_i32_265 = arith.constant 16 : i32
    %615 = arith.muli %612, %c16_i32_265 : i32
    %616 = tpu.assume_multiple %615, 16 : i32
    %c0_266 = arith.constant 0 : index
    %c0_267 = arith.constant 0 : index
    %617 = vector.load %arg8[%c0_266, %c0_267] : memref<16x128xf32, #tpu.memory_space<vmem>>, vector<16x128xf32>
    %618 = arith.truncf %617 : vector<16x128xf32> to vector<16x128xbf16>
    %c0_268 = arith.constant 0 : index
    %c0_269 = arith.constant 0 : index
    %619 = vector.load %arg3[%c0_268, %c0_269] : memref<128x512xbf16, #tpu.memory_space<vmem>>, vector<128x512xbf16>
    %cst_270 = arith.constant dense<0.000000e+00> : vector<16x512xf32>
    %620 = tpu.matmul %618, %619, %cst_270 {dimension_numbers = #tpu.dot_dimension_numbers<[1], [0], [0], [1], [0, 0, 1, 1], [], []>} : vector<16x128xbf16>, vector<128x512xbf16>, vector<16x512xf32> -> vector<16x512xf32>
    %c0_271 = arith.constant 0 : index
    %c0_272 = arith.constant 0 : index
    %621 = vector.load %arg9[%c0_271, %c0_272] : memref<16x128xf32, #tpu.memory_space<vmem>>, vector<16x128xf32>
    %622 = arith.truncf %621 : vector<16x128xf32> to vector<16x128xbf16>
    %c0_273 = arith.constant 0 : index
    %c0_274 = arith.constant 0 : index
    %623 = vector.load %arg4[%c0_273, %c0_274] : memref<128x512xbf16, #tpu.memory_space<vmem>>, vector<128x512xbf16>
    %cst_275 = arith.constant dense<0.000000e+00> : vector<16x512xf32>
    %624 = tpu.matmul %622, %623, %cst_275 {dimension_numbers = #tpu.dot_dimension_numbers<[1], [0], [0], [1], [0, 0, 1, 1], [], []>} : vector<16x128xbf16>, vector<128x512xbf16>, vector<16x512xf32> -> vector<16x512xf32>
    %625 = arith.index_cast %614 : i32 to index
    %c0_276 = arith.constant 0 : index
    %626 = vector.load %arg7[%625, %c0_276] : memref<128x1024xbf16, #tpu.memory_space<vmem>>, vector<16x512xbf16>
    %627 = arith.extf %626 : vector<16x512xbf16> to vector<16x512xf32>
    %628 = arith.addf %627, %620 : vector<16x512xf32>
    %629 = arith.index_cast %616 : i32 to index
    %c512_277 = arith.constant 512 : index
    %630 = vector.load %arg7[%629, %c512_277] : memref<128x1024xbf16, #tpu.memory_space<vmem>>, vector<16x512xbf16>
    %631 = arith.extf %630 : vector<16x512xbf16> to vector<16x512xf32>
    %632 = arith.addf %631, %624 : vector<16x512xf32>
    %c0_278 = arith.constant 0 : index
    %c0_279 = arith.constant 0 : index
    %633 = vector.load %arg10[%c0_278, %c0_279] : memref<16x128xf32, #tpu.memory_space<vmem>>, vector<16x128xf32>
    %634 = vector.extract_strided_slice %628 {offsets = [0, 0], sizes = [16, 384], strides = [1, 1]} : vector<16x512xf32> to vector<16x384xf32>
    %635 = arith.negf %634 : vector<16x384xf32>
    %636 = math.exp %635 : vector<16x384xf32>
    %cst_280 = arith.constant 1.000000e+00 : f32
    %637 = vector.broadcast %cst_280 : f32 to vector<16x384xf32>
    %638 = arith.addf %637, %636 : vector<16x384xf32>
    %639 = arith.divf %637, %638 : vector<16x384xf32>
    %640 = vector.extract_strided_slice %628 {offsets = [0, 384], sizes = [16, 128], strides = [1, 1]} : vector<16x512xf32> to vector<16x128xf32>
    %641 = math.tanh %640 : vector<16x128xf32>
    %642 = vector.extract_strided_slice %639 {offsets = [0, 0], sizes = [16, 128], strides = [1, 1]} : vector<16x384xf32> to vector<16x128xf32>
    %643 = vector.extract_strided_slice %639 {offsets = [0, 128], sizes = [16, 128], strides = [1, 1]} : vector<16x384xf32> to vector<16x128xf32>
    %644 = vector.extract_strided_slice %639 {offsets = [0, 256], sizes = [16, 128], strides = [1, 1]} : vector<16x384xf32> to vector<16x128xf32>
    %645 = arith.mulf %643, %633 : vector<16x128xf32>
    %646 = arith.mulf %642, %641 : vector<16x128xf32>
    %647 = arith.addf %645, %646 : vector<16x128xf32>
    %648 = math.tanh %647 : vector<16x128xf32>
    %649 = arith.mulf %644, %648 : vector<16x128xf32>
    %c0_281 = arith.constant 0 : index
    %c0_282 = arith.constant 0 : index
    %650 = vector.load %arg11[%c0_281, %c0_282] : memref<16x128xf32, #tpu.memory_space<vmem>>, vector<16x128xf32>
    %651 = vector.extract_strided_slice %632 {offsets = [0, 0], sizes = [16, 384], strides = [1, 1]} : vector<16x512xf32> to vector<16x384xf32>
    %652 = arith.negf %651 : vector<16x384xf32>
    %653 = math.exp %652 : vector<16x384xf32>
    %cst_283 = arith.constant 1.000000e+00 : f32
    %654 = vector.broadcast %cst_283 : f32 to vector<16x384xf32>
    %655 = arith.addf %654, %653 : vector<16x384xf32>
    %656 = arith.divf %654, %655 : vector<16x384xf32>
    %657 = vector.extract_strided_slice %632 {offsets = [0, 384], sizes = [16, 128], strides = [1, 1]} : vector<16x512xf32> to vector<16x128xf32>
    %658 = math.tanh %657 : vector<16x128xf32>
    %659 = vector.extract_strided_slice %656 {offsets = [0, 0], sizes = [16, 128], strides = [1, 1]} : vector<16x384xf32> to vector<16x128xf32>
    %660 = vector.extract_strided_slice %656 {offsets = [0, 128], sizes = [16, 128], strides = [1, 1]} : vector<16x384xf32> to vector<16x128xf32>
    %661 = vector.extract_strided_slice %656 {offsets = [0, 256], sizes = [16, 128], strides = [1, 1]} : vector<16x384xf32> to vector<16x128xf32>
    %662 = arith.mulf %660, %650 : vector<16x128xf32>
    %663 = arith.mulf %659, %658 : vector<16x128xf32>
    %664 = arith.addf %662, %663 : vector<16x128xf32>
    %665 = math.tanh %664 : vector<16x128xf32>
    %666 = arith.mulf %661, %665 : vector<16x128xf32>
    %667 = vector.broadcast %c7_i32_262 : i32 to vector<16x1xi32>
    %668 = arith.cmpi slt, %667, %16 : vector<16x1xi32>
    %669 = vector.broadcast %612 : i32 to vector<16x1xi32>
    %670 = arith.cmpi slt, %669, %16 : vector<16x1xi32>
    %cst_284 = arith.constant 0.000000e+00 : f32
    %671 = vector.shape_cast %668 : vector<16x1xi1> to vector<16x1xi1>
    %672 = vector.broadcast %671 : vector<16x1xi1> to vector<16x128xi1>
    %673 = vector.broadcast %cst_284 : f32 to vector<16x128xf32>
    %674 = arith.select %672, %649, %673 : vector<16x128xi1>, vector<16x128xf32>
    %cst_285 = arith.constant 0.000000e+00 : f32
    %675 = vector.shape_cast %668 : vector<16x1xi1> to vector<16x1xi1>
    %676 = vector.broadcast %675 : vector<16x1xi1> to vector<16x128xi1>
    %677 = vector.broadcast %cst_285 : f32 to vector<16x128xf32>
    %678 = arith.select %676, %647, %677 : vector<16x128xi1>, vector<16x128xf32>
    %cst_286 = arith.constant 0.000000e+00 : f32
    %679 = vector.shape_cast %670 : vector<16x1xi1> to vector<16x1xi1>
    %680 = vector.broadcast %679 : vector<16x1xi1> to vector<16x128xi1>
    %681 = vector.broadcast %cst_286 : f32 to vector<16x128xf32>
    %682 = arith.select %680, %666, %681 : vector<16x128xi1>, vector<16x128xf32>
    %cst_287 = arith.constant 0.000000e+00 : f32
    %683 = vector.shape_cast %670 : vector<16x1xi1> to vector<16x1xi1>
    %684 = vector.broadcast %683 : vector<16x1xi1> to vector<16x128xi1>
    %685 = vector.broadcast %cst_287 : f32 to vector<16x128xf32>
    %686 = arith.select %684, %664, %685 : vector<16x128xi1>, vector<16x128xf32>
    %c0_288 = arith.constant 0 : index
    %c0_289 = arith.constant 0 : index
    %687 = vector.load %arg8[%c0_288, %c0_289] : memref<16x128xf32, #tpu.memory_space<vmem>>, vector<16x128xf32>
    tpu.vector_store %arg8[%c0_288, %c0_289], %674 {strides = array<i32>} : memref<16x128xf32, #tpu.memory_space<vmem>>, vector<16x128xf32>,
    %c0_290 = arith.constant 0 : index
    %c0_291 = arith.constant 0 : index
    %688 = vector.load %arg10[%c0_290, %c0_291] : memref<16x128xf32, #tpu.memory_space<vmem>>, vector<16x128xf32>
    tpu.vector_store %arg10[%c0_290, %c0_291], %678 {strides = array<i32>} : memref<16x128xf32, #tpu.memory_space<vmem>>, vector<16x128xf32>,
    %c0_292 = arith.constant 0 : index
    %c0_293 = arith.constant 0 : index
    %689 = vector.load %arg9[%c0_292, %c0_293] : memref<16x128xf32, #tpu.memory_space<vmem>>, vector<16x128xf32>
    tpu.vector_store %arg9[%c0_292, %c0_293], %682 {strides = array<i32>} : memref<16x128xf32, #tpu.memory_space<vmem>>, vector<16x128xf32>,
    %c0_294 = arith.constant 0 : index
    %c0_295 = arith.constant 0 : index
    %690 = vector.load %arg11[%c0_294, %c0_295] : memref<16x128xf32, #tpu.memory_space<vmem>>, vector<16x128xf32>
    tpu.vector_store %arg11[%c0_294, %c0_295], %686 {strides = array<i32>} : memref<16x128xf32, #tpu.memory_space<vmem>>, vector<16x128xf32>,
    %691 = arith.truncf %674 : vector<16x128xf32> to vector<16x128xbf16>
    %692 = arith.index_cast %614 : i32 to index
    %c0_296 = arith.constant 0 : index
    %693 = vector.load %arg6[%692, %c0_296] : memref<128x256xbf16, #tpu.memory_space<vmem>>, vector<16x128xbf16>
    tpu.vector_store %arg6[%692, %c0_296], %691 {strides = array<i32>} : memref<128x256xbf16, #tpu.memory_space<vmem>>, vector<16x128xbf16>,
    %694 = arith.truncf %682 : vector<16x128xf32> to vector<16x128xbf16>
    %695 = arith.index_cast %616 : i32 to index
    %c128_297 = arith.constant 128 : index
    %696 = vector.load %arg6[%695, %c128_297] : memref<128x256xbf16, #tpu.memory_space<vmem>>, vector<16x128xbf16>
    tpu.vector_store %arg6[%695, %c128_297], %694 {strides = array<i32>} : memref<128x256xbf16, #tpu.memory_space<vmem>>, vector<16x128xbf16>,
    %c8_i32 = arith.constant 8 : i32
    return
  }
}

</mosaic_0001>

<bundles_post_ra>
// kernel: tpu_custom_call.1
= control target key start
LH: loop header
LB: loop body
LE: loop exit
PB: predicated region body
PF: predicated region fallthrough
CT: control target
= control target key end

     0   :  { %11 = vsyncpa [#allocation8], 0  ;;  %s10979_s0 = inlined_call_operand.vmem [shape: s32[16,1], index: 0, kind: input, shape index: {}]   ;;  %s10980_s1 = inlined_call_operand.hbm [shape: bf16[128,128], index: 1, kind: input, shape index: {}]   ;;  %s10981_s2 = inlined_call_operand.hbm [shape: bf16[128,1024], index: 2, kind: input, shape index: {}]   ;;  %s10982_s3 = inlined_call_operand.hbm [shape: bf16[128,512], index: 3, kind: input, shape index: {}]   ;;  %s10983_s4 = inlined_call_operand.hbm [shape: bf16[128,512], index: 4, kind: input, shape index: {}]   ;;  %s10984_s5 = inlined_call_operand.vmem [shape: f32[1,1024], index: 5, kind: input, shape index: {}]   ;;  %s10985_s6 = inlined_call_operand.hbm [shape: bf16[128,256], index: 6, kind: output, shape index: {}]  }
   0x1   :  { %12 = vsyncpa [#allocation11], 0 }
   0x2   :  { %13 = vsyncpa [#allocation14], 0 }
   0x3   :  { %14 = vsyncpa [#allocation9], 0  ;;  %s9224_s21 = smov [#allocation10]   ;;  %s9106_s25 = scalar_lea.hbm %s10981_s2, 8192 }
   0x4   :  { %s34_s22 = sshll.u32 %s9224_s21, 4  ;;  %p9107_p0 = scmp.ne.s32.totalorder %s10981_s2, %s9106_s25  ;;  %s35_s22 = int_to_ptr.vmem [resolvable:$true] %s34_s22 }
   0x5   :  { %p9110_p1 = scmp.lt.u32.totalorder %s9106_s25, %s10981_s2 }
   0x7   :  { %p9112_p2 = pnand %p9110_p1, %p9107_p0 }
   0x9   :  { %9115 = shalt.err (!%p9112_p2)
}
   0xa   :  { %s9116_s30 = scalar_lea.vmem %s35_s22, 8192  ;;  %p9121_p4 = scmp.lt.s32.totalorder %s35_s22, %s35_s22 }
   0xb   :  { %p9117_p3 = scmp.ne.s32.totalorder %s35_s22, %s9116_s30  ;;  %p9122_p5 = scmp.lt.s32.totalorder %s9116_s30, %s9116_s30 }
   0xd   :  { %p9123_p6 = por %p9122_p5, %p9121_p4 }
   0xf   :  { %p9124_p7 = pnand %p9123_p6, %p9117_p3 }
  0x11   :  { %9127 = shalt.err (!%p9124_p7)
}
  0x12   :  { %s9225_s7 = smov 512   ;;  %s9226_s8 = smov 32  }
  0x13   :  { %40 = dma.hbm_to_vmem [thread:$0]  %s10981_s2, 8192, %s35_s22, [#allocation11], %s9225_s7, %s9225_s7, %s9226_s8  }
  0x14   :  { %s9227_s11 = smov [#allocation7]   ;;  %s9128_s15 = scalar_lea.hbm %s10980_s1, 1024 }
  0x15   :  { %s22_s12 = sshll.u32 %s9227_s11, 4  ;;  %p9129_p8 = scmp.ne.s32.totalorder %s10980_s1, %s9128_s15  ;;  %s23_s12 = int_to_ptr.vmem [resolvable:$true] %s22_s12 }
  0x16   :  { %p9132_p9 = scmp.lt.u32.totalorder %s9128_s15, %s10980_s1 }
  0x18   :  { %p9134_p10 = pnand %p9132_p9, %p9129_p8 }
  0x1a   :  { %9137 = shalt.err (!%p9134_p10)
}
  0x1b   :  { %s9138_s20 = scalar_lea.vmem %s23_s12, 1024  ;;  %p9143_p12 = scmp.lt.s32.totalorder %s23_s12, %s23_s12 }
  0x1c   :  { %p9139_p11 = scmp.ne.s32.totalorder %s23_s12, %s9138_s20  ;;  %p9144_p13 = scmp.lt.s32.totalorder %s9138_s20, %s9138_s20 }
  0x1e   :  { %p9145_p0 = por %p9144_p13, %p9143_p12 }
  0x20   :  { %p9146_p1 = pnand %p9145_p0, %p9139_p11 }
  0x22   :  { %9149 = shalt.err (!%p9146_p1)
}
  0x23   :  { %s9228_s2 = smov 64   ;;  %s9229_s21 = smov 4  }
  0x24   :  { %28 = dma.hbm_to_vmem [thread:$0]  %s10980_s1, 1024, %s23_s12, [#allocation8], %s9228_s2, %s9228_s2, %s9229_s21  }
  0x25   :  { %s9230_s24 = smov [#allocation12]   ;;  %s9150_s28 = scalar_lea.hbm %s10982_s3, 4096 }
  0x26   :  { %s46_s25 = sshll.u32 %s9230_s24, 4  ;;  %p9151_p2 = scmp.ne.s32.totalorder %s10982_s3, %s9150_s28  ;;  %s47_s25 = int_to_ptr.vmem [resolvable:$true] %s46_s25 }
  0x27   :  { %p9154_p3 = scmp.lt.u32.totalorder %s9150_s28, %s10982_s3 }
  0x29   :  { %p9156_p4 = pnand %p9154_p3, %p9151_p2 }
  0x2b   :  { %9159 = shalt.err (!%p9156_p4)
}
  0x2c   :  { %s9160_s9 = scalar_lea.vmem %s47_s25, 4096  ;;  %p9165_p6 = scmp.lt.s32.totalorder %s47_s25, %s47_s25 }
  0x2d   :  { %p9161_p5 = scmp.ne.s32.totalorder %s47_s25, %s9160_s9  ;;  %p9166_p7 = scmp.lt.s32.totalorder %s9160_s9, %s9160_s9 }
  0x2f   :  { %p9167_p8 = por %p9166_p7, %p9165_p6 }
  0x31   :  { %p9168_p9 = pnand %p9167_p8, %p9161_p5 }
  0x33   :  { %9171 = shalt.err (!%p9168_p9)
}
  0x34   :  { %s9231_s1 = smov 256   ;;  %s9232_s10 = smov 16  }
  0x35   :  { %52 = dma.hbm_to_vmem [thread:$0]  %s10982_s3, 4096, %s47_s25, [#allocation11], %s9231_s1, %s9231_s1, %s9232_s10  }
  0x36   :  { %s9233_s13 = smov [#allocation13]   ;;  %s9172_s17 = scalar_lea.hbm %s10983_s4, 4096 }
  0x37   :  { %s58_s14 = sshll.u32 %s9233_s13, 4  ;;  %p9173_p10 = scmp.ne.s32.totalorder %s10983_s4, %s9172_s17  ;;  %s59_s14 = int_to_ptr.vmem [resolvable:$true] %s58_s14 }
  0x38   :  { %p9176_p11 = scmp.lt.u32.totalorder %s9172_s17, %s10983_s4 }
  0x3a   :  { %p9178_p12 = pnand %p9176_p11, %p9173_p10 }
  0x3c   :  { %9181 = shalt.err (!%p9178_p12)
}
  0x3d   :  { %s9182_s21 = scalar_lea.vmem %s59_s14, 4096  ;;  %p9187_p0 = scmp.lt.s32.totalorder %s59_s14, %s59_s14 }
  0x3e   :  { %p9183_p13 = scmp.ne.s32.totalorder %s59_s14, %s9182_s21  ;;  %p9188_p1 = scmp.lt.s32.totalorder %s9182_s21, %s9182_s21 }
  0x40   :  { %p9189_p2 = por %p9188_p1, %p9187_p0 }
  0x42   :  { %p9190_p3 = pnand %p9189_p2, %p9183_p13 }
  0x44   :  { %9193 = shalt.err (!%p9190_p3)
}
  0x45   :  { %64 = dma.hbm_to_vmem [thread:$0]  %s10983_s4, 4096, %s59_s14, [#allocation14], %s9231_s1, %s9231_s1, %s9232_s10  }
  0x46   :  { %9216 = dma.done.wait [#allocation8], 1024  }
  0x47   :  { %9217 = vsyncadd [#allocation8], 4294966272 }
  0x48   :  { %9218 = dma.done.wait [#allocation11], 12288  }
  0x49   :  { %9219 = vsyncadd [#allocation11], 4294955008 }
  0x4a   :  { %9220 = dma.done.wait [#allocation14], 4096  }
  0x4b   :  { %9221 = vsyncadd [#allocation14], 4294963200  ;;  %v10986_v0 = vmov 0   ;;  %v96_v1 = vld [vmem:[#allocation10] sm:$0xff]  ;;  %v97_v3 = vld [vmem:[#allocation10 + $0x8] sm:$0xff] }
  0x4c   :  { %602 = vmatprep.mubr.bf16.mxu0 %v10986_v0  ;;  %715 = vmatprep.mubr.bf16.mxu1 %v10986_v0  ;;  %v100_v2 = vld [vmem:[#allocation10 + $0x20] sm:$0xff]  ;;  %v101_v5 = vld [vmem:[#allocation10 + $0x28] sm:$0xff]  ;;  %v98_v62 = vld [vmem:[#allocation10 + $0x10] sm:$0xff] }
  0x4d   :  { %8085 = vset.pattern.permute.xlu1 %v10986_v0  ;;  %8084 = vset.pattern.permute.xlu0 %v10986_v0  ;;  %v7250_v4 = vcombine.high %v96_v1, %v100_v2  ;;  %v7249_v6 = vcombine.low %v96_v1, %v100_v2  ;;  %v104_v7 = vld [vmem:[#allocation10 + $0x40] sm:$0xff]  ;;  %v7252_v9 = vcombine.high %v97_v3, %v101_v5  ;;  %v105_v12 = vld [vmem:[#allocation10 + $0x48] sm:$0xff]  ;;  %v102_v1 = vld [vmem:[#allocation10 + $0x30] sm:$0xff] }
  0x4e   :  { %v108_v8 = vld [vmem:[#allocation10 + $0x60] sm:$0xff]  ;;  %v7251_v10 = vcombine.low %v97_v3, %v101_v5  ;;  %v109_v13 = vld [vmem:[#allocation10 + $0x68] sm:$0xff]  ;;  %v99_v2 = vld [vmem:[#allocation10 + $0x18] sm:$0xff] }
  0x4f   :  { %v7258_v11 = vcombine.high %v104_v7, %v108_v8  ;;  %v112_v14 = vld [vmem:[#allocation10 + $0x80] sm:$0xff]  ;;  %570 = vmatprep.subr.bf16.mxu0 %v7250_v4  ;;  %v7260_v15 = vcombine.high %v105_v12, %v109_v13  ;;  %v113_v17 = vld [vmem:[#allocation10 + $0x88] sm:$0xff]  ;;  %683 = vmatprep.subr.bf16.mxu1 %v7252_v9  ;;  %v7257_v19 = vcombine.low %v104_v7, %v108_v8  ;;  %v103_v3 = vld [vmem:[#allocation10 + $0x38] sm:$0xff] }
  0x50   :  { %v116_v16 = vld [vmem:[#allocation10 + $0xa0] sm:$0xff]  ;;  %v117_v18 = vld [vmem:[#allocation10 + $0xa8] sm:$0xff]  ;;  %571 = vmatpush1.bf16.msra.mxu0 %v7249_v6  ;;  %684 = vmatpush1.bf16.msra.mxu1 %v7251_v10  ;;  %v7259_v20 = vcombine.low %v105_v12, %v109_v13  ;;  %v7254_v6 = vcombine.high %v98_v62, %v102_v1  ;;  %v106_v8 = vld [vmem:[#allocation10 + $0x50] sm:$0xff]  ;;  %v7256_v9 = vcombine.high %v99_v2, %v103_v3 }
  0x51   :  { %572 = vmatprep.subr.bf16.mxu0 %v7258_v11  ;;  %v7266_v21 = vcombine.high %v112_v14, %v116_v16  ;;  %685 = vmatprep.subr.bf16.mxu1 %v7260_v15  ;;  %v7268_v22 = vcombine.high %v113_v17, %v117_v18  ;;  %v120_v23 = vld [vmem:[#allocation10 + $0xc0] sm:$0xff]  ;;  %v121_v25 = vld [vmem:[#allocation10 + $0xc8] sm:$0xff]  ;;  %v7265_v27 = vcombine.low %v112_v14, %v116_v16  ;;  %v110_v10 = vld [vmem:[#allocation10 + $0x70] sm:$0xff] }
  0x52   :  { %v124_v24 = vld [vmem:[#allocation10 + $0xe0] sm:$0xff]  ;;  %v125_v26 = vld [vmem:[#allocation10 + $0xe8] sm:$0xff]  ;;  %v7267_v28 = vcombine.low %v113_v17, %v117_v18  ;;  %v107_v11 = vld [vmem:[#allocation10 + $0x58] sm:$0xff]  ;;  %v7253_v12 = vcombine.low %v98_v62, %v102_v1  ;;  %v7262_v14 = vcombine.high %v106_v8, %v110_v10  ;;  %v7255_v15 = vcombine.low %v99_v2, %v103_v3 }
  0x53   :  { %v7274_v29 = vcombine.high %v120_v23, %v124_v24  ;;  %v7276_v30 = vcombine.high %v121_v25, %v125_v26  ;;  %v128_v31 = vld [vmem:[#allocation10 + $0x100] sm:$0xff]  ;;  %v129_v33 = vld [vmem:[#allocation10 + $0x108] sm:$0xff]  ;;  %v7273_v35 = vcombine.low %v120_v23, %v124_v24  ;;  %v7275_v36 = vcombine.low %v121_v25, %v125_v26  ;;  %v111_v13 = vld [vmem:[#allocation10 + $0x78] sm:$0xff] }
  0x54   :  { %573 = vmatpush1.bf16.msra.mxu0 %v7257_v19  ;;  %686 = vmatpush1.bf16.msra.mxu1 %v7259_v20  ;;  %v132_v32 = vld [vmem:[#allocation10 + $0x120] sm:$0xff]  ;;  %v133_v34 = vld [vmem:[#allocation10 + $0x128] sm:$0xff]  ;;  %v114_v16 = vld [vmem:[#allocation10 + $0x90] sm:$0xff]  ;;  %v7264_v18 = vcombine.high %v107_v11, %v111_v13  ;;  %v7261_v20 = vcombine.low %v106_v8, %v110_v10  ;;  %v7263_v24 = vcombine.low %v107_v11, %v111_v13 }
  0x55   :  { %574 = vmatprep.subr.bf16.mxu0 %v7266_v21  ;;  %687 = vmatprep.subr.bf16.mxu1 %v7268_v22  ;;  %v7282_v37 = vcombine.high %v128_v31, %v132_v32  ;;  %v7284_v38 = vcombine.high %v129_v33, %v133_v34  ;;  %v136_v39 = vld [vmem:[#allocation10 + $0x140] sm:$0xff]  ;;  %v137_v41 = vld [vmem:[#allocation10 + $0x148] sm:$0xff]  ;;  %v7281_v43 = vcombine.low %v128_v31, %v132_v32  ;;  %v118_v17 = vld [vmem:[#allocation10 + $0xb0] sm:$0xff] }
  0x56   :  { %v140_v40 = vld [vmem:[#allocation10 + $0x160] sm:$0xff]  ;;  %v141_v42 = vld [vmem:[#allocation10 + $0x168] sm:$0xff]  ;;  %v7283_v44 = vcombine.low %v129_v33, %v133_v34  ;;  %v115_v19 = vld [vmem:[#allocation10 + $0x98] sm:$0xff]  ;;  %v7270_v22 = vcombine.high %v114_v16, %v118_v17 }
  0x57   :  { %v7290_v45 = vcombine.high %v136_v39, %v140_v40  ;;  %v7292_v46 = vcombine.high %v137_v41, %v141_v42  ;;  %v144_v47 = vld [vmem:[#allocation10 + $0x180] sm:$0xff]  ;;  %v145_v49 = vld [vmem:[#allocation10 + $0x188] sm:$0xff]  ;;  %v7289_v51 = vcombine.low %v136_v39, %v140_v40  ;;  %v7291_v52 = vcombine.low %v137_v41, %v141_v42  ;;  %v119_v21 = vld [vmem:[#allocation10 + $0xb8] sm:$0xff] }
  0x58   :  { %575 = vmatpush1.bf16.msra.mxu0 %v7265_v27  ;;  %688 = vmatpush1.bf16.msra.mxu1 %v7267_v28  ;;  %v148_v48 = vld [vmem:[#allocation10 + $0x1a0] sm:$0xff]  ;;  %v149_v50 = vld [vmem:[#allocation10 + $0x1a8] sm:$0xff]  ;;  %v122_v25 = vld [vmem:[#allocation10 + $0xd0] sm:$0xff]  ;;  %v7272_v27 = vcombine.high %v115_v19, %v119_v21  ;;  %v7271_v32 = vcombine.low %v115_v19, %v119_v21 }
  0x59   :  { %576 = vmatprep.subr.bf16.mxu0 %v7274_v29  ;;  %689 = vmatprep.subr.bf16.mxu1 %v7276_v30  ;;  %v7298_v53 = vcombine.high %v144_v47, %v148_v48  ;;  %v7300_v54 = vcombine.high %v145_v49, %v149_v50  ;;  %v152_v55 = vld [vmem:[#allocation10 + $0x1c0] sm:$0xff]  ;;  %v153_v57 = vld [vmem:[#allocation10 + $0x1c8] sm:$0xff]  ;;  %v7297_v59 = vcombine.low %v144_v47, %v148_v48  ;;  %v126_v26 = vld [vmem:[#allocation10 + $0xf0] sm:$0xff] }
  0x5a   :  { %v156_v56 = vld [vmem:[#allocation10 + $0x1e0] sm:$0xff]  ;;  %v157_v58 = vld [vmem:[#allocation10 + $0x1e8] sm:$0xff]  ;;  %v7299_v60 = vcombine.low %v145_v49, %v149_v50  ;;  %v123_v28 = vld [vmem:[#allocation10 + $0xd8] sm:$0xff]  ;;  %v7269_v30 = vcombine.low %v114_v16, %v118_v17  ;;  %v7278_v31 = vcombine.high %v122_v25, %v126_v26 }
  0x5b   :  { %v7306_v61 = vcombine.high %v152_v55, %v156_v56  ;;  %v7308_v63 = vcombine.high %v153_v57, %v157_v58  ;;  %v7305_v4 = vcombine.low %v152_v55, %v156_v56  ;;  %v7307_v5 = vcombine.low %v153_v57, %v157_v58  ;;  %v9326_v7 = vld [vmem:[#allocation7] sm:$0xff]   ;;  %v9332_v23 = vld [vmem:[#allocation7 + $0x8] sm:$0xff]   ;;  %v127_v29 = vld [vmem:[#allocation10 + $0xf8] sm:$0xff] }
  0x5c   :  { %577 = vmatpush1.bf16.msra.mxu0 %v7273_v35  ;;  %690 = vmatpush1.bf16.msra.mxu1 %v7275_v36  ;;  %v130_v33 = vld [vmem:[#allocation10 + $0x110] sm:$0xff]  ;;  %v7280_v35 = vcombine.high %v123_v28, %v127_v29  ;;  %v131_v36 = vld [vmem:[#allocation10 + $0x118] sm:$0xff]  ;;  %v7279_v41 = vcombine.low %v123_v28, %v127_v29  ;;  %v9356_v11 = vld [vmem:[#allocation7 + $0x28] sm:$0xff]  }
  0x5d   :  { %578 = vmatprep.subr.bf16.mxu0 %v7282_v37  ;;  %691 = vmatprep.subr.bf16.mxu1 %v7284_v38  ;;  %v134_v34 = vld [vmem:[#allocation10 + $0x130] sm:$0xff]  ;;  %v135_v37 = vld [vmem:[#allocation10 + $0x138] sm:$0xff]  ;;  %v7277_v38 = vcombine.low %v122_v25, %v126_v26 }
  0x5e   :  { %v9338_v39 = vld [vmem:[#allocation7 + $0x10] sm:$0xff]   ;;  %v7286_v40 = vcombine.high %v130_v33, %v134_v34  ;;  %v7285_v47 = vcombine.low %v130_v33, %v134_v34  ;;  %v7287_v49 = vcombine.low %v131_v36, %v135_v37  ;;  %v9344_v56 = vld [vmem:[#allocation7 + $0x18] sm:$0xff]  }
  0x5f   :  { %v138_v42 = vld [vmem:[#allocation10 + $0x150] sm:$0xff]  ;;  %v155_v62 = vld [vmem:[#allocation10 + $0x1d8] sm:$0xff] }
  0x60   :  { %579 = vmatpush1.bf16.msra.mxu0 %v7281_v43  ;;  %692 = vmatpush1.bf16.msra.mxu1 %v7283_v44  ;;  %v142_v43 = vld [vmem:[#allocation10 + $0x170] sm:$0xff]  ;;  %v7288_v44 = vcombine.high %v131_v36, %v135_v37  ;;  %v8102_v10 = vld [vmem:[#allocation12 + $0xc] ss:$16 sps:$4 sm:$0xff]   ;;  %v8100_v16 = vld [vmem:[#allocation12 + $0x8] ss:$16 sps:$4 sm:$0xff]  }
  0x61   :  { %580 = vmatprep.subr.bf16.mxu0 %v7290_v45  ;;  %693 = vmatprep.subr.bf16.mxu1 %v7292_v46  ;;  %v139_v45 = vld [vmem:[#allocation10 + $0x158] sm:$0xff]  ;;  %v7294_v48 = vcombine.high %v138_v42, %v142_v43  ;;  %v146_v50 = vld [vmem:[#allocation10 + $0x190] sm:$0xff]  ;;  %v7293_v55 = vcombine.low %v138_v42, %v142_v43 }
  0x62   :  { %v143_v46 = vld [vmem:[#allocation10 + $0x178] sm:$0xff]  ;;  %v8096_v8 = vld [vmem:[#allocation12 + $0x4] ss:$16 sps:$4 sm:$0xff]   ;;  %v8127_v37 = vld [vmem:[#allocation12 + $0xc0] ss:$16 sps:$4 sm:$0xff]  }
  0x63   :  { %v7295_v58 = vcombine.low %v139_v45, %v143_v46  ;;  %v9368_v13 = vld [vmem:[#allocation7 + $0x38] sm:$0xff]   ;;  %v8105_v19 = vld [vmem:[#allocation12 + $0x44] ss:$16 sps:$4 sm:$0xff]  }
  0x64   :  { %581 = vmatpush1.bf16.msra.mxu0 %v7289_v51  ;;  %694 = vmatpush1.bf16.msra.mxu1 %v7291_v52  ;;  %v150_v51 = vld [vmem:[#allocation10 + $0x1b0] sm:$0xff]  ;;  %v7296_v52 = vcombine.high %v139_v45, %v143_v46  ;;  %v8108_v17 = vld [vmem:[#allocation12 + $0x2c] ss:$16 sps:$4 sm:$0xff]   ;;  %v8112_v25 = vld [vmem:[#allocation12 + $0x48] ss:$16 sps:$4 sm:$0xff]  }
  0x65   :  { %582 = vmatprep.subr.bf16.mxu0 %v7298_v53  ;;  %695 = vmatprep.subr.bf16.mxu1 %v7300_v54  ;;  %v147_v53 = vld [vmem:[#allocation10 + $0x198] sm:$0xff]  ;;  %v7302_v57 = vcombine.high %v146_v50, %v150_v51  ;;  %v7301_v1 = vcombine.low %v146_v50, %v150_v51  ;;  %v8129_v34 = vld [vmem:[#allocation12 + $0xc4] ss:$16 sps:$4 sm:$0xff]  }
  0x66   :  { %v151_v54 = vld [vmem:[#allocation10 + $0x1b8] sm:$0xff]  ;;  %v8144_v43 = vld [vmem:[#allocation13 + $0x4] ss:$16 sps:$4 sm:$0xff]  }
  0x67   :  { %v7303_v3 = vcombine.low %v147_v53, %v151_v54  ;;  %v8114_v21 = vld [vmem:[#allocation12 + $0x4c] ss:$16 sps:$4 sm:$0xff]   ;;  %v8118_v28 = vld [vmem:[#allocation12 + $0x68] ss:$16 sps:$4 sm:$0xff]   ;;  %v9397_v45 = vld [vmem:[%s10979_s0] sm:$0xff] }
  0x68   :  { %583 = vmatpush1.bf16.msra.mxu0 %v7297_v59  ;;  %696 = vmatpush1.bf16.msra.mxu1 %v7299_v60  ;;  %v154_v59 = vld [vmem:[#allocation10 + $0x1d0] sm:$0xff]  ;;  %v8120_v26 = vld [vmem:[#allocation12 + $0x6c] ss:$16 sps:$4 sm:$0xff]   ;;  %v8139_v42 = vld [vmem:[#allocation12 + $0xe8] ss:$16 sps:$4 sm:$0xff]   ;;  %vm1870_vm0 = vcmp.gt.s32.totalorder %v9397_v45, 7 }
  0x69   :  { %584 = vmatprep.subr.bf16.mxu0 %v7306_v61  ;;  %697 = vmatprep.subr.bf16.mxu1 %v7308_v63  ;;  %v158_v60 = vld [vmem:[#allocation10 + $0x1f0] sm:$0xff]  ;;  %v7304_v61 = vcombine.high %v147_v53, %v151_v54  ;;  %v159_v63 = vld [vmem:[#allocation10 + $0x1f8] sm:$0xff]  ;;  %vm1868_vm1 = vcmp.gt.s32.totalorder %v9397_v45, 0  ;;  %v1886_v46 = vsel %vm1870_vm0, 1, %v10986_v0  ;;  %vm2642_vm5 = vcmp.gt.s32.totalorder %v9397_v45, 1 }
  0x6a   :  { %v7310_v2 = vcombine.high %v154_v59, %v158_v60  ;;  %v8126_v29 = vld [vmem:[#allocation12 + $0x8c] ss:$16 sps:$4 sm:$0xff]   ;;  %1889 = vperm.xlu1 %8085, %v1886_v46   ;;  %vm2644_vm7 = vcmp.gt.s32.totalorder %v9397_v45, 6  ;;  %vm3416_vm9 = vcmp.gt.s32.totalorder %v9397_v45, 2  ;;  %vm3418_vm11 = vcmp.gt.s32.totalorder %v9397_v45, 5 }
  0x6b   :  { %v8132_v33 = vld [vmem:[#allocation12 + $0xac] ss:$16 sps:$4 sm:$0xff]   ;;  %v2660_v54 = vsel %vm2644_vm7, 1, %v10986_v0  ;;  %vm4190_vm13 = vcmp.gt.s32.totalorder %v9397_v45, 3  ;;  %vm4192_vm15 = vcmp.gt.s32.totalorder %v9397_v45, 4 }
  0x6c   :  { %585 = vmatpush1.bf16.msra.mxu0 %v7305_v4  ;;  %698 = vmatpush1.bf16.msra.mxu1 %v7307_v5  ;;  %v7312_v4 = vcombine.high %v155_v62, %v159_v63  ;;  %v7309_v5 = vcombine.low %v154_v59, %v158_v60  ;;  %v8135_v36 = vld [vmem:[#allocation12 + $0xcc] ss:$16 sps:$4 sm:$0xff]   ;;  %v8142_v59 = vld [vmem:[#allocation13] ss:$16 sps:$4 sm:$0xff]  }
  0x6d   :  { %796 = vmatprep.subr.bf16.mxu0 %v7254_v6  ;;  %909 = vmatprep.subr.bf16.mxu1 %v7256_v9  ;;  %v7311_v6 = vcombine.low %v155_v62, %v159_v63  ;;  %v9350_v9 = vld [vmem:[#allocation7 + $0x20] sm:$0xff]   ;;  %v8145_v62 = vld [vmem:[#allocation13 + $0x8] ss:$16 sps:$4 sm:$0xff]  }
  0x6e   :  { %v8150_v63 = vld [vmem:[#allocation13 + $0x24] ss:$16 sps:$4 sm:$0xff]  }
  0x6f   :  { %603 = vmatmul.mubr.bf16.vlgmr.msra.gmra.mrb[0].mxu0 %v9326_v7  ;;  %716 = vmatmul.mubr.bf16.vlgmr.msra.gmra.mrb[0].mxu1 %v9326_v7 }
  0x70   :  { %797 = vmatpush1.bf16.msra.mxu0 %v7253_v12  ;;  %612 = vmatprep.mubr.bf16.mxu0 %v10986_v0  ;;  %v9362_v12 = vld [vmem:[#allocation7 + $0x30] sm:$0xff]  }
  0x71   :  { %725 = vmatprep.mubr.bf16.mxu1 %v10986_v0  ;;  %798 = vmatprep.subr.bf16.mxu0 %v7262_v14  ;;  %v8094_v14 = vld [vmem:[#allocation12] ss:$16 sps:$4 sm:$0xff]  }
  0x72   :  { %910 = vmatpush1.bf16.msra.mxu1 %v7255_v15  ;;  %v8099_v15 = vld [vmem:[#allocation12 + $0x24] ss:$16 sps:$4 sm:$0xff]  }
  0x73   :  { %911 = vmatprep.subr.bf16.mxu1 %v7264_v18  ;;  %v8097_v18 = vld [vmem:[#allocation12 + $0x20] ss:$16 sps:$4 sm:$0xff]  }
  0x74   :  { %799 = vmatpush1.bf16.msra.mxu0 %v7261_v20  ;;  %v8106_v20 = vld [vmem:[#allocation12 + $0x28] ss:$16 sps:$4 sm:$0xff]  }
  0x75   :  { %800 = vmatprep.subr.bf16.mxu0 %v7270_v22  ;;  %v8103_v22 = vld [vmem:[#allocation12 + $0x40] ss:$16 sps:$4 sm:$0xff]  }
  0x76   :  { %912 = vmatpush1.bf16.msra.mxu1 %v7263_v24  ;;  %v8111_v24 = vld [vmem:[#allocation12 + $0x64] ss:$16 sps:$4 sm:$0xff]  }
  0x77   :  { %613 = vmatmul.mubr.bf16.gmra.mrb[4].mxu0 %v9332_v23  ;;  %913 = vmatprep.subr.bf16.mxu1 %v7272_v27  ;;  %v8117_v27 = vld [vmem:[#allocation12 + $0x84] ss:$16 sps:$4 sm:$0xff]  }
  0x78   :  { %726 = vmatmul.mubr.bf16.gmra.mrb[4].mxu1 %v9332_v23  ;;  %622 = vmatprep.mubr.bf16.mxu0 %v10986_v0 }
  0x79   :  { %735 = vmatprep.mubr.bf16.mxu1 %v10986_v0  ;;  %801 = vmatpush1.bf16.msra.mxu0 %v7269_v30  ;;  %v8115_v30 = vld [vmem:[#allocation12 + $0x80] ss:$16 sps:$4 sm:$0xff]  }
  0x7a   :  { %802 = vmatprep.subr.bf16.mxu0 %v7278_v31  ;;  %914 = vmatpush1.bf16.msra.mxu1 %v7271_v32  ;;  %v8123_v31 = vld [vmem:[#allocation12 + $0xa4] ss:$16 sps:$4 sm:$0xff]   ;;  %v8124_v32 = vld [vmem:[#allocation12 + $0x88] ss:$16 sps:$4 sm:$0xff]  }
  0x7b   :  { %915 = vmatprep.subr.bf16.mxu1 %v7280_v35  ;;  %v8130_v35 = vld [vmem:[#allocation12 + $0xa8] ss:$16 sps:$4 sm:$0xff]  }
  0x7d   :  { %803 = vmatpush1.bf16.msra.mxu0 %v7277_v38  ;;  %v8133_v38 = vld [vmem:[#allocation12 + $0xc8] ss:$16 sps:$4 sm:$0xff]  }
  0x7e   :  { %804 = vmatprep.subr.bf16.mxu0 %v7286_v40  ;;  %916 = vmatpush1.bf16.msra.mxu1 %v7279_v41  ;;  %v8138_v40 = vld [vmem:[#allocation12 + $0xe4] ss:$16 sps:$4 sm:$0xff]   ;;  %v8141_v41 = vld [vmem:[#allocation12 + $0xec] ss:$16 sps:$4 sm:$0xff]  }
  0x7f   :  { %623 = vmatmul.mubr.bf16.gmra.mrb[8].mxu0 %v9338_v39  ;;  %917 = vmatprep.subr.bf16.mxu1 %v7288_v44  ;;  %v8147_v44 = vld [vmem:[#allocation13 + $0xc] ss:$16 sps:$4 sm:$0xff]  }
  0x80   :  { %736 = vmatmul.mubr.bf16.gmra.mrb[8].mxu1 %v9338_v39  ;;  %632 = vmatprep.mubr.bf16.mxu0 %v10986_v0 }
  0x81   :  { %745 = vmatprep.mubr.bf16.mxu1 %v10986_v0  ;;  %805 = vmatpush1.bf16.msra.mxu0 %v7285_v47  ;;  %v1872_v47 = vsel %vm1868_vm1, 1, %v10986_v0 }
  0x82   :  { %806 = vmatprep.subr.bf16.mxu0 %v7294_v48  ;;  %918 = vmatpush1.bf16.msra.mxu1 %v7287_v49  ;;  %v1159_v48 = vld [vmem:[%s10979_s0 + $0x8] sm:$0xff] }
  0x83   :  { %919 = vmatprep.subr.bf16.mxu1 %v7296_v52  ;;  %1875 = vperm.xlu0 %8084, %v1872_v47   ;;  %vm1871_vm2 = vcmp.gt.s32.totalorder %v1159_v48, 7  ;;  %vm1869_vm3 = vcmp.gt.s32.totalorder %v1159_v48, 0  ;;  %vm2643_vm4 = vcmp.gt.s32.totalorder %v1159_v48, 1  ;;  %v2646_v52 = vsel %vm2642_vm5, 1, %v10986_v0 }
  0x84   :  { %v1887_v49 = vsel %vm1871_vm2, 1, %v10986_v0  ;;  %v1873_v50 = vsel %vm1869_vm3, 1, %v10986_v0  ;;  %v2647_v51 = vsel %vm2643_vm4, 1, %v10986_v0  ;;  %vm2645_vm6 = vcmp.gt.s32.totalorder %v1159_v48, 6 }
  0x85   :  { %807 = vmatpush1.bf16.msra.mxu0 %v7293_v55  ;;  %1892 = vperm.xlu1 %8085, %v1887_v49   ;;  %v2661_v53 = vsel %vm2645_vm6, 1, %v10986_v0  ;;  %vm3417_vm8 = vcmp.gt.s32.totalorder %v1159_v48, 2  ;;  %vm3419_vm10 = vcmp.gt.s32.totalorder %v1159_v48, 5  ;;  %vm4191_vm12 = vcmp.gt.s32.totalorder %v1159_v48, 3 }
  0x86   :  { %808 = vmatprep.subr.bf16.mxu0 %v7302_v57  ;;  %920 = vmatpush1.bf16.msra.mxu1 %v7295_v58  ;;  %v3421_v55 = vsel %vm3417_vm8, 1, %v10986_v0  ;;  %v3435_v57 = vsel %vm3419_vm10, 1, %v10986_v0  ;;  %v3434_v58 = vsel %vm3418_vm11, 1, %v10986_v0  ;;  %v4195_v60 = vsel %vm4191_vm12, 1, %v10986_v0 }
  0x87   :  { %633 = vmatmul.mubr.bf16.gmra.mrb[12].mxu0 %v9344_v56  ;;  %921 = vmatprep.subr.bf16.mxu1 %v7304_v61  ;;  %v4194_v61 = vsel %vm4190_vm13, 1, %v10986_v0  ;;  %vm4193_vm14 = vcmp.gt.s32.totalorder %v1159_v48, 4 }
  0x88   :  { %746 = vmatmul.mubr.bf16.gmra.mrb[12].mxu1 %v9344_v56  ;;  %642 = vmatprep.mubr.bf16.mxu0 %v10986_v0 }
  0x89   :  { %755 = vmatprep.mubr.bf16.mxu1 %v10986_v0  ;;  %809 = vmatpush1.bf16.msra.mxu0 %v7301_v1  ;;  %v8153_v1 = vld [vmem:[#allocation13 + $0x2c] ss:$16 sps:$4 sm:$0xff]  }
  0x8a   :  { %810 = vmatprep.subr.bf16.mxu0 %v7310_v2  ;;  %922 = vmatpush1.bf16.msra.mxu1 %v7303_v3  ;;  %v9235_v2 = vmov 0.0|0.0   ;;  %v8148_v3 = vld [vmem:[#allocation13 + $0x20] ss:$16 sps:$4 sm:$0xff]  }
  0x8b   :  { %923 = vmatprep.subr.bf16.mxu1 %v7312_v4  ;;  %1878 = vperm.xlu0 %8084, %v1873_v50   ;;  %v4209_v4 = vsel %vm4193_vm14, 1, %v10986_v0 }
  0x8c   :  { %2652 = vperm.xlu1 %8085, %v2647_v51  }
  0x8d   :  { %811 = vmatpush1.bf16.msra.mxu0 %v7309_v5  ;;  %v8151_v5 = vld [vmem:[#allocation13 + $0x28] ss:$16 sps:$4 sm:$0xff]  }
  0x8e   :  { %924 = vmatpush1.bf16.msra.mxu1 %v7311_v6  ;;  %1355 = vmatprep.subr.bf16.mxu0 %v8096_v8  ;;  %v8156_v6 = vld [vmem:[#allocation13 + $0x44] ss:$16 sps:$4 sm:$0xff]   ;;  %v4208_v8 = vsel %vm4192_vm15, 1, %v10986_v0 }
  0x8f   :  { %643 = vmatmul.mubr.bf16.gmra.mrb[16].mxu0 %v9350_v9  ;;  %1398 = vmatprep.subr.bf16.mxu1 %v8102_v10  ;;  %v8154_v10 = vld [vmem:[#allocation13 + $0x40] ss:$16 sps:$4 sm:$0xff]  }
  0x90   :  { %756 = vmatmul.mubr.bf16.gmra.mrb[16].mxu1 %v9350_v9  ;;  %652 = vmatprep.mubr.bf16.mxu0 %v10986_v0 }
  0x91   :  { %765 = vmatprep.mubr.bf16.mxu1 %v10986_v0  ;;  %2649 = vperm.xlu0 %8084, %v2646_v52  }
  0x92   :  { %2666 = vperm.xlu1 %8085, %v2661_v53  }
  0x95   :  { %2663 = vperm.xlu0 %8084, %v2660_v54  }
  0x96   :  { %3426 = vperm.xlu1 %8085, %v3421_v55  }
  0x97   :  { %653 = vmatmul.mubr.bf16.gmra.mrb[20].mxu0 %v9356_v11 }
  0x98   :  { %766 = vmatmul.mubr.bf16.gmra.mrb[20].mxu1 %v9356_v11  ;;  %662 = vmatprep.mubr.bf16.mxu0 %v10986_v0 }
  0x99   :  { %775 = vmatprep.mubr.bf16.mxu1 %v10986_v0 }
  0x9a   :  { %3440 = vperm.xlu1 %8085, %v3435_v57  }
  0x9e   :  { %4200 = vperm.xlu1 %8085, %v4195_v60  }
  0x9f   :  { %663 = vmatmul.mubr.bf16.gmra.mrb[24].mxu0 %v9362_v12 }
  0xa0   :  { %776 = vmatmul.mubr.bf16.gmra.mrb[24].mxu1 %v9362_v12  ;;  %672 = vmatprep.mubr.bf16.mxu0 %v10986_v0 }
  0xa1   :  { %785 = vmatprep.mubr.bf16.mxu1 %v10986_v0 }
  0xa2   :  { %4214 = vperm.xlu1 %8085, %v4209_v4  }
  0xa7   :  { %673 = vmatmul.mubr.bf16.gmra.mrb[28].mxu0 %v9368_v13 }
  0xa8   :  { %786 = vmatmul.mubr.bf16.gmra.mrb[28].mxu1 %v9368_v13  ;;  %828 = vmatprep.mubr.bf16.mxu0 %v10986_v0 }
  0xa9   :  { %941 = vmatprep.mubr.bf16.mxu1 %v10986_v0 }
  0xaf   :  { %829 = vmatmul.mubr.bf16.vlgmr.msra.gmra.mrb[32].mxu0 %v9326_v7 }
  0xb0   :  { %942 = vmatmul.mubr.bf16.vlgmr.msra.gmra.mrb[32].mxu1 %v9326_v7  ;;  %1356 = vmatpush1.bf16.msra.mxu0 %v8094_v14  ;;  %v8109_v7 = vld [vmem:[#allocation12 + $0x60] ss:$16 sps:$4 sm:$0xff]  }
  0xb1   :  { %838 = vmatprep.mubr.bf16.mxu0 %v10986_v0  ;;  %951 = vmatprep.mubr.bf16.mxu1 %v10986_v0  ;;  %v8160_v14 = vld [vmem:[#allocation13 + $0x60] ss:$16 sps:$4 sm:$0xff]  }
  0xb2   :  { %1357 = vmatprep.subr.bf16.mxu0 %v8099_v15  ;;  %1399 = vmatpush1.bf16.msra.mxu1 %v8100_v16  ;;  %v8163_v15 = vld [vmem:[#allocation13 + $0x68] ss:$16 sps:$4 sm:$0xff]   ;;  %v8168_v16 = vld [vmem:[#allocation13 + $0x84] ss:$16 sps:$4 sm:$0xff]  }
  0xb3   :  { %1400 = vmatprep.subr.bf16.mxu1 %v8108_v17  ;;  %v8171_v17 = vld [vmem:[#allocation13 + $0x8c] ss:$16 sps:$4 sm:$0xff]  }
  0xb4   :  { %1358 = vmatpush1.bf16.msra.mxu0 %v8097_v18  ;;  %v8166_v18 = vld [vmem:[#allocation13 + $0x80] ss:$16 sps:$4 sm:$0xff]  }
  0xb5   :  { %1359 = vmatprep.subr.bf16.mxu0 %v8105_v19  ;;  %v8169_v19 = vld [vmem:[#allocation13 + $0x88] ss:$16 sps:$4 sm:$0xff]  }
  0xb6   :  { %1401 = vmatpush1.bf16.msra.mxu1 %v8106_v20  ;;  %v8174_v20 = vld [vmem:[#allocation13 + $0xa4] ss:$16 sps:$4 sm:$0xff]  }
  0xb7   :  { %839 = vmatmul.mubr.bf16.gmra.mrb[36].mxu0 %v9332_v23  ;;  %1402 = vmatprep.subr.bf16.mxu1 %v8114_v21  ;;  %v8177_v21 = vld [vmem:[#allocation13 + $0xac] ss:$16 sps:$4 sm:$0xff]  }
  0xb8   :  { %952 = vmatmul.mubr.bf16.gmra.mrb[36].mxu1 %v9332_v23  ;;  %848 = vmatprep.mubr.bf16.mxu0 %v10986_v0  ;;  %v8121_v23 = vld [vmem:[#allocation12 + $0xa0] ss:$16 sps:$4 sm:$0xff]  }
  0xb9   :  { %961 = vmatprep.mubr.bf16.mxu1 %v10986_v0  ;;  %1360 = vmatpush1.bf16.msra.mxu0 %v8103_v22  ;;  %v8172_v22 = vld [vmem:[#allocation13 + $0xa0] ss:$16 sps:$4 sm:$0xff]  }
  0xba   :  { %1361 = vmatprep.subr.bf16.mxu0 %v8111_v24  ;;  %1403 = vmatpush1.bf16.msra.mxu1 %v8112_v25  ;;  %v8175_v24 = vld [vmem:[#allocation13 + $0xa8] ss:$16 sps:$4 sm:$0xff]   ;;  %v8180_v25 = vld [vmem:[#allocation13 + $0xc4] ss:$16 sps:$4 sm:$0xff]  }
  0xbb   :  { %1404 = vmatprep.subr.bf16.mxu1 %v8120_v26  ;;  %v8183_v26 = vld [vmem:[#allocation13 + $0xcc] ss:$16 sps:$4 sm:$0xff]  }
  0xbd   :  { %1362 = vmatpush1.bf16.msra.mxu0 %v8109_v7  ;;  %v8178_v7 = vld [vmem:[#allocation13 + $0xc0] ss:$16 sps:$4 sm:$0xff]  }
  0xbe   :  { %1363 = vmatprep.subr.bf16.mxu0 %v8117_v27  ;;  %1405 = vmatpush1.bf16.msra.mxu1 %v8118_v28  ;;  %v8181_v27 = vld [vmem:[#allocation13 + $0xc8] ss:$16 sps:$4 sm:$0xff]   ;;  %v8186_v28 = vld [vmem:[#allocation13 + $0xe4] ss:$16 sps:$4 sm:$0xff]  }
  0xbf   :  { %849 = vmatmul.mubr.bf16.gmra.mrb[40].mxu0 %v9338_v39  ;;  %1406 = vmatprep.subr.bf16.mxu1 %v8126_v29  ;;  %v8189_v29 = vld [vmem:[#allocation13 + $0xec] ss:$16 sps:$4 sm:$0xff]  }
  0xc0   :  { %962 = vmatmul.mubr.bf16.gmra.mrb[40].mxu1 %v9338_v39  ;;  %858 = vmatprep.mubr.bf16.mxu0 %v10986_v0  ;;  %v8136_v39 = vld [vmem:[#allocation12 + $0xe0] ss:$16 sps:$4 sm:$0xff]  }
  0xc1   :  { %971 = vmatprep.mubr.bf16.mxu1 %v10986_v0  ;;  %1364 = vmatpush1.bf16.msra.mxu0 %v8115_v30  ;;  %v8184_v30 = vld [vmem:[#allocation13 + $0xe0] ss:$16 sps:$4 sm:$0xff]  }
  0xc2   :  { %1365 = vmatprep.subr.bf16.mxu0 %v8123_v31  ;;  %1407 = vmatpush1.bf16.msra.mxu1 %v8124_v32  ;;  %v8187_v31 = vld [vmem:[#allocation13 + $0xe8] ss:$16 sps:$4 sm:$0xff]   ;;  %v162_v32 = vlaneseq }
  0xc3   :  { %1408 = vmatprep.subr.bf16.mxu1 %v8132_v33 }
  0xc4   :  { %v9446_v33 = vshrl.u32 %v162_v32, 7 }
  0xc5   :  { %1366 = vmatpush1.bf16.msra.mxu0 %v8121_v23 }
  0xc6   :  { %1367 = vmatprep.subr.bf16.mxu0 %v8129_v34  ;;  %1409 = vmatpush1.bf16.msra.mxu1 %v8130_v35  ;;  %v172_v23 = vsub.s32 2, %v9446_v33  ;;  %v164_v34 = vsub.s32 0, %v9446_v33  ;;  %v176_v35 = vsub.s32 3, %v9446_v33 }
  0xc7   :  { %859 = vmatmul.mubr.bf16.gmra.mrb[44].mxu0 %v9344_v56  ;;  %1410 = vmatprep.subr.bf16.mxu1 %v8135_v36  ;;  %v9454_v36 = vld [vmem:[%s10984_s5] sm:$0xff]  ;;  %s9236_s5 = smov [#allocation15]  }
  0xc8   :  { %972 = vmatmul.mubr.bf16.gmra.mrb[44].mxu1 %v9344_v56  ;;  %868 = vmatprep.mubr.bf16.mxu0 %v10986_v0  ;;  %v3420_v56 = vsel %vm3416_vm9, 1, %v10986_v0  ;;  %s7213_s27 = sshll.u32 %s9236_s5, 4  ;;  %s7214_s27 = int_to_ptr.vmem [resolvable:$true] %s7213_s27 }
  0xc9   :  { %981 = vmatprep.mubr.bf16.mxu1 %v10986_v0  ;;  %1368 = vmatpush1.bf16.msra.mxu0 %v8127_v37  ;;  %v168_v37 = vsub.s32 1, %v9446_v33  ;;  %s9194_s28 = scalar_lea.vmem %s7214_s27, 2048  ;;  %p9199_p5 = scmp.lt.s32.totalorder %s7214_s27, %s7214_s27 }
  0xca   :  { %1369 = vmatprep.subr.bf16.mxu0 %v8138_v40  ;;  %1411 = vmatpush1.bf16.msra.mxu1 %v8133_v38  ;;  %v9458_v38 = vrot.slane %v9454_v36, %v172_v23  ;;  %v9461_v40 = vrot.slane %v9454_v36, %v164_v34  ;;  %p9195_p4 = scmp.ne.s32.totalorder %s7214_s27, %s9194_s28  ;;  %p9200_p6 = scmp.lt.s32.totalorder %s9194_s28, %s9194_s28 }
  0xcb   :  { %1412 = vmatprep.subr.bf16.mxu1 %v8141_v41  ;;  %3423 = vperm.xlu0 %8084, %v3420_v56   ;;  %v9464_v41 = vrot.slane %v9454_v36, %v176_v35 }
  0xcc   :  { %p9201_p7 = por %p9200_p6, %p9199_p5 }
  0xcd   :  { %1370 = vmatpush1.bf16.msra.mxu0 %v8136_v39 }
  0xce   :  { %1413 = vmatpush1.bf16.msra.mxu1 %v8139_v42  ;;  %1636 = vmatprep.subr.bf16.mxu0 %v8144_v43  ;;  %v9467_v42 = vrot.slane %v9454_v36, %v168_v37  ;;  %p9202_p8 = pnand %p9201_p7, %p9195_p4 }
  0xcf   :  { %869 = vmatmul.mubr.bf16.gmra.mrb[48].mxu0 %v9350_v9  ;;  %1679 = vmatprep.subr.bf16.mxu1 %v8147_v44 }
  0xd0   :  { %982 = vmatmul.mubr.bf16.gmra.mrb[48].mxu1 %v9350_v9  ;;  %878 = vmatprep.mubr.bf16.mxu0 %v10986_v0  ;;  %v8159_v9 = vld [vmem:[#allocation13 + $0x4c] ss:$16 sps:$4 sm:$0xff]  }
  0xd1   :  { %991 = vmatprep.mubr.bf16.mxu1 %v10986_v0  ;;  %3437 = vperm.xlu0 %8084, %v3434_v58  }
  0xd5   :  { %4197 = vperm.xlu0 %8084, %v4194_v61  }
  0xd7   :  { %879 = vmatmul.mubr.bf16.gmra.mrb[52].mxu0 %v9356_v11 }
  0xd8   :  { %992 = vmatmul.mubr.bf16.gmra.mrb[52].mxu1 %v9356_v11  ;;  %888 = vmatprep.mubr.bf16.mxu0 %v10986_v0  ;;  %v8157_v11 = vld [vmem:[#allocation13 + $0x48] ss:$16 sps:$4 sm:$0xff]  }
  0xd9   :  { %1001 = vmatprep.mubr.bf16.mxu1 %v10986_v0  ;;  %4211 = vperm.xlu0 %8084, %v4208_v8  }
  0xdf   :  { %889 = vmatmul.mubr.bf16.gmra.mrb[56].mxu0 %v9362_v12 }
  0xe0   :  { %1002 = vmatmul.mubr.bf16.gmra.mrb[56].mxu1 %v9362_v12  ;;  %898 = vmatprep.mubr.bf16.mxu0 %v10986_v0  ;;  %v8162_v12 = vld [vmem:[#allocation13 + $0x64] ss:$16 sps:$4 sm:$0xff]  }
  0xe1   :  { %1011 = vmatprep.mubr.bf16.mxu1 %v10986_v0 }
  0xe7   :  { %899 = vmatmul.mubr.bf16.gmra.mrb[60].mxu0 %v9368_v13 }
  0xe8   :  { %1012 = vmatmul.mubr.bf16.gmra.mrb[60].mxu1 %v9368_v13  ;;  %1387 = vmatprep.mubr.bf16.mxu0 %v10986_v0  ;;  %v8165_v13 = vld [vmem:[#allocation13 + $0x6c] ss:$16 sps:$4 sm:$0xff]  }
  0xe9   :  { %1430 = vmatprep.mubr.bf16.mxu1 %v10986_v0 }
  0xef   :  { %1388 = vmatmul.mubr.bf16.vlgmr.msra.gmra.mrb[64].mxu0 %v9235_v2 }
  0xf0   :  { %1431 = vmatmul.mubr.bf16.vlgmr.msra.gmra.mrb[64].mxu1 %v9235_v2  ;;  %1637 = vmatpush1.bf16.msra.mxu0 %v8142_v59 }
  0xf1   :  { %1680 = vmatpush1.bf16.msra.mxu1 %v8145_v62  ;;  %1638 = vmatprep.subr.bf16.mxu0 %v8150_v63 }
  0xf2   :  { %1681 = vmatprep.subr.bf16.mxu1 %v8153_v1  ;;  %1668 = vmatprep.mubr.bf16.mxu0 %v10986_v0 }
  0xf3   :  { %1711 = vmatprep.mubr.bf16.mxu1 %v10986_v0 }
  0xf4   :  { %1639 = vmatpush1.bf16.msra.mxu0 %v8148_v3 }
  0xf5   :  { %1682 = vmatpush1.bf16.msra.mxu1 %v8151_v5  ;;  %1640 = vmatprep.subr.bf16.mxu0 %v8156_v6 }
  0xf6   :  { %1683 = vmatprep.subr.bf16.mxu1 %v8159_v9 }
  0xf8   :  { %1641 = vmatpush1.bf16.msra.mxu0 %v8154_v10 }
  0xf9   :  { %1684 = vmatpush1.bf16.msra.mxu1 %v8157_v11  ;;  %1642 = vmatprep.subr.bf16.mxu0 %v8162_v12 }
  0xfa   :  { %1685 = vmatprep.subr.bf16.mxu1 %v8165_v13 }
  0xfc   :  { %1643 = vmatpush1.bf16.msra.mxu0 %v8160_v14 }
  0xfd   :  { %1686 = vmatpush1.bf16.msra.mxu1 %v8163_v15  ;;  %1644 = vmatprep.subr.bf16.mxu0 %v8168_v16 }
  0xfe   :  { %1687 = vmatprep.subr.bf16.mxu1 %v8171_v17 }
 0x100   :  { %1645 = vmatpush1.bf16.msra.mxu0 %v8166_v18 }
 0x101   :  { %1688 = vmatpush1.bf16.msra.mxu1 %v8169_v19  ;;  %1646 = vmatprep.subr.bf16.mxu0 %v8174_v20 }
 0x102   :  { %1689 = vmatprep.subr.bf16.mxu1 %v8177_v21 }
 0x104   :  { %1647 = vmatpush1.bf16.msra.mxu0 %v8172_v22 }
 0x105   :  { %1690 = vmatpush1.bf16.msra.mxu1 %v8175_v24  ;;  %1648 = vmatprep.subr.bf16.mxu0 %v8180_v25 }
 0x106   :  { %1691 = vmatprep.subr.bf16.mxu1 %v8183_v26 }
 0x108   :  { %1649 = vmatpush1.bf16.msra.mxu0 %v8178_v7 }
 0x109   :  { %1692 = vmatpush1.bf16.msra.mxu1 %v8181_v27  ;;  %1650 = vmatprep.subr.bf16.mxu0 %v8186_v28 }
 0x10a   :  { %1693 = vmatprep.subr.bf16.mxu1 %v8189_v29 }
 0x10c   :  { %1651 = vmatpush1.bf16.msra.mxu0 %v8184_v30 }
 0x10d   :  { %1694 = vmatpush1.bf16.msra.mxu1 %v8187_v31 }
 0x10f   :  { %1669 = vmatmul.mubr.bf16.vlgmr.msra.gmra.mrb[68].mxu0 %v9235_v2 }
 0x110   :  { %1712 = vmatmul.mubr.bf16.vlgmr.msra.gmra.mrb[68].mxu1 %v9235_v2  ;;  %2161 = vmatprep.mubr.bf16.mxu0 %v10986_v0 }
 0x111   :  { %2204 = vmatprep.mubr.bf16.mxu1 %v10986_v0 }
 0x142   :  { %v604_v39 = vpop.f32.mrb[0].mxu0  ;;  %v717_v44 = vpop.f32.mrb[0].mxu1 }
 0x143   :  { %v606_v43 = vpop.f32.mrb[1].mxu0  ;;  %v718_v46 = vadd.f32 %v717_v44, %v9458_v38  ;;  %v719_v47 = vpop.f32.mrb[1].mxu1  ;;  %v605_v48 = vadd.f32 %v604_v39, %v9461_v40  ;;  %v8192_v44 = vld [vmem:[#allocation12 + $0x4] ss:$16 sps:$4 sm:$0xff]  }
 0x144   :  { %v608_v45 = vpop.f32.mrb[2].mxu0  ;;  %v720_v51 = vadd.f32 %v719_v47, %v9464_v41  ;;  %v721_v52 = vpop.f32.mrb[2].mxu1  ;;  %v607_v53 = vadd.f32 %v606_v43, %v9467_v42  ;;  %v8190_v47 = vld [vmem:[#allocation12] ss:$16 sps:$4 sm:$0xff]   ;;  %2129 = vmatprep.subr.bf16.mxu0 %v8192_v44 }
 0x145   :  { %v609_v49 = vadd.f32 %v608_v45, %v9461_v40  ;;  %v610_v50 = vpop.f32.mrb[3].mxu0  ;;  %v722_v55 = vadd.f32 %v721_v52, %v9458_v38  ;;  %v723_v56 = vpop.f32.mrb[3].mxu1  ;;  %v8195_v45 = vld [vmem:[#allocation12 + $0xc] ss:$16 sps:$4 sm:$0xff]   ;;  %2130 = vmatpush1.bf16.msra.mxu0 %v8190_v47 }
 0x146   :  { %v611_v54 = vadd.f32 %v610_v50, %v9467_v42  ;;  %v724_v58 = vadd.f32 %v723_v56, %v9464_v41  ;;  %2172 = vmatprep.subr.bf16.mxu1 %v8195_v45  ;;  %v8208_v45 = vld [vmem:[#allocation12 + $0x60] ss:$16 sps:$4 sm:$0xff]  }
 0x147   :  { %v9476_v57 = vpack.c.bf16 %v609_v49, %v605_v48  ;;  %v9481_v60 = vpack.c.bf16 %v722_v55, %v718_v46  ;;  %v8193_v48 = vld [vmem:[#allocation12 + $0x8] ss:$16 sps:$4 sm:$0xff]  }
 0x148   :  { %v9479_v59 = vpack.c.bf16 %v611_v54, %v607_v53  ;;  %v9483_v61 = vpack.c.bf16 %v724_v58, %v720_v51  ;;  %2173 = vmatpush1.bf16.msra.mxu1 %v8193_v48  ;;  %v8198_v58 = vld [vmem:[#allocation12 + $0x24] ss:$16 sps:$4 sm:$0xff]  }
 0x149   :  { %2131 = vmatprep.subr.bf16.mxu0 %v8198_v58  ;;  %v8216_v58 = vld [vmem:[#allocation12 + $0x84] ss:$16 sps:$4 sm:$0xff]  }
 0x14a   :  { %v614_v62 = vpop.f32.mrb[4].mxu0 }
 0x14b   :  { %v615_v63 = vadd.f32 %v614_v62, %v9461_v40  ;;  %v616_v1 = vpop.f32.mrb[5].mxu0  ;;  %v727_v2 = vpop.f32.mrb[4].mxu1  ;;  %v8201_v62 = vld [vmem:[#allocation12 + $0x2c] ss:$16 sps:$4 sm:$0xff]  }
 0x14c   :  { %v617_v3 = vadd.f32 %v616_v1, %v9467_v42  ;;  %v618_v4 = vpop.f32.mrb[6].mxu0  ;;  %v728_v5 = vadd.f32 %v727_v2, %v9458_v38  ;;  %v729_v6 = vpop.f32.mrb[5].mxu1  ;;  %2174 = vmatprep.subr.bf16.mxu1 %v8201_v62  ;;  %v8219_v62 = vld [vmem:[#allocation12 + $0x8c] ss:$16 sps:$4 sm:$0xff]  }
 0x14d   :  { %v619_v8 = vadd.f32 %v618_v4, %v9461_v40  ;;  %v620_v9 = vpop.f32.mrb[7].mxu0  ;;  %v730_v10 = vadd.f32 %v729_v6, %v9464_v41  ;;  %v731_v11 = vpop.f32.mrb[6].mxu1  ;;  %v8196_v4 = vld [vmem:[#allocation12 + $0x20] ss:$16 sps:$4 sm:$0xff]  }
 0x14e   :  { %v621_v12 = vadd.f32 %v620_v9, %v9467_v42  ;;  %v732_v13 = vadd.f32 %v731_v11, %v9458_v38  ;;  %v733_v14 = vpop.f32.mrb[7].mxu1  ;;  %2132 = vmatpush1.bf16.msra.mxu0 %v8196_v4 }
 0x14f   :  { %v9492_v15 = vpack.c.bf16 %v619_v8, %v615_v63  ;;  %v734_v16 = vadd.f32 %v733_v14, %v9464_v41  ;;  %v8204_v14 = vld [vmem:[#allocation12 + $0x44] ss:$16 sps:$4 sm:$0xff]  }
 0x150   :  { %v9495_v17 = vpack.c.bf16 %v621_v12, %v617_v3  ;;  %v9497_v18 = vpack.c.bf16 %v732_v13, %v728_v5  ;;  %v8199_v5 = vld [vmem:[#allocation12 + $0x28] ss:$16 sps:$4 sm:$0xff]   ;;  %2133 = vmatprep.subr.bf16.mxu0 %v8204_v14 }
 0x151   :  { %v9499_v19 = vpack.c.bf16 %v734_v16, %v730_v10  ;;  %2175 = vmatpush1.bf16.msra.mxu1 %v8199_v5  ;;  %v8207_v16 = vld [vmem:[#allocation12 + $0x4c] ss:$16 sps:$4 sm:$0xff]  }
 0x152   :  { %v624_v20 = vpop.f32.mrb[8].mxu0  ;;  %2176 = vmatprep.subr.bf16.mxu1 %v8207_v16 }
 0x153   :  { %v625_v21 = vadd.f32 %v624_v20, %v9461_v40  ;;  %v626_v22 = vpop.f32.mrb[9].mxu0  ;;  %v737_v24 = vpop.f32.mrb[8].mxu1 }
 0x154   :  { %v627_v25 = vadd.f32 %v626_v22, %v9467_v42  ;;  %v628_v26 = vpop.f32.mrb[10].mxu0  ;;  %v738_v7 = vadd.f32 %v737_v24, %v9458_v38  ;;  %v739_v27 = vpop.f32.mrb[9].mxu1  ;;  %v8205_v22 = vld [vmem:[#allocation12 + $0x48] ss:$16 sps:$4 sm:$0xff]  }
 0x155   :  { %v629_v28 = vadd.f32 %v628_v26, %v9461_v40  ;;  %v630_v29 = vpop.f32.mrb[11].mxu0  ;;  %v740_v30 = vadd.f32 %v739_v27, %v9464_v41  ;;  %v741_v31 = vpop.f32.mrb[10].mxu1  ;;  %2177 = vmatpush1.bf16.msra.mxu1 %v8205_v22 }
 0x156   :  { %v631_v32 = vadd.f32 %v630_v29, %v9467_v42  ;;  %v742_v23 = vadd.f32 %v741_v31, %v9458_v38  ;;  %v743_v34 = vpop.f32.mrb[11].mxu1  ;;  %v8210_v31 = vld [vmem:[#allocation12 + $0x64] ss:$16 sps:$4 sm:$0xff]  }
 0x157   :  { %v9508_v35 = vpack.c.bf16 %v629_v28, %v625_v21  ;;  %v744_v37 = vadd.f32 %v743_v34, %v9464_v41  ;;  %v8202_v21 = vld [vmem:[#allocation12 + $0x40] ss:$16 sps:$4 sm:$0xff]  }
 0x158   :  { %v9511_v39 = vpack.c.bf16 %v631_v32, %v627_v25  ;;  %v9513_v43 = vpack.c.bf16 %v742_v23, %v738_v7  ;;  %2134 = vmatpush1.bf16.msra.mxu0 %v8202_v21  ;;  %v8213_v32 = vld [vmem:[#allocation12 + $0x6c] ss:$16 sps:$4 sm:$0xff]  }
 0x159   :  { %11116 = vst [vmem:[#allocation20_spill] sm:$0xff] %v9508_v35  ;;  %v9515_v46 = vpack.c.bf16 %v744_v37, %v740_v30  ;;  %2135 = vmatprep.subr.bf16.mxu0 %v8210_v31  ;;  %2178 = vmatprep.subr.bf16.mxu1 %v8213_v32 }
 0x15a   :  { %11117 = vst [vmem:[#allocation21_spill] sm:$0xff] %v9511_v39  ;;  %11118 = vst [vmem:[#allocation22_spill] sm:$0xff] %v9513_v43  ;;  %v634_v49 = vpop.f32.mrb[12].mxu0  ;;  %v9913_v39 = vld [vmem:[#allocation13 + $0xe8] ss:$16 sps:$4 sm:$0xff]  }
 0x15b   :  { %11119 = vst [vmem:[#allocation23_spill] sm:$0xff] %v9515_v46  ;;  %v635_v50 = vadd.f32 %v634_v49, %v9461_v40  ;;  %v636_v51 = vpop.f32.mrb[13].mxu0  ;;  %v747_v52 = vpop.f32.mrb[12].mxu1  ;;  %v9911_v46 = vld [vmem:[#allocation13 + $0xe0] ss:$16 sps:$4 sm:$0xff]   ;;  %11175 = vst [vmem:[#allocation78_spill] sm:$0xff] %v9913_v39 }
 0x15c   :  { %v637_v53 = vadd.f32 %v636_v51, %v9467_v42  ;;  %v638_v54 = vpop.f32.mrb[14].mxu0  ;;  %v748_v55 = vadd.f32 %v747_v52, %v9458_v38  ;;  %v749_v56 = vpop.f32.mrb[13].mxu1  ;;  %2136 = vmatpush1.bf16.msra.mxu0 %v8208_v45 }
 0x15d   :  { %v639_v63 = vadd.f32 %v638_v54, %v9461_v40  ;;  %v640_v1 = vpop.f32.mrb[15].mxu0  ;;  %v750_v2 = vadd.f32 %v749_v56, %v9464_v41  ;;  %v751_v3 = vpop.f32.mrb[14].mxu1  ;;  %2137 = vmatprep.subr.bf16.mxu0 %v8216_v58 }
 0x15e   :  { %v641_v6 = vadd.f32 %v640_v1, %v9467_v42  ;;  %v752_v8 = vadd.f32 %v751_v3, %v9458_v38  ;;  %v753_v9 = vpop.f32.mrb[15].mxu1  ;;  %v8214_v3 = vld [vmem:[#allocation12 + $0x80] ss:$16 sps:$4 sm:$0xff]  }
 0x15f   :  { %v9524_v10 = vpack.c.bf16 %v639_v63, %v635_v50  ;;  %v754_v11 = vadd.f32 %v753_v9, %v9464_v41  ;;  %v8211_v50 = vld [vmem:[#allocation12 + $0x68] ss:$16 sps:$4 sm:$0xff]  }
 0x160   :  { %v9527_v12 = vpack.c.bf16 %v641_v6, %v637_v53  ;;  %v9529_v13 = vpack.c.bf16 %v752_v8, %v748_v55  ;;  %2179 = vmatpush1.bf16.msra.mxu1 %v8211_v50  ;;  %v8217_v9 = vld [vmem:[#allocation12 + $0x88] ss:$16 sps:$4 sm:$0xff]   ;;  %2138 = vmatpush1.bf16.msra.mxu0 %v8214_v3 }
 0x161   :  { %11120 = vst [vmem:[#allocation24_spill] sm:$0xff] %v9524_v10  ;;  %v9531_v20 = vpack.c.bf16 %v754_v11, %v750_v2  ;;  %2180 = vmatprep.subr.bf16.mxu1 %v8219_v62  ;;  %v9584_v50 = vld [vmem:[#allocation12 + $0xc8] ss:$16 sps:$4 sm:$0xff]  }
 0x162   :  { %11121 = vst [vmem:[#allocation25_spill] sm:$0xff] %v9527_v12  ;;  %11122 = vst [vmem:[#allocation26_spill] sm:$0xff] %v9529_v13  ;;  %v644_v24 = vpop.f32.mrb[16].mxu0  ;;  %v9871_v13 = vld [vmem:[#allocation13 + $0x88] ss:$16 sps:$4 sm:$0xff]  }
 0x163   :  { %11123 = vst [vmem:[#allocation27_spill] sm:$0xff] %v9531_v20  ;;  %v645_v25 = vadd.f32 %v644_v24, %v9461_v40  ;;  %v646_v26 = vpop.f32.mrb[17].mxu0  ;;  %v757_v7 = vpop.f32.mrb[16].mxu1 }
 0x164   :  { %v647_v27 = vadd.f32 %v646_v26, %v9467_v42  ;;  %v648_v28 = vpop.f32.mrb[18].mxu0  ;;  %v758_v29 = vadd.f32 %v757_v7, %v9458_v38  ;;  %v759_v30 = vpop.f32.mrb[17].mxu1  ;;  %2181 = vmatpush1.bf16.msra.mxu1 %v8217_v9  ;;  %v9556_v26 = vld [vmem:[#allocation12 + $0xa4] ss:$16 sps:$4 sm:$0xff]   ;;  %v9558_v7 = vld [vmem:[#allocation12 + $0xac] ss:$16 sps:$4 sm:$0xff]  }
 0x165   :  { %v649_v23 = vadd.f32 %v648_v28, %v9461_v40  ;;  %v650_v34 = vpop.f32.mrb[19].mxu0  ;;  %v760_v37 = vadd.f32 %v759_v30, %v9464_v41  ;;  %v761_v44 = vpop.f32.mrb[18].mxu1  ;;  %v9565_v30 = vld [vmem:[#allocation12 + $0xa8] ss:$16 sps:$4 sm:$0xff]   ;;  %2139 = vmatprep.subr.bf16.mxu0 %v9556_v26  ;;  %2182 = vmatprep.subr.bf16.mxu1 %v9558_v7 }
 0x166   :  { %v651_v47 = vadd.f32 %v650_v34, %v9467_v42  ;;  %v762_v48 = vadd.f32 %v761_v44, %v9458_v38  ;;  %v763_v49 = vpop.f32.mrb[19].mxu1  ;;  %v9579_v44 = vld [vmem:[#allocation12 + $0xcc] ss:$16 sps:$4 sm:$0xff]  }
 0x167   :  { %v9540_v51 = vpack.c.bf16 %v649_v23, %v645_v25  ;;  %v764_v52 = vadd.f32 %v763_v49, %v9464_v41  ;;  %v9582_v49 = vld [vmem:[#allocation12 + $0xc0] ss:$16 sps:$4 sm:$0xff]  }
 0x168   :  { %v9543_v53 = vpack.c.bf16 %v651_v47, %v647_v27  ;;  %v9545_v54 = vpack.c.bf16 %v762_v48, %v758_v29  ;;  %v9563_v29 = vld [vmem:[#allocation12 + $0xa0] ss:$16 sps:$4 sm:$0xff]   ;;  %2183 = vmatpush1.bf16.msra.mxu1 %v9565_v30 }
 0x169   :  { %11124 = vst [vmem:[#allocation28_spill] sm:$0xff] %v9540_v51  ;;  %v9547_v55 = vpack.c.bf16 %v764_v52, %v760_v37  ;;  %2140 = vmatpush1.bf16.msra.mxu0 %v9563_v29  ;;  %v9577_v37 = vld [vmem:[#allocation12 + $0xc4] ss:$16 sps:$4 sm:$0xff]   ;;  %2184 = vmatprep.subr.bf16.mxu1 %v9579_v44 }
 0x16a   :  { %11125 = vst [vmem:[#allocation29_spill] sm:$0xff] %v9543_v53  ;;  %11126 = vst [vmem:[#allocation30_spill] sm:$0xff] %v9545_v54  ;;  %v654_v56 = vpop.f32.mrb[20].mxu0  ;;  %2141 = vmatprep.subr.bf16.mxu0 %v9577_v37 }
 0x16b   :  { %11127 = vst [vmem:[#allocation31_spill] sm:$0xff] %v9547_v55  ;;  %v655_v63 = vadd.f32 %v654_v56, %v9461_v40  ;;  %v656_v1 = vpop.f32.mrb[21].mxu0  ;;  %v767_v2 = vpop.f32.mrb[20].mxu1 }
 0x16c   :  { %v657_v4 = vadd.f32 %v656_v1, %v9467_v42  ;;  %v658_v5 = vpop.f32.mrb[22].mxu0  ;;  %v768_v6 = vadd.f32 %v767_v2, %v9458_v38  ;;  %v769_v8 = vpop.f32.mrb[21].mxu1  ;;  %2185 = vmatpush1.bf16.msra.mxu1 %v9584_v50 }
 0x16d   :  { %v659_v11 = vadd.f32 %v658_v5, %v9461_v40  ;;  %v660_v14 = vpop.f32.mrb[23].mxu0  ;;  %v770_v16 = vadd.f32 %v769_v8, %v9464_v41  ;;  %v771_v21 = vpop.f32.mrb[22].mxu1  ;;  %2142 = vmatpush1.bf16.msra.mxu0 %v9582_v49  ;;  %v9596_v8 = vld [vmem:[#allocation12 + $0xe4] ss:$16 sps:$4 sm:$0xff]  }
 0x16e   :  { %v661_v22 = vadd.f32 %v660_v14, %v9467_v42  ;;  %v772_v24 = vadd.f32 %v771_v21, %v9458_v38  ;;  %v773_v25 = vpop.f32.mrb[23].mxu1  ;;  %v9601_v14 = vld [vmem:[#allocation12 + $0xe0] ss:$16 sps:$4 sm:$0xff]   ;;  %2143 = vmatprep.subr.bf16.mxu0 %v9596_v8 }
 0x16f   :  { %v9560_v27 = vpack.c.bf16 %v659_v11, %v655_v63  ;;  %v774_v28 = vadd.f32 %v773_v25, %v9464_v41 }
 0x170   :  { %v9567_v31 = vpack.c.bf16 %v661_v22, %v657_v4  ;;  %v9569_v32 = vpack.c.bf16 %v772_v24, %v768_v6  ;;  %v9610_v24 = vld [vmem:[#allocation12 + $0xec] ss:$16 sps:$4 sm:$0xff]  }
 0x171   :  { %11128 = vst [vmem:[#allocation32_spill] sm:$0xff] %v9560_v27  ;;  %v9573_v23 = vpack.c.bf16 %v774_v28, %v770_v16  ;;  %v9603_v16 = vld [vmem:[#allocation12 + $0xe8] ss:$16 sps:$4 sm:$0xff]   ;;  %2144 = vmatpush1.bf16.msra.mxu0 %v9601_v14  ;;  %2186 = vmatprep.subr.bf16.mxu1 %v9610_v24 }
 0x172   :  { %11129 = vst [vmem:[#allocation33_spill] sm:$0xff] %v9567_v31  ;;  %11130 = vst [vmem:[#allocation34_spill] sm:$0xff] %v9569_v32  ;;  %v664_v34 = vpop.f32.mrb[24].mxu0  ;;  %2187 = vmatpush1.bf16.msra.mxu1 %v9603_v16 }
 0x173   :  { %11131 = vst [vmem:[#allocation35_spill] sm:$0xff] %v9573_v23  ;;  %v665_v45 = vadd.f32 %v664_v34, %v9461_v40  ;;  %v666_v47 = vpop.f32.mrb[25].mxu0  ;;  %v777_v48 = vpop.f32.mrb[24].mxu1  ;;  %v9616_v34 = vld [vmem:[#allocation13 + $0x4] ss:$16 sps:$4 sm:$0xff]  }
 0x174   :  { %v667_v52 = vadd.f32 %v666_v47, %v9467_v42  ;;  %v668_v56 = vpop.f32.mrb[26].mxu0  ;;  %v778_v58 = vadd.f32 %v777_v48, %v9458_v38  ;;  %v779_v62 = vpop.f32.mrb[25].mxu1  ;;  %2410 = vmatprep.subr.bf16.mxu0 %v9616_v34 }
 0x175   :  { %v669_v63 = vadd.f32 %v668_v56, %v9461_v40  ;;  %v670_v1 = vpop.f32.mrb[27].mxu0  ;;  %v780_v2 = vadd.f32 %v779_v62, %v9464_v41  ;;  %v781_v3 = vpop.f32.mrb[26].mxu1 }
 0x176   :  { %v671_v4 = vadd.f32 %v670_v1, %v9467_v42  ;;  %v782_v5 = vadd.f32 %v781_v3, %v9458_v38  ;;  %v783_v6 = vpop.f32.mrb[27].mxu1  ;;  %v188_v3 = vsub.s32 6, %v9446_v33 }
 0x177   :  { %v9598_v9 = vpack.c.bf16 %v669_v63, %v665_v45  ;;  %v784_v11 = vadd.f32 %v783_v6, %v9464_v41  ;;  %v9618_v45 = vld [vmem:[#allocation13 + $0xc] ss:$16 sps:$4 sm:$0xff]   ;;  %v184_v63 = vsub.s32 5, %v9446_v33 }
 0x178   :  { %v9605_v21 = vpack.c.bf16 %v671_v4, %v667_v52  ;;  %v9607_v22 = vpack.c.bf16 %v782_v5, %v778_v58  ;;  %v180_v52 = vsub.s32 4, %v9446_v33  ;;  %2453 = vmatprep.subr.bf16.mxu1 %v9618_v45 }
 0x179   :  { %11132 = vst [vmem:[#allocation36_spill] sm:$0xff] %v9598_v9  ;;  %v9612_v25 = vpack.c.bf16 %v784_v11, %v780_v2 }
 0x17a   :  { %11133 = vst [vmem:[#allocation37_spill] sm:$0xff] %v9605_v21  ;;  %11134 = vst [vmem:[#allocation38_spill] sm:$0xff] %v9607_v22  ;;  %v674_v28 = vpop.f32.mrb[28].mxu0  ;;  %v9637_v21 = vrot.slane %v9454_v36, %v180_v52 }
 0x17b   :  { %11135 = vst [vmem:[#allocation39_spill] sm:$0xff] %v9612_v25  ;;  %v675_v47 = vadd.f32 %v674_v28, %v9461_v40  ;;  %v676_v48 = vpop.f32.mrb[29].mxu0  ;;  %v787_v56 = vpop.f32.mrb[28].mxu1  ;;  %v192_v28 = vsub.s32 7, %v9446_v33  ;;  %v9648_v33 = vrot.slane %v9454_v36, %v188_v3 }
 0x17c   :  { %v677_v58 = vadd.f32 %v676_v48, %v9467_v42  ;;  %v678_v62 = vpop.f32.mrb[30].mxu0  ;;  %v788_v1 = vadd.f32 %v787_v56, %v9458_v38  ;;  %v789_v2 = vpop.f32.mrb[29].mxu1 }
 0x17d   :  { %v679_v4 = vadd.f32 %v678_v62, %v9461_v40  ;;  %v680_v5 = vpop.f32.mrb[31].mxu0  ;;  %v790_v6 = vadd.f32 %v789_v2, %v9464_v41  ;;  %v791_v11 = vpop.f32.mrb[30].mxu1  ;;  %v9643_v40 = vrot.slane %v9454_v36, %v184_v63 }
 0x17e   :  { %v681_v48 = vadd.f32 %v680_v5, %v9467_v42  ;;  %v792_v0 = vadd.f32 %v791_v11, %v9458_v38  ;;  %v793_v56 = vpop.f32.mrb[31].mxu1  ;;  %v9653_v38 = vrot.slane %v9454_v36, %v192_v28 }
 0x17f   :  { %v9634_v25 = vpack.c.bf16 %v679_v4, %v675_v47  ;;  %v794_v22 = vadd.f32 %v793_v56, %v9464_v41 }
 0x180   :  { %v9640_v9 = vpack.c.bf16 %v681_v48, %v677_v58  ;;  %v9645_v62 = vpack.c.bf16 %v792_v0, %v788_v1 }
 0x181   :  { %11136 = vst [vmem:[#allocation40_spill] sm:$0xff] %v9634_v25  ;;  %v9650_v42 = vpack.c.bf16 %v794_v22, %v790_v6 }
 0x182   :  { %11137 = vst [vmem:[#allocation41_spill] sm:$0xff] %v9640_v9  ;;  %11138 = vst [vmem:[#allocation42_spill] sm:$0xff] %v9645_v62  ;;  %v830_v47 = vpop.f32.mrb[32].mxu0 }
 0x183   :  { %11139 = vst [vmem:[#allocation43_spill] sm:$0xff] %v9650_v42  ;;  %v831_v52 = vadd.f32 %v830_v47, %v9637_v21  ;;  %v832_v2 = vpop.f32.mrb[33].mxu0  ;;  %v943_v41 = vpop.f32.mrb[32].mxu1 }
 0x184   :  { %v833_v58 = vadd.f32 %v832_v2, %v9643_v40  ;;  %v834_v4 = vpop.f32.mrb[34].mxu0  ;;  %v944_v63 = vadd.f32 %v943_v41, %v9648_v33  ;;  %v945_v0 = vpop.f32.mrb[33].mxu1 }
 0x185   :  { %v835_v1 = vadd.f32 %v834_v4, %v9637_v21  ;;  %v836_v3 = vpop.f32.mrb[35].mxu0  ;;  %v946_v22 = vadd.f32 %v945_v0, %v9653_v38  ;;  %v947_v5 = vpop.f32.mrb[34].mxu1 }
 0x186   :  { %v837_v36 = vadd.f32 %v836_v3, %v9643_v40  ;;  %v948_v6 = vadd.f32 %v947_v5, %v9648_v33  ;;  %v949_v11 = vpop.f32.mrb[35].mxu1 }
 0x187   :  { %v9662_v28 = vpack.c.bf16 %v835_v1, %v831_v52  ;;  %v950_v48 = vadd.f32 %v949_v11, %v9653_v38 }
 0x188   :  { %v9665_v56 = vpack.c.bf16 %v837_v36, %v833_v58  ;;  %v9667_v47 = vpack.c.bf16 %v948_v6, %v944_v63 }
 0x189   :  { %11140 = vst [vmem:[#allocation44_spill] sm:$0xff] %v9662_v28  ;;  %v9669_v2 = vpack.c.bf16 %v950_v48, %v946_v22 }
 0x18a   :  { %11141 = vst [vmem:[#allocation45_spill] sm:$0xff] %v9665_v56  ;;  %11142 = vst [vmem:[#allocation46_spill] sm:$0xff] %v9667_v47  ;;  %v840_v41 = vpop.f32.mrb[36].mxu0 }
 0x18b   :  { %11143 = vst [vmem:[#allocation47_spill] sm:$0xff] %v9669_v2  ;;  %v841_v4 = vadd.f32 %v840_v41, %v9637_v21  ;;  %v842_v0 = vpop.f32.mrb[37].mxu0  ;;  %v953_v42 = vpop.f32.mrb[36].mxu1 }
 0x18c   :  { %v843_v3 = vadd.f32 %v842_v0, %v9643_v40  ;;  %v844_v9 = vpop.f32.mrb[38].mxu0  ;;  %v954_v5 = vadd.f32 %v953_v42, %v9648_v33  ;;  %v955_v52 = vpop.f32.mrb[37].mxu1 }
 0x18d   :  { %v845_v1 = vadd.f32 %v844_v9, %v9637_v21  ;;  %v846_v11 = vpop.f32.mrb[39].mxu0  ;;  %v956_v58 = vadd.f32 %v955_v52, %v9653_v38  ;;  %v957_v63 = vpop.f32.mrb[38].mxu1 }
 0x18e   :  { %v847_v22 = vadd.f32 %v846_v11, %v9643_v40  ;;  %v958_v36 = vadd.f32 %v957_v63, %v9648_v33  ;;  %v959_v6 = vpop.f32.mrb[39].mxu1 }
 0x18f   :  { %v9678_v48 = vpack.c.bf16 %v845_v1, %v841_v4  ;;  %v960_v41 = vadd.f32 %v959_v6, %v9653_v38 }
 0x190   :  { %v9681_v0 = vpack.c.bf16 %v847_v22, %v843_v3  ;;  %v9683_v2 = vpack.c.bf16 %v958_v36, %v954_v5 }
 0x191   :  { %11144 = vst [vmem:[#allocation48_spill] sm:$0xff] %v9678_v48  ;;  %v9685_v42 = vpack.c.bf16 %v960_v41, %v956_v58 }
 0x192   :  { %11145 = vst [vmem:[#allocation49_spill] sm:$0xff] %v9681_v0  ;;  %11146 = vst [vmem:[#allocation50_spill] sm:$0xff] %v9683_v2  ;;  %v850_v9 = vpop.f32.mrb[40].mxu0 }
 0x193   :  { %11147 = vst [vmem:[#allocation51_spill] sm:$0xff] %v9685_v42  ;;  %v851_v56 = vadd.f32 %v850_v9, %v9637_v21  ;;  %v852_v52 = vpop.f32.mrb[41].mxu0  ;;  %v963_v47 = vpop.f32.mrb[40].mxu1 }
 0x194   :  { %v853_v11 = vadd.f32 %v852_v52, %v9643_v40  ;;  %v854_v28 = vpop.f32.mrb[42].mxu0  ;;  %v964_v63 = vadd.f32 %v963_v47, %v9648_v33  ;;  %v965_v4 = vpop.f32.mrb[41].mxu1 }
 0x195   :  { %v855_v1 = vadd.f32 %v854_v28, %v9637_v21  ;;  %v856_v6 = vpop.f32.mrb[43].mxu0  ;;  %v966_v3 = vadd.f32 %v965_v4, %v9653_v38  ;;  %v967_v5 = vpop.f32.mrb[42].mxu1 }
 0x196   :  { %v857_v58 = vadd.f32 %v856_v6, %v9643_v40  ;;  %v968_v22 = vadd.f32 %v967_v5, %v9648_v33  ;;  %v969_v36 = vpop.f32.mrb[43].mxu1 }
 0x197   :  { %v9694_v41 = vpack.c.bf16 %v855_v1, %v851_v56  ;;  %v970_v9 = vadd.f32 %v969_v36, %v9653_v38 }
 0x198   :  { %v9697_v52 = vpack.c.bf16 %v857_v58, %v853_v11  ;;  %v9699_v62 = vpack.c.bf16 %v968_v22, %v964_v63 }
 0x199   :  { %11148 = vst [vmem:[#allocation52_spill] sm:$0xff] %v9694_v41  ;;  %v9701_v47 = vpack.c.bf16 %v970_v9, %v966_v3 }
 0x19a   :  { %11149 = vst [vmem:[#allocation53_spill] sm:$0xff] %v9697_v52  ;;  %11150 = vst [vmem:[#allocation54_spill] sm:$0xff] %v9699_v62  ;;  %v860_v28 = vpop.f32.mrb[44].mxu0 }
 0x19b   :  { %11151 = vst [vmem:[#allocation55_spill] sm:$0xff] %v9701_v47  ;;  %v861_v25 = vadd.f32 %v860_v28, %v9637_v21  ;;  %v862_v4 = vpop.f32.mrb[45].mxu0  ;;  %v973_v42 = vpop.f32.mrb[44].mxu1 }
 0x19c   :  { %v863_v6 = vadd.f32 %v862_v4, %v9643_v40  ;;  %v864_v0 = vpop.f32.mrb[46].mxu0  ;;  %v974_v5 = vadd.f32 %v973_v42, %v9648_v33  ;;  %v975_v56 = vpop.f32.mrb[45].mxu1 }
 0x19d   :  { %v865_v1 = vadd.f32 %v864_v0, %v9637_v21  ;;  %v866_v36 = vpop.f32.mrb[47].mxu0  ;;  %v976_v11 = vadd.f32 %v975_v56, %v9653_v38  ;;  %v977_v63 = vpop.f32.mrb[46].mxu1 }
 0x19e   :  { %v867_v3 = vadd.f32 %v866_v36, %v9643_v40  ;;  %v978_v58 = vadd.f32 %v977_v63, %v9648_v33  ;;  %v979_v22 = vpop.f32.mrb[47].mxu1 }
 0x19f   :  { %v9710_v9 = vpack.c.bf16 %v865_v1, %v861_v25  ;;  %v980_v28 = vadd.f32 %v979_v22, %v9653_v38 }
 0x1a0   :  { %v9713_v4 = vpack.c.bf16 %v867_v3, %v863_v6  ;;  %v9715_v2 = vpack.c.bf16 %v978_v58, %v974_v5 }
 0x1a1   :  { %11152 = vst [vmem:[#allocation56_spill] sm:$0xff] %v9710_v9  ;;  %v9717_v42 = vpack.c.bf16 %v980_v28, %v976_v11 }
 0x1a2   :  { %11153 = vst [vmem:[#allocation57_spill] sm:$0xff] %v9713_v4  ;;  %11154 = vst [vmem:[#allocation58_spill] sm:$0xff] %v9715_v2  ;;  %v870_v0 = vpop.f32.mrb[48].mxu0 }
 0x1a3   :  { %11155 = vst [vmem:[#allocation59_spill] sm:$0xff] %v9717_v42  ;;  %v871_v48 = vadd.f32 %v870_v0, %v9637_v21  ;;  %v872_v56 = vpop.f32.mrb[49].mxu0  ;;  %v983_v47 = vpop.f32.mrb[48].mxu1 }
 0x1a4   :  { %v873_v36 = vadd.f32 %v872_v56, %v9643_v40  ;;  %v874_v52 = vpop.f32.mrb[50].mxu0  ;;  %v984_v63 = vadd.f32 %v983_v47, %v9648_v33  ;;  %v985_v25 = vpop.f32.mrb[49].mxu1 }
 0x1a5   :  { %v875_v1 = vadd.f32 %v874_v52, %v9637_v21  ;;  %v876_v22 = vpop.f32.mrb[51].mxu0  ;;  %v986_v6 = vadd.f32 %v985_v25, %v9653_v38  ;;  %v987_v5 = vpop.f32.mrb[50].mxu1 }
 0x1a6   :  { %v877_v11 = vadd.f32 %v876_v22, %v9643_v40  ;;  %v988_v3 = vadd.f32 %v987_v5, %v9648_v33  ;;  %v989_v58 = vpop.f32.mrb[51].mxu1 }
 0x1a7   :  { %v9726_v28 = vpack.c.bf16 %v875_v1, %v871_v48  ;;  %v990_v0 = vadd.f32 %v989_v58, %v9653_v38 }
 0x1a8   :  { %v9729_v56 = vpack.c.bf16 %v877_v11, %v873_v36  ;;  %v9731_v62 = vpack.c.bf16 %v988_v3, %v984_v63 }
 0x1a9   :  { %11156 = vst [vmem:[#allocation60_spill] sm:$0xff] %v9726_v28  ;;  %v9733_v47 = vpack.c.bf16 %v990_v0, %v986_v6 }
 0x1aa   :  { %11157 = vst [vmem:[#allocation61_spill] sm:$0xff] %v9729_v56  ;;  %11158 = vst [vmem:[#allocation62_spill] sm:$0xff] %v9731_v62  ;;  %v880_v52 = vpop.f32.mrb[52].mxu0 }
 0x1ab   :  { %11159 = vst [vmem:[#allocation63_spill] sm:$0xff] %v9733_v47  ;;  %v881_v41 = vadd.f32 %v880_v52, %v9637_v21  ;;  %v882_v25 = vpop.f32.mrb[53].mxu0  ;;  %v993_v23 = vpop.f32.mrb[52].mxu1 }
 0x1ac   :  { %v883_v22 = vadd.f32 %v882_v25, %v9643_v40  ;;  %v884_v31 = vpop.f32.mrb[54].mxu0  ;;  %v994_v5 = vadd.f32 %v993_v23, %v9648_v33  ;;  %v995_v48 = vpop.f32.mrb[53].mxu1 }
 0x1ad   :  { %v885_v1 = vadd.f32 %v884_v31, %v9637_v21  ;;  %v886_v58 = vpop.f32.mrb[55].mxu0  ;;  %v996_v36 = vadd.f32 %v995_v48, %v9653_v38  ;;  %v997_v63 = vpop.f32.mrb[54].mxu1 }
 0x1ae   :  { %v887_v6 = vadd.f32 %v886_v58, %v9643_v40  ;;  %v998_v11 = vadd.f32 %v997_v63, %v9648_v33  ;;  %v999_v3 = vpop.f32.mrb[55].mxu1 }
 0x1af   :  { %v9742_v0 = vpack.c.bf16 %v885_v1, %v881_v41  ;;  %v1000_v52 = vadd.f32 %v999_v3, %v9653_v38 }
 0x1b0   :  { %v9745_v25 = vpack.c.bf16 %v887_v6, %v883_v22  ;;  %v9747_v32 = vpack.c.bf16 %v998_v11, %v994_v5 }
 0x1b1   :  { %11160 = vst [vmem:[#allocation64_spill] sm:$0xff] %v9742_v0  ;;  %v9749_v23 = vpack.c.bf16 %v1000_v52, %v996_v36 }
 0x1b2   :  { %11161 = vst [vmem:[#allocation65_spill] sm:$0xff] %v9745_v25  ;;  %11162 = vst [vmem:[#allocation66_spill] sm:$0xff] %v9747_v32  ;;  %v890_v31 = vpop.f32.mrb[56].mxu0  ;;  %v9907_v32 = vpop.permute.xlu1 %1889 }
 0x1b3   :  { %11163 = vst [vmem:[#allocation67_spill] sm:$0xff] %v9749_v23  ;;  %v891_v27 = vadd.f32 %v890_v31, %v9637_v21  ;;  %v892_v48 = vpop.f32.mrb[57].mxu0  ;;  %v1003_v42 = vpop.f32.mrb[56].mxu1  ;;  %v9905_v23 = vld [vmem:[#allocation13 + $0xec] ss:$16 sps:$4 sm:$0xff]   ;;  %11174 = vst [vmem:[#allocation77_spill] sm:$0xff] %v9907_v32 }
 0x1b4   :  { %v893_v58 = vadd.f32 %v892_v48, %v9643_v40  ;;  %v894_v4 = vpop.f32.mrb[58].mxu0  ;;  %v1004_v63 = vadd.f32 %v1003_v42, %v9648_v33  ;;  %v1005_v41 = vpop.f32.mrb[57].mxu1  ;;  %11173 = vst [vmem:[#allocation76_spill] sm:$0xff] %v9905_v23  ;;  %vm11084_vm3 = vcmp.eq.s32.totalorder %v9907_v32, 1 }
 0x1b5   :  { %v895_v1 = vadd.f32 %v894_v4, %v9637_v21  ;;  %v896_v3 = vpop.f32.mrb[59].mxu0  ;;  %v1006_v22 = vadd.f32 %v1005_v41, %v9653_v38  ;;  %v1007_v5 = vpop.f32.mrb[58].mxu1 }
 0x1b6   :  { %v897_v36 = vadd.f32 %v896_v3, %v9643_v40  ;;  %v1008_v6 = vadd.f32 %v1007_v5, %v9648_v33  ;;  %v1009_v11 = vpop.f32.mrb[59].mxu1 }
 0x1b7   :  { %v9758_v52 = vpack.c.bf16 %v895_v1, %v891_v27  ;;  %v1010_v31 = vadd.f32 %v1009_v11, %v9653_v38 }
 0x1b8   :  { %v9761_v48 = vpack.c.bf16 %v897_v36, %v893_v58  ;;  %v9763_v2 = vpack.c.bf16 %v1008_v6, %v1004_v63 }
 0x1b9   :  { %v9765_v42 = vpack.c.bf16 %v1010_v31, %v1006_v22 }
 0x1ba   :  { %v900_v4 = vpop.f32.mrb[60].mxu0 }
 0x1bb   :  { %v902_v9 = vpop.f32.mrb[61].mxu0  ;;  %v1013_v55 = vpop.f32.mrb[60].mxu1  ;;  %v901_v5 = vadd.f32 %v900_v4, %v9637_v21 }
 0x1bc   :  { %v904_v41 = vpop.f32.mrb[62].mxu0  ;;  %v1014_v53 = vadd.f32 %v1013_v55, %v9648_v33  ;;  %v1015_v3 = vpop.f32.mrb[61].mxu1  ;;  %v903_v63 = vadd.f32 %v902_v9, %v9643_v40  ;;  %v1731_v9 = vunpack.c.l.bf16 %v9481_v60 }
 0x1bd   :  { %v905_v27 = vadd.f32 %v904_v41, %v9637_v21  ;;  %v906_v1 = vpop.f32.mrb[63].mxu0  ;;  %v1016_v11 = vadd.f32 %v1015_v3, %v9653_v38  ;;  %v1017_v58 = vpop.f32.mrb[62].mxu1  ;;  %v1729_v41 = vunpack.c.l.bf16 %v9476_v57 }
 0x1be   :  { %v907_v22 = vadd.f32 %v906_v1, %v9643_v40  ;;  %v1018_v36 = vadd.f32 %v1017_v58, %v9648_v33  ;;  %v1019_v6 = vpop.f32.mrb[63].mxu1  ;;  %v1730_v40 = vunpack.c.l.bf16 %v9479_v59 }
 0x1bf   :  { %v9774_v31 = vpack.c.bf16 %v905_v27, %v901_v5  ;;  %v1020_v55 = vadd.f32 %v1019_v6, %v9653_v38  ;;  %v1732_v5 = vunpack.c.l.bf16 %v9483_v61  ;;  %v1733_v38 = vunpack.c.h.bf16 %v9476_v57 }
 0x1c0   :  { %v9777_v54 = vpack.c.bf16 %v907_v22, %v903_v63  ;;  %v9779_v4 = vpack.c.bf16 %v1018_v36, %v1014_v53  ;;  %v1734_v36 = vunpack.c.h.bf16 %v9479_v59 }
 0x1c1   :  { %v9781_v21 = vpack.c.bf16 %v1020_v55, %v1016_v11  ;;  %v1735_v11 = vunpack.c.h.bf16 %v9481_v60 }
 0x1c2   :  { %v1389_v3 = vpop.f32.mrb[64].mxu0 }
 0x1c3   :  { %v1737_v1 = vadd.f32 %v1729_v41, %v1389_v3  ;;  %v1432_v33 = vpop.f32.mrb[64].mxu1  ;;  %v1391_v58 = vpop.f32.mrb[65].mxu0  ;;  %v1736_v41 = vunpack.c.h.bf16 %v9483_v61 }
 0x1c4   :  { %v1739_v27 = vadd.f32 %v1731_v9, %v1432_v33  ;;  %v1738_v63 = vadd.f32 %v1730_v40, %v1391_v58  ;;  %v1434_v53 = vpop.f32.mrb[65].mxu1  ;;  %v1393_v22 = vpop.f32.mrb[66].mxu0 }
 0x1c5   :  { %v7377_v6 = vmul.f32 -1.442695, %v1737_v1  ;;  %v1740_v55 = vadd.f32 %v1732_v5, %v1434_v53  ;;  %v1741_v51 = vadd.f32 %v1733_v38, %v1393_v22  ;;  %v1436_v47 = vpop.f32.mrb[66].mxu1  ;;  %v1395_v56 = vpop.f32.mrb[67].mxu0 }
 0x1c6   :  { %v7378_v3 = vmul.f32 -1.442695, %v1738_v63  ;;  %v1743_v62 = vadd.f32 %v1735_v11, %v1436_v47  ;;  %v1742_v28 = vadd.f32 %v1734_v36, %v1395_v56  ;;  %v1438_v20 = vpop.f32.mrb[67].mxu1  ;;  %v7379_v60 = vmul.f32 -1.442695, %v1739_v27 }
 0x1c7   :  { %8574 = vpow2.f32 %v7377_v6  ;;  %v7380_v57 = vmul.f32 -1.442695, %v1741_v51  ;;  %v1744_v9 = vadd.f32 %v1736_v41, %v1438_v20  ;;  %v1752_v36 = vunpack.c.l.bf16 %v9774_v31 }
 0x1c8   :  { %8576 = vpow2.f32 %v7378_v3  ;;  %v7381_v40 = vmul.f32 -1.442695, %v1742_v28  ;;  %v7382_v1 = vmul.f32 -1.442695, %v1743_v62  ;;  %v1754_v41 = vunpack.c.l.bf16 %v9779_v4 }
 0x1c9   :  { %8578 = vpow2.f32 %v7380_v57  ;;  %v1753_v3 = vunpack.c.l.bf16 %v9777_v54  ;;  %v1756_v57 = vunpack.c.h.bf16 %v9774_v31 }
 0x1ca   :  { %8580 = vpow2.f32 %v7381_v40 }
 0x1cb   :  { %8582 = vpow2.f32 %v7379_v60 }
 0x1cc   :  { %8584 = vtanh.f32 %v1740_v55 }
 0x1d1   :  { %v8575_v59 = vpop.eup %8574 }
 0x1d2   :  { %v1788_v33 = vadd.f32 1.0, %v8575_v59  ;;  %v8577_v58 = vpop.eup %8576 }
 0x1d3   :  { %v1789_v61 = vadd.f32 1.0, %v8577_v58  ;;  %v8579_v5 = vpop.eup %8578  ;;  %v1755_v58 = vunpack.c.l.bf16 %v9781_v21 }
 0x1d4   :  { %8586 = vrcp.f32 %v1788_v33  ;;  %v1791_v56 = vadd.f32 1.0, %v8579_v5  ;;  %v8581_v47 = vpop.eup %8580 }
 0x1d5   :  { %8588 = vpow2.f32 %v7382_v1  ;;  %v1792_v20 = vadd.f32 1.0, %v8581_v47  ;;  %v8583_v51 = vpop.eup %8582 }
 0x1d6   :  { %8590 = vrcp.f32 %v1789_v61  ;;  %v8585_v28 = vpop.eup %8584  ;;  %v1790_v53 = vadd.f32 1.0, %v8583_v51 }
 0x1d7   :  { %8592 = vtanh.f32 %v1744_v9  ;;  %v1758_v9 = vunpack.c.h.bf16 %v9779_v4 }
 0x1d8   :  { %8594 = vrcp.f32 %v1791_v56 }
 0x1d9   :  { %8596 = vrcp.f32 %v1792_v20 }
 0x1da   :  { %8598 = vrcp.f32 %v1790_v53 }
 0x1de   :  { %v8587_v38 = vpop.eup %8586 }
 0x1df   :  { %v8589_v27 = vpop.eup %8588  ;;  %v1810_v62 = vmul.f32 %v8587_v38, %v8585_v28 }
 0x1e0   :  { %v8591_v63 = vpop.eup %8590  ;;  %v1793_v5 = vadd.f32 1.0, %v8589_v27 }
 0x1e1   :  { %v8593_v22 = vpop.eup %8592  ;;  %v1808_v11 = vmul.f32 0.0, %v8591_v63 }
 0x1e2   :  { %v8595_v6 = vpop.eup %8594  ;;  %v1670_v55 = vpop.f32.mrb[68].mxu0 }
 0x1e3   :  { %v9796_v40 = vadd.f32 %v1810_v62, %v1808_v11  ;;  %v1811_v60 = vmul.f32 %v8595_v6, %v8593_v22  ;;  %v1760_v59 = vadd.f32 %v1752_v36, %v1670_v55  ;;  %v1713_v1 = vpop.f32.mrb[68].mxu1  ;;  %v1672_v33 = vpop.f32.mrb[69].mxu0  ;;  %v1757_v62 = vunpack.c.h.bf16 %v9777_v54 }
 0x1e4   :  { %v8597_v61 = vpop.eup %8596  ;;  %v1762_v56 = vadd.f32 %v1754_v41, %v1713_v1  ;;  %v1761_v47 = vadd.f32 %v1753_v3, %v1672_v33  ;;  %v1715_v20 = vpop.f32.mrb[69].mxu1  ;;  %v1759_v6 = vunpack.c.h.bf16 %v9781_v21 }
 0x1e5   :  { %v1674_v51 = vpop.f32.mrb[70].mxu0  ;;  %v1809_v28 = vmul.f32 0.0, %v8597_v61  ;;  %8600 = vtanh.f32 %v9796_v40  ;;  %v7383_v31 = vmul.f32 -1.442695, %v1760_v59  ;;  %v1717_v4 = vpop.f32.mrb[70].mxu1  ;;  %v1763_v22 = vadd.f32 %v1755_v58, %v1715_v20 }
 0x1e6   :  { %v1676_v38 = vpop.f32.mrb[71].mxu0  ;;  %v7384_v63 = vmul.f32 -1.442695, %v1761_v47  ;;  %v1764_v11 = vadd.f32 %v1756_v57, %v1674_v51  ;;  %v1719_v36 = vpop.f32.mrb[71].mxu1  ;;  %v1766_v27 = vadd.f32 %v1758_v9, %v1717_v4  ;;  %v7385_v57 = vmul.f32 -1.442695, %v1762_v56 }
 0x1e7   :  { %v9802_v53 = vadd.f32 %v1811_v60, %v1809_v28  ;;  %8602 = vpow2.f32 %v7383_v31  ;;  %v1765_v55 = vadd.f32 %v1757_v62, %v1676_v38  ;;  %v1767_v3 = vadd.f32 %v1759_v6, %v1719_v36  ;;  %v8599_v54 = vpop.eup %8598  ;;  %v9805_v1 = vpop.permute.xlu0 %1875  ;;  %v9813_v4 = vld [vmem:[#allocation13] ss:$16 sps:$4 sm:$0xff]   ;;  %v9815_v38 = vld [vmem:[#allocation13 + $0x8] ss:$16 sps:$4 sm:$0xff]   ;;  %v9821_v36 = vld [vmem:[#allocation13 + $0x2c] ss:$16 sps:$4 sm:$0xff]  }
 0x1e8   :  { %8604 = vrcp.f32 %v1793_v5  ;;  %v7386_v41 = vmul.f32 -1.442695, %v1764_v11  ;;  %11164 = vst [vmem:[#allocation68_spill] sm:$0xff] %v9805_v1  ;;  %vm11082_vm0 = vcmp.eq.s32.totalorder %v9805_v1, 1  ;;  %v7388_v5 = vmul.f32 -1.442695, %v1766_v27 }
 0x1e9   :  { %8606 = vtanh.f32 %v9802_v53  ;;  %v7387_v59 = vmul.f32 -1.442695, %v1765_v55 }
 0x1ea   :  { %8608 = vpow2.f32 %v7384_v63 }
 0x1eb   :  { %8610 = vpow2.f32 %v7386_v41  ;;  %v9810_v28 = vpop.permute.xlu0 %1878 }
 0x1ec   :  { %8612 = vpow2.f32 %v7387_v59  ;;  %11165 = vst [vmem:[#allocation69_spill] sm:$0xff] %v9810_v28  ;;  %vm11081_vm1 = vcmp.eq.s32.totalorder %v9810_v28, 1  ;;  %v9829_v59 = vld [vmem:[#allocation13 + $0x20] ss:$16 sps:$4 sm:$0xff]  }
 0x1ed   :  { %8614 = vpow2.f32 %v7385_v57  ;;  %vm7985_vm2 = vmpackc.low %vm11081_vm1, %vm11082_vm0  ;;  %v9835_v57 = vld [vmem:[#allocation13 + $0x44] ss:$16 sps:$4 sm:$0xff]  }
 0x1ee   :  { %8616 = vtanh.f32 %v1763_v22  ;;  %v9819_v22 = vld [vmem:[#allocation13 + $0x24] ss:$16 sps:$4 sm:$0xff]  }
 0x1ef   :  { %v8601_v33 = vpop.eup %8600 }
 0x1f0   :  { %v1816_v21 = vmul.f32 %v8601_v33, %v8599_v54  ;;  %v9831_v54 = vld [vmem:[#allocation13 + $0x28] ss:$16 sps:$4 sm:$0xff]   ;;  %v11166_v33 = vmov 0  }
 0x1f1   :  { %v8603_v60 = vpop.eup %8602 }
 0x1f2   :  { %v8605_v9 = vpop.eup %8604  ;;  %v1882_v58 = vsel %vm11082_vm0, %v1816_v21, 0.0  ;;  %v1838_v61 = vadd.f32 1.0, %v8603_v60 }
 0x1f3   :  { %v8607_v47 = vpop.eup %8606  ;;  %v7953_v20 = vpack.c.bf16 %v1882_v58, %v1882_v58  ;;  %v9845_v58 = vld [vmem:[#allocation13 + $0x48] ss:$16 sps:$4 sm:$0xff]  }
 0x1f4   :  { %v8609_v51 = vpop.eup %8608  ;;  %v1817_v56 = vmul.f32 %v8607_v47, %v8605_v9  ;;  %8618 = vrcp.f32 %v1838_v61  ;;  %v9843_v9 = vld [vmem:[#allocation13 + $0x40] ss:$16 sps:$4 sm:$0xff]   ;;  %v9851_v47 = vld [vmem:[#allocation13 + $0x6c] ss:$16 sps:$4 sm:$0xff]  }
 0x1f5   :  { %1919 = vst [vmem:[#allocation15] sm:$0xf] %v7953_v20  ;;  %v1839_v31 = vadd.f32 1.0, %v8609_v51  ;;  %v8611_v62 = vpop.eup %8610  ;;  %8620 = vpow2.f32 %v7388_v5  ;;  %v9849_v5 = vld [vmem:[#allocation13 + $0x64] ss:$16 sps:$4 sm:$0xff]  }
 0x1f6   :  { %v1883_v63 = vsel %vm11081_vm1, %v1817_v56, 0.0  ;;  %v7986_v11 = vpack.c.bf16 %v1817_v56, %v1816_v21  ;;  %v1841_v27 = vadd.f32 1.0, %v8611_v62  ;;  %v8613_v55 = vpop.eup %8612  ;;  %v9855_v62 = vld [vmem:[#allocation13 + $0x60] ss:$16 sps:$4 sm:$0xff]  }
 0x1f7   :  { %v7954_v6 = vpack.c.bf16 %v1883_v63, %v1883_v63  ;;  %8622 = vrcp.f32 %v1839_v31  ;;  %v1842_v41 = vadd.f32 1.0, %v8613_v55  ;;  %v8615_v21 = vpop.eup %8614  ;;  %v9857_v63 = vld [vmem:[#allocation13 + $0x68] ss:$16 sps:$4 sm:$0xff]   ;;  %v9863_v55 = vld [vmem:[#allocation13 + $0x8c] ss:$16 sps:$4 sm:$0xff]  }
 0x1f8   :  { %8624 = vtanh.f32 %v1767_v3  ;;  %7987 = vmatmul.mubr.msk.bf16.vlgmr.msra.gmra.mrb[72].mxu0 %vm7985_vm2, %v7986_v11  ;;  %7990 = vmatmul.mubr.msk.bf16.vlgmr.msra.gmra.mrb[72].mxu1 %vm7985_vm2, %v7986_v11  ;;  %v9837_v3 = vld [vmem:[#allocation13 + $0x4c] ss:$16 sps:$4 sm:$0xff]   ;;  %v8617_v60 = vpop.eup %8616  ;;  %v1840_v31 = vadd.f32 1.0, %v8615_v21 }
 0x1f9   :  { %1920 = vst [vmem:[#allocation15 + $0x8] sm:$0xf] %v7954_v6  ;;  %8626 = vrcp.f32 %v1841_v27  ;;  %2411 = vmatpush1.bf16.msra.mxu0 %v9813_v4  ;;  %2454 = vmatpush1.bf16.msra.mxu1 %v9815_v38  ;;  %v9861_v27 = vld [vmem:[#allocation13 + $0x84] ss:$16 sps:$4 sm:$0xff]  }
 0x1fa   :  { %2412 = vmatprep.subr.bf16.mxu0 %v9819_v22  ;;  %2455 = vmatprep.subr.bf16.mxu1 %v9821_v36  ;;  %8628 = vrcp.f32 %v1842_v41 }
 0x1fb   :  { %2442 = vmatprep.mubr.bf16.mxu0 %v11166_v33  ;;  %2485 = vmatprep.mubr.bf16.mxu1 %v11166_v33  ;;  %8630 = vrcp.f32 %v1840_v31  ;;  %v9884_v31 = vld [vmem:[#allocation13 + $0xa0] ss:$16 sps:$4 sm:$0xff]  }
 0x1fd   :  { %2413 = vmatpush1.bf16.msra.mxu0 %v9829_v59  ;;  %2456 = vmatpush1.bf16.msra.mxu1 %v9831_v54 }
 0x1fe   :  { %v8619_v61 = vpop.eup %8618  ;;  %2414 = vmatprep.subr.bf16.mxu0 %v9835_v57  ;;  %2457 = vmatprep.subr.bf16.mxu1 %v9837_v3 }
 0x1ff   :  { %v1860_v20 = vmul.f32 %v8619_v61, %v8617_v60  ;;  %v8621_v51 = vpop.eup %8620 }
 0x200   :  { %v1843_v12 = vadd.f32 1.0, %v8621_v51 }
 0x201   :  { %v8623_v56 = vpop.eup %8622  ;;  %2415 = vmatpush1.bf16.msra.mxu0 %v9843_v9  ;;  %2458 = vmatpush1.bf16.msra.mxu1 %v9845_v58 }
 0x202   :  { %v8625_v11 = vpop.eup %8624  ;;  %v1858_v6 = vmul.f32 0.0, %v8623_v56  ;;  %2416 = vmatprep.subr.bf16.mxu0 %v9849_v5  ;;  %2459 = vmatprep.subr.bf16.mxu1 %v9851_v47  ;;  %v9869_v56 = vld [vmem:[#allocation13 + $0x80] ss:$16 sps:$4 sm:$0xff]  }
 0x203   :  { %v8627_v41 = vpop.eup %8626 }
 0x204   :  { %v9865_v21 = vadd.f32 %v1860_v20, %v1858_v6  ;;  %v1861_v60 = vmul.f32 %v8627_v41, %v8625_v11  ;;  %v8629_v61 = vpop.eup %8628  ;;  %v9876_v20 = vld [vmem:[#allocation13 + $0xa4] ss:$16 sps:$4 sm:$0xff]   ;;  %v9878_v11 = vld [vmem:[#allocation13 + $0xac] ss:$16 sps:$4 sm:$0xff]   ;;  %v9886_v6 = vld [vmem:[#allocation13 + $0xa8] ss:$16 sps:$4 sm:$0xff]  }
 0x205   :  { %2417 = vmatpush1.bf16.msra.mxu0 %v9855_v62  ;;  %2460 = vmatpush1.bf16.msra.mxu1 %v9857_v63  ;;  %v1859_v10 = vmul.f32 0.0, %v8629_v61  ;;  %11167 = vst [vmem:[#allocation70_spill] sm:$0xff] %v9886_v6  ;;  %v9891_v41 = vld [vmem:[#allocation13 + $0xc4] ss:$16 sps:$4 sm:$0xff]   ;;  %v9893_v61 = vld [vmem:[#allocation13 + $0xcc] ss:$16 sps:$4 sm:$0xff]   ;;  %v8631_v25 = vpop.eup %8630 }
 0x206   :  { %8632 = vtanh.f32 %v9865_v21  ;;  %2418 = vmatprep.subr.bf16.mxu0 %v9861_v27  ;;  %2461 = vmatprep.subr.bf16.mxu1 %v9863_v55  ;;  %11168 = vst [vmem:[#allocation71_spill] sm:$0xff] %v9891_v41  ;;  %11169 = vst [vmem:[#allocation72_spill] sm:$0xff] %v9893_v61 }
 0x207   :  { %v9880_v51 = vadd.f32 %v1861_v60, %v1859_v10  ;;  %8634 = vrcp.f32 %v1843_v12  ;;  %v9897_v10 = vld [vmem:[#allocation13 + $0xc0] ss:$16 sps:$4 sm:$0xff]   ;;  %v9899_v12 = vld [vmem:[#allocation13 + $0xc8] ss:$16 sps:$4 sm:$0xff]   ;;  %v9903_v60 = vld [vmem:[#allocation13 + $0xe4] ss:$16 sps:$4 sm:$0xff]  }
 0x208   :  { %11170 = vst [vmem:[#allocation73_spill] sm:$0xff] %v9897_v10  ;;  %11171 = vst [vmem:[#allocation74_spill] sm:$0xff] %v9899_v12 }
 0x209   :  { %2419 = vmatpush1.bf16.msra.mxu0 %v9869_v56  ;;  %2462 = vmatpush1.bf16.msra.mxu1 %v9871_v13  ;;  %8636 = vtanh.f32 %v9880_v51  ;;  %11172 = vst [vmem:[#allocation75_spill] sm:$0xff] %v9903_v60 }
 0x20a   :  { %2420 = vmatprep.subr.bf16.mxu0 %v9876_v20  ;;  %2463 = vmatprep.subr.bf16.mxu1 %v9878_v11 }
 0x20d   :  { %2421 = vmatpush1.bf16.msra.mxu0 %v9884_v31  ;;  %2464 = vmatpush1.bf16.msra.mxu1 %v9886_v6 }
 0x20e   :  { %2422 = vmatprep.subr.bf16.mxu0 %v9891_v41  ;;  %2465 = vmatprep.subr.bf16.mxu1 %v9893_v61 }
 0x210   :  { %v8633_v0 = vpop.eup %8632 }
 0x211   :  { %2423 = vmatpush1.bf16.msra.mxu0 %v9897_v10  ;;  %2466 = vmatpush1.bf16.msra.mxu1 %v9899_v12  ;;  %v1866_v43 = vmul.f32 %v8633_v0, %v8631_v25  ;;  %v8635_v35 = vpop.eup %8634  ;;  %v9920_v10 = vpop.permute.xlu1 %1892  ;;  %v9086_v0 = vld [vmem:[#allocation12 + $0x4] ss:$16 sps:$4 sm:$0xff]   ;;  %v9087_v25 = vld [vmem:[#allocation12 + $0xc] ss:$16 sps:$4 sm:$0xff]  }
 0x212   :  { %2424 = vmatprep.subr.bf16.mxu0 %v9903_v60  ;;  %2467 = vmatprep.subr.bf16.mxu1 %v9905_v23  ;;  %11176 = vst [vmem:[#allocation79_spill] sm:$0xff] %v9920_v10  ;;  %vm11083_vm4 = vcmp.eq.s32.totalorder %v9920_v10, 1 }
 0x213   :  { %v1896_v61 = vsel %vm11084_vm3, %v1866_v43, 0.0  ;;  %v8637_v41 = vpop.eup %8636  ;;  %vm7991_vm5 = vmpackc.low %vm11083_vm4, %vm11084_vm3 }
 0x214   :  { %v7955_v6 = vpack.c.bf16 %v1896_v61, %v1896_v61  ;;  %v1867_v12 = vmul.f32 %v8637_v41, %v8635_v35  ;;  %v9088_v35 = vld [vmem:[#allocation12] ss:$16 sps:$4 sm:$0xff]   ;;  %v9090_v41 = vld [vmem:[#allocation12 + $0x24] ss:$16 sps:$4 sm:$0xff]  }
 0x215   :  { %2425 = vmatpush1.bf16.msra.mxu0 %v9911_v46  ;;  %2468 = vmatpush1.bf16.msra.mxu1 %v9913_v39  ;;  %v9102_v39 = vld [vmem:[#allocation12 + $0x84] ss:$16 sps:$4 sm:$0xff]  }
 0x216   :  { %1932 = vst [vmem:[#allocation15 + $0x74] sm:$0xf] %v7955_v6  ;;  %2903 = vmatprep.subr.bf16.mxu0 %v9086_v0  ;;  %2946 = vmatprep.subr.bf16.mxu1 %v9087_v25  ;;  %v1897_v23 = vsel %vm11083_vm4, %v1867_v12, 0.0  ;;  %v7992_v60 = vpack.c.bf16 %v1867_v12, %v1866_v43  ;;  %v9089_v6 = vld [vmem:[#allocation12 + $0x8] ss:$16 sps:$4 sm:$0xff]  }
 0x217   :  { %v7956_v61 = vpack.c.bf16 %v1897_v23, %v1897_v23  ;;  %v9091_v0 = vld [vmem:[#allocation12 + $0x2c] ss:$16 sps:$4 sm:$0xff]   ;;  %v9092_v43 = vld [vmem:[#allocation12 + $0x20] ss:$16 sps:$4 sm:$0xff]   ;;  %v9093_v12 = vld [vmem:[#allocation12 + $0x28] ss:$16 sps:$4 sm:$0xff]  }
 0x218   :  { %7993 = vmatmul.mubr.msk.bf16.vlgmr.msra.gmra.mrb[76].mxu0 %vm7991_vm5, %v7992_v60  ;;  %7996 = vmatmul.mubr.msk.bf16.vlgmr.msra.gmra.mrb[76].mxu1 %vm7991_vm5, %v7992_v60  ;;  %v9094_v23 = vld [vmem:[#allocation12 + $0x44] ss:$16 sps:$4 sm:$0xff]   ;;  %v9095_v60 = vld [vmem:[#allocation12 + $0x4c] ss:$16 sps:$4 sm:$0xff]   ;;  %v9096_v25 = vld [vmem:[#allocation12 + $0x40] ss:$16 sps:$4 sm:$0xff]  }
 0x219   :  { %1933 = vst [vmem:[#allocation15 + $0x7c] sm:$0xf] %v7956_v61  ;;  %2904 = vmatpush1.bf16.msra.mxu0 %v9088_v35  ;;  %2947 = vmatpush1.bf16.msra.mxu1 %v9089_v6  ;;  %v9097_v61 = vld [vmem:[#allocation12 + $0x48] ss:$16 sps:$4 sm:$0xff]   ;;  %v9098_v35 = vld [vmem:[#allocation12 + $0x64] ss:$16 sps:$4 sm:$0xff]  }
 0x21a   :  { %2905 = vmatprep.subr.bf16.mxu0 %v9090_v41  ;;  %2948 = vmatprep.subr.bf16.mxu1 %v9091_v0  ;;  %v9099_v6 = vld [vmem:[#allocation12 + $0x6c] ss:$16 sps:$4 sm:$0xff]   ;;  %v9100_v41 = vld [vmem:[#allocation12 + $0x60] ss:$16 sps:$4 sm:$0xff]   ;;  %v9101_v0 = vld [vmem:[#allocation12 + $0x68] ss:$16 sps:$4 sm:$0xff]  }
 0x21b   :  { %2935 = vmatprep.mubr.bf16.mxu0 %v11166_v33  ;;  %2978 = vmatprep.mubr.bf16.mxu1 %v11166_v33 }
 0x21d   :  { %2906 = vmatpush1.bf16.msra.mxu0 %v9092_v43  ;;  %2949 = vmatpush1.bf16.msra.mxu1 %v9093_v12  ;;  %v9103_v43 = vld [vmem:[#allocation12 + $0x8c] ss:$16 sps:$4 sm:$0xff]   ;;  %v9104_v12 = vld [vmem:[#allocation12 + $0x80] ss:$16 sps:$4 sm:$0xff]  }
 0x21e   :  { %2907 = vmatprep.subr.bf16.mxu0 %v9094_v23  ;;  %2950 = vmatprep.subr.bf16.mxu1 %v9095_v60  ;;  %v9105_v23 = vld [vmem:[#allocation12 + $0x88] ss:$16 sps:$4 sm:$0xff]  }
 0x221   :  { %2908 = vmatpush1.bf16.msra.mxu0 %v9096_v25  ;;  %2951 = vmatpush1.bf16.msra.mxu1 %v9097_v61  ;;  %v2508_v25 = vunpack.c.h.bf16 %v9495_v17  ;;  %v2510_v61 = vunpack.c.h.bf16 %v9499_v19 }
 0x222   :  { %2909 = vmatprep.subr.bf16.mxu0 %v9098_v35  ;;  %2952 = vmatprep.subr.bf16.mxu1 %v9099_v6 }
 0x225   :  { %2910 = vmatpush1.bf16.msra.mxu0 %v9100_v41  ;;  %2953 = vmatpush1.bf16.msra.mxu1 %v9101_v0 }
 0x226   :  { %2911 = vmatprep.subr.bf16.mxu0 %v9102_v39  ;;  %2954 = vmatprep.subr.bf16.mxu1 %v9103_v43  ;;  %v2503_v39 = vunpack.c.l.bf16 %v9492_v15 }
 0x229   :  { %2912 = vmatpush1.bf16.msra.mxu0 %v9104_v12  ;;  %2955 = vmatpush1.bf16.msra.mxu1 %v9105_v23 }
 0x22a   :  { %2913 = vmatprep.subr.bf16.mxu0 %v9556_v26  ;;  %2956 = vmatprep.subr.bf16.mxu1 %v9558_v7  ;;  %v2505_v26 = vunpack.c.l.bf16 %v9497_v18 }
 0x22d   :  { %2914 = vmatpush1.bf16.msra.mxu0 %v9563_v29  ;;  %2957 = vmatpush1.bf16.msra.mxu1 %v9565_v30  ;;  %v2504_v30 = vunpack.c.l.bf16 %v9495_v17 }
 0x22e   :  { %2915 = vmatprep.subr.bf16.mxu0 %v9577_v37  ;;  %2958 = vmatprep.subr.bf16.mxu1 %v9579_v44  ;;  %v2506_v37 = vunpack.c.l.bf16 %v9499_v19 }
 0x231   :  { %2916 = vmatpush1.bf16.msra.mxu0 %v9582_v49  ;;  %2959 = vmatpush1.bf16.msra.mxu1 %v9584_v50 }
 0x232   :  { %2917 = vmatprep.subr.bf16.mxu0 %v9596_v8  ;;  %2960 = vmatprep.subr.bf16.mxu1 %v9610_v24 }
 0x235   :  { %2918 = vmatpush1.bf16.msra.mxu0 %v9601_v14  ;;  %2961 = vmatpush1.bf16.msra.mxu1 %v9603_v16  ;;  %v2507_v14 = vunpack.c.h.bf16 %v9492_v15  ;;  %v2509_v16 = vunpack.c.h.bf16 %v9497_v18 }
 0x236   :  { %3184 = vmatprep.subr.bf16.mxu0 %v9616_v34  ;;  %3227 = vmatprep.subr.bf16.mxu1 %v9618_v45 }
 0x2cb   :  { %v2163_v7 = vpop.f32.mrb[72].mxu0  ;;  %v2206_v29 = vpop.f32.mrb[72].mxu1 }
 0x2cc   :  { %v2511_v44 = vadd.f32 %v2503_v39, %v2163_v7  ;;  %v2513_v49 = vadd.f32 %v2505_v26, %v2206_v29  ;;  %v2165_v50 = vpop.f32.mrb[73].mxu0  ;;  %v2208_v8 = vpop.f32.mrb[73].mxu1 }
 0x2cd   :  { %v2512_v24 = vadd.f32 %v2504_v30, %v2165_v50  ;;  %v2514_v34 = vadd.f32 %v2506_v37, %v2208_v8  ;;  %v2167_v45 = vpop.f32.mrb[74].mxu0  ;;  %v2210_v60 = vpop.f32.mrb[74].mxu1 }
 0x2ce   :  { %v7457_v35 = vmul.f32 -1.442695, %v2511_v44  ;;  %v2515_v6 = vadd.f32 %v2507_v14, %v2167_v45  ;;  %v2517_v41 = vadd.f32 %v2509_v16, %v2210_v60  ;;  %v2169_v0 = vpop.f32.mrb[75].mxu0  ;;  %v2212_v43 = vpop.f32.mrb[75].mxu1  ;;  %v7459_v18 = vmul.f32 -1.442695, %v2513_v49 }
 0x2cf   :  { %v7458_v12 = vmul.f32 -1.442695, %v2512_v24  ;;  %v2516_v23 = vadd.f32 %v2508_v25, %v2169_v0  ;;  %v2518_v39 = vadd.f32 %v2510_v61, %v2212_v43  ;;  %v1884_v25 = vsel %vm11082_vm0, %v9796_v40, 0.0 }
 0x2d0   :  { %8638 = vpow2.f32 %v7457_v35  ;;  %v7460_v15 = vmul.f32 -1.442695, %v2515_v6  ;;  %v7462_v7 = vmul.f32 -1.442695, %v2517_v41  ;;  %v2526_v41 = vunpack.c.l.bf16 %v9758_v52 }
 0x2d1   :  { %v7461_v26 = vmul.f32 -1.442695, %v2516_v23  ;;  %8640 = vpow2.f32 %v7458_v12  ;;  %v2530_v0 = vunpack.c.h.bf16 %v9758_v52  ;;  %v2528_v12 = vunpack.c.l.bf16 %v9763_v2 }
 0x2d2   :  { %8642 = vpow2.f32 %v7460_v15  ;;  %v2527_v23 = vunpack.c.l.bf16 %v9761_v48 }
 0x2d3   :  { %8644 = vpow2.f32 %v7461_v26  ;;  %v1885_v26 = vsel %vm11081_vm1, %v9802_v53, 0.0  ;;  %v2531_v53 = vunpack.c.h.bf16 %v9761_v48 }
 0x2d4   :  { %8646 = vtanh.f32 %v2514_v34 }
 0x2d5   :  { %8648 = vpow2.f32 %v7459_v18 }
 0x2d6   :  { %8650 = vpow2.f32 %v7462_v7 }
 0x2da   :  { %v8639_v29 = vpop.eup %8638 }
 0x2db   :  { %v2562_v17 = vadd.f32 1.0, %v8639_v29  ;;  %v8641_v19 = vpop.eup %8640 }
 0x2dc   :  { %v8643_v30 = vpop.eup %8642  ;;  %v2563_v37 = vadd.f32 1.0, %v8641_v19 }
 0x2dd   :  { %8652 = vrcp.f32 %v2562_v17  ;;  %v2565_v44 = vadd.f32 1.0, %v8643_v30  ;;  %v8645_v50 = vpop.eup %8644  ;;  %v2529_v17 = vunpack.c.l.bf16 %v9765_v42 }
 0x2de   :  { %8654 = vtanh.f32 %v2518_v39  ;;  %v2566_v8 = vadd.f32 1.0, %v8645_v50  ;;  %v8647_v14 = vpop.eup %8646  ;;  %v2532_v39 = vunpack.c.h.bf16 %v9763_v2 }
 0x2df   :  { %8656 = vrcp.f32 %v2563_v37  ;;  %v8649_v16 = vpop.eup %8648 }
 0x2e0   :  { %8658 = vrcp.f32 %v2565_v44  ;;  %v8651_v49 = vpop.eup %8650  ;;  %v2564_v61 = vadd.f32 1.0, %v8649_v16 }
 0x2e1   :  { %8660 = vrcp.f32 %v2566_v8  ;;  %v2567_v18 = vadd.f32 1.0, %v8651_v49 }
 0x2e2   :  { %8662 = vrcp.f32 %v2564_v61 }
 0x2e7   :  { %v8653_v24 = vpop.eup %8652 }
 0x2e8   :  { %v8655_v45 = vpop.eup %8654  ;;  %v2584_v34 = vmul.f32 %v8653_v24, %v8647_v14 }
 0x2e9   :  { %v8657_v60 = vpop.eup %8656 }
 0x2ea   :  { %v8659_v35 = vpop.eup %8658  ;;  %v2582_v6 = vmul.f32 %v8657_v60, %v1884_v25  ;;  %v2533_v60 = vunpack.c.h.bf16 %v9765_v42 }
 0x2eb   :  { %v2585_v43 = vmul.f32 %v8659_v35, %v8655_v45  ;;  %v8661_v15 = vpop.eup %8660  ;;  %v2444_v7 = vpop.f32.mrb[76].mxu0 }
 0x2ec   :  { %v9966_v40 = vadd.f32 %v2584_v34, %v2582_v6  ;;  %v2487_v29 = vpop.f32.mrb[76].mxu1  ;;  %v2583_v52 = vmul.f32 %v8661_v15, %v1885_v26  ;;  %v2534_v19 = vadd.f32 %v2526_v41, %v2444_v7  ;;  %v2446_v37 = vpop.f32.mrb[77].mxu0 }
 0x2ed   :  { %v2536_v30 = vadd.f32 %v2528_v12, %v2487_v29  ;;  %v2489_v44 = vpop.f32.mrb[77].mxu1  ;;  %v2535_v2 = vadd.f32 %v2527_v23, %v2446_v37  ;;  %v2448_v8 = vpop.f32.mrb[78].mxu0 }
 0x2ee   :  { %8664 = vtanh.f32 %v9966_v40  ;;  %v2537_v50 = vadd.f32 %v2529_v17, %v2489_v44  ;;  %v2491_v14 = vpop.f32.mrb[78].mxu1  ;;  %v9971_v16 = vadd.f32 %v2585_v43, %v2583_v52  ;;  %v7463_v49 = vmul.f32 -1.442695, %v2534_v19  ;;  %v2450_v45 = vpop.f32.mrb[79].mxu0 }
 0x2ef   :  { %v2538_v24 = vadd.f32 %v2530_v0, %v2448_v8  ;;  %v2493_v34 = vpop.f32.mrb[79].mxu1  ;;  %8666 = vrcp.f32 %v2567_v18  ;;  %v7464_v25 = vmul.f32 -1.442695, %v2535_v2  ;;  %v2540_v61 = vadd.f32 %v2532_v39, %v2491_v14  ;;  %v8663_v48 = vpop.eup %8662 }
 0x2f0   :  { %v2539_v35 = vadd.f32 %v2531_v53, %v2450_v45  ;;  %8668 = vtanh.f32 %v9971_v16  ;;  %v2541_v41 = vadd.f32 %v2533_v60, %v2493_v34  ;;  %v9975_v0 = vpop.permute.xlu0 %2649  ;;  %v7465_v23 = vmul.f32 -1.442695, %v2536_v30  ;;  %v9978_v18 = vpop.permute.xlu1 %2652 }
 0x2f1   :  { %v7466_v6 = vmul.f32 -1.442695, %v2538_v24  ;;  %8670 = vpow2.f32 %v7463_v49  ;;  %11177 = vst [vmem:[#allocation80_spill] sm:$0xff] %v9975_v0  ;;  %vm11086_vm6 = vcmp.eq.s32.totalorder %v9975_v0, 1  ;;  %v7468_v39 = vmul.f32 -1.442695, %v2540_v61 }
 0x2f2   :  { %v7467_v12 = vmul.f32 -1.442695, %v2539_v35  ;;  %8672 = vpow2.f32 %v7464_v25  ;;  %11178 = vst [vmem:[#allocation81_spill] sm:$0xff] %v9978_v18  ;;  %vm11085_vm7 = vcmp.eq.s32.totalorder %v9978_v18, 1  ;;  %v11187_v35 = vld [vmem:[#allocation75_spill] sm:$0xff] }
 0x2f3   :  { %8674 = vpow2.f32 %v7466_v6  ;;  %vm9989_vm8 = vmpackc.low %vm11085_vm7, %vm11086_vm6 }
 0x2f4   :  { %8676 = vpow2.f32 %v7467_v12  ;;  %v10042_v12 = vpop.permute.xlu1 %2666 }
 0x2f5   :  { %8678 = vtanh.f32 %v2537_v50  ;;  %v11179_v50 = vmov 0  ;;  %vm2669_vm10 = vcmp.eq.s32.totalorder %v10042_v12, 1 }
 0x2f6   :  { %8680 = vpow2.f32 %v7465_v23  ;;  %v11180_v50 = vsel %vm9989_vm8, 4294967295, %v11179_v50 }
 0x2f7   :  { %8682 = vpow2.f32 %v7468_v39  ;;  %11181 = vst [vmem:[#allocation82_spill] sm:$0xff] %v11180_v50 }
 0x2f8   :  { %v8665_v43 = vpop.eup %8664 }
 0x2f9   :  { %v2590_v15 = vmul.f32 %v8665_v43, %v8663_v48  ;;  %v8667_v42 = vpop.eup %8666  ;;  %v11191_v48 = vld [vmem:[#allocation78_spill] sm:$0xff] }
 0x2fa   :  { %v8669_v26 = vpop.eup %8668 }
 0x2fb   :  { %v2656_v7 = vsel %vm11086_vm6, %v2590_v15, 0.0  ;;  %v8671_v29 = vpop.eup %8670  ;;  %v2591_v17 = vmul.f32 %v8669_v26, %v8667_v42 }
 0x2fc   :  { %v7957_v52 = vpack.c.bf16 %v2656_v7, %v2656_v7  ;;  %v2612_v19 = vadd.f32 1.0, %v8671_v29  ;;  %v8673_v30 = vpop.eup %8672  ;;  %v10065_v7 = vld [vmem:[#allocation12 + $0x4] ss:$16 sps:$4 sm:$0xff]   ;;  %v10067_v29 = vld [vmem:[#allocation12 + $0xc] ss:$16 sps:$4 sm:$0xff]  }
 0x2fd   :  { %v2657_v37 = vsel %vm11085_vm7, %v2591_v17, 0.0  ;;  %v7998_v44 = vpack.c.bf16 %v2591_v17, %v2590_v15  ;;  %v8675_v2 = vpop.eup %8674  ;;  %v2613_v8 = vadd.f32 1.0, %v8673_v30  ;;  %v10069_v17 = vld [vmem:[#allocation12] ss:$16 sps:$4 sm:$0xff]   ;;  %v10079_v30 = vld [vmem:[#allocation12 + $0x2c] ss:$16 sps:$4 sm:$0xff]  }
 0x2fe   :  { %2693 = vst [vmem:[#allocation15 + $0x10] sm:$0xf] %v7957_v52  ;;  %8684 = vrcp.f32 %v2612_v19  ;;  %v7958_v14 = vpack.c.bf16 %v2657_v37, %v2657_v37  ;;  %v2615_v53 = vadd.f32 1.0, %v8675_v2  ;;  %v8677_v49 = vpop.eup %8676  ;;  %v10071_v52 = vld [vmem:[#allocation12 + $0x8] ss:$16 sps:$4 sm:$0xff]  }
 0x2ff   :  { %8686 = vtanh.f32 %v2541_v41  ;;  %7999 = vmatmul.mubr.msk.bf16.vlgmr.msra.gmra.mrb[80].mxu0 %vm9989_vm8, %v7998_v44  ;;  %8002 = vmatmul.mubr.msk.bf16.vlgmr.msra.gmra.mrb[80].mxu1 %vm9989_vm8, %v7998_v44  ;;  %v2616_v24 = vadd.f32 1.0, %v8677_v49  ;;  %v8679_v45 = vpop.eup %8678  ;;  %v10077_v19 = vld [vmem:[#allocation12 + $0x24] ss:$16 sps:$4 sm:$0xff]   ;;  %v10081_v37 = vld [vmem:[#allocation12 + $0x20] ss:$16 sps:$4 sm:$0xff]  }
 0x300   :  { %8688 = vrcp.f32 %v2613_v8  ;;  %2694 = vst [vmem:[#allocation15 + $0x18] sm:$0xf] %v7958_v14  ;;  %3185 = vmatpush1.bf16.msra.mxu0 %v9813_v4  ;;  %3228 = vmatpush1.bf16.msra.mxu1 %v9815_v38  ;;  %v8681_v4 = vpop.eup %8680  ;;  %v10083_v44 = vld [vmem:[#allocation12 + $0x28] ss:$16 sps:$4 sm:$0xff]   ;;  %v10089_v2 = vld [vmem:[#allocation12 + $0x44] ss:$16 sps:$4 sm:$0xff]  }
 0x301   :  { %8690 = vrcp.f32 %v2615_v53  ;;  %3186 = vmatprep.subr.bf16.mxu0 %v9819_v22  ;;  %3229 = vmatprep.subr.bf16.mxu1 %v9821_v36  ;;  %v8683_v38 = vpop.eup %8682  ;;  %v10091_v8 = vld [vmem:[#allocation12 + $0x4c] ss:$16 sps:$4 sm:$0xff]   ;;  %v10093_v14 = vld [vmem:[#allocation12 + $0x40] ss:$16 sps:$4 sm:$0xff]   ;;  %v10095_v53 = vld [vmem:[#allocation12 + $0x48] ss:$16 sps:$4 sm:$0xff]  }
 0x302   :  { %3216 = vmatprep.mubr.bf16.mxu0 %v11166_v33  ;;  %3259 = vmatprep.mubr.bf16.mxu1 %v11166_v33  ;;  %8692 = vrcp.f32 %v2616_v24  ;;  %v10101_v49 = vld [vmem:[#allocation12 + $0x64] ss:$16 sps:$4 sm:$0xff]   ;;  %v10103_v24 = vld [vmem:[#allocation12 + $0x6c] ss:$16 sps:$4 sm:$0xff]  }
 0x304   :  { %3187 = vmatpush1.bf16.msra.mxu0 %v9829_v59  ;;  %3230 = vmatpush1.bf16.msra.mxu1 %v9831_v54  ;;  %v1898_v54 = vsel %vm11084_vm3, %v9865_v21, 0.0 }
 0x305   :  { %3188 = vmatprep.subr.bf16.mxu0 %v9835_v57  ;;  %3231 = vmatprep.subr.bf16.mxu1 %v9837_v3  ;;  %v2614_v57 = vadd.f32 1.0, %v8681_v4  ;;  %v10107_v4 = vld [vmem:[#allocation12 + $0x68] ss:$16 sps:$4 sm:$0xff]  }
 0x307   :  { %8694 = vrcp.f32 %v2614_v57  ;;  %v10129_v57 = vld [vmem:[#allocation12 + $0xa0] ss:$16 sps:$4 sm:$0xff]  }
 0x308   :  { %v8685_v34 = vpop.eup %8684  ;;  %3189 = vmatpush1.bf16.msra.mxu0 %v9843_v9  ;;  %3232 = vmatpush1.bf16.msra.mxu1 %v9845_v58  ;;  %v1899_v58 = vsel %vm11083_vm4, %v9880_v51, 0.0  ;;  %v11185_v51 = vld [vmem:[#allocation73_spill] sm:$0xff] }
 0x309   :  { %v8687_v22 = vpop.eup %8686  ;;  %v2634_v36 = vmul.f32 %v8685_v34, %v8679_v45  ;;  %3190 = vmatprep.subr.bf16.mxu0 %v9849_v5  ;;  %3233 = vmatprep.subr.bf16.mxu1 %v9851_v47  ;;  %v2617_v47 = vadd.f32 1.0, %v8683_v38  ;;  %v10105_v45 = vld [vmem:[#allocation12 + $0x60] ss:$16 sps:$4 sm:$0xff]   ;;  %v10113_v38 = vld [vmem:[#allocation12 + $0x84] ss:$16 sps:$4 sm:$0xff]  }
 0x30a   :  { %v8689_v59 = vpop.eup %8688  ;;  %v10115_v34 = vld [vmem:[#allocation12 + $0x8c] ss:$16 sps:$4 sm:$0xff]  }
 0x30b   :  { %v8691_v3 = vpop.eup %8690  ;;  %v2632_v60 = vmul.f32 %v8689_v59, %v1898_v54  ;;  %v10125_v59 = vld [vmem:[#allocation12 + $0xa4] ss:$16 sps:$4 sm:$0xff]   ;;  %v10127_v54 = vld [vmem:[#allocation12 + $0xac] ss:$16 sps:$4 sm:$0xff]  }
 0x30c   :  { %v2635_v25 = vmul.f32 %v8691_v3, %v8687_v22  ;;  %3191 = vmatpush1.bf16.msra.mxu0 %v9855_v62  ;;  %3234 = vmatpush1.bf16.msra.mxu1 %v9857_v63  ;;  %v8693_v9 = vpop.eup %8692  ;;  %v11182_v62 = vld [vmem:[#allocation70_spill] sm:$0xff]  ;;  %v11183_v63 = vld [vmem:[#allocation71_spill] sm:$0xff] }
 0x30d   :  { %v10019_v5 = vadd.f32 %v2634_v36, %v2632_v60  ;;  %3192 = vmatprep.subr.bf16.mxu0 %v9861_v27  ;;  %3235 = vmatprep.subr.bf16.mxu1 %v9863_v55  ;;  %v2633_v21 = vmul.f32 %v8693_v9, %v1899_v58  ;;  %v11184_v27 = vld [vmem:[#allocation72_spill] sm:$0xff]  ;;  %11190 = vst [vmem:[#allocation71_spill] sm:$0xff] %v10042_v12  ;;  %v10119_v36 = vld [vmem:[#allocation12 + $0x88] ss:$16 sps:$4 sm:$0xff]  }
 0x30e   :  { %v10117_v22 = vld [vmem:[#allocation12 + $0x80] ss:$16 sps:$4 sm:$0xff]   ;;  %v10131_v3 = vld [vmem:[#allocation12 + $0xa8] ss:$16 sps:$4 sm:$0xff]   ;;  %v10137_v60 = vld [vmem:[#allocation12 + $0xc4] ss:$16 sps:$4 sm:$0xff]  }
 0x30f   :  { %8696 = vtanh.f32 %v10019_v5  ;;  %v10024_v61 = vadd.f32 %v2635_v25, %v2633_v21  ;;  %v10139_v25 = vld [vmem:[#allocation12 + $0xcc] ss:$16 sps:$4 sm:$0xff]   ;;  %v10141_v9 = vld [vmem:[#allocation12 + $0xc0] ss:$16 sps:$4 sm:$0xff]   ;;  %v10143_v58 = vld [vmem:[#allocation12 + $0xc8] ss:$16 sps:$4 sm:$0xff]  }
 0x310   :  { %3193 = vmatpush1.bf16.msra.mxu0 %v9869_v56  ;;  %3236 = vmatpush1.bf16.msra.mxu1 %v9871_v13  ;;  %8698 = vrcp.f32 %v2617_v47  ;;  %v11186_v56 = vld [vmem:[#allocation74_spill] sm:$0xff]  ;;  %v10151_v21 = vld [vmem:[#allocation12 + $0xec] ss:$16 sps:$4 sm:$0xff]   ;;  %v10315_v12 = vld [vmem:[#allocation13 + $0xe8] ss:$16 sps:$4 sm:$0xff]  }
 0x311   :  { %3194 = vmatprep.subr.bf16.mxu0 %v9876_v20  ;;  %3237 = vmatprep.subr.bf16.mxu1 %v9878_v11  ;;  %8700 = vtanh.f32 %v10024_v61  ;;  %v8695_v55 = vpop.eup %8694  ;;  %v11188_v20 = vld [vmem:[#allocation76_spill] sm:$0xff]  ;;  %v10039_v11 = vpop.permute.xlu0 %2663  ;;  %11196 = vst [vmem:[#allocation74_spill] sm:$0xff] %v10151_v21  ;;  %11226 = vst [vmem:[#allocation91_spill] sm:$0xff] %v10315_v12 }
 0x312   :  { %11189 = vst [vmem:[#allocation70_spill] sm:$0xff] %v10039_v11  ;;  %vm2668_vm9 = vcmp.eq.s32.totalorder %v10039_v11, 1  ;;  %v10149_v47 = vld [vmem:[#allocation12 + $0xe4] ss:$16 sps:$4 sm:$0xff]  }
 0x313   :  { %vm10055_vm11 = vmpackc.low %vm2669_vm10, %vm2668_vm9  ;;  %11195 = vst [vmem:[#allocation73_spill] sm:$0xff] %v10149_v47 }
 0x314   :  { %3195 = vmatpush1.bf16.msra.mxu0 %v9884_v31  ;;  %3238 = vmatpush1.bf16.msra.mxu1 %v11182_v62  ;;  %v10153_v62 = vld [vmem:[#allocation12 + $0xe0] ss:$16 sps:$4 sm:$0xff]  }
 0x315   :  { %3196 = vmatprep.subr.bf16.mxu0 %v11183_v63  ;;  %3239 = vmatprep.subr.bf16.mxu1 %v11184_v27  ;;  %11197 = vst [vmem:[#allocation75_spill] sm:$0xff] %v10153_v62  ;;  %v10155_v63 = vld [vmem:[#allocation12 + $0xe8] ss:$16 sps:$4 sm:$0xff]   ;;  %v10161_v27 = vld [vmem:[#allocation13 + $0x4] ss:$16 sps:$4 sm:$0xff]  }
 0x316   :  { %11198 = vst [vmem:[#allocation76_spill] sm:$0xff] %v10155_v63  ;;  %11199 = vst [vmem:[#allocation78_spill] sm:$0xff] %v10161_v27 }
 0x318   :  { %3197 = vmatpush1.bf16.msra.mxu0 %v11185_v51  ;;  %3240 = vmatpush1.bf16.msra.mxu1 %v11186_v56  ;;  %v11201_v51 = vld [vmem:[#allocation20_spill] sm:$0xff] }
 0x319   :  { %v8697_v13 = vpop.eup %8696  ;;  %3198 = vmatprep.subr.bf16.mxu0 %v11187_v35  ;;  %3241 = vmatprep.subr.bf16.mxu1 %v11188_v20  ;;  %v3277_v56 = vunpack.c.l.bf16 %v11201_v51 }
 0x31a   :  { %v2640_v6 = vmul.f32 %v8697_v13, %v8695_v55  ;;  %v8699_v31 = vpop.eup %8698  ;;  %v10163_v55 = vld [vmem:[#allocation13 + $0xc] ss:$16 sps:$4 sm:$0xff]   ;;  %v11202_v13 = vld [vmem:[#allocation22_spill] sm:$0xff] }
 0x31b   :  { %v8701_v41 = vpop.eup %8700  ;;  %11200 = vst [vmem:[#allocation83_spill] sm:$0xff] %v10163_v55  ;;  %v3279_v35 = vunpack.c.l.bf16 %v11202_v13  ;;  %v3283_v28 = vunpack.c.h.bf16 %v11202_v13 }
 0x31c   :  { %3199 = vmatpush1.bf16.msra.mxu0 %v9911_v46  ;;  %3242 = vmatpush1.bf16.msra.mxu1 %v11191_v48  ;;  %v2670_v43 = vsel %vm2668_vm9, %v2640_v6, 0.0  ;;  %v2641_v23 = vmul.f32 %v8701_v41, %v8699_v31  ;;  %v11192_v46 = vmov 0  ;;  %v11203_v31 = vld [vmem:[#allocation21_spill] sm:$0xff]  ;;  %v11204_v48 = vld [vmem:[#allocation23_spill] sm:$0xff] }
 0x31d   :  { %v7959_v15 = vpack.c.bf16 %v2670_v43, %v2670_v43  ;;  %v11193_v46 = vsel %vm10055_vm11, 4294967295, %v11192_v46  ;;  %3677 = vmatprep.subr.bf16.mxu0 %v10065_v7  ;;  %3720 = vmatprep.subr.bf16.mxu1 %v10067_v29  ;;  %v3278_v41 = vunpack.c.l.bf16 %v11203_v31  ;;  %v3280_v43 = vunpack.c.l.bf16 %v11204_v48 }
 0x31e   :  { %v2671_v42 = vsel %vm2669_vm10, %v2641_v23, 0.0  ;;  %v8004_v39 = vpack.c.bf16 %v2641_v23, %v2640_v6  ;;  %11194 = vst [vmem:[#allocation72_spill] sm:$0xff] %v11193_v46  ;;  %v3282_v46 = vunpack.c.h.bf16 %v11203_v31 }
 0x31f   :  { %2706 = vst [vmem:[#allocation15 + $0x64] sm:$0xf] %v7959_v15  ;;  %v7960_v26 = vpack.c.bf16 %v2671_v42, %v2671_v42 }
 0x320   :  { %8005 = vmatmul.mubr.msk.bf16.vlgmr.msra.gmra.mrb[84].mxu0 %vm10055_vm11, %v8004_v39  ;;  %8008 = vmatmul.mubr.msk.bf16.vlgmr.msra.gmra.mrb[84].mxu1 %vm10055_vm11, %v8004_v39 }
 0x321   :  { %2707 = vst [vmem:[#allocation15 + $0x6c] sm:$0xf] %v7960_v26  ;;  %3709 = vmatprep.mubr.bf16.mxu0 %v11166_v33  ;;  %3752 = vmatprep.mubr.bf16.mxu1 %v11166_v33  ;;  %v3281_v26 = vunpack.c.h.bf16 %v11201_v51 }
 0x322   :  { %3678 = vmatpush1.bf16.msra.mxu0 %v10069_v17  ;;  %3721 = vmatpush1.bf16.msra.mxu1 %v10071_v52 }
 0x323   :  { %3679 = vmatprep.subr.bf16.mxu0 %v10077_v19  ;;  %3722 = vmatprep.subr.bf16.mxu1 %v10079_v30 }
 0x326   :  { %3680 = vmatpush1.bf16.msra.mxu0 %v10081_v37  ;;  %3723 = vmatpush1.bf16.msra.mxu1 %v10083_v44 }
 0x327   :  { %3681 = vmatprep.subr.bf16.mxu0 %v10089_v2  ;;  %3724 = vmatprep.subr.bf16.mxu1 %v10091_v8 }
 0x32a   :  { %3682 = vmatpush1.bf16.msra.mxu0 %v10093_v14  ;;  %3725 = vmatpush1.bf16.msra.mxu1 %v10095_v53 }
 0x32b   :  { %3683 = vmatprep.subr.bf16.mxu0 %v10101_v49  ;;  %3726 = vmatprep.subr.bf16.mxu1 %v10103_v24 }
 0x32e   :  { %3684 = vmatpush1.bf16.msra.mxu0 %v10105_v45  ;;  %3727 = vmatpush1.bf16.msra.mxu1 %v10107_v4 }
 0x32f   :  { %3685 = vmatprep.subr.bf16.mxu0 %v10113_v38  ;;  %3728 = vmatprep.subr.bf16.mxu1 %v10115_v34 }
 0x332   :  { %3686 = vmatpush1.bf16.msra.mxu0 %v10117_v22  ;;  %3729 = vmatpush1.bf16.msra.mxu1 %v10119_v36 }
 0x333   :  { %3687 = vmatprep.subr.bf16.mxu0 %v10125_v59  ;;  %3730 = vmatprep.subr.bf16.mxu1 %v10127_v54 }
 0x336   :  { %3688 = vmatpush1.bf16.msra.mxu0 %v10129_v57  ;;  %3731 = vmatpush1.bf16.msra.mxu1 %v10131_v3 }
 0x337   :  { %3689 = vmatprep.subr.bf16.mxu0 %v10137_v60  ;;  %3732 = vmatprep.subr.bf16.mxu1 %v10139_v25 }
 0x33a   :  { %3690 = vmatpush1.bf16.msra.mxu0 %v10141_v9  ;;  %3733 = vmatpush1.bf16.msra.mxu1 %v10143_v58 }
 0x33b   :  { %3691 = vmatprep.subr.bf16.mxu0 %v10149_v47  ;;  %3734 = vmatprep.subr.bf16.mxu1 %v10151_v21 }
 0x33e   :  { %3692 = vmatpush1.bf16.msra.mxu0 %v10153_v62  ;;  %3735 = vmatpush1.bf16.msra.mxu1 %v10155_v63 }
 0x33f   :  { %3958 = vmatprep.subr.bf16.mxu0 %v10161_v27  ;;  %4001 = vmatprep.subr.bf16.mxu1 %v10163_v55  ;;  %v3284_v55 = vunpack.c.h.bf16 %v11204_v48 }
 0x3d2   :  { %v2937_v20 = vpop.f32.mrb[80].mxu0  ;;  %v2980_v6 = vpop.f32.mrb[80].mxu1 }
 0x3d3   :  { %v3285_v23 = vadd.f32 %v3277_v56, %v2937_v20  ;;  %v3287_v15 = vadd.f32 %v3279_v35, %v2980_v6  ;;  %v2939_v42 = vpop.f32.mrb[81].mxu0  ;;  %v2982_v39 = vpop.f32.mrb[81].mxu1 }
 0x3d4   :  { %v3286_v1 = vadd.f32 %v3278_v41, %v2939_v42  ;;  %v3288_v10 = vadd.f32 %v3280_v43, %v2982_v39  ;;  %v2941_v32 = vpop.f32.mrb[82].mxu0  ;;  %v2984_v50 = vpop.f32.mrb[82].mxu1 }
 0x3d5   :  { %v7537_v27 = vmul.f32 -1.442695, %v3285_v23  ;;  %v3289_v63 = vadd.f32 %v3281_v26, %v2941_v32  ;;  %v3291_v62 = vadd.f32 %v3283_v28, %v2984_v50  ;;  %v2943_v21 = vpop.f32.mrb[83].mxu0  ;;  %v2986_v56 = vpop.f32.mrb[83].mxu1  ;;  %v7539_v13 = vmul.f32 -1.442695, %v3287_v15 }
 0x3d6   :  { %v7538_v35 = vmul.f32 -1.442695, %v3286_v1  ;;  %v3290_v20 = vadd.f32 %v3282_v46, %v2943_v21  ;;  %v3292_v6 = vadd.f32 %v3284_v55, %v2986_v56  ;;  %v2658_v23 = vsel %vm11086_vm6, %v9966_v40, 0.0  ;;  %v11205_v56 = vld [vmem:[#allocation64_spill] sm:$0xff] }
 0x3d7   :  { %8702 = vpow2.f32 %v7537_v27  ;;  %v7540_v51 = vmul.f32 -1.442695, %v3289_v63  ;;  %v7542_v41 = vmul.f32 -1.442695, %v3291_v62 }
 0x3d8   :  { %v7541_v47 = vmul.f32 -1.442695, %v3290_v20  ;;  %8704 = vpow2.f32 %v7538_v35  ;;  %v3300_v35 = vunpack.c.l.bf16 %v11205_v56  ;;  %v11206_v20 = vld [vmem:[#allocation66_spill] sm:$0xff] }
 0x3d9   :  { %8706 = vpow2.f32 %v7540_v51  ;;  %v3304_v51 = vunpack.c.h.bf16 %v11205_v56 }
 0x3da   :  { %8708 = vpow2.f32 %v7541_v47 }
 0x3db   :  { %8710 = vtanh.f32 %v3288_v10 }
 0x3dc   :  { %8712 = vpow2.f32 %v7539_v13 }
 0x3dd   :  { %8714 = vpow2.f32 %v7542_v41  ;;  %v2659_v41 = vsel %vm11085_vm7, %v9971_v16, 0.0 }
 0x3e1   :  { %v8703_v43 = vpop.eup %8702 }
 0x3e2   :  { %v3336_v31 = vadd.f32 1.0, %v8703_v43  ;;  %v8705_v48 = vpop.eup %8704 }
 0x3e3   :  { %v8707_v32 = vpop.eup %8706  ;;  %v3337_v28 = vadd.f32 1.0, %v8705_v48  ;;  %v11207_v48 = vld [vmem:[#allocation65_spill] sm:$0xff] }
 0x3e4   :  { %8716 = vrcp.f32 %v3336_v31  ;;  %v3339_v1 = vadd.f32 1.0, %v8707_v32  ;;  %v8709_v50 = vpop.eup %8708  ;;  %v3301_v40 = vunpack.c.l.bf16 %v11207_v48  ;;  %v3305_v16 = vunpack.c.h.bf16 %v11207_v48 }
 0x3e5   :  { %8718 = vtanh.f32 %v3292_v6  ;;  %v3340_v46 = vadd.f32 1.0, %v8709_v50  ;;  %v8711_v21 = vpop.eup %8710  ;;  %v3302_v6 = vunpack.c.l.bf16 %v11206_v20  ;;  %v11208_v50 = vld [vmem:[#allocation67_spill] sm:$0xff] }
 0x3e6   :  { %8720 = vrcp.f32 %v3337_v28  ;;  %v8713_v47 = vpop.eup %8712 }
 0x3e7   :  { %8722 = vrcp.f32 %v3339_v1  ;;  %v8715_v63 = vpop.eup %8714  ;;  %v3338_v15 = vadd.f32 1.0, %v8713_v47 }
 0x3e8   :  { %8724 = vrcp.f32 %v3340_v46  ;;  %v3341_v31 = vadd.f32 1.0, %v8715_v63  ;;  %v3303_v46 = vunpack.c.l.bf16 %v11208_v50 }
 0x3e9   :  { %8726 = vrcp.f32 %v3338_v15 }
 0x3ee   :  { %v8717_v62 = vpop.eup %8716 }
 0x3ef   :  { %v8719_v27 = vpop.eup %8718  ;;  %v3358_v10 = vmul.f32 %v8717_v62, %v8711_v21  ;;  %v3306_v21 = vunpack.c.h.bf16 %v11206_v20 }
 0x3f0   :  { %v8721_v55 = vpop.eup %8720 }
 0x3f1   :  { %v8723_v42 = vpop.eup %8722  ;;  %v3356_v39 = vmul.f32 %v8721_v55, %v2658_v23 }
 0x3f2   :  { %v3359_v26 = vmul.f32 %v8723_v42, %v8719_v27  ;;  %v8725_v13 = vpop.eup %8724 }
 0x3f3   :  { %v10184_v43 = vadd.f32 %v3358_v10, %v3356_v39  ;;  %v3357_v32 = vmul.f32 %v8725_v13, %v2659_v41  ;;  %v3218_v28 = vpop.f32.mrb[84].mxu0  ;;  %v3261_v1 = vpop.f32.mrb[84].mxu1  ;;  %v3307_v39 = vunpack.c.h.bf16 %v11208_v50 }
 0x3f4   :  { %v3308_v47 = vadd.f32 %v3300_v35, %v3218_v28  ;;  %v3310_v62 = vadd.f32 %v3302_v6, %v3261_v1  ;;  %v3220_v27 = vpop.f32.mrb[85].mxu0  ;;  %v3263_v55 = vpop.f32.mrb[85].mxu1 }
 0x3f5   :  { %8728 = vtanh.f32 %v10184_v43  ;;  %v10191_v10 = vadd.f32 %v3359_v26, %v3357_v32  ;;  %v3309_v63 = vadd.f32 %v3301_v40, %v3220_v27  ;;  %v3311_v23 = vadd.f32 %v3303_v46, %v3263_v55  ;;  %v3222_v15 = vpop.f32.mrb[86].mxu0  ;;  %v3265_v42 = vpop.f32.mrb[86].mxu1 }
 0x3f6   :  { %8730 = vrcp.f32 %v3341_v31  ;;  %v7543_v56 = vmul.f32 -1.442695, %v3308_v47  ;;  %v3312_v13 = vadd.f32 %v3304_v51, %v3222_v15  ;;  %v3314_v20 = vadd.f32 %v3306_v21, %v3265_v42  ;;  %v3224_v41 = vpop.f32.mrb[87].mxu0  ;;  %v3267_v18 = vpop.f32.mrb[87].mxu1  ;;  %v10203_v15 = vld [vmem:[#allocation13] ss:$16 sps:$4 sm:$0xff]  }
 0x3f7   :  { %8732 = vtanh.f32 %v10191_v10  ;;  %v7544_v35 = vmul.f32 -1.442695, %v3309_v63  ;;  %v3313_v6 = vadd.f32 %v3305_v16, %v3224_v41  ;;  %v3315_v26 = vadd.f32 %v3307_v39, %v3267_v18  ;;  %v8727_v32 = vpop.eup %8726  ;;  %v10195_v1 = vpop.permute.xlu0 %3423  ;;  %v10211_v41 = vld [vmem:[#allocation13 + $0x2c] ss:$16 sps:$4 sm:$0xff]  }
 0x3f8   :  { %8734 = vpow2.f32 %v7543_v56  ;;  %v7546_v48 = vmul.f32 -1.442695, %v3312_v13  ;;  %11209 = vst [vmem:[#allocation20_spill] sm:$0xff] %v10195_v1  ;;  %v7545_v31 = vmul.f32 -1.442695, %v3310_v62  ;;  %vm3428_vm12 = vcmp.eq.s32.totalorder %v10195_v1, 1  ;;  %v10198_v21 = vpop.permute.xlu1 %3426 }
 0x3f9   :  { %8736 = vpow2.f32 %v7544_v35  ;;  %v7547_v40 = vmul.f32 -1.442695, %v3313_v6  ;;  %11210 = vst [vmem:[#allocation22_spill] sm:$0xff] %v10198_v21  ;;  %vm3429_vm13 = vcmp.eq.s32.totalorder %v10198_v21, 1  ;;  %v7548_v27 = vmul.f32 -1.442695, %v3314_v20 }
 0x3fa   :  { %8738 = vpow2.f32 %v7546_v48  ;;  %v10205_v62 = vld [vmem:[#allocation13 + $0x8] ss:$16 sps:$4 sm:$0xff]   ;;  %v10209_v13 = vld [vmem:[#allocation13 + $0x24] ss:$16 sps:$4 sm:$0xff]   ;;  %vm10217_vm14 = vmpackc.low %vm3429_vm13, %vm3428_vm12  ;;  %v11211_v6 = vmov 0 }
 0x3fb   :  { %8740 = vpow2.f32 %v7547_v40  ;;  %v11212_v6 = vsel %vm10217_vm14, 4294967295, %v11211_v6  ;;  %v10227_v40 = vld [vmem:[#allocation13 + $0x20] ss:$16 sps:$4 sm:$0xff]  }
 0x3fc   :  { %8742 = vpow2.f32 %v7545_v31  ;;  %11213 = vst [vmem:[#allocation21_spill] sm:$0xff] %v11212_v6  ;;  %v10233_v31 = vld [vmem:[#allocation13 + $0x44] ss:$16 sps:$4 sm:$0xff]  }
 0x3fd   :  { %8744 = vtanh.f32 %v3311_v23 }
 0x3ff   :  { %v8729_v28 = vpop.eup %8728 }
 0x400   :  { %v3364_v51 = vmul.f32 %v8729_v28, %v8727_v32  ;;  %v8731_v50 = vpop.eup %8730  ;;  %v10229_v32 = vld [vmem:[#allocation13 + $0x28] ss:$16 sps:$4 sm:$0xff]  }
 0x401   :  { %v8733_v46 = vpop.eup %8732 }
 0x402   :  { %v3430_v47 = vsel %vm3428_vm12, %v3364_v51, 0.0  ;;  %v8735_v18 = vpop.eup %8734  ;;  %v3365_v55 = vmul.f32 %v8733_v46, %v8731_v50  ;;  %v10243_v46 = vld [vmem:[#allocation13 + $0x48] ss:$16 sps:$4 sm:$0xff]  }
 0x403   :  { %v7961_v16 = vpack.c.bf16 %v3430_v47, %v3430_v47  ;;  %v3386_v63 = vadd.f32 1.0, %v8735_v18  ;;  %v8737_v42 = vpop.eup %8736  ;;  %v10247_v47 = vld [vmem:[#allocation13 + $0x64] ss:$16 sps:$4 sm:$0xff]   ;;  %v10249_v18 = vld [vmem:[#allocation13 + $0x6c] ss:$16 sps:$4 sm:$0xff]  }
 0x404   :  { %v3431_v39 = vsel %vm3429_vm13, %v3365_v55, 0.0  ;;  %v8010_v56 = vpack.c.bf16 %v3365_v55, %v3364_v51  ;;  %v3387_v20 = vadd.f32 1.0, %v8737_v42  ;;  %v8739_v23 = vpop.eup %8738  ;;  %v10235_v51 = vld [vmem:[#allocation13 + $0x4c] ss:$16 sps:$4 sm:$0xff]   ;;  %11214 = vst [vmem:[#allocation23_spill] sm:$0xff] %v10247_v47  ;;  %11215 = vst [vmem:[#allocation64_spill] sm:$0xff] %v10249_v18 }
 0x405   :  { %3467 = vst [vmem:[#allocation15 + $0x20] sm:$0xf] %v7961_v16  ;;  %8746 = vrcp.f32 %v3386_v63  ;;  %v7962_v35 = vpack.c.bf16 %v3431_v39, %v3431_v39  ;;  %v3389_v48 = vadd.f32 1.0, %v8739_v23  ;;  %v8741_v28 = vpop.eup %8740  ;;  %v10253_v63 = vld [vmem:[#allocation13 + $0x60] ss:$16 sps:$4 sm:$0xff]  }
 0x406   :  { %8748 = vpow2.f32 %v7548_v27  ;;  %8011 = vmatmul.mubr.msk.bf16.vlgmr.msra.gmra.mrb[88].mxu0 %vm10217_vm14, %v8010_v56  ;;  %8014 = vmatmul.mubr.msk.bf16.vlgmr.msra.gmra.mrb[88].mxu1 %vm10217_vm14, %v8010_v56  ;;  %v3390_v50 = vadd.f32 1.0, %v8741_v28  ;;  %v8743_v27 = vpop.eup %8742  ;;  %v10255_v42 = vld [vmem:[#allocation13 + $0x68] ss:$16 sps:$4 sm:$0xff]  }
 0x407   :  { %8750 = vrcp.f32 %v3387_v20  ;;  %3468 = vst [vmem:[#allocation15 + $0x28] sm:$0xf] %v7962_v35  ;;  %3959 = vmatpush1.bf16.msra.mxu0 %v10203_v15  ;;  %4002 = vmatpush1.bf16.msra.mxu1 %v10205_v62  ;;  %v8745_v55 = vpop.eup %8744  ;;  %v10259_v20 = vld [vmem:[#allocation13 + $0x84] ss:$16 sps:$4 sm:$0xff]   ;;  %v10261_v35 = vld [vmem:[#allocation13 + $0x8c] ss:$16 sps:$4 sm:$0xff]  }
 0x408   :  { %8752 = vtanh.f32 %v3315_v26  ;;  %3960 = vmatprep.subr.bf16.mxu0 %v10209_v13  ;;  %4003 = vmatprep.subr.bf16.mxu1 %v10211_v41  ;;  %v10241_v26 = vld [vmem:[#allocation13 + $0x40] ss:$16 sps:$4 sm:$0xff]   ;;  %v3388_v28 = vadd.f32 1.0, %v8743_v27  ;;  %v10278_v27 = vld [vmem:[#allocation13 + $0xac] ss:$16 sps:$4 sm:$0xff]  }
 0x409   :  { %8754 = vrcp.f32 %v3389_v48  ;;  %3990 = vmatprep.mubr.bf16.mxu0 %v11166_v33  ;;  %4033 = vmatprep.mubr.bf16.mxu1 %v11166_v33  ;;  %v2672_v48 = vsel %vm2668_vm9, %v10019_v5, 0.0  ;;  %v10276_v5 = vld [vmem:[#allocation13 + $0xa4] ss:$16 sps:$4 sm:$0xff]   ;;  %11217 = vst [vmem:[#allocation65_spill] sm:$0xff] %v10278_v27 }
 0x40a   :  { %8756 = vrcp.f32 %v3390_v50  ;;  %11216 = vst [vmem:[#allocation66_spill] sm:$0xff] %v10276_v5 }
 0x40b   :  { %3961 = vmatpush1.bf16.msra.mxu0 %v10227_v40  ;;  %4004 = vmatpush1.bf16.msra.mxu1 %v10229_v32  ;;  %8758 = vrcp.f32 %v3388_v28  ;;  %v10301_v28 = vld [vmem:[#allocation13 + $0xc0] ss:$16 sps:$4 sm:$0xff]  }
 0x40c   :  { %3962 = vmatprep.subr.bf16.mxu0 %v10233_v31  ;;  %4005 = vmatprep.subr.bf16.mxu1 %v10235_v51  ;;  %11222 = vst [vmem:[#allocation87_spill] sm:$0xff] %v10301_v28 }
 0x40f   :  { %v8747_v16 = vpop.eup %8746  ;;  %3963 = vmatpush1.bf16.msra.mxu0 %v10241_v26  ;;  %4006 = vmatpush1.bf16.msra.mxu1 %v10243_v46 }
 0x410   :  { %v8749_v39 = vpop.eup %8748  ;;  %v3408_v56 = vmul.f32 %v8747_v16, %v8745_v55  ;;  %3964 = vmatprep.subr.bf16.mxu0 %v10247_v47  ;;  %4007 = vmatprep.subr.bf16.mxu1 %v10249_v18  ;;  %v10268_v55 = vld [vmem:[#allocation13 + $0x80] ss:$16 sps:$4 sm:$0xff]   ;;  %v10270_v16 = vld [vmem:[#allocation13 + $0x88] ss:$16 sps:$4 sm:$0xff]  }
 0x411   :  { %v8751_v23 = vpop.eup %8750  ;;  %v3391_v11 = vadd.f32 1.0, %v8749_v39  ;;  %v10296_v39 = vld [vmem:[#allocation13 + $0xcc] ss:$16 sps:$4 sm:$0xff]  }
 0x412   :  { %v8753_v50 = vpop.eup %8752  ;;  %v3406_v0 = vmul.f32 %v8751_v23, %v2672_v48  ;;  %v2673_v48 = vsel %vm2669_vm10, %v10024_v61, 0.0  ;;  %v10294_v61 = vld [vmem:[#allocation13 + $0xc4] ss:$16 sps:$4 sm:$0xff]   ;;  %11221 = vst [vmem:[#allocation86_spill] sm:$0xff] %v10296_v39 }
 0x413   :  { %v8755_v6 = vpop.eup %8754  ;;  %3965 = vmatpush1.bf16.msra.mxu0 %v10253_v63  ;;  %4008 = vmatpush1.bf16.msra.mxu1 %v10255_v42  ;;  %11220 = vst [vmem:[#allocation85_spill] sm:$0xff] %v10294_v61 }
 0x414   :  { %v10272_v18 = vadd.f32 %v3408_v56, %v3406_v0  ;;  %v3409_v47 = vmul.f32 %v8755_v6, %v8753_v50  ;;  %3966 = vmatprep.subr.bf16.mxu0 %v10259_v20  ;;  %4009 = vmatprep.subr.bf16.mxu1 %v10261_v35  ;;  %v8757_v23 = vpop.eup %8756  ;;  %v10286_v6 = vld [vmem:[#allocation13 + $0xa0] ss:$16 sps:$4 sm:$0xff]   ;;  %v10288_v56 = vld [vmem:[#allocation13 + $0xa8] ss:$16 sps:$4 sm:$0xff]  }
 0x415   :  { %v3407_v0 = vmul.f32 %v8757_v23, %v2673_v48  ;;  %11218 = vst [vmem:[#allocation67_spill] sm:$0xff] %v10286_v6  ;;  %11219 = vst [vmem:[#allocation84_spill] sm:$0xff] %v10288_v56  ;;  %v10303_v23 = vld [vmem:[#allocation13 + $0xc8] ss:$16 sps:$4 sm:$0xff]   ;;  %v10309_v48 = vld [vmem:[#allocation13 + $0xec] ss:$16 sps:$4 sm:$0xff]  }
 0x416   :  { %8760 = vtanh.f32 %v10272_v18  ;;  %11223 = vst [vmem:[#allocation88_spill] sm:$0xff] %v10303_v23  ;;  %11224 = vst [vmem:[#allocation89_spill] sm:$0xff] %v10309_v48 }
 0x417   :  { %3967 = vmatpush1.bf16.msra.mxu0 %v10268_v55  ;;  %4010 = vmatpush1.bf16.msra.mxu1 %v10270_v16  ;;  %v10290_v50 = vadd.f32 %v3409_v47, %v3407_v0  ;;  %8762 = vrcp.f32 %v3391_v11  ;;  %v10307_v47 = vld [vmem:[#allocation13 + $0xe4] ss:$16 sps:$4 sm:$0xff]   ;;  %v8759_v0 = vpop.eup %8758  ;;  %v10313_v11 = vld [vmem:[#allocation13 + $0xe0] ss:$16 sps:$4 sm:$0xff]  }
 0x418   :  { %3968 = vmatprep.subr.bf16.mxu0 %v10276_v5  ;;  %4011 = vmatprep.subr.bf16.mxu1 %v10278_v27  ;;  %11225 = vst [vmem:[#allocation90_spill] sm:$0xff] %v10313_v11  ;;  %v10326_v27 = vpop.permute.xlu1 %3440 }
 0x419   :  { %8764 = vtanh.f32 %v10290_v50  ;;  %11228 = vst [vmem:[#allocation93_spill] sm:$0xff] %v10326_v27  ;;  %vm3443_vm2 = vcmp.eq.s32.totalorder %v10326_v27, 1 }
 0x41b   :  { %3969 = vmatpush1.bf16.msra.mxu0 %v10286_v6  ;;  %4012 = vmatpush1.bf16.msra.mxu1 %v10288_v56 }
 0x41c   :  { %3970 = vmatprep.subr.bf16.mxu0 %v10294_v61  ;;  %4013 = vmatprep.subr.bf16.mxu1 %v10296_v39  ;;  %v10319_v61 = vpop.permute.xlu0 %3437 }
 0x41d   :  { %11227 = vst [vmem:[#allocation92_spill] sm:$0xff] %v10319_v61  ;;  %vm3442_vm15 = vcmp.eq.s32.totalorder %v10319_v61, 1 }
 0x41e   :  { %vm10337_vm5 = vmpackc.low %vm3443_vm2, %vm3442_vm15 }
 0x41f   :  { %3971 = vmatpush1.bf16.msra.mxu0 %v10301_v28  ;;  %4014 = vmatpush1.bf16.msra.mxu1 %v10303_v23 }
 0x420   :  { %v8761_v56 = vpop.eup %8760  ;;  %3972 = vmatprep.subr.bf16.mxu0 %v10307_v47  ;;  %4015 = vmatprep.subr.bf16.mxu1 %v10309_v48  ;;  %v11229_v48 = vmov 0 }
 0x421   :  { %v3414_v39 = vmul.f32 %v8761_v56, %v8759_v0  ;;  %v8763_v6 = vpop.eup %8762  ;;  %v11230_v48 = vsel %vm10337_vm5, 4294967295, %v11229_v48 }
 0x422   :  { %11231 = vst [vmem:[#allocation94_spill] sm:$0xff] %v11230_v48 }
 0x423   :  { %3973 = vmatpush1.bf16.msra.mxu0 %v10313_v11  ;;  %4016 = vmatpush1.bf16.msra.mxu1 %v10315_v12  ;;  %v3444_v23 = vsel %vm3442_vm15, %v3414_v39, 0.0  ;;  %v8765_v28 = vpop.eup %8764 }
 0x424   :  { %v7963_v5 = vpack.c.bf16 %v3444_v23, %v3444_v23  ;;  %4451 = vmatprep.subr.bf16.mxu0 %v10065_v7  ;;  %4494 = vmatprep.subr.bf16.mxu1 %v10067_v29  ;;  %v3415_v56 = vmul.f32 %v8765_v28, %v8763_v6  ;;  %v11233_v7 = vld [vmem:[#allocation74_spill] sm:$0xff]  ;;  %v11234_v29 = vld [vmem:[#allocation75_spill] sm:$0xff] }
 0x426   :  { %3480 = vst [vmem:[#allocation15 + $0x54] sm:$0xf] %v7963_v5  ;;  %v3445_v0 = vsel %vm3443_vm2, %v3415_v56, 0.0  ;;  %v8016_v11 = vpack.c.bf16 %v3415_v56, %v3414_v39 }
 0x427   :  { %v7964_v12 = vpack.c.bf16 %v3445_v0, %v3445_v0 }
 0x428   :  { %8017 = vmatmul.mubr.msk.bf16.vlgmr.msra.gmra.mrb[92].mxu0 %vm10337_vm5, %v8016_v11  ;;  %8020 = vmatmul.mubr.msk.bf16.vlgmr.msra.gmra.mrb[92].mxu1 %vm10337_vm5, %v8016_v11 }
 0x429   :  { %3481 = vst [vmem:[#allocation15 + $0x5c] sm:$0xf] %v7964_v12  ;;  %4452 = vmatpush1.bf16.msra.mxu0 %v10069_v17  ;;  %4495 = vmatpush1.bf16.msra.mxu1 %v10071_v52  ;;  %v11232_v12 = vld [vmem:[#allocation73_spill] sm:$0xff]  ;;  %v11235_v17 = vld [vmem:[#allocation76_spill] sm:$0xff]  ;;  %v11236_v52 = vld [vmem:[#allocation78_spill] sm:$0xff] }
 0x42a   :  { %4453 = vmatprep.subr.bf16.mxu0 %v10077_v19  ;;  %4496 = vmatprep.subr.bf16.mxu1 %v10079_v30  ;;  %v11237_v19 = vld [vmem:[#allocation83_spill] sm:$0xff]  ;;  %v11238_v30 = vld [vmem:[#allocation24_spill] sm:$0xff] }
 0x42b   :  { %4483 = vmatprep.mubr.bf16.mxu0 %v11166_v33  ;;  %4526 = vmatprep.mubr.bf16.mxu1 %v11166_v33 }
 0x42d   :  { %4454 = vmatpush1.bf16.msra.mxu0 %v10081_v37  ;;  %4497 = vmatpush1.bf16.msra.mxu1 %v10083_v44  ;;  %v4051_v37 = vunpack.c.l.bf16 %v11238_v30  ;;  %v11239_v44 = vld [vmem:[#allocation26_spill] sm:$0xff] }
 0x42e   :  { %4455 = vmatprep.subr.bf16.mxu0 %v10089_v2  ;;  %4498 = vmatprep.subr.bf16.mxu1 %v10091_v8  ;;  %v4053_v2 = vunpack.c.l.bf16 %v11239_v44 }
 0x431   :  { %4456 = vmatpush1.bf16.msra.mxu0 %v10093_v14  ;;  %4499 = vmatpush1.bf16.msra.mxu1 %v10095_v53  ;;  %v11240_v53 = vld [vmem:[#allocation25_spill] sm:$0xff] }
 0x432   :  { %4457 = vmatprep.subr.bf16.mxu0 %v10101_v49  ;;  %4500 = vmatprep.subr.bf16.mxu1 %v10103_v24  ;;  %v4052_v49 = vunpack.c.l.bf16 %v11240_v53  ;;  %v11241_v24 = vld [vmem:[#allocation27_spill] sm:$0xff] }
 0x435   :  { %4458 = vmatpush1.bf16.msra.mxu0 %v10105_v45  ;;  %4501 = vmatpush1.bf16.msra.mxu1 %v10107_v4  ;;  %v4054_v45 = vunpack.c.l.bf16 %v11241_v24 }
 0x436   :  { %4459 = vmatprep.subr.bf16.mxu0 %v10113_v38  ;;  %4502 = vmatprep.subr.bf16.mxu1 %v10115_v34 }
 0x439   :  { %4460 = vmatpush1.bf16.msra.mxu0 %v10117_v22  ;;  %4503 = vmatpush1.bf16.msra.mxu1 %v10119_v36  ;;  %v4055_v36 = vunpack.c.h.bf16 %v11238_v30 }
 0x43a   :  { %4461 = vmatprep.subr.bf16.mxu0 %v10125_v59  ;;  %4504 = vmatprep.subr.bf16.mxu1 %v10127_v54  ;;  %v4057_v59 = vunpack.c.h.bf16 %v11239_v44 }
 0x43d   :  { %4462 = vmatpush1.bf16.msra.mxu0 %v10129_v57  ;;  %4505 = vmatpush1.bf16.msra.mxu1 %v10131_v3 }
 0x43e   :  { %4463 = vmatprep.subr.bf16.mxu0 %v10137_v60  ;;  %4506 = vmatprep.subr.bf16.mxu1 %v10139_v25  ;;  %v4056_v25 = vunpack.c.h.bf16 %v11240_v53 }
 0x441   :  { %4464 = vmatpush1.bf16.msra.mxu0 %v10141_v9  ;;  %4507 = vmatpush1.bf16.msra.mxu1 %v10143_v58  ;;  %v4058_v9 = vunpack.c.h.bf16 %v11241_v24 }
 0x442   :  { %4465 = vmatprep.subr.bf16.mxu0 %v11232_v12  ;;  %4508 = vmatprep.subr.bf16.mxu1 %v11233_v7 }
 0x445   :  { %4466 = vmatpush1.bf16.msra.mxu0 %v11234_v29  ;;  %4509 = vmatpush1.bf16.msra.mxu1 %v11235_v17 }
 0x446   :  { %4732 = vmatprep.subr.bf16.mxu0 %v11236_v52  ;;  %4775 = vmatprep.subr.bf16.mxu1 %v11237_v19 }
 0x4d9   :  { %v3711_v8 = vpop.f32.mrb[88].mxu0  ;;  %v3754_v14 = vpop.f32.mrb[88].mxu1 }
 0x4da   :  { %v4059_v4 = vadd.f32 %v4051_v37, %v3711_v8  ;;  %v4061_v38 = vadd.f32 %v4053_v2, %v3754_v14  ;;  %v3713_v34 = vpop.f32.mrb[89].mxu0  ;;  %v3756_v22 = vpop.f32.mrb[89].mxu1 }
 0x4db   :  { %v4060_v54 = vadd.f32 %v4052_v49, %v3713_v34  ;;  %v4062_v57 = vadd.f32 %v4054_v45, %v3756_v22  ;;  %v3715_v3 = vpop.f32.mrb[90].mxu0  ;;  %v3758_v60 = vpop.f32.mrb[90].mxu1  ;;  %v3432_v34 = vsel %vm3428_vm12, %v10184_v43, 0.0 }
 0x4dc   :  { %v7617_v58 = vmul.f32 -1.442695, %v4059_v4  ;;  %v4063_v5 = vadd.f32 %v4055_v36, %v3715_v3  ;;  %v4065_v6 = vadd.f32 %v4057_v59, %v3758_v60  ;;  %v3717_v39 = vpop.f32.mrb[91].mxu0  ;;  %v3760_v28 = vpop.f32.mrb[91].mxu1  ;;  %v7619_v7 = vmul.f32 -1.442695, %v4061_v38 }
 0x4dd   :  { %v7618_v23 = vmul.f32 -1.442695, %v4060_v54  ;;  %v4064_v11 = vadd.f32 %v4056_v25, %v3717_v39  ;;  %v4066_v56 = vadd.f32 %v4058_v9, %v3760_v28  ;;  %v3433_v3 = vsel %vm3429_vm13, %v10191_v10, 0.0 }
 0x4de   :  { %8766 = vpow2.f32 %v7617_v58  ;;  %v7620_v0 = vmul.f32 -1.442695, %v4063_v5  ;;  %v7622_v29 = vmul.f32 -1.442695, %v4065_v6  ;;  %v11242_v58 = vld [vmem:[#allocation60_spill] sm:$0xff]  ;;  %v11243_v6 = vld [vmem:[#allocation62_spill] sm:$0xff] }
 0x4df   :  { %v7621_v12 = vmul.f32 -1.442695, %v4064_v11  ;;  %8768 = vpow2.f32 %v7618_v23  ;;  %v4074_v5 = vunpack.c.l.bf16 %v11242_v58  ;;  %v4076_v39 = vunpack.c.l.bf16 %v11243_v6  ;;  %v11244_v23 = vld [vmem:[#allocation61_spill] sm:$0xff] }
 0x4e0   :  { %8770 = vpow2.f32 %v7620_v0  ;;  %v4075_v11 = vunpack.c.l.bf16 %v11244_v23 }
 0x4e1   :  { %8772 = vpow2.f32 %v7621_v12 }
 0x4e2   :  { %8774 = vtanh.f32 %v4062_v57 }
 0x4e3   :  { %8776 = vpow2.f32 %v7619_v7 }
 0x4e4   :  { %8778 = vpow2.f32 %v7622_v29 }
 0x4e8   :  { %v8767_v17 = vpop.eup %8766 }
 0x4e9   :  { %v4110_v52 = vadd.f32 1.0, %v8767_v17  ;;  %v8769_v19 = vpop.eup %8768 }
 0x4ea   :  { %v8771_v30 = vpop.eup %8770  ;;  %v4111_v37 = vadd.f32 1.0, %v8769_v19 }
 0x4eb   :  { %8780 = vrcp.f32 %v4110_v52  ;;  %v4113_v44 = vadd.f32 1.0, %v8771_v30  ;;  %v8773_v2 = vpop.eup %8772  ;;  %v4078_v52 = vunpack.c.h.bf16 %v11242_v58 }
 0x4ec   :  { %8782 = vtanh.f32 %v4066_v56  ;;  %v4114_v8 = vadd.f32 1.0, %v8773_v2  ;;  %v8775_v14 = vpop.eup %8774  ;;  %v11245_v56 = vld [vmem:[#allocation63_spill] sm:$0xff]  ;;  %v4080_v2 = vunpack.c.h.bf16 %v11243_v6  ;;  %v10410_v6 = vpop.permute.xlu1 %4200 }
 0x4ed   :  { %8784 = vrcp.f32 %v4111_v37  ;;  %v8777_v53 = vpop.eup %8776  ;;  %v4077_v0 = vunpack.c.l.bf16 %v11245_v56  ;;  %vm4203_vm0 = vcmp.eq.s32.totalorder %v10410_v6, 1 }
 0x4ee   :  { %8786 = vrcp.f32 %v4113_v44  ;;  %v8779_v49 = vpop.eup %8778  ;;  %v4112_v22 = vadd.f32 1.0, %v8777_v53  ;;  %v4079_v53 = vunpack.c.h.bf16 %v11244_v23 }
 0x4ef   :  { %8788 = vrcp.f32 %v4114_v8  ;;  %v4115_v25 = vadd.f32 1.0, %v8779_v49  ;;  %v4081_v49 = vunpack.c.h.bf16 %v11245_v56 }
 0x4f0   :  { %8790 = vrcp.f32 %v4112_v22 }
 0x4f5   :  { %v8781_v24 = vpop.eup %8780 }
 0x4f6   :  { %v8783_v45 = vpop.eup %8782  ;;  %v4132_v4 = vmul.f32 %v8781_v24, %v8775_v14 }
 0x4f7   :  { %v8785_v38 = vpop.eup %8784 }
 0x4f8   :  { %v8787_v36 = vpop.eup %8786  ;;  %v4130_v59 = vmul.f32 %v8785_v38, %v3432_v34 }
 0x4f9   :  { %v4133_v54 = vmul.f32 %v8787_v36, %v8783_v45  ;;  %v8789_v57 = vpop.eup %8788 }
 0x4fa   :  { %v10393_v60 = vadd.f32 %v4132_v4, %v4130_v59  ;;  %v4131_v9 = vmul.f32 %v8789_v57, %v3433_v3  ;;  %v10407_v3 = vpop.permute.xlu0 %4197 }
 0x4fb   :  { %v3992_v43 = vpop.f32.mrb[92].mxu0  ;;  %v4035_v28 = vpop.f32.mrb[92].mxu1  ;;  %vm4202_vm1 = vcmp.eq.s32.totalorder %v10407_v3, 1 }
 0x4fc   :  { %8792 = vtanh.f32 %v10393_v60  ;;  %v10400_v12 = vadd.f32 %v4133_v54, %v4131_v9  ;;  %v4082_v10 = vadd.f32 %v4074_v5, %v3992_v43  ;;  %v4084_v7 = vadd.f32 %v4076_v39, %v4035_v28  ;;  %v3994_v29 = vpop.f32.mrb[93].mxu0  ;;  %v4037_v17 = vpop.f32.mrb[93].mxu1  ;;  %vm10421_vm4 = vmpackc.low %vm4203_vm0, %vm4202_vm1 }
 0x4fd   :  { %8794 = vrcp.f32 %v4115_v25  ;;  %v4083_v19 = vadd.f32 %v4075_v11, %v3994_v29  ;;  %v4085_v30 = vadd.f32 %v4077_v0, %v4037_v17  ;;  %v3996_v37 = vpop.f32.mrb[94].mxu0  ;;  %v4039_v44 = vpop.f32.mrb[94].mxu1 }
 0x4fe   :  { %8796 = vtanh.f32 %v10400_v12  ;;  %v7623_v8 = vmul.f32 -1.442695, %v4082_v10  ;;  %v3998_v14 = vpop.f32.mrb[95].mxu0  ;;  %v4086_v45 = vadd.f32 %v4078_v52, %v3996_v37  ;;  %v4088_v4 = vadd.f32 %v4080_v2, %v4039_v44  ;;  %v4041_v38 = vpop.f32.mrb[95].mxu1  ;;  %v11248_v2 = vld [vmem:[#allocation23_spill] sm:$0xff] }
 0x4ff   :  { %v7624_v24 = vmul.f32 -1.442695, %v4083_v19  ;;  %v4087_v34 = vadd.f32 %v4079_v53, %v3998_v14  ;;  %v4089_v22 = vadd.f32 %v4081_v49, %v4041_v38  ;;  %v8791_v54 = vpop.eup %8790  ;;  %v7625_v58 = vmul.f32 -1.442695, %v4084_v7  ;;  %v11254_v38 = vld [vmem:[#allocation85_spill] sm:$0xff] }
 0x500   :  { %8798 = vpow2.f32 %v7623_v8  ;;  %v7626_v36 = vmul.f32 -1.442695, %v4086_v45  ;;  %v7628_v39 = vmul.f32 -1.442695, %v4088_v4  ;;  %v11249_v8 = vld [vmem:[#allocation64_spill] sm:$0xff] }
 0x501   :  { %8800 = vpow2.f32 %v7624_v24  ;;  %v7627_v59 = vmul.f32 -1.442695, %v4087_v34  ;;  %v3447_v24 = vsel %vm3443_vm2, %v10290_v50, 0.0  ;;  %v11253_v50 = vld [vmem:[#allocation84_spill] sm:$0xff]  ;;  %v11255_v34 = vld [vmem:[#allocation86_spill] sm:$0xff] }
 0x502   :  { %8802 = vpow2.f32 %v7626_v36  ;;  %v10469_v36 = vpop.permute.xlu0 %4211 }
 0x503   :  { %8804 = vpow2.f32 %v7627_v59  ;;  %v11258_v59 = vld [vmem:[#allocation89_spill] sm:$0xff]  ;;  %vm4216_vm3 = vcmp.eq.s32.totalorder %v10469_v36, 1 }
 0x504   :  { %8806 = vtanh.f32 %v4085_v30 }
 0x505   :  { %8808 = vpow2.f32 %v7625_v58  ;;  %v11259_v58 = vld [vmem:[#allocation90_spill] sm:$0xff] }
 0x506   :  { %v8793_v57 = vpop.eup %8792  ;;  %8810 = vpow2.f32 %v7628_v39 }
 0x507   :  { %v4138_v25 = vmul.f32 %v8793_v57, %v8791_v54  ;;  %v8795_v9 = vpop.eup %8794  ;;  %v10473_v57 = vpop.permute.xlu1 %4214 }
 0x508   :  { %v8797_v5 = vpop.eup %8796  ;;  %vm4217_vm7 = vcmp.eq.s32.totalorder %v10473_v57, 1 }
 0x509   :  { %v4204_v43 = vsel %vm4202_vm1, %v4138_v25, 0.0  ;;  %v4139_v28 = vmul.f32 %v8797_v5, %v8795_v9  ;;  %v11260_v5 = vld [vmem:[#allocation91_spill] sm:$0xff]  ;;  %vm10487_vm6 = vmpackc.low %vm4217_vm7, %vm4216_vm3 }
 0x50a   :  { %v7965_v23 = vpack.c.bf16 %v4204_v43, %v4204_v43  ;;  %v8799_v11 = vpop.eup %8798 }
 0x50b   :  { %v4160_v56 = vadd.f32 1.0, %v8799_v11  ;;  %v4205_v0 = vsel %vm4203_vm0, %v4139_v28, 0.0  ;;  %v8022_v10 = vpack.c.bf16 %v4139_v28, %v4138_v25  ;;  %v8801_v7 = vpop.eup %8800 }
 0x50c   :  { %4241 = vst [vmem:[#allocation15 + $0x30] sm:$0xf] %v7965_v23  ;;  %v7966_v29 = vpack.c.bf16 %v4205_v0, %v4205_v0  ;;  %v8803_v52 = vpop.eup %8802  ;;  %v4161_v19 = vadd.f32 1.0, %v8801_v7  ;;  %v10499_v7 = vld [vmem:[#allocation12 + $0xc] ss:$16 sps:$4 sm:$0xff]  }
 0x50d   :  { %8812 = vrcp.f32 %v4160_v56  ;;  %8023 = vmatmul.mubr.msk.bf16.vlgmr.msra.gmra.mrb[96].mxu0 %vm10421_vm4, %v8022_v10  ;;  %8026 = vmatmul.mubr.msk.bf16.vlgmr.msra.gmra.mrb[96].mxu1 %vm10421_vm4, %v8022_v10  ;;  %v4163_v30 = vadd.f32 1.0, %v8803_v52  ;;  %v8805_v37 = vpop.eup %8804  ;;  %v10497_v10 = vld [vmem:[#allocation12 + $0x4] ss:$16 sps:$4 sm:$0xff]   ;;  %v10503_v52 = vld [vmem:[#allocation12 + $0x8] ss:$16 sps:$4 sm:$0xff]  }
 0x50e   :  { %8814 = vtanh.f32 %v4089_v22  ;;  %4242 = vst [vmem:[#allocation15 + $0x38] sm:$0xf] %v7966_v29  ;;  %4733 = vmatpush1.bf16.msra.mxu0 %v10203_v15  ;;  %4776 = vmatpush1.bf16.msra.mxu1 %v10205_v62  ;;  %v4164_v44 = vadd.f32 1.0, %v8805_v37  ;;  %v8807_v15 = vpop.eup %8806  ;;  %v10501_v29 = vld [vmem:[#allocation12] ss:$16 sps:$4 sm:$0xff]  }
 0x50f   :  { %8816 = vrcp.f32 %v4161_v19  ;;  %4734 = vmatprep.subr.bf16.mxu0 %v10209_v13  ;;  %4777 = vmatprep.subr.bf16.mxu1 %v10211_v41  ;;  %v8809_v62 = vpop.eup %8808  ;;  %v10509_v19 = vld [vmem:[#allocation12 + $0x24] ss:$16 sps:$4 sm:$0xff]   ;;  %v10513_v37 = vld [vmem:[#allocation12 + $0x20] ss:$16 sps:$4 sm:$0xff]   ;;  %v10653_v0 = vld [vmem:[#allocation13 + $0x4c] ss:$16 sps:$4 sm:$0xff]  }
 0x510   :  { %8818 = vrcp.f32 %v4163_v30  ;;  %4764 = vmatprep.mubr.bf16.mxu0 %v11166_v33  ;;  %4807 = vmatprep.mubr.bf16.mxu1 %v11166_v33  ;;  %v8811_v13 = vpop.eup %8810  ;;  %v10511_v30 = vld [vmem:[#allocation12 + $0x2c] ss:$16 sps:$4 sm:$0xff]  }
 0x511   :  { %8820 = vrcp.f32 %v4164_v44  ;;  %v10515_v44 = vld [vmem:[#allocation12 + $0x28] ss:$16 sps:$4 sm:$0xff]  }
 0x512   :  { %4735 = vmatpush1.bf16.msra.mxu0 %v10227_v40  ;;  %4778 = vmatpush1.bf16.msra.mxu1 %v10229_v32  ;;  %v3446_v32 = vsel %vm3442_vm15, %v10272_v18, 0.0  ;;  %v4165_v18 = vadd.f32 1.0, %v8811_v13  ;;  %v10525_v13 = vld [vmem:[#allocation12 + $0x40] ss:$16 sps:$4 sm:$0xff]  }
 0x513   :  { %4736 = vmatprep.subr.bf16.mxu0 %v10233_v31  ;;  %4779 = vmatprep.subr.bf16.mxu1 %v10235_v51  ;;  %v4162_v31 = vadd.f32 1.0, %v8809_v62  ;;  %v10523_v62 = vld [vmem:[#allocation12 + $0x4c] ss:$16 sps:$4 sm:$0xff]  }
 0x515   :  { %8822 = vrcp.f32 %v4162_v31  ;;  %v10549_v31 = vld [vmem:[#allocation12 + $0x80] ss:$16 sps:$4 sm:$0xff]  }
 0x516   :  { %4737 = vmatpush1.bf16.msra.mxu0 %v10241_v26  ;;  %4780 = vmatpush1.bf16.msra.mxu1 %v10243_v46 }
 0x517   :  { %v8813_v41 = vpop.eup %8812  ;;  %4738 = vmatprep.subr.bf16.mxu0 %v11248_v2  ;;  %4781 = vmatprep.subr.bf16.mxu1 %v11249_v8  ;;  %v10533_v2 = vld [vmem:[#allocation12 + $0x64] ss:$16 sps:$4 sm:$0xff]   ;;  %v10535_v8 = vld [vmem:[#allocation12 + $0x6c] ss:$16 sps:$4 sm:$0xff]  }
 0x518   :  { %v8815_v14 = vpop.eup %8814  ;;  %v4182_v40 = vmul.f32 %v8813_v41, %v8807_v15  ;;  %v10521_v15 = vld [vmem:[#allocation12 + $0x44] ss:$16 sps:$4 sm:$0xff]   ;;  %v10527_v41 = vld [vmem:[#allocation12 + $0x48] ss:$16 sps:$4 sm:$0xff]  }
 0x519   :  { %v8817_v53 = vpop.eup %8816 }
 0x51a   :  { %v8819_v51 = vpop.eup %8818  ;;  %v4180_v49 = vmul.f32 %v8817_v53, %v3446_v32  ;;  %4739 = vmatpush1.bf16.msra.mxu0 %v10253_v63  ;;  %4782 = vmatpush1.bf16.msra.mxu1 %v10255_v42  ;;  %v11250_v42 = vld [vmem:[#allocation66_spill] sm:$0xff]  ;;  %v10547_v32 = vld [vmem:[#allocation12 + $0x8c] ss:$16 sps:$4 sm:$0xff]  }
 0x51b   :  { %v4183_v26 = vmul.f32 %v8819_v51, %v8815_v14  ;;  %4740 = vmatprep.subr.bf16.mxu0 %v10259_v20  ;;  %4783 = vmatprep.subr.bf16.mxu1 %v10261_v35  ;;  %v8821_v46 = vpop.eup %8820  ;;  %v11251_v20 = vld [vmem:[#allocation65_spill] sm:$0xff]  ;;  %v11252_v35 = vld [vmem:[#allocation67_spill] sm:$0xff]  ;;  %v10537_v14 = vld [vmem:[#allocation12 + $0x60] ss:$16 sps:$4 sm:$0xff]  }
 0x51c   :  { %v10453_v45 = vadd.f32 %v4182_v40, %v4180_v49  ;;  %v4181_v4 = vmul.f32 %v8821_v46, %v3447_v24  ;;  %v10539_v40 = vld [vmem:[#allocation12 + $0x68] ss:$16 sps:$4 sm:$0xff]   ;;  %v10545_v53 = vld [vmem:[#allocation12 + $0x84] ss:$16 sps:$4 sm:$0xff]   ;;  %v10561_v46 = vld [vmem:[#allocation12 + $0xa0] ss:$16 sps:$4 sm:$0xff]  }
 0x51d   :  { %v10551_v51 = vld [vmem:[#allocation12 + $0x88] ss:$16 sps:$4 sm:$0xff]   ;;  %v10557_v49 = vld [vmem:[#allocation12 + $0xa4] ss:$16 sps:$4 sm:$0xff]  }
 0x51e   :  { %8824 = vtanh.f32 %v10453_v45  ;;  %4741 = vmatpush1.bf16.msra.mxu0 %v10268_v55  ;;  %4784 = vmatpush1.bf16.msra.mxu1 %v10270_v16  ;;  %v10458_v63 = vadd.f32 %v4183_v26, %v4181_v4  ;;  %v11256_v55 = vld [vmem:[#allocation87_spill] sm:$0xff]  ;;  %v11257_v16 = vld [vmem:[#allocation88_spill] sm:$0xff] }
 0x51f   :  { %4742 = vmatprep.subr.bf16.mxu0 %v11250_v42  ;;  %4785 = vmatprep.subr.bf16.mxu1 %v11251_v20  ;;  %8826 = vrcp.f32 %v4165_v18  ;;  %v8823_v22 = vpop.eup %8822  ;;  %v10559_v26 = vld [vmem:[#allocation12 + $0xac] ss:$16 sps:$4 sm:$0xff]   ;;  %v10563_v24 = vld [vmem:[#allocation12 + $0xa8] ss:$16 sps:$4 sm:$0xff]   ;;  %v10569_v18 = vld [vmem:[#allocation12 + $0xc4] ss:$16 sps:$4 sm:$0xff]  }
 0x520   :  { %8828 = vtanh.f32 %v10458_v63  ;;  %v10571_v4 = vld [vmem:[#allocation12 + $0xcc] ss:$16 sps:$4 sm:$0xff]   ;;  %v10573_v42 = vld [vmem:[#allocation12 + $0xc0] ss:$16 sps:$4 sm:$0xff]   ;;  %v10575_v20 = vld [vmem:[#allocation12 + $0xc8] ss:$16 sps:$4 sm:$0xff]  }
 0x521   :  { %11263 = vst [vmem:[#allocation73_spill] sm:$0xff] %v10573_v42  ;;  %11264 = vst [vmem:[#allocation74_spill] sm:$0xff] %v10575_v20 }
 0x522   :  { %4743 = vmatpush1.bf16.msra.mxu0 %v11252_v35  ;;  %4786 = vmatpush1.bf16.msra.mxu1 %v11253_v50  ;;  %v10581_v35 = vld [vmem:[#allocation12 + $0xe4] ss:$16 sps:$4 sm:$0xff]   ;;  %v10583_v50 = vld [vmem:[#allocation12 + $0xec] ss:$16 sps:$4 sm:$0xff]  }
 0x523   :  { %4744 = vmatprep.subr.bf16.mxu0 %v11254_v38  ;;  %4787 = vmatprep.subr.bf16.mxu1 %v11255_v34  ;;  %11265 = vst [vmem:[#allocation75_spill] sm:$0xff] %v10581_v35  ;;  %11266 = vst [vmem:[#allocation76_spill] sm:$0xff] %v10583_v50  ;;  %v10585_v38 = vld [vmem:[#allocation12 + $0xe0] ss:$16 sps:$4 sm:$0xff]   ;;  %v10587_v34 = vld [vmem:[#allocation12 + $0xe8] ss:$16 sps:$4 sm:$0xff]  }
 0x524   :  { %11267 = vst [vmem:[#allocation78_spill] sm:$0xff] %v10585_v38  ;;  %11268 = vst [vmem:[#allocation83_spill] sm:$0xff] %v10587_v34 }
 0x526   :  { %4745 = vmatpush1.bf16.msra.mxu0 %v11256_v55  ;;  %4788 = vmatpush1.bf16.msra.mxu1 %v11257_v16  ;;  %v10593_v55 = vld [vmem:[#allocation13 + $0x4] ss:$16 sps:$4 sm:$0xff]   ;;  %v10595_v16 = vld [vmem:[#allocation13 + $0xc] ss:$16 sps:$4 sm:$0xff]  }
 0x527   :  { %4746 = vmatprep.subr.bf16.mxu0 %v10307_v47  ;;  %4789 = vmatprep.subr.bf16.mxu1 %v11258_v59  ;;  %11269 = vst [vmem:[#allocation24_spill] sm:$0xff] %v10593_v55  ;;  %11270 = vst [vmem:[#allocation26_spill] sm:$0xff] %v10595_v16 }
 0x528   :  { %v8825_v54 = vpop.eup %8824  ;;  %v11290_v17 = vld [vmem:[#allocation73_spill] sm:$0xff] }
 0x529   :  { %v4188_v25 = vmul.f32 %v8825_v54, %v8823_v22  ;;  %v8827_v9 = vpop.eup %8826  ;;  %v11271_v22 = vld [vmem:[#allocation28_spill] sm:$0xff]  ;;  %v11272_v54 = vld [vmem:[#allocation30_spill] sm:$0xff] }
 0x52a   :  { %4747 = vmatpush1.bf16.msra.mxu0 %v11259_v58  ;;  %4790 = vmatpush1.bf16.msra.mxu1 %v11260_v5  ;;  %v8829_v39 = vpop.eup %8828  ;;  %v4822_v59 = vunpack.c.l.bf16 %v11271_v22  ;;  %v11273_v5 = vld [vmem:[#allocation29_spill] sm:$0xff]  ;;  %v4826_v21 = vunpack.c.h.bf16 %v11271_v22  ;;  %v4828_v1 = vunpack.c.h.bf16 %v11272_v54 }
 0x52b   :  { %v4218_v43 = vsel %vm4216_vm3, %v4188_v25, 0.0  ;;  %v4189_v47 = vmul.f32 %v8829_v39, %v8827_v9  ;;  %5189 = vmatprep.subr.bf16.mxu0 %v10497_v10  ;;  %5232 = vmatprep.subr.bf16.mxu1 %v10499_v7  ;;  %v4823_v39 = vunpack.c.l.bf16 %v11273_v5 }
 0x52c   :  { %v7967_v28 = vpack.c.bf16 %v4218_v43, %v4218_v43  ;;  %v11274_v43 = vld [vmem:[#allocation31_spill] sm:$0xff] }
 0x52d   :  { %v4219_v23 = vsel %vm4217_vm7, %v4189_v47, 0.0  ;;  %v8028_v11 = vpack.c.bf16 %v4189_v47, %v4188_v25  ;;  %v4824_v25 = vunpack.c.l.bf16 %v11272_v54  ;;  %v4825_v47 = vunpack.c.l.bf16 %v11274_v43 }
 0x52e   :  { %4254 = vst [vmem:[#allocation15 + $0x44] sm:$0xf] %v7967_v28  ;;  %v7968_v56 = vpack.c.bf16 %v4219_v23, %v4219_v23 }
 0x52f   :  { %8029 = vmatmul.mubr.msk.bf16.vlgmr.msra.gmra.mrb[100].mxu0 %vm10487_vm6, %v8028_v11  ;;  %8032 = vmatmul.mubr.msk.bf16.vlgmr.msra.gmra.mrb[100].mxu1 %vm10487_vm6, %v8028_v11 }
 0x530   :  { %4255 = vst [vmem:[#allocation15 + $0x4c] sm:$0xf] %v7968_v56  ;;  %5221 = vmatprep.mubr.bf16.mxu0 %v11166_v33  ;;  %5264 = vmatprep.mubr.bf16.mxu1 %v11166_v33 }
 0x531   :  { %5190 = vmatpush1.bf16.msra.mxu0 %v10501_v29  ;;  %5233 = vmatpush1.bf16.msra.mxu1 %v10503_v52 }
 0x532   :  { %5191 = vmatprep.subr.bf16.mxu0 %v10509_v19  ;;  %5234 = vmatprep.subr.bf16.mxu1 %v10511_v30 }
 0x535   :  { %5192 = vmatpush1.bf16.msra.mxu0 %v10513_v37  ;;  %5235 = vmatpush1.bf16.msra.mxu1 %v10515_v44 }
 0x536   :  { %5193 = vmatprep.subr.bf16.mxu0 %v10521_v15  ;;  %5236 = vmatprep.subr.bf16.mxu1 %v10523_v62 }
 0x539   :  { %5194 = vmatpush1.bf16.msra.mxu0 %v10525_v13  ;;  %5237 = vmatpush1.bf16.msra.mxu1 %v10527_v41 }
 0x53a   :  { %5195 = vmatprep.subr.bf16.mxu0 %v10533_v2  ;;  %5238 = vmatprep.subr.bf16.mxu1 %v10535_v8 }
 0x53d   :  { %5196 = vmatpush1.bf16.msra.mxu0 %v10537_v14  ;;  %5239 = vmatpush1.bf16.msra.mxu1 %v10539_v40 }
 0x53e   :  { %5197 = vmatprep.subr.bf16.mxu0 %v10545_v53  ;;  %5240 = vmatprep.subr.bf16.mxu1 %v10547_v32 }
 0x541   :  { %5198 = vmatpush1.bf16.msra.mxu0 %v10549_v31  ;;  %5241 = vmatpush1.bf16.msra.mxu1 %v10551_v51 }
 0x542   :  { %5199 = vmatprep.subr.bf16.mxu0 %v10557_v49  ;;  %5242 = vmatprep.subr.bf16.mxu1 %v10559_v26 }
 0x545   :  { %5200 = vmatpush1.bf16.msra.mxu0 %v10561_v46  ;;  %5243 = vmatpush1.bf16.msra.mxu1 %v10563_v24 }
 0x546   :  { %5201 = vmatprep.subr.bf16.mxu0 %v10569_v18  ;;  %5244 = vmatprep.subr.bf16.mxu1 %v10571_v4 }
 0x549   :  { %5202 = vmatpush1.bf16.msra.mxu0 %v10573_v42  ;;  %5245 = vmatpush1.bf16.msra.mxu1 %v10575_v20 }
 0x54a   :  { %5203 = vmatprep.subr.bf16.mxu0 %v10581_v35  ;;  %5246 = vmatprep.subr.bf16.mxu1 %v10583_v50 }
 0x54d   :  { %5204 = vmatpush1.bf16.msra.mxu0 %v10585_v38  ;;  %5247 = vmatpush1.bf16.msra.mxu1 %v10587_v34  ;;  %v4829_v34 = vunpack.c.h.bf16 %v11274_v43 }
 0x54e   :  { %5470 = vmatprep.subr.bf16.mxu0 %v10593_v55  ;;  %5513 = vmatprep.subr.bf16.mxu1 %v10595_v16  ;;  %v4827_v55 = vunpack.c.h.bf16 %v11273_v5 }
 0x5e0   :  { %v4485_v9 = vpop.f32.mrb[96].mxu0  ;;  %v4528_v58 = vpop.f32.mrb[96].mxu1 }
 0x5e1   :  { %v4830_v28 = vadd.f32 %v4822_v59, %v4485_v9  ;;  %v4832_v23 = vadd.f32 %v4824_v25, %v4528_v58  ;;  %v4487_v11 = vpop.f32.mrb[97].mxu0  ;;  %v4530_v56 = vpop.f32.mrb[97].mxu1 }
 0x5e2   :  { %v4831_v48 = vadd.f32 %v4823_v39, %v4487_v11  ;;  %v4833_v27 = vadd.f32 %v4825_v47, %v4530_v56  ;;  %v4489_v61 = vpop.f32.mrb[98].mxu0  ;;  %v4532_v16 = vpop.f32.mrb[98].mxu1 }
 0x5e3   :  { %v7697_v38 = vmul.f32 -1.442695, %v4830_v28  ;;  %v4834_v50 = vadd.f32 %v4826_v21, %v4489_v61  ;;  %v4836_v35 = vadd.f32 %v4828_v1, %v4532_v16  ;;  %v4491_v20 = vpop.f32.mrb[99].mxu0  ;;  %v4534_v59 = vpop.f32.mrb[99].mxu1  ;;  %v7699_v54 = vmul.f32 -1.442695, %v4832_v23 }
 0x5e4   :  { %v7698_v25 = vmul.f32 -1.442695, %v4831_v48  ;;  %v4835_v9 = vadd.f32 %v4827_v55, %v4491_v20  ;;  %v4837_v58 = vadd.f32 %v4829_v34, %v4534_v59  ;;  %v4206_v16 = vsel %vm4202_vm1, %v10393_v60, 0.0 }
 0x5e5   :  { %8830 = vpow2.f32 %v7697_v38  ;;  %v7700_v22 = vmul.f32 -1.442695, %v4834_v50  ;;  %v7702_v39 = vmul.f32 -1.442695, %v4836_v35 }
 0x5e6   :  { %v7701_v42 = vmul.f32 -1.442695, %v4835_v9  ;;  %8832 = vpow2.f32 %v7698_v25  ;;  %v4207_v25 = vsel %vm4203_vm0, %v10400_v12, 0.0 }
 0x5e7   :  { %8834 = vpow2.f32 %v7700_v22 }
 0x5e8   :  { %8836 = vpow2.f32 %v7701_v42 }
 0x5e9   :  { %8838 = vtanh.f32 %v4833_v27 }
 0x5ea   :  { %8840 = vpow2.f32 %v7699_v54  ;;  %v11275_v54 = vld [vmem:[#allocation56_spill] sm:$0xff] }
 0x5eb   :  { %8842 = vpow2.f32 %v7702_v39  ;;  %v4842_v39 = vunpack.c.l.bf16 %v11275_v54 }
 0x5ef   :  { %v8831_v47 = vpop.eup %8830 }
 0x5f0   :  { %v4878_v5 = vadd.f32 1.0, %v8831_v47  ;;  %v8833_v43 = vpop.eup %8832  ;;  %v11276_v47 = vld [vmem:[#allocation58_spill] sm:$0xff] }
 0x5f1   :  { %v8835_v1 = vpop.eup %8834  ;;  %v4879_v21 = vadd.f32 1.0, %v8833_v43 }
 0x5f2   :  { %8844 = vrcp.f32 %v4878_v5  ;;  %v4881_v61 = vadd.f32 1.0, %v8835_v1  ;;  %v8837_v48 = vpop.eup %8836  ;;  %v4844_v5 = vunpack.c.l.bf16 %v11276_v47  ;;  %v11277_v1 = vld [vmem:[#allocation57_spill] sm:$0xff] }
 0x5f3   :  { %8846 = vtanh.f32 %v4837_v58  ;;  %v4882_v20 = vadd.f32 1.0, %v8837_v48  ;;  %v8839_v50 = vpop.eup %8838 }
 0x5f4   :  { %8848 = vrcp.f32 %v4879_v21  ;;  %v8841_v42 = vpop.eup %8840  ;;  %v4843_v21 = vunpack.c.l.bf16 %v11277_v1 }
 0x5f5   :  { %8850 = vrcp.f32 %v4881_v61  ;;  %v8843_v38 = vpop.eup %8842  ;;  %v4880_v28 = vadd.f32 1.0, %v8841_v42  ;;  %v11278_v61 = vld [vmem:[#allocation59_spill] sm:$0xff] }
 0x5f6   :  { %8852 = vrcp.f32 %v4882_v20  ;;  %v4883_v58 = vadd.f32 1.0, %v8843_v38  ;;  %v4845_v48 = vunpack.c.l.bf16 %v11278_v61 }
 0x5f7   :  { %8854 = vrcp.f32 %v4880_v28  ;;  %v4848_v28 = vunpack.c.h.bf16 %v11276_v47 }
 0x5fc   :  { %v8845_v35 = vpop.eup %8844 }
 0x5fd   :  { %v8847_v34 = vpop.eup %8846  ;;  %v4900_v27 = vmul.f32 %v8845_v35, %v8839_v50  ;;  %v4846_v35 = vunpack.c.h.bf16 %v11275_v54 }
 0x5fe   :  { %v8849_v55 = vpop.eup %8848 }
 0x5ff   :  { %v8851_v23 = vpop.eup %8850  ;;  %v4898_v11 = vmul.f32 %v8849_v55, %v4206_v16 }
 0x600   :  { %v4901_v56 = vmul.f32 %v8851_v23, %v8847_v34  ;;  %v8853_v59 = vpop.eup %8852 }
 0x601   :  { %v10613_v9 = vadd.f32 %v4900_v27, %v4898_v11  ;;  %v4899_v22 = vmul.f32 %v8853_v59, %v4207_v25  ;;  %v4849_v59 = vunpack.c.h.bf16 %v11278_v61  ;;  %v8855_v47 = vpop.eup %8854 }
 0x602   :  { %v4766_v60 = vpop.f32.mrb[100].mxu0  ;;  %v4809_v43 = vpop.f32.mrb[100].mxu1 }
 0x603   :  { %8856 = vtanh.f32 %v10613_v9  ;;  %v10620_v20 = vadd.f32 %v4901_v56, %v4899_v22  ;;  %v4850_v12 = vadd.f32 %v4842_v39, %v4766_v60  ;;  %v4852_v50 = vadd.f32 %v4844_v5, %v4809_v43  ;;  %v4768_v42 = vpop.f32.mrb[101].mxu0  ;;  %v4811_v38 = vpop.f32.mrb[101].mxu1 }
 0x604   :  { %8858 = vrcp.f32 %v4883_v58  ;;  %v4851_v34 = vadd.f32 %v4843_v21, %v4768_v42  ;;  %v4853_v27 = vadd.f32 %v4845_v48, %v4811_v38  ;;  %v4770_v55 = vpop.f32.mrb[102].mxu0  ;;  %v4813_v16 = vpop.f32.mrb[102].mxu1  ;;  %v4847_v56 = vunpack.c.h.bf16 %v11277_v1 }
 0x605   :  { %8860 = vtanh.f32 %v10620_v20  ;;  %v7703_v23 = vmul.f32 -1.442695, %v4850_v12  ;;  %v4772_v11 = vpop.f32.mrb[103].mxu0  ;;  %v4854_v22 = vadd.f32 %v4846_v35, %v4770_v55  ;;  %v4856_v39 = vadd.f32 %v4848_v28, %v4813_v16  ;;  %v4815_v5 = vpop.f32.mrb[103].mxu1  ;;  %v10629_v16 = vld [vmem:[#allocation13] ss:$16 sps:$4 sm:$0xff]  }
 0x606   :  { %v7704_v25 = vmul.f32 -1.442695, %v4851_v34  ;;  %v4855_v58 = vadd.f32 %v4847_v56, %v4772_v11  ;;  %v4857_v54 = vadd.f32 %v4849_v59, %v4815_v5  ;;  %v7705_v42 = vmul.f32 -1.442695, %v4852_v50  ;;  %v10631_v28 = vld [vmem:[#allocation13 + $0x8] ss:$16 sps:$4 sm:$0xff]  }
 0x607   :  { %8862 = vpow2.f32 %v7703_v23  ;;  %v7706_v60 = vmul.f32 -1.442695, %v4854_v22  ;;  %v7708_v38 = vmul.f32 -1.442695, %v4856_v39  ;;  %v10635_v56 = vld [vmem:[#allocation13 + $0x24] ss:$16 sps:$4 sm:$0xff]  }
 0x608   :  { %8864 = vpow2.f32 %v7704_v25  ;;  %v7707_v43 = vmul.f32 -1.442695, %v4855_v58  ;;  %v10637_v59 = vld [vmem:[#allocation13 + $0x2c] ss:$16 sps:$4 sm:$0xff]   ;;  %v10645_v58 = vld [vmem:[#allocation13 + $0x20] ss:$16 sps:$4 sm:$0xff]  }
 0x609   :  { %8866 = vpow2.f32 %v7706_v60  ;;  %v10647_v60 = vld [vmem:[#allocation13 + $0x28] ss:$16 sps:$4 sm:$0xff]  }
 0x60a   :  { %8868 = vpow2.f32 %v7707_v43 }
 0x60b   :  { %8870 = vtanh.f32 %v4853_v27 }
 0x60c   :  { %8872 = vpow2.f32 %v7705_v42  ;;  %v10667_v42 = vld [vmem:[#allocation13 + $0x6c] ss:$16 sps:$4 sm:$0xff]  }
 0x60d   :  { %v8857_v21 = vpop.eup %8856  ;;  %8874 = vpow2.f32 %v7708_v38  ;;  %11280 = vst [vmem:[#allocation27_spill] sm:$0xff] %v10667_v42 }
 0x60e   :  { %v4906_v48 = vmul.f32 %v8857_v21, %v8855_v47  ;;  %v8859_v12 = vpop.eup %8858  ;;  %v10651_v47 = vld [vmem:[#allocation13 + $0x44] ss:$16 sps:$4 sm:$0xff]   ;;  %v10659_v21 = vld [vmem:[#allocation13 + $0x40] ss:$16 sps:$4 sm:$0xff]  }
 0x60f   :  { %v8861_v1 = vpop.eup %8860 }
 0x610   :  { %v4958_v61 = vsel %vm4216_vm3, %v4906_v48, 0.0  ;;  %v4907_v35 = vmul.f32 %v8861_v1, %v8859_v12  ;;  %v10665_v12 = vld [vmem:[#allocation13 + $0x64] ss:$16 sps:$4 sm:$0xff]  }
 0x611   :  { %v7969_v34 = vpack.c.bf16 %v4958_v61, %v4958_v61  ;;  %v8863_v55 = vpop.eup %8862  ;;  %11279 = vst [vmem:[#allocation25_spill] sm:$0xff] %v10665_v12 }
 0x612   :  { %v4928_v23 = vadd.f32 1.0, %v8863_v55  ;;  %v4959_v11 = vsel %vm4217_vm7, %v4907_v35, 0.0  ;;  %v8034_v50 = vpack.c.bf16 %v4907_v35, %v4906_v48  ;;  %v8865_v25 = vpop.eup %8864  ;;  %v10661_v48 = vld [vmem:[#allocation13 + $0x48] ss:$16 sps:$4 sm:$0xff]   ;;  %v10671_v35 = vld [vmem:[#allocation13 + $0x60] ss:$16 sps:$4 sm:$0xff]  }
 0x613   :  { %4982 = vst [vmem:[#allocation15 + $0x40] sm:$0xf] %v7969_v34  ;;  %v7970_v22 = vpack.c.bf16 %v4959_v11, %v4959_v11  ;;  %v8867_v39 = vpop.eup %8866  ;;  %v4929_v27 = vadd.f32 1.0, %v8865_v25  ;;  %v10673_v34 = vld [vmem:[#allocation13 + $0x68] ss:$16 sps:$4 sm:$0xff]  }
 0x614   :  { %8876 = vrcp.f32 %v4928_v23  ;;  %8035 = vmatmul.mubr.msk.bf16.vlgmr.msra.gmra.mrb[104].mxu0 %vm10487_vm6, %v8034_v50  ;;  %8038 = vmatmul.mubr.msk.bf16.vlgmr.msra.gmra.mrb[104].mxu1 %vm10487_vm6, %v8034_v50  ;;  %v4931_v5 = vadd.f32 1.0, %v8867_v39  ;;  %v8869_v43 = vpop.eup %8868  ;;  %11281 = vst [vmem:[#allocation60_spill] sm:$0xff] %v10673_v34  ;;  %v10677_v23 = vld [vmem:[#allocation13 + $0x84] ss:$16 sps:$4 sm:$0xff]   ;;  %v10679_v11 = vld [vmem:[#allocation13 + $0x8c] ss:$16 sps:$4 sm:$0xff]  }
 0x615   :  { %8878 = vtanh.f32 %v4857_v54  ;;  %4983 = vst [vmem:[#allocation15 + $0x48] sm:$0xf] %v7970_v22  ;;  %5471 = vmatpush1.bf16.msra.mxu0 %v10629_v16  ;;  %5514 = vmatpush1.bf16.msra.mxu1 %v10631_v28  ;;  %v4932_v54 = vadd.f32 1.0, %v8869_v43  ;;  %v8871_v1 = vpop.eup %8870  ;;  %11282 = vst [vmem:[#allocation62_spill] sm:$0xff] %v10679_v11  ;;  %v4220_v39 = vsel %vm4216_vm3, %v10453_v45, 0.0 }
 0x616   :  { %8880 = vrcp.f32 %v4929_v27  ;;  %5472 = vmatprep.subr.bf16.mxu0 %v10635_v56  ;;  %5515 = vmatprep.subr.bf16.mxu1 %v10637_v59  ;;  %v8873_v38 = vpop.eup %8872 }
 0x617   :  { %8882 = vrcp.f32 %v4931_v5  ;;  %5502 = vmatprep.mubr.bf16.mxu0 %v11166_v33  ;;  %5545 = vmatprep.mubr.bf16.mxu1 %v11166_v33  ;;  %v8875_v61 = vpop.eup %8874  ;;  %v4930_v27 = vadd.f32 1.0, %v8873_v38  ;;  %v4221_v38 = vsel %vm4217_vm7, %v10458_v63, 0.0  ;;  %v10712_v63 = vld [vmem:[#allocation13 + $0xc4] ss:$16 sps:$4 sm:$0xff]  }
 0x618   :  { %8884 = vrcp.f32 %v4932_v54  ;;  %v10686_v54 = vld [vmem:[#allocation13 + $0x80] ss:$16 sps:$4 sm:$0xff]   ;;  %11285 = vst [vmem:[#allocation23_spill] sm:$0xff] %v10712_v63 }
 0x619   :  { %5473 = vmatpush1.bf16.msra.mxu0 %v10645_v58  ;;  %5516 = vmatpush1.bf16.msra.mxu1 %v10647_v60  ;;  %8886 = vrcp.f32 %v4930_v27  ;;  %v10721_v27 = vld [vmem:[#allocation13 + $0xc8] ss:$16 sps:$4 sm:$0xff]  }
 0x61a   :  { %5474 = vmatprep.subr.bf16.mxu0 %v10651_v47  ;;  %5517 = vmatprep.subr.bf16.mxu1 %v10653_v0  ;;  %11288 = vst [vmem:[#allocation65_spill] sm:$0xff] %v10721_v27 }
 0x61d   :  { %5475 = vmatpush1.bf16.msra.mxu0 %v10659_v21  ;;  %5518 = vmatpush1.bf16.msra.mxu1 %v10661_v48 }
 0x61e   :  { %v8877_v55 = vpop.eup %8876  ;;  %5476 = vmatprep.subr.bf16.mxu0 %v10665_v12  ;;  %5519 = vmatprep.subr.bf16.mxu1 %v10667_v42  ;;  %v10688_v42 = vld [vmem:[#allocation13 + $0x88] ss:$16 sps:$4 sm:$0xff]  }
 0x61f   :  { %v8879_v50 = vpop.eup %8878  ;;  %v4950_v25 = vmul.f32 %v8877_v55, %v8871_v1  ;;  %v10692_v1 = vld [vmem:[#allocation13 + $0xa4] ss:$16 sps:$4 sm:$0xff]   ;;  %v10694_v55 = vld [vmem:[#allocation13 + $0xac] ss:$16 sps:$4 sm:$0xff]  }
 0x620   :  { %v8881_v22 = vpop.eup %8880 }
 0x621   :  { %v8883_v5 = vpop.eup %8882  ;;  %v4948_v43 = vmul.f32 %v8881_v22, %v4220_v39  ;;  %5477 = vmatpush1.bf16.msra.mxu0 %v10671_v35  ;;  %5520 = vmatpush1.bf16.msra.mxu1 %v10673_v34  ;;  %v4933_v39 = vadd.f32 1.0, %v8875_v61  ;;  %v10714_v61 = vld [vmem:[#allocation13 + $0xcc] ss:$16 sps:$4 sm:$0xff]  }
 0x622   :  { %v4951_v12 = vmul.f32 %v8883_v5, %v8879_v50  ;;  %5478 = vmatprep.subr.bf16.mxu0 %v10677_v23  ;;  %5521 = vmatprep.subr.bf16.mxu1 %v10679_v11  ;;  %v8885_v45 = vpop.eup %8884  ;;  %v10704_v50 = vld [vmem:[#allocation13 + $0xa0] ss:$16 sps:$4 sm:$0xff]   ;;  %v10706_v5 = vld [vmem:[#allocation13 + $0xa8] ss:$16 sps:$4 sm:$0xff]   ;;  %11286 = vst [vmem:[#allocation64_spill] sm:$0xff] %v10714_v61 }
 0x623   :  { %v10699_v22 = vadd.f32 %v4950_v25, %v4948_v43  ;;  %v4949_v34 = vmul.f32 %v8885_v45, %v4221_v38  ;;  %11283 = vst [vmem:[#allocation61_spill] sm:$0xff] %v10704_v50  ;;  %11284 = vst [vmem:[#allocation63_spill] sm:$0xff] %v10706_v5  ;;  %v10719_v25 = vld [vmem:[#allocation13 + $0xc0] ss:$16 sps:$4 sm:$0xff]   ;;  %v10733_v45 = vld [vmem:[#allocation13 + $0xe8] ss:$16 sps:$4 sm:$0xff]   ;;  %v8887_v38 = vpop.eup %8886 }
 0x624   :  { %11287 = vst [vmem:[#allocation66_spill] sm:$0xff] %v10719_v25  ;;  %v10731_v43 = vld [vmem:[#allocation13 + $0xe0] ss:$16 sps:$4 sm:$0xff]  }
 0x625   :  { %8888 = vtanh.f32 %v10699_v22  ;;  %5479 = vmatpush1.bf16.msra.mxu0 %v10686_v54  ;;  %5522 = vmatpush1.bf16.msra.mxu1 %v10688_v42  ;;  %v10708_v11 = vadd.f32 %v4951_v12, %v4949_v34  ;;  %v10725_v12 = vld [vmem:[#allocation13 + $0xe4] ss:$16 sps:$4 sm:$0xff]   ;;  %v10727_v34 = vld [vmem:[#allocation13 + $0xec] ss:$16 sps:$4 sm:$0xff]  }
 0x626   :  { %5480 = vmatprep.subr.bf16.mxu0 %v10692_v1  ;;  %5523 = vmatprep.subr.bf16.mxu1 %v10694_v55  ;;  %8890 = vrcp.f32 %v4933_v39  ;;  %11289 = vst [vmem:[#allocation67_spill] sm:$0xff] %v10727_v34 }
 0x627   :  { %8892 = vtanh.f32 %v10708_v11 }
 0x629   :  { %5481 = vmatpush1.bf16.msra.mxu0 %v10704_v50  ;;  %5524 = vmatpush1.bf16.msra.mxu1 %v10706_v5 }
 0x62a   :  { %5482 = vmatprep.subr.bf16.mxu0 %v10712_v63  ;;  %5525 = vmatprep.subr.bf16.mxu1 %v10714_v61  ;;  %v11313_v6 = vld [vmem:[#allocation61_spill] sm:$0xff] }
 0x62d   :  { %5483 = vmatpush1.bf16.msra.mxu0 %v10719_v25  ;;  %5526 = vmatpush1.bf16.msra.mxu1 %v10721_v27 }
 0x62e   :  { %5484 = vmatprep.subr.bf16.mxu0 %v10725_v12  ;;  %5527 = vmatprep.subr.bf16.mxu1 %v10727_v34 }
 0x62f   :  { %v8889_v39 = vpop.eup %8888 }
 0x630   :  { %v4956_v63 = vmul.f32 %v8889_v39, %v8887_v38  ;;  %v8891_v61 = vpop.eup %8890 }
 0x631   :  { %5485 = vmatpush1.bf16.msra.mxu0 %v10731_v43  ;;  %5528 = vmatpush1.bf16.msra.mxu1 %v10733_v45  ;;  %v8893_v5 = vpop.eup %8892 }
 0x632   :  { %v4962_v27 = vsel %vm4202_vm1, %v4956_v63, 0.0  ;;  %5927 = vmatprep.subr.bf16.mxu0 %v10497_v10  ;;  %5970 = vmatprep.subr.bf16.mxu1 %v10499_v7  ;;  %v4957_v25 = vmul.f32 %v8893_v5, %v8891_v61  ;;  %v11291_v10 = vld [vmem:[#allocation74_spill] sm:$0xff]  ;;  %v11292_v7 = vld [vmem:[#allocation75_spill] sm:$0xff] }
 0x633   :  { %v7971_v50 = vpack.c.bf16 %v4962_v27, %v4962_v27 }
 0x634   :  { %v4963_v34 = vsel %vm4203_vm0, %v4957_v25, 0.0  ;;  %v8040_v38 = vpack.c.bf16 %v4957_v25, %v4956_v63 }
 0x635   :  { %4992 = vst [vmem:[#allocation15 + $0x34] sm:$0xf] %v7971_v50  ;;  %v7972_v39 = vpack.c.bf16 %v4963_v34, %v4963_v34 }
 0x636   :  { %8041 = vmatmul.mubr.msk.bf16.vlgmr.msra.gmra.mrb[108].mxu0 %vm10421_vm4, %v8040_v38  ;;  %8044 = vmatmul.mubr.msk.bf16.vlgmr.msra.gmra.mrb[108].mxu1 %vm10421_vm4, %v8040_v38 }
 0x637   :  { %4993 = vst [vmem:[#allocation15 + $0x3c] sm:$0xf] %v7972_v39  ;;  %5928 = vmatpush1.bf16.msra.mxu0 %v10501_v29  ;;  %5971 = vmatpush1.bf16.msra.mxu1 %v10503_v52  ;;  %v11293_v29 = vld [vmem:[#allocation76_spill] sm:$0xff]  ;;  %v11294_v52 = vld [vmem:[#allocation78_spill] sm:$0xff] }
 0x638   :  { %5929 = vmatprep.subr.bf16.mxu0 %v10509_v19  ;;  %5972 = vmatprep.subr.bf16.mxu1 %v10511_v30  ;;  %v11295_v19 = vld [vmem:[#allocation83_spill] sm:$0xff]  ;;  %v11296_v30 = vld [vmem:[#allocation24_spill] sm:$0xff] }
 0x639   :  { %5959 = vmatprep.mubr.bf16.mxu0 %v11166_v33  ;;  %6002 = vmatprep.mubr.bf16.mxu1 %v11166_v33 }
 0x63b   :  { %5930 = vmatpush1.bf16.msra.mxu0 %v10513_v37  ;;  %5973 = vmatpush1.bf16.msra.mxu1 %v10515_v44  ;;  %v11297_v37 = vld [vmem:[#allocation26_spill] sm:$0xff]  ;;  %v11298_v44 = vld [vmem:[#allocation32_spill] sm:$0xff] }
 0x63c   :  { %5931 = vmatprep.subr.bf16.mxu0 %v10521_v15  ;;  %5974 = vmatprep.subr.bf16.mxu1 %v10523_v62  ;;  %v5560_v15 = vunpack.c.l.bf16 %v11298_v44  ;;  %v11299_v62 = vld [vmem:[#allocation34_spill] sm:$0xff] }
 0x63f   :  { %5932 = vmatpush1.bf16.msra.mxu0 %v10525_v13  ;;  %5975 = vmatpush1.bf16.msra.mxu1 %v10527_v41  ;;  %v5562_v13 = vunpack.c.l.bf16 %v11299_v62 }
 0x640   :  { %5933 = vmatprep.subr.bf16.mxu0 %v10533_v2  ;;  %5976 = vmatprep.subr.bf16.mxu1 %v10535_v8  ;;  %v11300_v8 = vld [vmem:[#allocation33_spill] sm:$0xff] }
 0x641   :  { %v5565_v5 = vunpack.c.h.bf16 %v11300_v8 }
 0x643   :  { %5934 = vmatpush1.bf16.msra.mxu0 %v10537_v14  ;;  %5977 = vmatpush1.bf16.msra.mxu1 %v10539_v40  ;;  %v5561_v14 = vunpack.c.l.bf16 %v11300_v8  ;;  %v11301_v40 = vld [vmem:[#allocation35_spill] sm:$0xff] }
 0x644   :  { %5935 = vmatprep.subr.bf16.mxu0 %v10545_v53  ;;  %5978 = vmatprep.subr.bf16.mxu1 %v10547_v32  ;;  %v5563_v53 = vunpack.c.l.bf16 %v11301_v40  ;;  %v5567_v63 = vunpack.c.h.bf16 %v11301_v40 }
 0x647   :  { %5936 = vmatpush1.bf16.msra.mxu0 %v10549_v31  ;;  %5979 = vmatpush1.bf16.msra.mxu1 %v10551_v51 }
 0x648   :  { %5937 = vmatprep.subr.bf16.mxu0 %v10557_v49  ;;  %5980 = vmatprep.subr.bf16.mxu1 %v10559_v26  ;;  %v5564_v26 = vunpack.c.h.bf16 %v11298_v44 }
 0x64b   :  { %5938 = vmatpush1.bf16.msra.mxu0 %v10561_v46  ;;  %5981 = vmatpush1.bf16.msra.mxu1 %v10563_v24  ;;  %v5566_v46 = vunpack.c.h.bf16 %v11299_v62 }
 0x64c   :  { %5939 = vmatprep.subr.bf16.mxu0 %v10569_v18  ;;  %5982 = vmatprep.subr.bf16.mxu1 %v10571_v4 }
 0x64f   :  { %5940 = vmatpush1.bf16.msra.mxu0 %v11290_v17  ;;  %5983 = vmatpush1.bf16.msra.mxu1 %v11291_v10 }
 0x650   :  { %5941 = vmatprep.subr.bf16.mxu0 %v11292_v7  ;;  %5984 = vmatprep.subr.bf16.mxu1 %v11293_v29 }
 0x653   :  { %5942 = vmatpush1.bf16.msra.mxu0 %v11294_v52  ;;  %5985 = vmatpush1.bf16.msra.mxu1 %v11295_v19 }
 0x654   :  { %6208 = vmatprep.subr.bf16.mxu0 %v11296_v30  ;;  %6251 = vmatprep.subr.bf16.mxu1 %v11297_v37 }
 0x6e7   :  { %v5223_v41 = vpop.f32.mrb[104].mxu0  ;;  %v5266_v2 = vpop.f32.mrb[104].mxu1 }
 0x6e8   :  { %v5568_v32 = vadd.f32 %v5560_v15, %v5223_v41  ;;  %v5570_v31 = vadd.f32 %v5562_v13, %v5266_v2  ;;  %v5225_v51 = vpop.f32.mrb[105].mxu0  ;;  %v5268_v49 = vpop.f32.mrb[105].mxu1 }
 0x6e9   :  { %v5569_v24 = vadd.f32 %v5561_v14, %v5225_v51  ;;  %v5571_v18 = vadd.f32 %v5563_v53, %v5268_v49  ;;  %v5227_v4 = vpop.f32.mrb[106].mxu0  ;;  %v5270_v50 = vpop.f32.mrb[106].mxu1  ;;  %v4960_v49 = vsel %vm4216_vm3, %v10613_v9, 0.0 }
 0x6ea   :  { %v7777_v61 = vmul.f32 -1.442695, %v5568_v32  ;;  %v5572_v25 = vadd.f32 %v5564_v26, %v5227_v4  ;;  %v5574_v27 = vadd.f32 %v5566_v46, %v5270_v50  ;;  %v5229_v34 = vpop.f32.mrb[107].mxu0  ;;  %v5272_v38 = vpop.f32.mrb[107].mxu1  ;;  %v7779_v52 = vmul.f32 -1.442695, %v5570_v31 }
 0x6eb   :  { %v7778_v39 = vmul.f32 -1.442695, %v5569_v24  ;;  %v5573_v17 = vadd.f32 %v5565_v5, %v5229_v34  ;;  %v5575_v10 = vadd.f32 %v5567_v63, %v5272_v38  ;;  %v4961_v50 = vsel %vm4217_vm7, %v10620_v20, 0.0  ;;  %v11303_v34 = vld [vmem:[#allocation54_spill] sm:$0xff] }
 0x6ec   :  { %8894 = vpow2.f32 %v7777_v61  ;;  %v7780_v7 = vmul.f32 -1.442695, %v5572_v25  ;;  %v7782_v19 = vmul.f32 -1.442695, %v5574_v27  ;;  %v11302_v25 = vld [vmem:[#allocation52_spill] sm:$0xff]  ;;  %v5582_v38 = vunpack.c.l.bf16 %v11303_v34 }
 0x6ed   :  { %v7781_v29 = vmul.f32 -1.442695, %v5573_v17  ;;  %8896 = vpow2.f32 %v7778_v39  ;;  %v5580_v27 = vunpack.c.l.bf16 %v11302_v25  ;;  %v11304_v39 = vld [vmem:[#allocation53_spill] sm:$0xff] }
 0x6ee   :  { %8898 = vpow2.f32 %v7780_v7  ;;  %v5581_v17 = vunpack.c.l.bf16 %v11304_v39 }
 0x6ef   :  { %8900 = vpow2.f32 %v7781_v29 }
 0x6f0   :  { %8902 = vtanh.f32 %v5571_v18 }
 0x6f1   :  { %8904 = vpow2.f32 %v7779_v52 }
 0x6f2   :  { %8906 = vpow2.f32 %v7782_v19 }
 0x6f6   :  { %v8895_v30 = vpop.eup %8894 }
 0x6f7   :  { %v5616_v37 = vadd.f32 1.0, %v8895_v30  ;;  %v8897_v44 = vpop.eup %8896  ;;  %v5584_v30 = vunpack.c.h.bf16 %v11302_v25 }
 0x6f8   :  { %v8899_v15 = vpop.eup %8898  ;;  %v5617_v62 = vadd.f32 1.0, %v8897_v44 }
 0x6f9   :  { %8908 = vrcp.f32 %v5616_v37  ;;  %v5619_v13 = vadd.f32 1.0, %v8899_v15  ;;  %v8901_v41 = vpop.eup %8900 }
 0x6fa   :  { %8910 = vtanh.f32 %v5575_v10  ;;  %v5620_v2 = vadd.f32 1.0, %v8901_v41  ;;  %v8903_v8 = vpop.eup %8902  ;;  %v11305_v10 = vld [vmem:[#allocation55_spill] sm:$0xff] }
 0x6fb   :  { %8912 = vrcp.f32 %v5617_v62  ;;  %v8905_v14 = vpop.eup %8904  ;;  %v5583_v7 = vunpack.c.l.bf16 %v11305_v10 }
 0x6fc   :  { %8914 = vrcp.f32 %v5619_v13  ;;  %v8907_v40 = vpop.eup %8906  ;;  %v5618_v26 = vadd.f32 1.0, %v8905_v14  ;;  %v5586_v13 = vunpack.c.h.bf16 %v11303_v34  ;;  %v5587_v14 = vunpack.c.h.bf16 %v11305_v10 }
 0x6fd   :  { %8916 = vrcp.f32 %v5620_v2  ;;  %v5621_v63 = vadd.f32 1.0, %v8907_v40 }
 0x6fe   :  { %8918 = vrcp.f32 %v5618_v26 }
 0x703   :  { %v8909_v53 = vpop.eup %8908 }
 0x704   :  { %v8911_v32 = vpop.eup %8910  ;;  %v5638_v31 = vmul.f32 %v8909_v53, %v8903_v8  ;;  %v5585_v8 = vunpack.c.h.bf16 %v11304_v39 }
 0x705   :  { %v8913_v51 = vpop.eup %8912 }
 0x706   :  { %v8915_v46 = vpop.eup %8914  ;;  %v5636_v24 = vmul.f32 %v8913_v51, %v4960_v49 }
 0x707   :  { %v5639_v18 = vmul.f32 %v8915_v46, %v8911_v32  ;;  %v8917_v4 = vpop.eup %8916 }
 0x708   :  { %v10797_v5 = vadd.f32 %v5638_v31, %v5636_v24  ;;  %v5637_v61 = vmul.f32 %v8917_v4, %v4961_v50  ;;  %v8919_v24 = vpop.eup %8918 }
 0x709   :  { %v5504_v36 = vpop.f32.mrb[108].mxu0  ;;  %v5547_v9 = vpop.f32.mrb[108].mxu1 }
 0x70a   :  { %8920 = vtanh.f32 %v10797_v5  ;;  %v10804_v29 = vadd.f32 %v5639_v18, %v5637_v61  ;;  %v5588_v57 = vadd.f32 %v5580_v27, %v5504_v36  ;;  %v5590_v20 = vadd.f32 %v5582_v38, %v5547_v9  ;;  %v5506_v52 = vpop.f32.mrb[109].mxu0  ;;  %v5549_v19 = vpop.f32.mrb[109].mxu1 }
 0x70b   :  { %8922 = vrcp.f32 %v5621_v63  ;;  %v5589_v37 = vadd.f32 %v5581_v17, %v5506_v52  ;;  %v5591_v44 = vadd.f32 %v5583_v7, %v5549_v19  ;;  %v5508_v15 = vpop.f32.mrb[110].mxu0  ;;  %v5551_v62 = vpop.f32.mrb[110].mxu1 }
 0x70c   :  { %8924 = vtanh.f32 %v10804_v29  ;;  %v7783_v41 = vmul.f32 -1.442695, %v5588_v57  ;;  %v5510_v2 = vpop.f32.mrb[111].mxu0  ;;  %v5592_v53 = vadd.f32 %v5584_v30, %v5508_v15  ;;  %v5594_v32 = vadd.f32 %v5586_v13, %v5551_v62  ;;  %v5553_v31 = vpop.f32.mrb[111].mxu1  ;;  %v11309_v62 = vld [vmem:[#allocation25_spill] sm:$0xff]  ;;  %v11310_v13 = vld [vmem:[#allocation27_spill] sm:$0xff] }
 0x70d   :  { %v7784_v40 = vmul.f32 -1.442695, %v5589_v37  ;;  %v5593_v51 = vadd.f32 %v5585_v8, %v5510_v2  ;;  %v5595_v49 = vadd.f32 %v5587_v14, %v5553_v31  ;;  %v7785_v63 = vmul.f32 -1.442695, %v5590_v20  ;;  %v11312_v14 = vld [vmem:[#allocation62_spill] sm:$0xff]  ;;  %v11316_v31 = vld [vmem:[#allocation64_spill] sm:$0xff] }
 0x70e   :  { %8926 = vpow2.f32 %v7783_v41  ;;  %v7786_v26 = vmul.f32 -1.442695, %v5592_v53  ;;  %v7788_v25 = vmul.f32 -1.442695, %v5594_v32  ;;  %v4965_v53 = vsel %vm4203_vm0, %v10708_v11, 0.0  ;;  %v11315_v11 = vld [vmem:[#allocation23_spill] sm:$0xff] }
 0x70f   :  { %8928 = vpow2.f32 %v7784_v40  ;;  %v7787_v46 = vmul.f32 -1.442695, %v5593_v51  ;;  %v8498_v30 = vld [vmem:[#allocation12 + $0x64] ss:$16 sps:$4 sm:$0xff]  }
 0x710   :  { %8930 = vpow2.f32 %v7786_v26 }
 0x711   :  { %8932 = vpow2.f32 %v7787_v46 }
 0x712   :  { %8934 = vtanh.f32 %v5591_v44 }
 0x713   :  { %8936 = vpow2.f32 %v7785_v63  ;;  %v8565_v63 = vld [vmem:[#allocation13 + $0xc8] ss:$16 sps:$4 sm:$0xff]  }
 0x714   :  { %v8921_v18 = vpop.eup %8920  ;;  %8938 = vpow2.f32 %v7788_v25 }
 0x715   :  { %v5644_v4 = vmul.f32 %v8921_v18, %v8919_v24  ;;  %v8923_v50 = vpop.eup %8922 }
 0x716   :  { %v8925_v61 = vpop.eup %8924 }
 0x717   :  { %v5696_v34 = vsel %vm3442_vm15, %v5644_v4, 0.0  ;;  %v5645_v38 = vmul.f32 %v8925_v61, %v8923_v50 }
 0x718   :  { %v7973_v36 = vpack.c.bf16 %v5696_v34, %v5696_v34  ;;  %v8927_v9 = vpop.eup %8926 }
 0x719   :  { %v5666_v39 = vadd.f32 1.0, %v8927_v9  ;;  %v5697_v10 = vsel %vm3443_vm2, %v5645_v38, 0.0  ;;  %v8046_v7 = vpack.c.bf16 %v5645_v38, %v5644_v4  ;;  %v8929_v57 = vpop.eup %8928  ;;  %v8478_v38 = vld [vmem:[#allocation12] ss:$16 sps:$4 sm:$0xff]   ;;  %v8486_v9 = vld [vmem:[#allocation12 + $0x24] ss:$16 sps:$4 sm:$0xff]  }
 0x71a   :  { %5720 = vst [vmem:[#allocation15 + $0x50] sm:$0xf] %v7973_v36  ;;  %v7974_v52 = vpack.c.bf16 %v5697_v10, %v5697_v10  ;;  %v8931_v20 = vpop.eup %8930  ;;  %v5667_v19 = vadd.f32 1.0, %v8929_v57  ;;  %v8481_v36 = vld [vmem:[#allocation12 + $0x8] ss:$16 sps:$4 sm:$0xff]  }
 0x71b   :  { %8940 = vrcp.f32 %v5666_v39  ;;  %8047 = vmatmul.mubr.msk.bf16.vlgmr.msra.gmra.mrb[112].mxu0 %vm10337_vm5, %v8046_v7  ;;  %8050 = vmatmul.mubr.msk.bf16.vlgmr.msra.gmra.mrb[112].mxu1 %vm10337_vm5, %v8046_v7  ;;  %v5669_v37 = vadd.f32 1.0, %v8931_v20  ;;  %v8933_v44 = vpop.eup %8932  ;;  %v8489_v39 = vld [vmem:[#allocation12 + $0x2c] ss:$16 sps:$4 sm:$0xff]   ;;  %v8484_v10 = vld [vmem:[#allocation12 + $0x20] ss:$16 sps:$4 sm:$0xff]  }
 0x71c   :  { %8942 = vtanh.f32 %v5595_v49  ;;  %5721 = vst [vmem:[#allocation15 + $0x58] sm:$0xf] %v7974_v52  ;;  %6209 = vmatpush1.bf16.msra.mxu0 %v10629_v16  ;;  %6252 = vmatpush1.bf16.msra.mxu1 %v10631_v28  ;;  %v5670_v15 = vadd.f32 1.0, %v8933_v44  ;;  %v8935_v16 = vpop.eup %8934  ;;  %v8487_v7 = vld [vmem:[#allocation12 + $0x28] ss:$16 sps:$4 sm:$0xff]  }
 0x71d   :  { %8944 = vrcp.f32 %v5667_v19  ;;  %6210 = vmatprep.subr.bf16.mxu0 %v10635_v56  ;;  %6253 = vmatprep.subr.bf16.mxu1 %v10637_v59  ;;  %v8937_v28 = vpop.eup %8936  ;;  %v8492_v57 = vld [vmem:[#allocation12 + $0x44] ss:$16 sps:$4 sm:$0xff]   ;;  %v8495_v52 = vld [vmem:[#allocation12 + $0x4c] ss:$16 sps:$4 sm:$0xff]   ;;  %v8490_v20 = vld [vmem:[#allocation12 + $0x40] ss:$16 sps:$4 sm:$0xff]  }
 0x71e   :  { %8946 = vrcp.f32 %v5669_v37  ;;  %6240 = vmatprep.mubr.bf16.mxu0 %v11166_v33  ;;  %6283 = vmatprep.mubr.bf16.mxu1 %v11166_v33  ;;  %v8939_v56 = vpop.eup %8938  ;;  %v8493_v19 = vld [vmem:[#allocation12 + $0x48] ss:$16 sps:$4 sm:$0xff]   ;;  %v8501_v37 = vld [vmem:[#allocation12 + $0x6c] ss:$16 sps:$4 sm:$0xff]   ;;  %v8496_v44 = vld [vmem:[#allocation12 + $0x60] ss:$16 sps:$4 sm:$0xff]  }
 0x71f   :  { %8948 = vrcp.f32 %v5670_v15  ;;  %v5671_v3 = vadd.f32 1.0, %v8939_v56  ;;  %v8499_v15 = vld [vmem:[#allocation12 + $0x68] ss:$16 sps:$4 sm:$0xff]   ;;  %v8502_v56 = vld [vmem:[#allocation12 + $0x80] ss:$16 sps:$4 sm:$0xff]  }
 0x720   :  { %6211 = vmatpush1.bf16.msra.mxu0 %v10645_v58  ;;  %6254 = vmatpush1.bf16.msra.mxu1 %v10647_v60  ;;  %v4964_v60 = vsel %vm4202_vm1, %v10699_v22, 0.0 }
 0x721   :  { %6212 = vmatprep.subr.bf16.mxu0 %v10651_v47  ;;  %6255 = vmatprep.subr.bf16.mxu1 %v10653_v0  ;;  %v5668_v47 = vadd.f32 1.0, %v8937_v28  ;;  %v8507_v28 = vld [vmem:[#allocation12 + $0x8c] ss:$16 sps:$4 sm:$0xff]  }
 0x723   :  { %8950 = vrcp.f32 %v5668_v47  ;;  %v8514_v47 = vld [vmem:[#allocation12 + $0xc0] ss:$16 sps:$4 sm:$0xff]  }
 0x724   :  { %6213 = vmatpush1.bf16.msra.mxu0 %v10659_v21  ;;  %6256 = vmatpush1.bf16.msra.mxu1 %v10661_v48  ;;  %v11311_v21 = vld [vmem:[#allocation60_spill] sm:$0xff] }
 0x725   :  { %v8941_v59 = vpop.eup %8940  ;;  %6214 = vmatprep.subr.bf16.mxu0 %v11309_v62  ;;  %6257 = vmatprep.subr.bf16.mxu1 %v11310_v13  ;;  %v8510_v62 = vld [vmem:[#allocation12 + $0xa4] ss:$16 sps:$4 sm:$0xff]   ;;  %v8513_v13 = vld [vmem:[#allocation12 + $0xac] ss:$16 sps:$4 sm:$0xff]  }
 0x726   :  { %v8943_v41 = vpop.eup %8942  ;;  %v5688_v58 = vmul.f32 %v8941_v59, %v8935_v16  ;;  %v8504_v16 = vld [vmem:[#allocation12 + $0x84] ss:$16 sps:$4 sm:$0xff]   ;;  %v8505_v59 = vld [vmem:[#allocation12 + $0x88] ss:$16 sps:$4 sm:$0xff]  }
 0x727   :  { %v8945_v2 = vpop.eup %8944 }
 0x728   :  { %v8947_v0 = vpop.eup %8946  ;;  %v5686_v8 = vmul.f32 %v8945_v2, %v4964_v60  ;;  %6215 = vmatpush1.bf16.msra.mxu0 %v10671_v35  ;;  %6258 = vmatpush1.bf16.msra.mxu1 %v11311_v21  ;;  %v8516_v2 = vld [vmem:[#allocation12 + $0xc4] ss:$16 sps:$4 sm:$0xff]   ;;  %v8519_v60 = vld [vmem:[#allocation12 + $0xcc] ss:$16 sps:$4 sm:$0xff]  }
 0x729   :  { %v5689_v48 = vmul.f32 %v8947_v0, %v8943_v41  ;;  %6216 = vmatprep.subr.bf16.mxu0 %v10677_v23  ;;  %6259 = vmatprep.subr.bf16.mxu1 %v11312_v14  ;;  %v8949_v40 = vpop.eup %8948  ;;  %v11314_v23 = vld [vmem:[#allocation63_spill] sm:$0xff]  ;;  %v8508_v41 = vld [vmem:[#allocation12 + $0xa0] ss:$16 sps:$4 sm:$0xff]  }
 0x72a   :  { %v10843_v32 = vadd.f32 %v5688_v58, %v5686_v8  ;;  %v5687_v22 = vmul.f32 %v8949_v40, %v4965_v53  ;;  %v8511_v58 = vld [vmem:[#allocation12 + $0xa8] ss:$16 sps:$4 sm:$0xff]   ;;  %v8522_v8 = vld [vmem:[#allocation12 + $0xe4] ss:$16 sps:$4 sm:$0xff]   ;;  %v8525_v21 = vld [vmem:[#allocation12 + $0xec] ss:$16 sps:$4 sm:$0xff]  }
 0x72b   :  { %v8517_v0 = vld [vmem:[#allocation12 + $0xc8] ss:$16 sps:$4 sm:$0xff]   ;;  %v8528_v40 = vld [vmem:[#allocation13 + $0x4] ss:$16 sps:$4 sm:$0xff]   ;;  %v8531_v53 = vld [vmem:[#allocation13 + $0xc] ss:$16 sps:$4 sm:$0xff]  }
 0x72c   :  { %8952 = vtanh.f32 %v10843_v32  ;;  %6217 = vmatpush1.bf16.msra.mxu0 %v10686_v54  ;;  %6260 = vmatpush1.bf16.msra.mxu1 %v10688_v42  ;;  %v10848_v35 = vadd.f32 %v5689_v48, %v5687_v22  ;;  %v11317_v54 = vld [vmem:[#allocation66_spill] sm:$0xff]  ;;  %v11318_v42 = vld [vmem:[#allocation65_spill] sm:$0xff] }
 0x72d   :  { %6218 = vmatprep.subr.bf16.mxu0 %v10692_v1  ;;  %6261 = vmatprep.subr.bf16.mxu1 %v10694_v55  ;;  %8954 = vrcp.f32 %v5671_v3  ;;  %v8951_v51 = vpop.eup %8950  ;;  %v11319_v1 = vld [vmem:[#allocation67_spill] sm:$0xff]  ;;  %v8520_v48 = vld [vmem:[#allocation12 + $0xe0] ss:$16 sps:$4 sm:$0xff]  }
 0x72e   :  { %8956 = vtanh.f32 %v10848_v35  ;;  %v8523_v14 = vld [vmem:[#allocation12 + $0xe8] ss:$16 sps:$4 sm:$0xff]   ;;  %v11323_v3 = vld [vmem:[#allocation36_spill] sm:$0xff] }
 0x72f   :  { %v6298_v22 = vunpack.c.l.bf16 %v11323_v3 }
 0x730   :  { %6219 = vmatpush1.bf16.msra.mxu0 %v11313_v6  ;;  %6262 = vmatpush1.bf16.msra.mxu1 %v11314_v23  ;;  %v11324_v6 = vld [vmem:[#allocation38_spill] sm:$0xff] }
 0x731   :  { %6220 = vmatprep.subr.bf16.mxu0 %v11315_v11  ;;  %6263 = vmatprep.subr.bf16.mxu1 %v11316_v31  ;;  %v6300_v23 = vunpack.c.l.bf16 %v11324_v6 }
 0x734   :  { %6221 = vmatpush1.bf16.msra.mxu0 %v11317_v54  ;;  %6264 = vmatpush1.bf16.msra.mxu1 %v11318_v42  ;;  %v11325_v54 = vld [vmem:[#allocation37_spill] sm:$0xff] }
 0x735   :  { %6222 = vmatprep.subr.bf16.mxu0 %v10725_v12  ;;  %6265 = vmatprep.subr.bf16.mxu1 %v11319_v1  ;;  %v6299_v42 = vunpack.c.l.bf16 %v11325_v54  ;;  %v6303_v34 = vunpack.c.h.bf16 %v11325_v54  ;;  %v11328_v54 = vld [vmem:[#allocation50_spill] sm:$0xff] }
 0x736   :  { %v8953_v55 = vpop.eup %8952 }
 0x737   :  { %v5694_v49 = vmul.f32 %v8953_v55, %v8951_v51  ;;  %v8955_v26 = vpop.eup %8954  ;;  %v11326_v51 = vld [vmem:[#allocation39_spill] sm:$0xff] }
 0x738   :  { %6223 = vmatpush1.bf16.msra.mxu0 %v10731_v43  ;;  %6266 = vmatpush1.bf16.msra.mxu1 %v10733_v45  ;;  %v8957_v46 = vpop.eup %8956  ;;  %v8480_v43 = vld [vmem:[#allocation12 + $0x4] ss:$16 sps:$4 sm:$0xff]   ;;  %v8483_v45 = vld [vmem:[#allocation12 + $0xc] ss:$16 sps:$4 sm:$0xff]   ;;  %v6301_v1 = vunpack.c.l.bf16 %v11326_v51 }
 0x739   :  { %v5700_v18 = vsel %vm3428_vm12, %v5694_v49, 0.0  ;;  %v5695_v4 = vmul.f32 %v8957_v46, %v8955_v26  ;;  %6665 = vmatprep.subr.bf16.mxu0 %v8480_v43  ;;  %6708 = vmatprep.subr.bf16.mxu1 %v8483_v45  ;;  %v6305_v43 = vunpack.c.h.bf16 %v11326_v51  ;;  %v11329_v51 = vld [vmem:[#allocation49_spill] sm:$0xff] }
 0x73a   :  { %v7975_v50 = vpack.c.bf16 %v5700_v18, %v5700_v18  ;;  %v6302_v18 = vunpack.c.h.bf16 %v11323_v3  ;;  %v5699_v3 = vsel %vm3443_vm2, %v10804_v29, 0.0 }
 0x73b   :  { %v5701_v61 = vsel %vm3429_vm13, %v5695_v4, 0.0  ;;  %v8052_v12 = vpack.c.bf16 %v5695_v4, %v5694_v49  ;;  %v6304_v4 = vunpack.c.h.bf16 %v11324_v6 }
 0x73c   :  { %5730 = vst [vmem:[#allocation15 + $0x24] sm:$0xf] %v7975_v50  ;;  %v7976_v25 = vpack.c.bf16 %v5701_v61, %v5701_v61 }
 0x73d   :  { %8053 = vmatmul.mubr.msk.bf16.vlgmr.msra.gmra.mrb[116].mxu0 %vm10217_vm14, %v8052_v12  ;;  %8056 = vmatmul.mubr.msk.bf16.vlgmr.msra.gmra.mrb[116].mxu1 %vm10217_vm14, %v8052_v12 }
 0x73e   :  { %5731 = vst [vmem:[#allocation15 + $0x2c] sm:$0xf] %v7976_v25  ;;  %6697 = vmatprep.mubr.bf16.mxu0 %v11166_v33  ;;  %6740 = vmatprep.mubr.bf16.mxu1 %v11166_v33 }
 0x73f   :  { %6666 = vmatpush1.bf16.msra.mxu0 %v8478_v38  ;;  %6709 = vmatpush1.bf16.msra.mxu1 %v8481_v36 }
 0x740   :  { %6667 = vmatprep.subr.bf16.mxu0 %v8486_v9  ;;  %6710 = vmatprep.subr.bf16.mxu1 %v8489_v39 }
 0x743   :  { %6668 = vmatpush1.bf16.msra.mxu0 %v8484_v10  ;;  %6711 = vmatpush1.bf16.msra.mxu1 %v8487_v7 }
 0x744   :  { %6669 = vmatprep.subr.bf16.mxu0 %v8492_v57  ;;  %6712 = vmatprep.subr.bf16.mxu1 %v8495_v52 }
 0x747   :  { %6670 = vmatpush1.bf16.msra.mxu0 %v8490_v20  ;;  %6713 = vmatpush1.bf16.msra.mxu1 %v8493_v19 }
 0x748   :  { %6671 = vmatprep.subr.bf16.mxu0 %v8498_v30  ;;  %6714 = vmatprep.subr.bf16.mxu1 %v8501_v37 }
 0x74b   :  { %6672 = vmatpush1.bf16.msra.mxu0 %v8496_v44  ;;  %6715 = vmatpush1.bf16.msra.mxu1 %v8499_v15 }
 0x74c   :  { %6673 = vmatprep.subr.bf16.mxu0 %v8504_v16  ;;  %6716 = vmatprep.subr.bf16.mxu1 %v8507_v28 }
 0x74f   :  { %6674 = vmatpush1.bf16.msra.mxu0 %v8502_v56  ;;  %6717 = vmatpush1.bf16.msra.mxu1 %v8505_v59 }
 0x750   :  { %6675 = vmatprep.subr.bf16.mxu0 %v8510_v62  ;;  %6718 = vmatprep.subr.bf16.mxu1 %v8513_v13 }
 0x753   :  { %6676 = vmatpush1.bf16.msra.mxu0 %v8508_v41  ;;  %6719 = vmatpush1.bf16.msra.mxu1 %v8511_v58 }
 0x754   :  { %6677 = vmatprep.subr.bf16.mxu0 %v8516_v2  ;;  %6720 = vmatprep.subr.bf16.mxu1 %v8519_v60 }
 0x757   :  { %6678 = vmatpush1.bf16.msra.mxu0 %v8514_v47  ;;  %6721 = vmatpush1.bf16.msra.mxu1 %v8517_v0 }
 0x758   :  { %6679 = vmatprep.subr.bf16.mxu0 %v8522_v8  ;;  %6722 = vmatprep.subr.bf16.mxu1 %v8525_v21  ;;  %v5698_v8 = vsel %vm3442_vm15, %v10797_v5, 0.0 }
 0x75b   :  { %6680 = vmatpush1.bf16.msra.mxu0 %v8520_v48  ;;  %6723 = vmatpush1.bf16.msra.mxu1 %v8523_v14 }
 0x75c   :  { %6946 = vmatprep.subr.bf16.mxu0 %v8528_v40  ;;  %6989 = vmatprep.subr.bf16.mxu1 %v8531_v53 }
 0x7ee   :  { %v5961_v11 = vpop.f32.mrb[112].mxu0  ;;  %v6004_v31 = vpop.f32.mrb[112].mxu1 }
 0x7ef   :  { %v6306_v55 = vadd.f32 %v6298_v22, %v5961_v11  ;;  %v6308_v49 = vadd.f32 %v6300_v23, %v6004_v31  ;;  %v5963_v26 = vpop.f32.mrb[113].mxu0  ;;  %v6006_v46 = vpop.f32.mrb[113].mxu1  ;;  %v11327_v11 = vld [vmem:[#allocation48_spill] sm:$0xff] }
 0x7f0   :  { %v6307_v50 = vadd.f32 %v6299_v42, %v5963_v26  ;;  %v6309_v61 = vadd.f32 %v6301_v1, %v6006_v46  ;;  %v5965_v12 = vpop.f32.mrb[114].mxu0  ;;  %v6008_v25 = vpop.f32.mrb[114].mxu1  ;;  %v6318_v31 = vunpack.c.l.bf16 %v11327_v11  ;;  %v6320_v42 = vunpack.c.l.bf16 %v11328_v54 }
 0x7f1   :  { %v7857_v45 = vmul.f32 -1.442695, %v6306_v55  ;;  %v6310_v38 = vadd.f32 %v6302_v18, %v5965_v12  ;;  %v6312_v36 = vadd.f32 %v6304_v4, %v6008_v25  ;;  %v5967_v9 = vpop.f32.mrb[115].mxu0  ;;  %v6010_v39 = vpop.f32.mrb[115].mxu1  ;;  %v7859_v19 = vmul.f32 -1.442695, %v6308_v49 }
 0x7f2   :  { %v7858_v10 = vmul.f32 -1.442695, %v6307_v50  ;;  %v6311_v7 = vadd.f32 %v6303_v34, %v5967_v9  ;;  %v6313_v57 = vadd.f32 %v6305_v43, %v6010_v39  ;;  %v6319_v1 = vunpack.c.l.bf16 %v11329_v51  ;;  %v11330_v55 = vld [vmem:[#allocation51_spill] sm:$0xff] }
 0x7f3   :  { %8958 = vpow2.f32 %v7857_v45  ;;  %v7860_v52 = vmul.f32 -1.442695, %v6310_v38  ;;  %v7862_v30 = vmul.f32 -1.442695, %v6312_v36  ;;  %v6321_v49 = vunpack.c.l.bf16 %v11330_v55 }
 0x7f4   :  { %v7861_v20 = vmul.f32 -1.442695, %v6311_v7  ;;  %8960 = vpow2.f32 %v7858_v10  ;;  %v6322_v4 = vunpack.c.h.bf16 %v11327_v11  ;;  %v6324_v34 = vunpack.c.h.bf16 %v11328_v54  ;;  %v8535_v54 = vld [vmem:[#allocation13 + $0x28] ss:$16 sps:$4 sm:$0xff]  }
 0x7f5   :  { %8962 = vpow2.f32 %v7860_v52  ;;  %v6323_v38 = vunpack.c.h.bf16 %v11329_v51  ;;  %v6325_v36 = vunpack.c.h.bf16 %v11330_v55  ;;  %v8541_v55 = vld [vmem:[#allocation13 + $0x48] ss:$16 sps:$4 sm:$0xff]  }
 0x7f6   :  { %8964 = vpow2.f32 %v7861_v20 }
 0x7f7   :  { %8966 = vtanh.f32 %v6309_v61 }
 0x7f8   :  { %8968 = vpow2.f32 %v7859_v19 }
 0x7f9   :  { %8970 = vpow2.f32 %v7862_v30 }
 0x7fd   :  { %v8959_v37 = vpop.eup %8958 }
 0x7fe   :  { %v6354_v44 = vadd.f32 1.0, %v8959_v37  ;;  %v8961_v15 = vpop.eup %8960 }
 0x7ff   :  { %v8963_v16 = vpop.eup %8962  ;;  %v6355_v28 = vadd.f32 1.0, %v8961_v15 }
 0x800   :  { %8972 = vrcp.f32 %v6354_v44  ;;  %v6357_v56 = vadd.f32 1.0, %v8963_v16  ;;  %v8965_v59 = vpop.eup %8964 }
 0x801   :  { %8974 = vtanh.f32 %v6313_v57  ;;  %v6358_v62 = vadd.f32 1.0, %v8965_v59  ;;  %v8967_v13 = vpop.eup %8966 }
 0x802   :  { %8976 = vrcp.f32 %v6355_v28  ;;  %v8969_v41 = vpop.eup %8968 }
 0x803   :  { %8978 = vrcp.f32 %v6357_v56  ;;  %v8971_v58 = vpop.eup %8970  ;;  %v6356_v21 = vadd.f32 1.0, %v8969_v41 }
 0x804   :  { %8980 = vrcp.f32 %v6358_v62  ;;  %v6359_v6 = vadd.f32 1.0, %v8971_v58 }
 0x805   :  { %8982 = vrcp.f32 %v6356_v21 }
 0x80a   :  { %v8973_v2 = vpop.eup %8972 }
 0x80b   :  { %v8975_v60 = vpop.eup %8974  ;;  %v6376_v47 = vmul.f32 %v8973_v2, %v8967_v13  ;;  %v8526_v2 = vld [vmem:[#allocation13] ss:$16 sps:$4 sm:$0xff]  }
 0x80c   :  { %v8977_v0 = vpop.eup %8976 }
 0x80d   :  { %v8979_v48 = vpop.eup %8978  ;;  %v6374_v14 = vmul.f32 %v8977_v0, %v5698_v8 }
 0x80e   :  { %v6377_v40 = vmul.f32 %v8979_v48, %v8975_v60  ;;  %v8981_v53 = vpop.eup %8980  ;;  %v8529_v60 = vld [vmem:[#allocation13 + $0x8] ss:$16 sps:$4 sm:$0xff]   ;;  %v8534_v48 = vld [vmem:[#allocation13 + $0x24] ss:$16 sps:$4 sm:$0xff]  }
 0x80f   :  { %v10887_v22 = vadd.f32 %v6376_v47, %v6374_v14  ;;  %v6375_v23 = vmul.f32 %v8981_v53, %v5699_v3  ;;  %v8983_v30 = vpop.eup %8982  ;;  %v8537_v14 = vld [vmem:[#allocation13 + $0x2c] ss:$16 sps:$4 sm:$0xff]  }
 0x810   :  { %v6242_v5 = vpop.f32.mrb[116].mxu0  ;;  %v6285_v27 = vpop.f32.mrb[116].mxu1 }
 0x811   :  { %8984 = vtanh.f32 %v10887_v22  ;;  %v10894_v26 = vadd.f32 %v6377_v40, %v6375_v23  ;;  %v6326_v29 = vadd.f32 %v6318_v31, %v6242_v5  ;;  %v6328_v17 = vadd.f32 %v6320_v42, %v6285_v27  ;;  %v6244_v46 = vpop.f32.mrb[117].mxu0  ;;  %v6287_v18 = vpop.f32.mrb[117].mxu1  ;;  %v8532_v31 = vld [vmem:[#allocation13 + $0x20] ss:$16 sps:$4 sm:$0xff]   ;;  %v8540_v5 = vld [vmem:[#allocation13 + $0x44] ss:$16 sps:$4 sm:$0xff]  }
 0x812   :  { %8986 = vrcp.f32 %v6359_v6  ;;  %v6327_v50 = vadd.f32 %v6319_v1, %v6244_v46  ;;  %v6329_v61 = vadd.f32 %v6321_v49, %v6287_v18  ;;  %v6246_v12 = vpop.f32.mrb[118].mxu0  ;;  %v6289_v25 = vpop.f32.mrb[118].mxu1  ;;  %v8543_v27 = vld [vmem:[#allocation13 + $0x4c] ss:$16 sps:$4 sm:$0xff]   ;;  %v8538_v1 = vld [vmem:[#allocation13 + $0x40] ss:$16 sps:$4 sm:$0xff]  }
 0x813   :  { %8988 = vtanh.f32 %v10894_v26  ;;  %v7863_v43 = vmul.f32 -1.442695, %v6326_v29  ;;  %v6248_v45 = vpop.f32.mrb[119].mxu0  ;;  %v6330_v39 = vadd.f32 %v6322_v4, %v6246_v12  ;;  %v6332_v10 = vadd.f32 %v6324_v34, %v6289_v25  ;;  %v6291_v7 = vpop.f32.mrb[119].mxu1  ;;  %v8546_v49 = vld [vmem:[#allocation13 + $0x64] ss:$16 sps:$4 sm:$0xff]  }
 0x814   :  { %v7864_v9 = vmul.f32 -1.442695, %v6327_v50  ;;  %v6331_v57 = vadd.f32 %v6323_v38, %v6248_v45  ;;  %v6333_v52 = vadd.f32 %v6325_v36, %v6291_v7  ;;  %v7865_v16 = vmul.f32 -1.442695, %v6328_v17  ;;  %v8549_v29 = vld [vmem:[#allocation13 + $0x6c] ss:$16 sps:$4 sm:$0xff]  }
 0x815   :  { %8990 = vpow2.f32 %v7863_v43  ;;  %v7866_v20 = vmul.f32 -1.442695, %v6330_v39  ;;  %v7868_v56 = vmul.f32 -1.442695, %v6332_v10  ;;  %v8544_v4 = vld [vmem:[#allocation13 + $0x60] ss:$16 sps:$4 sm:$0xff]  }
 0x816   :  { %8992 = vpow2.f32 %v7864_v9  ;;  %v7867_v19 = vmul.f32 -1.442695, %v6331_v57  ;;  %v8547_v50 = vld [vmem:[#allocation13 + $0x68] ss:$16 sps:$4 sm:$0xff]   ;;  %v8555_v12 = vld [vmem:[#allocation13 + $0x8c] ss:$16 sps:$4 sm:$0xff]  }
 0x817   :  { %8994 = vpow2.f32 %v7866_v20  ;;  %v5702_v45 = vsel %vm3428_vm12, %v10843_v32, 0.0  ;;  %v8550_v39 = vld [vmem:[#allocation13 + $0x80] ss:$16 sps:$4 sm:$0xff]   ;;  %v8553_v10 = vld [vmem:[#allocation13 + $0x88] ss:$16 sps:$4 sm:$0xff]  }
 0x818   :  { %8996 = vpow2.f32 %v7867_v19  ;;  %v8558_v57 = vld [vmem:[#allocation13 + $0xa4] ss:$16 sps:$4 sm:$0xff]   ;;  %v5703_v19 = vsel %vm3429_vm13, %v10848_v35, 0.0  ;;  %v8562_v35 = vld [vmem:[#allocation13 + $0xc0] ss:$16 sps:$4 sm:$0xff]  }
 0x819   :  { %8998 = vtanh.f32 %v6329_v61 }
 0x81a   :  { %9000 = vpow2.f32 %v7865_v16  ;;  %v8564_v16 = vld [vmem:[#allocation13 + $0xc4] ss:$16 sps:$4 sm:$0xff]  }
 0x81b   :  { %v8985_v37 = vpop.eup %8984  ;;  %9002 = vpow2.f32 %v7868_v56  ;;  %v8570_v56 = vld [vmem:[#allocation13 + $0xe4] ss:$16 sps:$4 sm:$0xff]  }
 0x81c   :  { %v6382_v44 = vmul.f32 %v8985_v37, %v8983_v30  ;;  %v8987_v15 = vpop.eup %8986  ;;  %v8556_v37 = vld [vmem:[#allocation13 + $0xa0] ss:$16 sps:$4 sm:$0xff]  }
 0x81d   :  { %v8989_v28 = vpop.eup %8988 }
 0x81e   :  { %v6434_v62 = vsel %vm2668_vm9, %v6382_v44, 0.0  ;;  %v6383_v13 = vmul.f32 %v8989_v28, %v8987_v15  ;;  %v8567_v28 = vld [vmem:[#allocation13 + $0xcc] ss:$16 sps:$4 sm:$0xff]  }
 0x81f   :  { %v7977_v41 = vpack.c.bf16 %v6434_v62, %v6434_v62  ;;  %v8991_v58 = vpop.eup %8990  ;;  %v8573_v62 = vld [vmem:[#allocation13 + $0xec] ss:$16 sps:$4 sm:$0xff]  }
 0x820   :  { %v6404_v47 = vadd.f32 1.0, %v8991_v58  ;;  %v6435_v8 = vsel %vm2669_vm10, %v6383_v13, 0.0  ;;  %v8058_v21 = vpack.c.bf16 %v6383_v13, %v6382_v44  ;;  %v8993_v40 = vpop.eup %8992  ;;  %v8559_v44 = vld [vmem:[#allocation13 + $0xa8] ss:$16 sps:$4 sm:$0xff]   ;;  %v8568_v13 = vld [vmem:[#allocation13 + $0xe0] ss:$16 sps:$4 sm:$0xff]  }
 0x821   :  { %6458 = vst [vmem:[#allocation15 + $0x60] sm:$0xf] %v7977_v41  ;;  %v7978_v53 = vpack.c.bf16 %v6435_v8, %v6435_v8  ;;  %v8995_v3 = vpop.eup %8994  ;;  %v6405_v6 = vadd.f32 1.0, %v8993_v40  ;;  %v8571_v41 = vld [vmem:[#allocation13 + $0xe8] ss:$16 sps:$4 sm:$0xff]  }
 0x822   :  { %9004 = vrcp.f32 %v6404_v47  ;;  %8059 = vmatmul.mubr.msk.bf16.vlgmr.msra.gmra.mrb[120].mxu0 %vm10055_vm11, %v8058_v21  ;;  %8062 = vmatmul.mubr.msk.bf16.vlgmr.msra.gmra.mrb[120].mxu1 %vm10055_vm11, %v8058_v21  ;;  %v6407_v11 = vadd.f32 1.0, %v8995_v3  ;;  %v8997_v42 = vpop.eup %8996  ;;  %v11334_v21 = vld [vmem:[#allocation80_spill] sm:$0xff] }
 0x823   :  { %9006 = vtanh.f32 %v6333_v52  ;;  %6459 = vst [vmem:[#allocation15 + $0x68] sm:$0xf] %v7978_v53  ;;  %6947 = vmatpush1.bf16.msra.mxu0 %v8526_v2  ;;  %6990 = vmatpush1.bf16.msra.mxu1 %v8529_v60  ;;  %v6408_v51 = vadd.f32 1.0, %v8997_v42  ;;  %v8999_v17 = vpop.eup %8998  ;;  %v8561_v52 = vld [vmem:[#allocation13 + $0xac] ss:$16 sps:$4 sm:$0xff]   ;;  %vm11335_vm0 = vcmp.eq.s32.totalorder %v11334_v21, 1 }
 0x824   :  { %9008 = vrcp.f32 %v6405_v6  ;;  %6948 = vmatprep.subr.bf16.mxu0 %v8534_v48  ;;  %6991 = vmatprep.subr.bf16.mxu1 %v8537_v14  ;;  %v9001_v46 = vpop.eup %9000  ;;  %v11336_v53 = vld [vmem:[#allocation81_spill] sm:$0xff]  ;;  %v11340_v42 = vld [vmem:[#allocation42_spill] sm:$0xff]  ;;  %vm11351_vm6 = vmmov %vm11335_vm0 }
 0x825   :  { %9010 = vrcp.f32 %v6407_v11  ;;  %6978 = vmatprep.mubr.bf16.mxu0 %v11166_v33  ;;  %7021 = vmatprep.mubr.bf16.mxu1 %v11166_v33  ;;  %v9003_v18 = vpop.eup %9002  ;;  %v8552_v33 = vld [vmem:[#allocation13 + $0x84] ss:$16 sps:$4 sm:$0xff]   ;;  %v6406_v38 = vadd.f32 1.0, %v9001_v46  ;;  %vm11337_vm1 = vcmp.eq.s32.totalorder %v11336_v53, 1  ;;  %v6437_v11 = vsel %vm2669_vm10, %v10894_v26, 0.0 }
 0x826   :  { %9012 = vrcp.f32 %v6408_v51  ;;  %v6409_v32 = vadd.f32 1.0, %v9003_v18  ;;  %vm11352_vm7 = vmmov %vm11337_vm1 }
 0x827   :  { %6949 = vmatpush1.bf16.msra.mxu0 %v8532_v31  ;;  %6992 = vmatpush1.bf16.msra.mxu1 %v8535_v54  ;;  %9014 = vrcp.f32 %v6406_v38  ;;  %v11339_v31 = vld [vmem:[#allocation40_spill] sm:$0xff] }
 0x828   :  { %6950 = vmatprep.subr.bf16.mxu0 %v8540_v5  ;;  %6993 = vmatprep.subr.bf16.mxu1 %v8543_v27  ;;  %v7036_v54 = vunpack.c.l.bf16 %v11339_v31  ;;  %v7038_v5 = vunpack.c.l.bf16 %v11340_v42 }
 0x82b   :  { %6951 = vmatpush1.bf16.msra.mxu0 %v8538_v1  ;;  %6994 = vmatpush1.bf16.msra.mxu1 %v8541_v55  ;;  %v11341_v1 = vld [vmem:[#allocation41_spill] sm:$0xff] }
 0x82c   :  { %v9005_v61 = vpop.eup %9004  ;;  %6952 = vmatprep.subr.bf16.mxu0 %v8546_v49  ;;  %6995 = vmatprep.subr.bf16.mxu1 %v8549_v29  ;;  %v7037_v55 = vunpack.c.l.bf16 %v11341_v1  ;;  %v11342_v49 = vld [vmem:[#allocation43_spill] sm:$0xff] }
 0x82d   :  { %v9007_v25 = vpop.eup %9006  ;;  %v6426_v34 = vmul.f32 %v9005_v61, %v8999_v17  ;;  %v7039_v29 = vunpack.c.l.bf16 %v11342_v49  ;;  %v7042_v61 = vunpack.c.h.bf16 %v11340_v42 }
 0x82e   :  { %v9009_v43 = vpop.eup %9008 }
 0x82f   :  { %v9011_v36 = vpop.eup %9010  ;;  %v6424_v9 = vmul.f32 %v9009_v43, %v5702_v45  ;;  %6953 = vmatpush1.bf16.msra.mxu0 %v8544_v4  ;;  %6996 = vmatpush1.bf16.msra.mxu1 %v8547_v50  ;;  %v7040_v50 = vunpack.c.h.bf16 %v11339_v31  ;;  %v7041_v43 = vunpack.c.h.bf16 %v11341_v1  ;;  %v7043_v45 = vunpack.c.h.bf16 %v11342_v49 }
 0x830   :  { %v6427_v7 = vmul.f32 %v9011_v36, %v9007_v25  ;;  %6954 = vmatprep.subr.bf16.mxu0 %v8552_v33  ;;  %6997 = vmatprep.subr.bf16.mxu1 %v8555_v12  ;;  %v9013_v20 = vpop.eup %9012 }
 0x831   :  { %v10917_v30 = vadd.f32 %v6426_v34, %v6424_v9  ;;  %v6425_v24 = vmul.f32 %v9013_v20, %v5703_v19  ;;  %v9015_v58 = vpop.eup %9014 }
 0x833   :  { %9016 = vtanh.f32 %v10917_v30  ;;  %6955 = vmatpush1.bf16.msra.mxu0 %v8550_v39  ;;  %6998 = vmatpush1.bf16.msra.mxu1 %v8553_v10  ;;  %v10920_v15 = vadd.f32 %v6427_v7, %v6425_v24 }
 0x834   :  { %6956 = vmatprep.subr.bf16.mxu0 %v8558_v57  ;;  %6999 = vmatprep.subr.bf16.mxu1 %v8561_v52  ;;  %9018 = vrcp.f32 %v6409_v32 }
 0x835   :  { %9020 = vtanh.f32 %v10920_v15 }
 0x837   :  { %6957 = vmatpush1.bf16.msra.mxu0 %v8556_v37  ;;  %7000 = vmatpush1.bf16.msra.mxu1 %v8559_v44 }
 0x838   :  { %6958 = vmatprep.subr.bf16.mxu0 %v8564_v16  ;;  %7001 = vmatprep.subr.bf16.mxu1 %v8567_v28 }
 0x83b   :  { %6959 = vmatpush1.bf16.msra.mxu0 %v8562_v35  ;;  %7002 = vmatpush1.bf16.msra.mxu1 %v8565_v63 }
 0x83c   :  { %6960 = vmatprep.subr.bf16.mxu0 %v8570_v56  ;;  %7003 = vmatprep.subr.bf16.mxu1 %v8573_v62 }
 0x83d   :  { %v9017_v2 = vpop.eup %9016 }
 0x83e   :  { %v6432_v60 = vmul.f32 %v9017_v2, %v9015_v58  ;;  %v9019_v47 = vpop.eup %9018 }
 0x83f   :  { %6961 = vmatpush1.bf16.msra.mxu0 %v8568_v13  ;;  %7004 = vmatpush1.bf16.msra.mxu1 %v8571_v41  ;;  %v9021_v8 = vpop.eup %9020 }
 0x840   :  { %v6438_v48 = vsel %vm11335_vm0, %v6432_v60, 0.0  ;;  %v6433_v14 = vmul.f32 %v9021_v8, %v9019_v47 }
 0x841   :  { %v7979_v40 = vpack.c.bf16 %v6438_v48, %v6438_v48  ;;  %v6436_v48 = vsel %vm2668_vm9, %v10887_v22, 0.0 }
 0x842   :  { %v6439_v3 = vsel %vm11337_vm1, %v6433_v14, 0.0  ;;  %v8064_v6 = vpack.c.bf16 %v6433_v14, %v6432_v60 }
 0x843   :  { %6468 = vst [vmem:[#allocation15 + $0x14] sm:$0xf] %v7979_v40  ;;  %v7980_v23 = vpack.c.bf16 %v6439_v3, %v6439_v3 }
 0x844   :  { %8065 = vmatmul.mubr.msk.bf16.vlgmr.msra.gmra.mrb[124].mxu0 %vm9989_vm8, %v8064_v6  ;;  %8068 = vmatmul.mubr.msk.bf16.vlgmr.msra.gmra.mrb[124].mxu1 %vm9989_vm8, %v8064_v6 }
 0x845   :  { %6469 = vst [vmem:[#allocation15 + $0x1c] sm:$0xf] %v7980_v23 }
 0x8f5   :  { %v6699_v27 = vpop.f32.mrb[120].mxu0  ;;  %v6742_v51 = vpop.f32.mrb[120].mxu1 }
 0x8f6   :  { %v7044_v17 = vadd.f32 %v7036_v54, %v6699_v27  ;;  %v7046_v46 = vadd.f32 %v7038_v5, %v6742_v51  ;;  %v6701_v18 = vpop.f32.mrb[121].mxu0  ;;  %v6744_v4 = vpop.f32.mrb[121].mxu1  ;;  %v11343_v5 = vld [vmem:[#allocation44_spill] sm:$0xff]  ;;  %v11344_v51 = vld [vmem:[#allocation46_spill] sm:$0xff] }
 0x8f7   :  { %v7045_v33 = vadd.f32 %v7037_v55, %v6701_v18  ;;  %v7047_v12 = vadd.f32 %v7039_v29, %v6744_v4  ;;  %v6703_v25 = vpop.f32.mrb[122].mxu0  ;;  %v6746_v34 = vpop.f32.mrb[122].mxu1  ;;  %v7056_v27 = vunpack.c.l.bf16 %v11343_v5  ;;  %v7058_v1 = vunpack.c.l.bf16 %v11344_v51  ;;  %v11345_v55 = vld [vmem:[#allocation45_spill] sm:$0xff]  ;;  %v11346_v29 = vld [vmem:[#allocation47_spill] sm:$0xff] }
 0x8f8   :  { %v7937_v38 = vmul.f32 -1.442695, %v7044_v17  ;;  %v7048_v36 = vadd.f32 %v7040_v50, %v6703_v25  ;;  %v7050_v9 = vadd.f32 %v7042_v61, %v6746_v34  ;;  %v6705_v39 = vpop.f32.mrb[123].mxu0  ;;  %v6748_v10 = vpop.f32.mrb[123].mxu1  ;;  %v7939_v32 = vmul.f32 -1.442695, %v7046_v46 }
 0x8f9   :  { %v7938_v7 = vmul.f32 -1.442695, %v7045_v33  ;;  %v7049_v57 = vadd.f32 %v7041_v43, %v6705_v39  ;;  %v7051_v52 = vadd.f32 %v7043_v45, %v6748_v10  ;;  %v7057_v49 = vunpack.c.l.bf16 %v11345_v55 }
 0x8fa   :  { %9022 = vpow2.f32 %v7937_v38  ;;  %v7940_v20 = vmul.f32 -1.442695, %v7048_v36  ;;  %v7942_v24 = vmul.f32 -1.442695, %v7050_v9  ;;  %v7059_v17 = vunpack.c.l.bf16 %v11346_v29 }
 0x8fb   :  { %v7941_v19 = vmul.f32 -1.442695, %v7049_v57  ;;  %9024 = vpow2.f32 %v7938_v7  ;;  %v7060_v46 = vunpack.c.h.bf16 %v11343_v5  ;;  %v7062_v61 = vunpack.c.h.bf16 %v11344_v51 }
 0x8fc   :  { %9026 = vpow2.f32 %v7940_v20  ;;  %v7061_v43 = vunpack.c.h.bf16 %v11345_v55  ;;  %v7063_v39 = vunpack.c.h.bf16 %v11346_v29  ;;  %v6440_v51 = vsel %vm11351_vm6, %v10917_v30, 0.0 }
 0x8fd   :  { %9028 = vpow2.f32 %v7941_v19  ;;  %v6441_v29 = vsel %vm11352_vm7, %v10920_v15, 0.0  ;;  %v11355_v15 = vld [vmem:[#allocation69_spill] sm:$0xff] }
 0x8fe   :  { %9030 = vtanh.f32 %v7047_v12  ;;  %vm11356_vm9 = vcmp.eq.s32.totalorder %v11355_v15, 1 }
 0x8ff   :  { %9032 = vpow2.f32 %v7939_v32 }
 0x900   :  { %9034 = vpow2.f32 %v7942_v24 }
 0x904   :  { %v9023_v37 = vpop.eup %9022 }
 0x905   :  { %v7092_v44 = vadd.f32 1.0, %v9023_v37  ;;  %v9025_v16 = vpop.eup %9024 }
 0x906   :  { %v9027_v28 = vpop.eup %9026  ;;  %v7093_v35 = vadd.f32 1.0, %v9025_v16 }
 0x907   :  { %9036 = vrcp.f32 %v7092_v44  ;;  %v7095_v63 = vadd.f32 1.0, %v9027_v28  ;;  %v9029_v56 = vpop.eup %9028 }
 0x908   :  { %9038 = vtanh.f32 %v7051_v52  ;;  %v7096_v62 = vadd.f32 1.0, %v9029_v56  ;;  %v9031_v13 = vpop.eup %9030 }
 0x909   :  { %9040 = vrcp.f32 %v7093_v35  ;;  %v9033_v41 = vpop.eup %9032  ;;  %v11347_v35 = vld [vmem:[#allocation77_spill] sm:$0xff] }
 0x90a   :  { %9042 = vrcp.f32 %v7095_v63  ;;  %v9035_v58 = vpop.eup %9034  ;;  %v7094_v14 = vadd.f32 1.0, %v9033_v41  ;;  %vm11348_vm3 = vcmp.eq.s32.totalorder %v11347_v35, 1 }
 0x90b   :  { %9044 = vrcp.f32 %v7096_v62  ;;  %v7097_v54 = vadd.f32 1.0, %v9035_v58  ;;  %v11349_v58 = vld [vmem:[#allocation79_spill] sm:$0xff] }
 0x90c   :  { %9046 = vrcp.f32 %v7094_v14  ;;  %vm11350_vm4 = vcmp.eq.s32.totalorder %v11349_v58, 1 }
 0x911   :  { %v9037_v2 = vpop.eup %9036 }
 0x912   :  { %v9039_v60 = vpop.eup %9038  ;;  %v7114_v47 = vmul.f32 %v9037_v2, %v9031_v13 }
 0x913   :  { %v9041_v8 = vpop.eup %9040 }
 0x914   :  { %v9043_v40 = vpop.eup %9042  ;;  %v7112_v3 = vmul.f32 %v9041_v8, %v6436_v48 }
 0x915   :  { %v7115_v6 = vmul.f32 %v9043_v40, %v9039_v60  ;;  %v9045_v23 = vpop.eup %9044 }
 0x916   :  { %v7116_v31 = vadd.f32 %v7114_v47, %v7112_v3  ;;  %v7113_v42 = vmul.f32 %v9045_v23, %v6437_v11  ;;  %v9047_v32 = vpop.eup %9046 }
 0x917   :  { %v6980_v59 = vpop.f32.mrb[124].mxu0  ;;  %v7023_v22 = vpop.f32.mrb[124].mxu1 }
 0x918   :  { %9048 = vtanh.f32 %v7116_v31  ;;  %v7117_v18 = vadd.f32 %v7115_v6, %v7113_v42  ;;  %v7064_v0 = vadd.f32 %v7056_v27, %v6980_v59  ;;  %v7066_v26 = vadd.f32 %v7058_v1, %v7023_v22  ;;  %v6982_v4 = vpop.f32.mrb[125].mxu0  ;;  %v7025_v50 = vpop.f32.mrb[125].mxu1 }
 0x919   :  { %9050 = vrcp.f32 %v7097_v54  ;;  %v7065_v33 = vadd.f32 %v7057_v49, %v6982_v4  ;;  %v7067_v12 = vadd.f32 %v7059_v17, %v7025_v50  ;;  %v6984_v25 = vpop.f32.mrb[126].mxu0  ;;  %v7027_v34 = vpop.f32.mrb[126].mxu1 }
 0x91a   :  { %9052 = vtanh.f32 %v7117_v18  ;;  %v7943_v45 = vmul.f32 -1.442695, %v7064_v0  ;;  %v7068_v38 = vadd.f32 %v7060_v46, %v6984_v25  ;;  %v6986_v36 = vpop.f32.mrb[127].mxu0  ;;  %v7029_v9 = vpop.f32.mrb[127].mxu1  ;;  %v7070_v7 = vadd.f32 %v7062_v61, %v7027_v34  ;;  %v11353_v61 = vld [vmem:[#allocation68_spill] sm:$0xff] }
 0x91b   :  { %v7944_v10 = vmul.f32 -1.442695, %v7065_v33  ;;  %v7069_v57 = vadd.f32 %v7061_v43, %v6986_v36  ;;  %v7071_v20 = vadd.f32 %v7063_v39, %v7029_v9  ;;  %v7945_v16 = vmul.f32 -1.442695, %v7066_v26 }
 0x91c   :  { %9054 = vpow2.f32 %v7943_v45  ;;  %v7946_v52 = vmul.f32 -1.442695, %v7068_v38  ;;  %v7948_v56 = vmul.f32 -1.442695, %v7070_v7  ;;  %vm11354_vm8 = vcmp.eq.s32.totalorder %v11353_v61, 1 }
 0x91d   :  { %v7947_v19 = vmul.f32 -1.442695, %v7069_v57  ;;  %9056 = vpow2.f32 %v7944_v10 }
 0x91e   :  { %9058 = vpow2.f32 %v7946_v52 }
 0x91f   :  { %9060 = vpow2.f32 %v7947_v19 }
 0x920   :  { %9062 = vtanh.f32 %v7067_v12 }
 0x921   :  { %9064 = vpow2.f32 %v7945_v16 }
 0x922   :  { %v9049_v24 = vpop.eup %9048  ;;  %9066 = vpow2.f32 %v7948_v56 }
 0x923   :  { %v7120_v37 = vmul.f32 %v9049_v24, %v9047_v32  ;;  %v9051_v44 = vpop.eup %9050 }
 0x924   :  { %v9053_v28 = vpop.eup %9052 }
 0x925   :  { %v7172_v63 = vsel %vm11348_vm3, %v7120_v37, 0.0  ;;  %v7121_v13 = vmul.f32 %v9053_v28, %v9051_v44 }
 0x926   :  { %v7981_v62 = vpack.c.bf16 %v7172_v63, %v7172_v63  ;;  %v9055_v41 = vpop.eup %9054 }
 0x927   :  { %v7173_v2 = vsel %vm11350_vm4, %v7121_v13, 0.0  ;;  %v7142_v60 = vadd.f32 1.0, %v9055_v41  ;;  %v9057_v47 = vpop.eup %9056 }
 0x928   :  { %7196 = vst [vmem:[#allocation15 + $0x70] sm:$0xf] %v7981_v62  ;;  %v7982_v8 = vpack.c.bf16 %v7173_v2, %v7173_v2  ;;  %v9059_v48 = vpop.eup %9058  ;;  %v7143_v14 = vadd.f32 1.0, %v9057_v47 }
 0x929   :  { %9068 = vrcp.f32 %v7142_v60  ;;  %v7145_v40 = vadd.f32 1.0, %v9059_v48  ;;  %v9061_v3 = vpop.eup %9060 }
 0x92a   :  { %7197 = vst [vmem:[#allocation15 + $0x78] sm:$0xf] %v7982_v8  ;;  %9070 = vtanh.f32 %v7071_v20  ;;  %v7146_v6 = vadd.f32 1.0, %v9061_v3  ;;  %v9063_v23 = vpop.eup %9062 }
 0x92b   :  { %9072 = vrcp.f32 %v7143_v14  ;;  %v9065_v11 = vpop.eup %9064 }
 0x92c   :  { %9074 = vrcp.f32 %v7145_v40  ;;  %v9067_v31 = vpop.eup %9066  ;;  %v7144_v1 = vadd.f32 1.0, %v9065_v11 }
 0x92d   :  { %9076 = vrcp.f32 %v7146_v6  ;;  %v7147_v46 = vadd.f32 1.0, %v9067_v31 }
 0x92e   :  { %9078 = vrcp.f32 %v7144_v1 }
 0x933   :  { %v9069_v54 = vpop.eup %9068 }
 0x934   :  { %v9071_v42 = vpop.eup %9070  ;;  %v7164_v5 = vmul.f32 %v9069_v54, %v9063_v23 }
 0x935   :  { %v9073_v27 = vpop.eup %9072 }
 0x936   :  { %v9075_v59 = vpop.eup %9074  ;;  %v7162_v22 = vmul.f32 %v9073_v27, %v6440_v51 }
 0x937   :  { %v7165_v55 = vmul.f32 %v9075_v59, %v9071_v42  ;;  %v9077_v49 = vpop.eup %9076 }
 0x938   :  { %v7166_v17 = vadd.f32 %v7164_v5, %v7162_v22  ;;  %v7163_v18 = vmul.f32 %v9077_v49, %v6441_v29  ;;  %v9079_v26 = vpop.eup %9078 }
 0x93a   :  { %9080 = vtanh.f32 %v7166_v17  ;;  %v7167_v0 = vadd.f32 %v7165_v55, %v7163_v18 }
 0x93b   :  { %9082 = vrcp.f32 %v7147_v46 }
 0x93c   :  { %9084 = vtanh.f32 %v7167_v0 }
 0x944   :  { %v9081_v21 = vpop.eup %9080 }
 0x945   :  { %v7170_v30 = vmul.f32 %v9081_v21, %v9079_v26  ;;  %v9083_v4 = vpop.eup %9082 }
 0x946   :  { %v9085_v50 = vpop.eup %9084 }
 0x947   :  { %v7176_v33 = vsel %vm11354_vm8, %v7170_v30, 0.0  ;;  %v7171_v25 = vmul.f32 %v9085_v50, %v9083_v4 }
 0x948   :  { %v7983_v12 = vpack.c.bf16 %v7176_v33, %v7176_v33 }
 0x949   :  { %v7177_v53 = vsel %vm11356_vm9, %v7171_v25, 0.0 }
 0x94a   :  { %7206 = vst [vmem:[#allocation15 + $0x4] sm:$0xf] %v7983_v12  ;;  %v7984_v34 = vpack.c.bf16 %v7177_v53, %v7177_v53 }
 0x94c   :  { %7207 = vst [vmem:[#allocation15 + $0xc] sm:$0xf] %v7984_v34 }
 0x94d   :  { %9205 = shalt.err (!%p9202_p8)
}
 0x94e   :  { %s9206_s7 = scalar_lea.hbm %s10985_s6, 2048 }
 0x94f   :  { %p9207_p9 = scmp.ne.s32.totalorder %s10985_s6, %s9206_s7  ;;  %p9210_p10 = scmp.lt.u32.totalorder %s9206_s7, %s10985_s6 }
 0x951   :  { %p9212_p11 = pnand %p9210_p10, %p9207_p9 }
 0x953   :  { %9215 = shalt.err (!%p9212_p11)
}
 0x954   :  { %s9237_s11 = smov 128   ;;  %s9238_s12 = smov 8  }
 0x955   :  { %7219 = dma.vmem_to_hbm [thread:$0]  %s7214_s27, 2048, %s10985_s6, [#allocation9], %s9237_s11, %s9237_s11, %s9238_s12  }
 0x956   :  { %9222 = dma.done.wait [#allocation9], 2048  }
 0x957   :  { %9223 = vsyncadd [#allocation9], 4294965248 }
 0x958   :  { %7223 = vsyncpa [#allocation8], 1 }
 0x959   :  { %7224 = vsyncpa [#allocation11], 1 }
 0x95a   :  { %7225 = vsyncpa [#allocation14], 1 }
 0x95b   :  { %7226 = vsyncpa [#allocation9], 1 }

</bundles_post_ra>
